<compile_context>
chip_gen: v7x
topology: tpu7x:2x2x1
jax: 0.10.0
libtpu: 0.0.40
codegen_flags: <defaults>
</compile_context>

<pallas_src>
import functools

import jax
import jax.numpy as jnp
from jax.experimental import pallas as pl
from jax.experimental.pallas import tpu as pltpu

INPUT_CH = 63          # module's input_ch
INPUT_PAD = 64         # lane-friendly zero-padded input width
HIDDEN = 256           # W
D = 8                  # number of pts_linears
SKIP = 4               # skips = [4]
ALPHA_PAD = 128        # lane-padded width of the MXU alpha head


def occupancy_kernel(x_ref, w05_ref, wstk_ref, bstk_ref, wa_ref, ba_ref,
                     occ_ref, h_ref, *, mxu_alpha):
    x = x_ref[...]                       # (TN, 64) bf16
    bstk = bstk_ref[...]                 # (8, 256) bf16 bias stack

    def bias_relu(acc_f32, i):
        # One f32->bf16 cast, then bias-add + ReLU on packed bf16 vregs.
        return jnp.maximum(acc_f32.astype(jnp.bfloat16) + bstk[i:i + 1], 0.0)

    # Fused K=64 matmul for layer 0 and the x-part of the layer-5 skip:
    # x @ [W0 | W5x] -> (TN, 512); slice at the (aligned) 256-lane boundary.
    pre = jnp.dot(x, w05_ref[...], preferred_element_type=jnp.float32)
    h = bias_relu(pre[:, :HIDDEN], 0)                     # layer 0 (bf16)
    pre5x = pre[:, HIDDEN:].astype(jnp.bfloat16)          # stash for layer 5

    for i in range(1, SKIP + 1):                          # layers 1..4
        acc = jnp.dot(h, wstk_ref[i - 1], preferred_element_type=jnp.float32)
        h = bias_relu(acc, i)

    # layer 5: cat([x, h]) @ W5 + b5  ==  x @ W5x + h @ W5h + b5
    acc5 = jnp.dot(h, wstk_ref[4], preferred_element_type=jnp.float32) + pre5x
    h = bias_relu(acc5, 5)

    for i, slot in ((6, 5), (7, 6)):                      # layers 6, 7
        acc = jnp.dot(h, wstk_ref[slot], preferred_element_type=jnp.float32)
        h = bias_relu(acc, i)

    if mxu_alpha:
        # Alpha head on the MXU (slack on v6e/v7x): wa padded to (256, 128)
        # bf16 with the real weight in lane 0.
        alpha = jnp.dot(h, wa_ref[...],
                        preferred_element_type=jnp.float32)[:, :1]
    else:
        # v5e and older (MXU-bound): keep the 1-column head on the VPU/XLU.
        alpha = jnp.sum(h.astype(jnp.float32) * wa_ref[...],
                        axis=-1, keepdims=True)
    alpha = alpha + ba_ref[...]
    occ_ref[...] = 1.0 - jnp.exp(-jnp.maximum(alpha, 0.0))
    h_ref[...] = h                                        # bf16 writeback


def init_params(key):
    """Deterministic PyTorch-Linear-style init (uniform +-1/sqrt(fan_in))."""
    params = []   # list of (weight[in,out], bias[1,out]) in layer order, f32
    keys = jax.random.split(key, 2 * (D + 1))
    k = 0

    def linear(fan_in, fan_out, bias_fill=None):
        nonlocal k
        bound = 1.0 / jnp.sqrt(jnp.float32(fan_in))
        w = jax.random.uniform(keys[k], (fan_in, fan_out), jnp.float32,
                               -bound, bound)
        k += 1
        if bias_fill is None:
            b = jax.random.uniform(keys[k], (1, fan_out), jnp.float32,
                                   -bound, bound)
        else:
            b = jnp.full((1, fan_out), bias_fill, jnp.float32)
        k += 1
        return w, b

    params.append(linear(INPUT_CH, HIDDEN))                        # layer 0
    for i in range(D - 1):                                         # layers 1..7
        in_ch = HIDDEN + (INPUT_CH if i == SKIP else 0)
        params.append(linear(in_ch, HIDDEN))
    params.append(linear(HIDDEN, 1, bias_fill=0.693))              # alpha
    return params


def pack_params(params, mxu_alpha):
    """Pack weights into few, large, kernel-ready arrays (fewer DMAs)."""
    ws = [w for (w, _) in params[:D]]
    bs = [b for (_, b) in params[:D]]

    # layer 0 and the x-part of the layer-5 skip weight, zero-padded 63 -> 64
    # on the contraction dim and fused along the output dim -> (64, 512).
    w0 = jnp.pad(ws[0], ((0, INPUT_PAD - INPUT_CH), (0, 0)))
    w5 = ws[SKIP + 1]                                      # (319, 256)
    w5x = jnp.pad(w5[:INPUT_CH], ((0, INPUT_PAD - INPUT_CH), (0, 0)))
    w5h = w5[INPUT_CH:]                                    # (256, 256)
    w05 = jnp.concatenate([w0, w5x], axis=1).astype(jnp.bfloat16)

    # The seven 256x256 weights: layers 1-4, layer-5 h-part, layers 6-7.
    wstk = jnp.stack([ws[1], ws[2], ws[3], ws[4], w5h, ws[6], ws[7]],
                     axis=0).astype(jnp.bfloat16)          # (7, 256, 256)
    bstk = jnp.concatenate(bs, axis=0).astype(jnp.bfloat16)  # (8, 256)

    wa, ba = params[D]                                     # (256, 1), (1, 1)
    if mxu_alpha:
        wa_in = jnp.pad(wa, ((0, 0), (0, ALPHA_PAD - 1))).astype(jnp.bfloat16)
    else:
        wa_in = wa.T                                       # (1, 256) f32 row
    return [w05, wstk, bstk, wa_in, ba]


def _mxu_alpha_default():
    # v6e/v7x: alpha head on the MXU; v5e and older (MXU-bound): VPU path.
    try:
        kind = jax.devices()[0].device_kind.lower()
    except Exception:
        return True
    return not any(tag in kind for tag in ("v2", "v3", "v4", "v5"))


def _choose_tile_n(n):
    # ~1024 rows/step fills the MXU M dim and amortizes the ~0.35us grid-step
    # cost; keep the number of tiles even so v7x's two TensorCores balance.
    tiles = max(1, pl.cdiv(n, 1024))
    if tiles > 1 and tiles % 2:
        tiles += 1
    return max(8, pl.cdiv(pl.cdiv(n, tiles), 8) * 8)


def occupancy_forward(light_pts, params, tile_n=None, mxu_alpha=None):
    N = light_pts.shape[0]
    if mxu_alpha is None:
        mxu_alpha = _mxu_alpha_default()
    if tile_n is None:
        tile_n = _choose_tile_n(N)
    tile_n = max(8, pl.cdiv(tile_n, 8) * 8)                # sublane multiple
    n_pad = pl.cdiv(N, tile_n) * tile_n

    # Pad point count to a tile multiple, feature dim 63 -> 64; cast to bf16.
    x = jnp.pad(light_pts, ((0, n_pad - N), (0, INPUT_PAD - INPUT_CH)))
    x = x.astype(jnp.bfloat16)

    packed = pack_params(params, mxu_alpha)
    w05, wstk, bstk, wa_in, ba = packed

    # Weights/biases are grid-invariant (constant index_map) -> fetched once.
    in_specs = [
        pl.BlockSpec((tile_n, INPUT_PAD), lambda i: (i, 0)),   # x tile
        pl.BlockSpec(w05.shape, lambda i: (0, 0)),             # [W0 | W5x]
        pl.BlockSpec(wstk.shape, lambda i: (0, 0, 0)),         # 7x 256x256
        pl.BlockSpec(bstk.shape, lambda i: (0, 0)),            # bias stack
        pl.BlockSpec(wa_in.shape, lambda i: (0, 0)),           # alpha weight
        pl.BlockSpec(ba.shape, lambda i: (0, 0)),              # alpha bias
    ]
    out_specs = [pl.BlockSpec((tile_n, 1), lambda i: (i, 0)),
                 pl.BlockSpec((tile_n, HIDDEN), lambda i: (i, 0))]
    out_shape = (jax.ShapeDtypeStruct((n_pad, 1), jnp.float32),
                 jax.ShapeDtypeStruct((n_pad, HIDDEN), jnp.bfloat16))

    flops_per_pt = 2 * (INPUT_PAD * 2 * HIDDEN             # fused layer 0 + 5x
                        + 7 * HIDDEN * HIDDEN              # layers 1-7 (h parts)
                        + HIDDEN * (ALPHA_PAD if mxu_alpha else 1))
    weight_bytes = int(sum(int(p.size) * p.dtype.itemsize for p in packed))
    cost = pl.CostEstimate(
        flops=int(n_pad) * flops_per_pt,
        transcendentals=int(n_pad),
        bytes_accessed=weight_bytes + int(n_pad) * (INPUT_PAD * 2
                                                    + HIDDEN * 2 + 4))

    occ, h = pl.pallas_call(
        functools.partial(occupancy_kernel, mxu_alpha=mxu_alpha),
        grid=(n_pad // tile_n,),
        in_specs=in_specs,
        out_specs=out_specs,
        out_shape=out_shape,
        compiler_params=pltpu.CompilerParams(
            dimension_semantics=("parallel",)),
        cost_estimate=cost,
    )(x, *packed)

    # Module returns f32; the bf16 h writeback is upcast outside the kernel.
    return occ[:N], h[:N].astype(jnp.float32)


def reference_forward(x, params):
    """Pure-JAX f32 mirror of the PyTorch forward, for validation."""
    h = x
    for i in range(D):
        w, b = params[i]
        h = jnp.maximum(h @ w + b, 0.0)
        if i == SKIP:
            h = jnp.concatenate([x, h], axis=-1)
    wa, ba = params[D]
    alpha = h @ wa + ba
    occ = 1.0 - jnp.exp(-jnp.maximum(alpha, 0.0))
    return occ, h


if __name__ == "__main__":
    key = jax.random.PRNGKey(0)
    k_param, k_x = jax.random.split(key)

    params = init_params(k_param)
    N = 1000                                  # ragged point count
    light_pts = jax.random.normal(k_x, (N, INPUT_CH), jnp.float32)

    occ, h = occupancy_forward(light_pts, params, tile_n=512)  # grid of 2 tiles
    occ, h = jax.block_until_ready((occ, h))

    occ_ref, h_ref = reference_forward(light_pts, params)
    assert occ.shape == (N, 1) and h.shape == (N, HIDDEN)
    # bf16 weights + bf16 activations (f32 MXU accumulation) vs f32 reference:
    # atol-dominant tolerances.
    assert jnp.allclose(occ, occ_ref, atol=5e-2, rtol=5e-2), float(
        jnp.max(jnp.abs(occ - occ_ref)))
    assert jnp.allclose(h, h_ref, atol=5e-2, rtol=5e-2), float(
        jnp.max(jnp.abs(h - h_ref)))

    print("KERNEL_OK")
</pallas_src>

<mosaic_0001>
module attributes {stable_mosaic.version = 11 : i64} {
  func.func @occupancy_kernel(%arg0: i32, %arg1: memref<512x64xbf16, #tpu.memory_space<vmem>>, %arg2: memref<64x512xbf16, #tpu.memory_space<vmem>>, %arg3: memref<7x256x256xbf16, #tpu.memory_space<vmem>>, %arg4: memref<8x256xbf16, #tpu.memory_space<vmem>>, %arg5: memref<256x128xbf16, #tpu.memory_space<vmem>>, %arg6: memref<1x1xf32, #tpu.memory_space<vmem>>, %arg7: memref<512x1xf32, #tpu.memory_space<vmem>>, %arg8: memref<512x256xbf16, #tpu.memory_space<vmem>>) attributes {dimension_semantics = [#tpu.dimension_semantics<parallel>], iteration_bounds = array<i64: 2>, scalar_prefetch = 0 : i64, scratch_operands = 0 : i64, tpu.core_type = #tpu.core_type<tc>, window_params = [{transform_indices = @transform_0, window_bounds = array<i64: 512, 64>}, {pipeline_mode = #tpu.pipeline_mode<synchronous>, transform_indices = @transform_1, window_bounds = array<i64: 64, 512>}, {pipeline_mode = #tpu.pipeline_mode<synchronous>, transform_indices = @transform_2, window_bounds = array<i64: 7, 256, 256>}, {pipeline_mode = #tpu.pipeline_mode<synchronous>, transform_indices = @transform_3, window_bounds = array<i64: 8, 256>}, {pipeline_mode = #tpu.pipeline_mode<synchronous>, transform_indices = @transform_4, window_bounds = array<i64: 256, 128>}, {pipeline_mode = #tpu.pipeline_mode<synchronous>, transform_indices = @transform_5, window_bounds = array<i64: 1, 1>}, {transform_indices = @transform_6, window_bounds = array<i64: 512, 1>}, {transform_indices = @transform_7, window_bounds = array<i64: 512, 256>}]} {
    %c0 = arith.constant 0 : index
    %c0_0 = arith.constant 0 : index
    %0 = vector.load %arg1[%c0, %c0_0] : memref<512x64xbf16, #tpu.memory_space<vmem>>, vector<512x64xbf16>
    %c0_1 = arith.constant 0 : index
    %c0_2 = arith.constant 0 : index
    %1 = vector.load %arg4[%c0_1, %c0_2] : memref<8x256xbf16, #tpu.memory_space<vmem>>, vector<8x256xbf16>
    %c0_3 = arith.constant 0 : index
    %c0_4 = arith.constant 0 : index
    %2 = vector.load %arg2[%c0_3, %c0_4] : memref<64x512xbf16, #tpu.memory_space<vmem>>, vector<64x512xbf16>
    %cst = arith.constant dense<0.000000e+00> : vector<512x512xf32>
    %3 = tpu.matmul %0, %2, %cst {dimension_numbers = #tpu.dot_dimension_numbers<[1], [0], [0], [1], [0, 0, 1, 1], [], []>} : vector<512x64xbf16>, vector<64x512xbf16>, vector<512x512xf32> -> vector<512x512xf32>
    %4 = vector.extract_strided_slice %3 {offsets = [0, 0], sizes = [512, 256], strides = [1, 1]} : vector<512x512xf32> to vector<512x256xf32>
    %5 = arith.truncf %4 : vector<512x256xf32> to vector<512x256xbf16>
    %6 = vector.extract_strided_slice %1 {offsets = [0, 0], sizes = [1, 256], strides = [1, 1]} : vector<8x256xbf16> to vector<1x256xbf16>
    %7 = vector.broadcast %6 : vector<1x256xbf16> to vector<512x256xbf16>
    %8 = arith.addf %5, %7 : vector<512x256xbf16>
    %cst_5 = arith.constant 0.000000e+00 : bf16
    %9 = vector.broadcast %cst_5 : bf16 to vector<512x256xbf16>
    %10 = arith.maximumf %8, %9 : vector<512x256xbf16>
    %11 = vector.extract_strided_slice %3 {offsets = [0, 256], sizes = [512, 256], strides = [1, 1]} : vector<512x512xf32> to vector<512x256xf32>
    %12 = arith.truncf %11 : vector<512x256xf32> to vector<512x256xbf16>
    %c0_6 = arith.constant 0 : index
    %c0_7 = arith.constant 0 : index
    %c0_8 = arith.constant 0 : index
    %13 = vector.load %arg3[%c0_6, %c0_7, %c0_8] : memref<7x256x256xbf16, #tpu.memory_space<vmem>>, vector<1x256x256xbf16>
    %14 = vector.shape_cast %13 : vector<1x256x256xbf16> to vector<256x256xbf16>
    %cst_9 = arith.constant dense<0.000000e+00> : vector<512x256xf32>
    %15 = tpu.matmul %10, %14, %cst_9 {dimension_numbers = #tpu.dot_dimension_numbers<[1], [0], [0], [1], [0, 0, 1, 1], [], []>} : vector<512x256xbf16>, vector<256x256xbf16>, vector<512x256xf32> -> vector<512x256xf32>
    %16 = arith.truncf %15 : vector<512x256xf32> to vector<512x256xbf16>
    %17 = vector.extract_strided_slice %1 {offsets = [1, 0], sizes = [1, 256], strides = [1, 1]} : vector<8x256xbf16> to vector<1x256xbf16>
    %18 = vector.broadcast %17 : vector<1x256xbf16> to vector<512x256xbf16>
    %19 = arith.addf %16, %18 : vector<512x256xbf16>
    %cst_10 = arith.constant 0.000000e+00 : bf16
    %20 = vector.broadcast %cst_10 : bf16 to vector<512x256xbf16>
    %21 = arith.maximumf %19, %20 : vector<512x256xbf16>
    %c1 = arith.constant 1 : index
    %c0_11 = arith.constant 0 : index
    %c0_12 = arith.constant 0 : index
    %22 = vector.load %arg3[%c1, %c0_11, %c0_12] : memref<7x256x256xbf16, #tpu.memory_space<vmem>>, vector<1x256x256xbf16>
    %23 = vector.shape_cast %22 : vector<1x256x256xbf16> to vector<256x256xbf16>
    %cst_13 = arith.constant dense<0.000000e+00> : vector<512x256xf32>
    %24 = tpu.matmul %21, %23, %cst_13 {dimension_numbers = #tpu.dot_dimension_numbers<[1], [0], [0], [1], [0, 0, 1, 1], [], []>} : vector<512x256xbf16>, vector<256x256xbf16>, vector<512x256xf32> -> vector<512x256xf32>
    %25 = arith.truncf %24 : vector<512x256xf32> to vector<512x256xbf16>
    %26 = vector.extract_strided_slice %1 {offsets = [2, 0], sizes = [1, 256], strides = [1, 1]} : vector<8x256xbf16> to vector<1x256xbf16>
    %27 = vector.broadcast %26 : vector<1x256xbf16> to vector<512x256xbf16>
    %28 = arith.addf %25, %27 : vector<512x256xbf16>
    %cst_14 = arith.constant 0.000000e+00 : bf16
    %29 = vector.broadcast %cst_14 : bf16 to vector<512x256xbf16>
    %30 = arith.maximumf %28, %29 : vector<512x256xbf16>
    %c2 = arith.constant 2 : index
    %c0_15 = arith.constant 0 : index
    %c0_16 = arith.constant 0 : index
    %31 = vector.load %arg3[%c2, %c0_15, %c0_16] : memref<7x256x256xbf16, #tpu.memory_space<vmem>>, vector<1x256x256xbf16>
    %32 = vector.shape_cast %31 : vector<1x256x256xbf16> to vector<256x256xbf16>
    %cst_17 = arith.constant dense<0.000000e+00> : vector<512x256xf32>
    %33 = tpu.matmul %30, %32, %cst_17 {dimension_numbers = #tpu.dot_dimension_numbers<[1], [0], [0], [1], [0, 0, 1, 1], [], []>} : vector<512x256xbf16>, vector<256x256xbf16>, vector<512x256xf32> -> vector<512x256xf32>
    %34 = arith.truncf %33 : vector<512x256xf32> to vector<512x256xbf16>
    %35 = vector.extract_strided_slice %1 {offsets = [3, 0], sizes = [1, 256], strides = [1, 1]} : vector<8x256xbf16> to vector<1x256xbf16>
    %36 = vector.broadcast %35 : vector<1x256xbf16> to vector<512x256xbf16>
    %37 = arith.addf %34, %36 : vector<512x256xbf16>
    %cst_18 = arith.constant 0.000000e+00 : bf16
    %38 = vector.broadcast %cst_18 : bf16 to vector<512x256xbf16>
    %39 = arith.maximumf %37, %38 : vector<512x256xbf16>
    %c3 = arith.constant 3 : index
    %c0_19 = arith.constant 0 : index
    %c0_20 = arith.constant 0 : index
    %40 = vector.load %arg3[%c3, %c0_19, %c0_20] : memref<7x256x256xbf16, #tpu.memory_space<vmem>>, vector<1x256x256xbf16>
    %41 = vector.shape_cast %40 : vector<1x256x256xbf16> to vector<256x256xbf16>
    %cst_21 = arith.constant dense<0.000000e+00> : vector<512x256xf32>
    %42 = tpu.matmul %39, %41, %cst_21 {dimension_numbers = #tpu.dot_dimension_numbers<[1], [0], [0], [1], [0, 0, 1, 1], [], []>} : vector<512x256xbf16>, vector<256x256xbf16>, vector<512x256xf32> -> vector<512x256xf32>
    %43 = arith.truncf %42 : vector<512x256xf32> to vector<512x256xbf16>
    %44 = vector.extract_strided_slice %1 {offsets = [4, 0], sizes = [1, 256], strides = [1, 1]} : vector<8x256xbf16> to vector<1x256xbf16>
    %45 = vector.broadcast %44 : vector<1x256xbf16> to vector<512x256xbf16>
    %46 = arith.addf %43, %45 : vector<512x256xbf16>
    %cst_22 = arith.constant 0.000000e+00 : bf16
    %47 = vector.broadcast %cst_22 : bf16 to vector<512x256xbf16>
    %48 = arith.maximumf %46, %47 : vector<512x256xbf16>
    %c4 = arith.constant 4 : index
    %c0_23 = arith.constant 0 : index
    %c0_24 = arith.constant 0 : index
    %49 = vector.load %arg3[%c4, %c0_23, %c0_24] : memref<7x256x256xbf16, #tpu.memory_space<vmem>>, vector<1x256x256xbf16>
    %50 = vector.shape_cast %49 : vector<1x256x256xbf16> to vector<256x256xbf16>
    %cst_25 = arith.constant dense<0.000000e+00> : vector<512x256xf32>
    %51 = tpu.matmul %48, %50, %cst_25 {dimension_numbers = #tpu.dot_dimension_numbers<[1], [0], [0], [1], [0, 0, 1, 1], [], []>} : vector<512x256xbf16>, vector<256x256xbf16>, vector<512x256xf32> -> vector<512x256xf32>
    %52 = arith.extf %12 : vector<512x256xbf16> to vector<512x256xf32>
    %53 = arith.addf %51, %52 : vector<512x256xf32>
    %54 = arith.truncf %53 : vector<512x256xf32> to vector<512x256xbf16>
    %55 = vector.extract_strided_slice %1 {offsets = [5, 0], sizes = [1, 256], strides = [1, 1]} : vector<8x256xbf16> to vector<1x256xbf16>
    %56 = vector.broadcast %55 : vector<1x256xbf16> to vector<512x256xbf16>
    %57 = arith.addf %54, %56 : vector<512x256xbf16>
    %cst_26 = arith.constant 0.000000e+00 : bf16
    %58 = vector.broadcast %cst_26 : bf16 to vector<512x256xbf16>
    %59 = arith.maximumf %57, %58 : vector<512x256xbf16>
    %c5 = arith.constant 5 : index
    %c0_27 = arith.constant 0 : index
    %c0_28 = arith.constant 0 : index
    %60 = vector.load %arg3[%c5, %c0_27, %c0_28] : memref<7x256x256xbf16, #tpu.memory_space<vmem>>, vector<1x256x256xbf16>
    %61 = vector.shape_cast %60 : vector<1x256x256xbf16> to vector<256x256xbf16>
    %cst_29 = arith.constant dense<0.000000e+00> : vector<512x256xf32>
    %62 = tpu.matmul %59, %61, %cst_29 {dimension_numbers = #tpu.dot_dimension_numbers<[1], [0], [0], [1], [0, 0, 1, 1], [], []>} : vector<512x256xbf16>, vector<256x256xbf16>, vector<512x256xf32> -> vector<512x256xf32>
    %63 = arith.truncf %62 : vector<512x256xf32> to vector<512x256xbf16>
    %64 = vector.extract_strided_slice %1 {offsets = [6, 0], sizes = [1, 256], strides = [1, 1]} : vector<8x256xbf16> to vector<1x256xbf16>
    %65 = vector.broadcast %64 : vector<1x256xbf16> to vector<512x256xbf16>
    %66 = arith.addf %63, %65 : vector<512x256xbf16>
    %cst_30 = arith.constant 0.000000e+00 : bf16
    %67 = vector.broadcast %cst_30 : bf16 to vector<512x256xbf16>
    %68 = arith.maximumf %66, %67 : vector<512x256xbf16>
    %c6 = arith.constant 6 : index
    %c0_31 = arith.constant 0 : index
    %c0_32 = arith.constant 0 : index
    %69 = vector.load %arg3[%c6, %c0_31, %c0_32] : memref<7x256x256xbf16, #tpu.memory_space<vmem>>, vector<1x256x256xbf16>
    %70 = vector.shape_cast %69 : vector<1x256x256xbf16> to vector<256x256xbf16>
    %cst_33 = arith.constant dense<0.000000e+00> : vector<512x256xf32>
    %71 = tpu.matmul %68, %70, %cst_33 {dimension_numbers = #tpu.dot_dimension_numbers<[1], [0], [0], [1], [0, 0, 1, 1], [], []>} : vector<512x256xbf16>, vector<256x256xbf16>, vector<512x256xf32> -> vector<512x256xf32>
    %72 = arith.truncf %71 : vector<512x256xf32> to vector<512x256xbf16>
    %73 = vector.extract_strided_slice %1 {offsets = [7, 0], sizes = [1, 256], strides = [1, 1]} : vector<8x256xbf16> to vector<1x256xbf16>
    %74 = vector.broadcast %73 : vector<1x256xbf16> to vector<512x256xbf16>
    %75 = arith.addf %72, %74 : vector<512x256xbf16>
    %cst_34 = arith.constant 0.000000e+00 : bf16
    %76 = vector.broadcast %cst_34 : bf16 to vector<512x256xbf16>
    %77 = arith.maximumf %75, %76 : vector<512x256xbf16>
    %c0_35 = arith.constant 0 : index
    %c0_36 = arith.constant 0 : index
    %78 = vector.load %arg5[%c0_35, %c0_36] : memref<256x128xbf16, #tpu.memory_space<vmem>>, vector<256x128xbf16>
    %cst_37 = arith.constant dense<0.000000e+00> : vector<512x128xf32>
    %79 = tpu.matmul %77, %78, %cst_37 {dimension_numbers = #tpu.dot_dimension_numbers<[1], [0], [0], [1], [0, 0, 1, 1], [], []>} : vector<512x256xbf16>, vector<256x128xbf16>, vector<512x128xf32> -> vector<512x128xf32>
    %80 = vector.extract_strided_slice %79 {offsets = [0, 0], sizes = [512, 1], strides = [1, 1]} : vector<512x128xf32> to vector<512x1xf32>
    %c0_38 = arith.constant 0 : index
    %c0_39 = arith.constant 0 : index
    %81 = vector.load %arg6[%c0_38, %c0_39] : memref<1x1xf32, #tpu.memory_space<vmem>>, vector<1x1xf32>
    %82 = vector.broadcast %81 : vector<1x1xf32> to vector<512x1xf32>
    %83 = arith.addf %80, %82 : vector<512x1xf32>
    %cst_40 = arith.constant 0.000000e+00 : f32
    %84 = vector.broadcast %cst_40 : f32 to vector<512x1xf32>
    %85 = arith.maximumf %83, %84 : vector<512x1xf32>
    %cst_41 = arith.constant 0.000000e+00 : f32
    %86 = vector.broadcast %cst_41 : f32 to vector<512x1xf32>
    %87 = arith.subf %86, %85 : vector<512x1xf32>
    %88 = math.exp %87 : vector<512x1xf32>
    %cst_42 = arith.constant 1.000000e+00 : f32
    %89 = vector.broadcast %cst_42 : f32 to vector<512x1xf32>
    %90 = arith.subf %89, %88 : vector<512x1xf32>
    %c0_43 = arith.constant 0 : index
    %c0_44 = arith.constant 0 : index
    %91 = vector.load %arg7[%c0_43, %c0_44] : memref<512x1xf32, #tpu.memory_space<vmem>>, vector<512x1xf32>
    tpu.vector_store %arg7[%c0_43, %c0_44], %90 {strides = array<i32>} : memref<512x1xf32, #tpu.memory_space<vmem>>, vector<512x1xf32>,
    %c0_45 = arith.constant 0 : index
    %c0_46 = arith.constant 0 : index
    %92 = vector.load %arg8[%c0_45, %c0_46] : memref<512x256xbf16, #tpu.memory_space<vmem>>, vector<512x256xbf16>
    tpu.vector_store %arg8[%c0_45, %c0_46], %77 {strides = array<i32>} : memref<512x256xbf16, #tpu.memory_space<vmem>>, vector<512x256xbf16>,
    return
  }
  func.func @transform_0(%arg0: i32) -> (i32, i32) {
    %c0_i32 = arith.constant 0 : i32
    %c0_i32_0 = arith.constant 0 : i32
    return %arg0, %c0_i32 : i32, i32
  }
  func.func @transform_1(%arg0: i32) -> (i32, i32) {
    %c0_i32 = arith.constant 0 : i32
    %c0_i32_0 = arith.constant 0 : i32
    %c0_i32_1 = arith.constant 0 : i32
    return %c0_i32, %c0_i32_0 : i32, i32
  }
  func.func @transform_2(%arg0: i32) -> (i32, i32, i32) {
    %c0_i32 = arith.constant 0 : i32
    %c0_i32_0 = arith.constant 0 : i32
    %c0_i32_1 = arith.constant 0 : i32
    %c0_i32_2 = arith.constant 0 : i32
    return %c0_i32, %c0_i32_0, %c0_i32_1 : i32, i32, i32
  }
  func.func @transform_3(%arg0: i32) -> (i32, i32) {
    %c0_i32 = arith.constant 0 : i32
    %c0_i32_0 = arith.constant 0 : i32
    %c0_i32_1 = arith.constant 0 : i32
    return %c0_i32, %c0_i32_0 : i32, i32
  }
  func.func @transform_4(%arg0: i32) -> (i32, i32) {
    %c0_i32 = arith.constant 0 : i32
    %c0_i32_0 = arith.constant 0 : i32
    %c0_i32_1 = arith.constant 0 : i32
    return %c0_i32, %c0_i32_0 : i32, i32
  }
  func.func @transform_5(%arg0: i32) -> (i32, i32) {
    %c0_i32 = arith.constant 0 : i32
    %c0_i32_0 = arith.constant 0 : i32
    %c0_i32_1 = arith.constant 0 : i32
    return %c0_i32, %c0_i32_0 : i32, i32
  }
  func.func @transform_6(%arg0: i32) -> (i32, i32) {
    %c0_i32 = arith.constant 0 : i32
    %c0_i32_0 = arith.constant 0 : i32
    return %arg0, %c0_i32 : i32, i32
  }
  func.func @transform_7(%arg0: i32) -> (i32, i32) {
    %c0_i32 = arith.constant 0 : i32
    %c0_i32_0 = arith.constant 0 : i32
    return %arg0, %c0_i32 : i32, i32
  }
}

</mosaic_0001>

<bundles_post_ra>
// kernel: tpu_custom_call.1
= control target key start
LH: loop header
LB: loop body
LE: loop exit
PB: predicated region body
PF: predicated region fallthrough
CT: control target
= control target key end

     0   :  { %s12325_s0 = inlined_call_operand.vmem [shape: bf16[1024,64], index: 0, kind: input, shape index: {}]   ;;  %s12326_s1 = inlined_call_operand.vmem [shape: bf16[64,512], index: 1, kind: input, shape index: {}]   ;;  %s12327_s2 = inlined_call_operand.hbm [shape: bf16[7,256,256], index: 2, kind: input, shape index: {}]   ;;  %s12328_s3 = inlined_call_operand.vmem [shape: bf16[8,256], index: 3, kind: input, shape index: {}]   ;;  %s12329_s4 = inlined_call_operand.vmem [shape: bf16[256,128], index: 4, kind: input, shape index: {}]   ;;  %s12330_s5 = inlined_call_operand.<no memory space> [shape: f32[1,1], index: 5, kind: input, shape index: {}]   ;;  %s12331_s6 = inlined_call_operand.vmem [shape: f32[1024,1], index: 6, kind: output, shape index: {0}]   ;;  %s12332_s7 = inlined_call_operand.hbm [shape: bf16[1024,256], index: 7, kind: output, shape index: {1}]  }
   0x1   :  { %v13_v0 = vstv %s12330_s5 }
   0x2   :  { %14 = vst [vmem:[#allocation2] sm:$0x1] %v13_v0 }
   0x3   :  { %15 = vsyncpa [#allocation4], 0 }
   0x4   :  { %16 = vsyncpa [#allocation5], 0 }
   0x5   :  { %18 = vsyncpa [#allocation5 + $0x1], 0  ;;  %s9624_s26 = smov 0   ;;  %s9626_s27 = smov 0  }
   0x6   :  { %s9628_s28 = smov 0   ;;  %s9630_s29 = smov 0  }
   0x7 LB: > { %s9645_s5 = sadd.s32 4294967295, %s9572_s29   ;;  %s8446_s30 = sadd.s32 4294967294, %s9572_s29   ;;  %s9572_s29 = sphi %s9630_s29, %s12472_s29   ;;  %s9568_s28 = sphi %s9628_s28, %s12471_s28   ;;  %s9564_s27 = sphi %s9626_s27, %s12470_s27   ;;  %s9560_s26 = sphi %s9624_s26, %s12469_s26  }
   0x8   : > { %s9649_s8 = sadd.s32 1, %s9572_s29   ;;  %s188_s9 = sadd.s32 1, %s9568_s28 }
   0x9   : > { %s185_s10 = ssub.s32 %s9572_s29, %s9649_s8  ;;  %p198_p0 = scmp.ne.s32.totalorder %s9568_s28, %s9564_s27 }
   0xa   : > { %p186_p1 = scmp.eq.s32.totalorder %s185_s10, 0  ;;  %p199_p2 = scmp.eq.s32.totalorder %s9645_s5, 1 }
   0xb   : > { %p204_p3 = scmp.ne.s32.totalorder %s9564_s27, %s9560_s26  ;;  %p205_p4 = scmp.eq.s32.totalorder %s8446_s30, 1 }
   0xc   : > { %s9660_s11 = scalar_select %p186_p1, %s9568_s28, %s188_s9  }
   0xd   : > { %p9662_p5 = por %p199_p2, %p198_p0  ;;  %p9666_p6 = por %p205_p4, %p204_p3 }
   0xe   : > { %p8447_p7 = scmp.ge.s32.totalorder %s9572_s29, 1  ;;  %p212_p8 = scmp.lt.s32.totalorder %s9572_s29, 3 }
   0xf   : > { %s12370_s12 = scalar_select %p9662_p5, 1, 0 }
  0x10   : > { %s12371_s13 = scalar_select %p9666_p6, 1, 0 }
  0x11   : > { %p12333_p9 = scmp.eq.s32.totalorder %s9645_s5, 0  ;;  %p9673_p10 = pnand %p8447_p7, %p212_p8 }
  0x12   : > { %s9574_s15 = smov [#allocation3]   ;;  %s9478_s20 = scalar_lea.hbm %s12327_s2, 28672 }
  0x13   : > { %s12372_s14 = scalar_select %p9673_p10, 1, 0 }
  0x14   : > { %s227_s16 = sshll.u32 %s9574_s15, 4  ;;  %p8890_p11 = pneg %p9673_p10  ;;  %s228_s16 = int_to_ptr.vmem [resolvable:$true] %s227_s16 }
  0x15   : > { %p9479_p13 = scmp.ne.s32.totalorder %s12327_s2, %s9478_s20  ;;  %p9485_p3 = scmp.lt.u32.totalorder %s9478_s20, %s12327_s2 }
  0x16   : > { %p9681_p12 = pnand %p12333_p9, %p8890_p11 }
  0x18   : > { %p9480_p0 = pneg %p9681_p12 }
  0x1a   : > { %p9481_p1 = pnand %p9480_p0, %p9479_p13 }
  0x1c   : > { %p9482_p2 = pneg %p9481_p1 }
  0x1e   : > { %p9487_p4 = pnand %p9485_p3, %p9482_p2 }
  0x20   : > { %9490 = shalt.err (!%p9487_p4)
}
  0x21   : > { %s9491_s25 = scalar_lea.vmem %s228_s16, 28672  ;;  %p9499_p9 = scmp.lt.s32.totalorder %s228_s16, %s228_s16 }
  0x22   : > { %p9492_p7 = scmp.ne.s32.totalorder %s228_s16, %s9491_s25  ;;  %p9500_p6 = scmp.lt.s32.totalorder %s9491_s25, %s9491_s25 }
  0x24   : > { %p9494_p8 = pnand %p9492_p7, %p9480_p0  ;;  %p9501_p5 = por %p9500_p6, %p9499_p9 }
  0x26   : > { %p9495_p11 = pneg %p9494_p8 }
  0x28   : > { %p9502_p10 = pnand %p9501_p5, %p9495_p11 }
  0x2a   : > { %9505 = shalt.err (!%p9502_p10)
}
  0x2b   : > { %s9575_s30 = smov 128   ;;  %s9576_s9 = smov 8  }
  0x2c   : > { %8893 = dma.hbm_to_vmem [thread:$0]  (!%p9681_p12), %s12327_s2, 28672, %s228_s16, [#allocation4], %s9575_s30, %s9575_s30, %s9576_s9  }
  0x2d   : > { %p12374_p13 = scmp.ne.s32.totalorder %s12372_s14, 0 }
  0x2f   : > { %261 = sbr.rel (%p12374_p13) target bundleno = 2371 (0x943), region = 44 }
  0x36   : > { %p12375_p1 = scmp.eq.s32.totalorder %s9645_s5, 0 }
  0x38   : > { %9551 = dma.done.wait (%p12375_p1), [#allocation4], 28672   ;;  %p12376_p0 = pmov %p12375_p1 }
  0x39   : > { %s8453_s18 = sshll.u32 %s9645_s5, 6  ;;  %v12350_v1 = vmov 0   ;;  %v8939_v2 = vld [vmem:[%s12326_s1 + $0x4] ss:$16 sps:$4 sm:$0xff]   ;;  %v8941_v3 = vld [vmem:[%s12326_s1] ss:$16 sps:$4 sm:$0xff]  }
  0x3a   : > { %9553 = vsyncadd (%p12376_p0), [#allocation4], 4294938624  ;;  %762 = vmatprep.mubr.bf16.mxu0 %v12350_v1  ;;  %p299_p5 = scmp.lt.s32.totalorder %s8453_s18, 127  ;;  %1115 = vmatprep.mubr.bf16.mxu1 %v12350_v1  ;;  %v8942_v4 = vld [vmem:[%s12326_s1 + $0x24] ss:$16 sps:$4 sm:$0xff]   ;;  %vm633_vm0 = vcmask 523264  }
  0x3b   : > { %730 = vmatprep.subr.bf16.mxu0 %v8939_v2  ;;  %v8944_v5 = vld [vmem:[%s12326_s1 + $0x20] ss:$16 sps:$4 sm:$0xff]   ;;  %v8945_v6 = vld [vmem:[%s12326_s1 + $0x44] ss:$16 sps:$4 sm:$0xff]   ;;  %v9016_v46 = vld [vmem:[%s12326_s1 + $0xc] ss:$16 sps:$4 sm:$0xff]  }
  0x3c   : > { %s12474_s18 = smov (!%p299_p5, %s8453_s18), 127  ;;  %731 = vmatpush1.bf16.msra.mxu0 %v8941_v3  ;;  %v8947_v7 = vld [vmem:[%s12326_s1 + $0x40] ss:$16 sps:$4 sm:$0xff]   ;;  %v8948_v8 = vld [vmem:[%s12326_s1 + $0x64] ss:$16 sps:$4 sm:$0xff]   ;;  %1083 = vmatprep.subr.bf16.mxu1 %v9016_v46  ;;  %v1508_v46 = vlaneseq  ;;  %s295_s17 = sand.u32 1, %s9564_s27  }
  0x3d   : > { %s8454_s20 = sshll.u32 %s12474_s18, 2  ;;  %732 = vmatprep.subr.bf16.mxu0 %v8942_v4  ;;  %v8950_v9 = vld [vmem:[%s12326_s1 + $0x60] ss:$16 sps:$4 sm:$0xff]   ;;  %v9018_v47 = vld [vmem:[%s12326_s1 + $0x8] ss:$16 sps:$4 sm:$0xff]   ;;  %s8452_s14 = sshll.u32 %s295_s17, 9 }
  0x3e   : > { %s9731_s15 = scalar_lea.vmem %s12325_s0, %s8454_s20  ;;  %v8954_v10 = vld [vmem:[#allocation3 + $0x4] ss:$8 sps:$4 sm:$0xff]   ;;  %v8952_v12 = vld [vmem:[#allocation3] ss:$8 sps:$4 sm:$0xff]   ;;  %v8959_v13 = vld [vmem:[#allocation3 + $0x14] ss:$8 sps:$4 sm:$0xff]   ;;  %1084 = vmatpush1.bf16.msra.mxu1 %v9018_v47 }
  0x3f   : > { %v9743_v11 = vld [vmem:[%s9731_s15] sm:$0xff]   ;;  %v8957_v14 = vld [vmem:[#allocation3 + $0x10] ss:$8 sps:$4 sm:$0xff]   ;;  %v9749_v16 = vld [vmem:[%s9731_s15 + $0x8] sm:$0xff]   ;;  %s11869_s19 = scalar_lea.vmem [#allocation6], %s8452_s14  ;;  %s8456_s21 = sshll.u32 %s12474_s18, 3 }
  0x40   : > { %733 = vmatpush1.bf16.msra.mxu0 %v8944_v5  ;;  %v8964_v15 = vld [vmem:[#allocation3 + $0x24] ss:$8 sps:$4 sm:$0xff]   ;;  %v8962_v17 = vld [vmem:[#allocation3 + $0x20] ss:$8 sps:$4 sm:$0xff]   ;;  %v8969_v18 = vld [vmem:[#allocation3 + $0x34] ss:$8 sps:$4 sm:$0xff]   ;;  %s12068_s23 = scalar_lea.vmem %s12331_s6, %s8456_s21 }
  0x41   : > { %734 = vmatprep.subr.bf16.mxu0 %v8945_v6  ;;  %v8967_v19 = vld [vmem:[#allocation3 + $0x30] ss:$8 sps:$4 sm:$0xff]   ;;  %v8974_v20 = vld [vmem:[#allocation3 + $0x44] ss:$8 sps:$4 sm:$0xff]   ;;  %v8972_v22 = vld [vmem:[#allocation3 + $0x40] ss:$8 sps:$4 sm:$0xff]  }
  0x42   : > { %v9755_v21 = vld [vmem:[%s9731_s15 + $0x10] sm:$0xff]   ;;  %v9761_v26 = vld [vmem:[%s9731_s15 + $0x18] sm:$0xff]   ;;  %v8982_v27 = vld [vmem:[#allocation3 + $0x60] ss:$8 sps:$4 sm:$0xff]   ;;  %vm7874_vm1 = vcmask 7168   ;;  %s8883_s18 = sshll.u32 %s9645_s5, 13 }
  0x43   : > { %v8979_v23 = vld [vmem:[#allocation3 + $0x54] ss:$8 sps:$4 sm:$0xff]   ;;  %v8977_v24 = vld [vmem:[#allocation3 + $0x50] ss:$8 sps:$4 sm:$0xff]   ;;  %v8984_v25 = vld [vmem:[#allocation3 + $0x64] ss:$8 sps:$4 sm:$0xff]  }
  0x44   : > { %735 = vmatpush1.bf16.msra.mxu0 %v8947_v7  ;;  %v8989_v28 = vld [vmem:[#allocation3 + $0x74] ss:$8 sps:$4 sm:$0xff]   ;;  %v8987_v29 = vld [vmem:[#allocation3 + $0x70] ss:$8 sps:$4 sm:$0xff]   ;;  %v8994_v30 = vld [vmem:[#allocation3 + $0x84] ss:$8 sps:$4 sm:$0xff]  }
  0x45   : > { %736 = vmatprep.subr.bf16.mxu0 %v8948_v8  ;;  %v9767_v31 = vld [vmem:[%s9731_s15 + $0x20] sm:$0xff]   ;;  %v8997_v34 = vld [vmem:[#allocation3 + $0x90] ss:$8 sps:$4 sm:$0xff]   ;;  %v9773_v36 = vld [vmem:[%s9731_s15 + $0x28] sm:$0xff]   ;;  %s8347_s24 = sshll.u32 %s11869_s19, 4  ;;  %s12191_s5 = scalar_lea.sflag [#allocation5], %s295_s17  ;;  %s12186_s24 = int_to_ptr.vmem [resolvable:$true] %s8347_s24 }
  0x46   : > { %v8992_v32 = vld [vmem:[#allocation3 + $0x80] ss:$8 sps:$4 sm:$0xff]   ;;  %v8999_v33 = vld [vmem:[#allocation3 + $0x94] ss:$8 sps:$4 sm:$0xff]   ;;  %v9004_v35 = vld [vmem:[#allocation3 + $0xa4] ss:$8 sps:$4 sm:$0xff]  }
  0x47   : > { %v9002_v37 = vld [vmem:[#allocation3 + $0xa0] ss:$8 sps:$4 sm:$0xff]   ;;  %v9779_v38 = vld [vmem:[%s9731_s15 + $0x30] sm:$0xff]   ;;  %v9785_v41 = vld [vmem:[%s9731_s15 + $0x38] sm:$0xff]   ;;  %s9506_s9 = scalar_lea.vmem %s12186_s24, 8192  ;;  %p12467_p9 = scmp.ne.s32.totalorder %s12370_s12, 0 }
  0x48   : > { %737 = vmatpush1.bf16.msra.mxu0 %v8950_v9  ;;  %v9007_v39 = vld [vmem:[#allocation3 + $0xb0] ss:$8 sps:$4 sm:$0xff]   ;;  %v9009_v40 = vld [vmem:[#allocation3 + $0xb4] ss:$8 sps:$4 sm:$0xff]   ;;  %v9012_v43 = vld [vmem:[#allocation3 + $0xc0] ss:$8 sps:$4 sm:$0xff]   ;;  %p9507_p6 = scmp.ne.s32.totalorder %s12186_s24, %s9506_s9 }
  0x49   : > { %1903 = vmatprep.subr.bf16.mxu0 %v8954_v10  ;;  %v9791_v42 = vld [vmem:[%s9731_s15 + $0x40] sm:$0xff]   ;;  %v9797_v45 = vld [vmem:[%s9731_s15 + $0x48] sm:$0xff]   ;;  %v9809_v48 = vld [vmem:[%s9731_s15 + $0x50] sm:$0xff]   ;;  %s9578_s10 = smov [#allocation6]  }
  0x4a   : > { %v9014_v44 = vld [vmem:[#allocation3 + $0xc4] ss:$8 sps:$4 sm:$0xff]   ;;  %v9022_v51 = vld [vmem:[#allocation3 + $0xd0] ss:$8 sps:$4 sm:$0xff]   ;;  %v9024_v52 = vld [vmem:[#allocation3 + $0xd4] ss:$8 sps:$4 sm:$0xff]   ;;  %p9508_p10 = pnand %p9507_p6, %p12467_p9 }
  0x4b   : > { %8505 = vmatmul.mubr.msk.bf16.vlgmr.msra.gmra.mrb[0].mxu0 %vm633_vm0, %v9743_v11  ;;  %v9020_v49 = vld [vmem:[%s12326_s1 + $0x2c] ss:$16 sps:$4 sm:$0xff]   ;;  %v9025_v50 = vld [vmem:[%s12326_s1 + $0x28] ss:$16 sps:$4 sm:$0xff]   ;;  %v9839_v58 = vld [vmem:[%s9731_s15 + $0x60] sm:$0xff]   ;;  %s9510_s16 = sshll.u32 %s9578_s10, 4  ;;  %s9511_s16 = int_to_ptr.vmem [resolvable:$false] %s9510_s16 }
  0x4c   : > { %1904 = vmatpush1.bf16.msra.mxu0 %v8952_v12  ;;  %772 = vmatprep.mubr.bf16.mxu0 %v12350_v1  ;;  %v9026_v53 = vld [vmem:[%s12326_s1 + $0x4c] ss:$16 sps:$4 sm:$0xff]   ;;  %v9029_v55 = vld [vmem:[%s12326_s1 + $0x48] ss:$16 sps:$4 sm:$0xff]   ;;  %v9857_v0 = vld [vmem:[%s9731_s15 + $0x70] sm:$0xff]   ;;  %p9509_p12 = pneg %p9508_p10  ;;  %s9512_s14 = scalar_lea.vmem %s9511_s16, 16384 }
  0x4d   : > { %1905 = vmatprep.subr.bf16.mxu0 %v8959_v13  ;;  %1085 = vmatprep.subr.bf16.mxu1 %v9020_v49  ;;  %v9824_v54 = vld [vmem:[%s9731_s15 + $0x58] sm:$0xff]   ;;  %v9035_v59 = vld [vmem:[#allocation3 + $0x100] ss:$8 sps:$4 sm:$0xff]   ;;  %v9037_v60 = vld [vmem:[#allocation3 + $0x104] ss:$8 sps:$4 sm:$0xff]   ;;  %p9513_p2 = scmp.lt.s32.totalorder %s12186_s24, %s9511_s16  ;;  %p9514_p3 = scmp.lt.s32.totalorder %s9512_s14, %s9506_s9 }
  0x4e   : > { %1086 = vmatpush1.bf16.msra.mxu1 %v9025_v50  ;;  %v9032_v56 = vld [vmem:[%s12326_s1 + $0x6c] ss:$16 sps:$4 sm:$0xff]   ;;  %v9034_v57 = vld [vmem:[%s12326_s1 + $0x68] ss:$16 sps:$4 sm:$0xff]   ;;  %v9877_v7 = vld [vmem:[%s9731_s15 + $0x80] sm:$0xff]  }
  0x4f   : > { %1087 = vmatprep.subr.bf16.mxu1 %v9026_v53  ;;  %v9039_v61 = vld [vmem:[#allocation3 + $0xe0] ss:$8 sps:$4 sm:$0xff]   ;;  %v9041_v63 = vld [vmem:[#allocation3 + $0xe4] ss:$8 sps:$4 sm:$0xff]   ;;  %v9043_v2 = vld [vmem:[#allocation3 + $0x110] ss:$8 sps:$4 sm:$0xff]   ;;  %p9515_p4 = por %p9514_p3, %p9513_p2 }
  0x50   : > { %1906 = vmatpush1.bf16.msra.mxu0 %v8957_v14  ;;  %v9848_v62 = vld [vmem:[%s9731_s15 + $0x68] sm:$0xff]   ;;  %v9045_v3 = vld [vmem:[#allocation3 + $0x114] ss:$8 sps:$4 sm:$0xff]   ;;  %v9047_v4 = vld [vmem:[#allocation3 + $0xf0] ss:$8 sps:$4 sm:$0xff]  }
  0x51   : > { %1907 = vmatprep.subr.bf16.mxu0 %v8964_v15  ;;  %v9866_v5 = vld [vmem:[%s9731_s15 + $0x78] sm:$0xff]   ;;  %v9051_v8 = vld [vmem:[#allocation3 + $0x120] ss:$8 sps:$4 sm:$0xff]   ;;  %v9053_v9 = vld [vmem:[#allocation3 + $0x124] ss:$8 sps:$4 sm:$0xff]   ;;  %p9516_p7 = pnand %p9515_p4, %p9509_p12 }
  0x52   : > { %1088 = vmatpush1.bf16.msra.mxu1 %v9029_v55  ;;  %v9049_v6 = vld [vmem:[#allocation3 + $0xf4] ss:$8 sps:$4 sm:$0xff]   ;;  %v9886_v10 = vld [vmem:[%s9731_s15 + $0x88] sm:$0xff]   ;;  %v9054_v12 = vld [vmem:[#allocation3 + $0x130] ss:$8 sps:$4 sm:$0xff]  }
  0x53   : > { %8506 = vmatmul.mubr.msk.bf16.gmra.mrb[4].mxu0 %vm633_vm0, %v9749_v16  ;;  %1089 = vmatprep.subr.bf16.mxu1 %v9032_v56  ;;  %v9056_v13 = vld [vmem:[#allocation3 + $0x134] ss:$8 sps:$4 sm:$0xff]   ;;  %v10016_v50 = vld [vmem:[%s9731_s15 + $0xe8] sm:$0xff]  }
  0x54   : > { %782 = vmatprep.mubr.bf16.mxu0 %v12350_v1  ;;  %1908 = vmatpush1.bf16.msra.mxu0 %v8962_v17  ;;  %v9904_v14 = vld [vmem:[%s9731_s15 + $0x98] sm:$0xff]   ;;  %v9913_v15 = vld [vmem:[%s9731_s15 + $0xa0] sm:$0xff]  }
  0x55   : > { %1909 = vmatprep.subr.bf16.mxu0 %v8969_v18  ;;  %v9059_v17 = vld [vmem:[#allocation3 + $0x144] ss:$8 sps:$4 sm:$0xff]  }
  0x56   : > { %1090 = vmatpush1.bf16.msra.mxu1 %v9034_v57  ;;  %v9922_v18 = vld [vmem:[%s9731_s15 + $0xa8] sm:$0xff]  }
  0x57   : > { %2655 = vmatprep.subr.bf16.mxu1 %v9037_v60 }
  0x58   : > { %1910 = vmatpush1.bf16.msra.mxu0 %v8967_v19  ;;  %v9931_v19 = vld [vmem:[%s9731_s15 + $0xb0] sm:$0xff]  }
  0x59   : > { %1911 = vmatprep.subr.bf16.mxu0 %v8974_v20  ;;  %8537 = vmatmul.mubr.msk.bf16.vlgmr.msra.gmra.mrb[0].mxu1 %vm633_vm0, %v9743_v11  ;;  %v9895_v11 = vld [vmem:[%s9731_s15 + $0x90] sm:$0xff]  }
  0x5a   : > { %1125 = vmatprep.mubr.bf16.mxu1 %v12350_v1  ;;  %2656 = vmatpush1.bf16.msra.mxu1 %v9035_v59  ;;  %v9060_v20 = vld [vmem:[#allocation3 + $0x150] ss:$8 sps:$4 sm:$0xff]  }
  0x5b   : > { %8507 = vmatmul.mubr.msk.bf16.gmra.mrb[8].mxu0 %vm633_vm0, %v9755_v21  ;;  %2657 = vmatprep.subr.bf16.mxu1 %v9045_v3 }
  0x5c   : > { %792 = vmatprep.mubr.bf16.mxu0 %v12350_v1  ;;  %1912 = vmatpush1.bf16.msra.mxu0 %v8972_v22  ;;  %v9940_v22 = vld [vmem:[%s9731_s15 + $0xb8] sm:$0xff]  }
  0x5d   : > { %1913 = vmatprep.subr.bf16.mxu0 %v8979_v23  ;;  %v9949_v23 = vld [vmem:[%s9731_s15 + $0xc0] sm:$0xff]  }
  0x5e   : > { %2658 = vmatpush1.bf16.msra.mxu1 %v9043_v2 }
  0x5f   : > { %2659 = vmatprep.subr.bf16.mxu1 %v9053_v9 }
  0x60   : > { %1914 = vmatpush1.bf16.msra.mxu0 %v8977_v24  ;;  %v9063_v24 = vld [vmem:[#allocation3 + $0x160] ss:$8 sps:$4 sm:$0xff]  }
  0x61   : > { %1915 = vmatprep.subr.bf16.mxu0 %v8984_v25  ;;  %8538 = vmatmul.mubr.msk.bf16.gmra.mrb[4].mxu1 %vm633_vm0, %v9749_v16  ;;  %v9057_v16 = vld [vmem:[#allocation3 + $0x140] ss:$8 sps:$4 sm:$0xff]   ;;  %v9065_v25 = vld [vmem:[#allocation3 + $0x164] ss:$8 sps:$4 sm:$0xff]  }
  0x62   : > { %1135 = vmatprep.mubr.bf16.mxu1 %v12350_v1  ;;  %2660 = vmatpush1.bf16.msra.mxu1 %v9051_v8 }
  0x63   : > { %8508 = vmatmul.mubr.msk.bf16.gmra.mrb[12].mxu0 %vm633_vm0, %v9761_v26  ;;  %2661 = vmatprep.subr.bf16.mxu1 %v9056_v13 }
  0x64   : > { %802 = vmatprep.mubr.bf16.mxu0 %v12350_v1  ;;  %1916 = vmatpush1.bf16.msra.mxu0 %v8982_v27  ;;  %v9967_v27 = vld [vmem:[%s9731_s15 + $0xd0] sm:$0xff]  }
  0x65   : > { %1917 = vmatprep.subr.bf16.mxu0 %v8989_v28  ;;  %v9066_v28 = vld [vmem:[#allocation3 + $0x170] ss:$8 sps:$4 sm:$0xff]  }
  0x66   : > { %2662 = vmatpush1.bf16.msra.mxu1 %v9054_v12 }
  0x67   : > { %2663 = vmatprep.subr.bf16.mxu1 %v9059_v17 }
  0x68   : > { %1918 = vmatpush1.bf16.msra.mxu0 %v8987_v29  ;;  %v9068_v29 = vld [vmem:[#allocation3 + $0x174] ss:$8 sps:$4 sm:$0xff]  }
  0x69   : > { %1919 = vmatprep.subr.bf16.mxu0 %v8994_v30  ;;  %8539 = vmatmul.mubr.msk.bf16.gmra.mrb[8].mxu1 %vm633_vm0, %v9755_v21  ;;  %v9062_v21 = vld [vmem:[#allocation3 + $0x154] ss:$8 sps:$4 sm:$0xff]  }
  0x6a   : > { %1145 = vmatprep.mubr.bf16.mxu1 %v12350_v1  ;;  %2664 = vmatpush1.bf16.msra.mxu1 %v9057_v16 }
  0x6b   : > { %8509 = vmatmul.mubr.msk.bf16.gmra.mrb[16].mxu0 %vm633_vm0, %v9767_v31  ;;  %2665 = vmatprep.subr.bf16.mxu1 %v9062_v21 }
  0x6c   : > { %812 = vmatprep.mubr.bf16.mxu0 %v12350_v1  ;;  %1920 = vmatpush1.bf16.msra.mxu0 %v8992_v32  ;;  %v9978_v32 = vld [vmem:[%s9731_s15 + $0xd8] sm:$0xff]  }
  0x6d   : > { %1921 = vmatprep.subr.bf16.mxu0 %v8999_v33 }
  0x6e   : > { %2666 = vmatpush1.bf16.msra.mxu1 %v9060_v20 }
  0x6f   : > { %2667 = vmatprep.subr.bf16.mxu1 %v9065_v25 }
  0x70   : > { %1922 = vmatpush1.bf16.msra.mxu0 %v8997_v34 }
  0x71   : > { %1923 = vmatprep.subr.bf16.mxu0 %v9004_v35  ;;  %8540 = vmatmul.mubr.msk.bf16.gmra.mrb[12].mxu1 %vm633_vm0, %v9761_v26  ;;  %v9958_v26 = vld [vmem:[%s9731_s15 + $0xc8] sm:$0xff]  }
  0x72   : > { %1155 = vmatprep.mubr.bf16.mxu1 %v12350_v1  ;;  %2668 = vmatpush1.bf16.msra.mxu1 %v9063_v24 }
  0x73   : > { %8510 = vmatmul.mubr.msk.bf16.gmra.mrb[20].mxu0 %vm633_vm0, %v9773_v36  ;;  %2669 = vmatprep.subr.bf16.mxu1 %v9068_v29 }
  0x74   : > { %822 = vmatprep.mubr.bf16.mxu0 %v12350_v1  ;;  %1924 = vmatpush1.bf16.msra.mxu0 %v9002_v37 }
  0x75   : > { %1925 = vmatprep.subr.bf16.mxu0 %v9009_v40 }
  0x76   : > { %2670 = vmatpush1.bf16.msra.mxu1 %v9066_v28 }
  0x78   : > { %1926 = vmatpush1.bf16.msra.mxu0 %v9007_v39  ;;  %v9995_v39 = vld [vmem:[%s9731_s15 + $0xe0] sm:$0xff]  }
  0x79   : > { %1927 = vmatprep.subr.bf16.mxu0 %v9014_v44  ;;  %8541 = vmatmul.mubr.msk.bf16.gmra.mrb[16].mxu1 %vm633_vm0, %v9767_v31  ;;  %v9069_v44 = vld [vmem:[#allocation3 + $0x180] ss:$8 sps:$4 sm:$0xff]  }
  0x7a   : > { %1165 = vmatprep.mubr.bf16.mxu1 %v12350_v1 }
  0x7b   : > { %8511 = vmatmul.mubr.msk.bf16.gmra.mrb[24].mxu0 %vm633_vm0, %v9779_v38 }
  0x7c   : > { %832 = vmatprep.mubr.bf16.mxu0 %v12350_v1  ;;  %1928 = vmatpush1.bf16.msra.mxu0 %v9012_v43 }
  0x7d   : > { %1929 = vmatprep.subr.bf16.mxu0 %v9024_v52 }
  0x80   : > { %1930 = vmatpush1.bf16.msra.mxu0 %v9022_v51 }
  0x81   : > { %1931 = vmatprep.subr.bf16.mxu0 %v9041_v63  ;;  %8542 = vmatmul.mubr.msk.bf16.gmra.mrb[20].mxu1 %vm633_vm0, %v9773_v36 }
  0x82   : > { %1175 = vmatprep.mubr.bf16.mxu1 %v12350_v1 }
  0x83   : > { %8512 = vmatmul.mubr.msk.bf16.gmra.mrb[28].mxu0 %vm633_vm0, %v9785_v41 }
  0x84   : > { %842 = vmatprep.mubr.bf16.mxu0 %v12350_v1  ;;  %1932 = vmatpush1.bf16.msra.mxu0 %v9039_v61  ;;  %v10045_v61 = vld [vmem:[%s9731_s15 + $0xf0] sm:$0xff]  }
  0x85   : > { %1933 = vmatprep.subr.bf16.mxu0 %v9049_v6  ;;  %v9074_v6 = vld [vmem:[#allocation3 + $0x194] ss:$8 sps:$4 sm:$0xff]  }
  0x88   : > { %1934 = vmatpush1.bf16.msra.mxu0 %v9047_v4 }
  0x89   : > { %8543 = vmatmul.mubr.msk.bf16.gmra.mrb[24].mxu1 %vm633_vm0, %v9779_v38 }
  0x8a   : > { %1185 = vmatprep.mubr.bf16.mxu1 %v12350_v1 }
  0x8b   : > { %8513 = vmatmul.mubr.msk.bf16.gmra.mrb[32].mxu0 %vm633_vm0, %v9791_v42 }
  0x8c   : > { %852 = vmatprep.mubr.bf16.mxu0 %v12350_v1 }
  0x91   : > { %8544 = vmatmul.mubr.msk.bf16.gmra.mrb[28].mxu1 %vm633_vm0, %v9785_v41 }
  0x92   : > { %1195 = vmatprep.mubr.bf16.mxu1 %v12350_v1 }
  0x93   : > { %8514 = vmatmul.mubr.msk.bf16.gmra.mrb[36].mxu0 %vm633_vm0, %v9797_v45 }
  0x94   : > { %862 = vmatprep.mubr.bf16.mxu0 %v12350_v1 }
  0x99   : > { %8545 = vmatmul.mubr.msk.bf16.gmra.mrb[32].mxu1 %vm633_vm0, %v9791_v42 }
  0x9a   : > { %1205 = vmatprep.mubr.bf16.mxu1 %v12350_v1 }
  0x9b   : > { %8515 = vmatmul.mubr.msk.bf16.gmra.mrb[40].mxu0 %vm633_vm0, %v9809_v48 }
  0x9c   : > { %872 = vmatprep.mubr.bf16.mxu0 %v12350_v1 }
  0xa1   : > { %8546 = vmatmul.mubr.msk.bf16.gmra.mrb[36].mxu1 %vm633_vm0, %v9797_v45  ;;  %v9071_v45 = vld [vmem:[#allocation3 + $0x184] ss:$8 sps:$4 sm:$0xff]  }
  0xa2   : > { %1215 = vmatprep.mubr.bf16.mxu1 %v12350_v1  ;;  %2671 = vmatprep.subr.bf16.mxu1 %v9071_v45 }
  0xa3   : > { %8516 = vmatmul.mubr.msk.bf16.gmra.mrb[44].mxu0 %vm633_vm0, %v9824_v54  ;;  %2672 = vmatpush1.bf16.msra.mxu1 %v9069_v44 }
  0xa4   : > { %882 = vmatprep.mubr.bf16.mxu0 %v12350_v1  ;;  %2673 = vmatprep.subr.bf16.mxu1 %v9074_v6  ;;  %v9080_v6 = vld [vmem:[#allocation3 + $0x1b4] ss:$8 sps:$4 sm:$0xff]  }
  0xa9   : > { %8547 = vmatmul.mubr.msk.bf16.gmra.mrb[40].mxu1 %vm633_vm0, %v9809_v48  ;;  %v376_v48 = vld [vmem:[%s12328_s3] sm:$0xff] }
  0xaa   : > { %1225 = vmatprep.mubr.bf16.mxu1 %v12350_v1  ;;  %v10025_v55 = vcombine.high %v376_v48, %v376_v48  ;;  %v10050_v63 = vcombine.low %v376_v48, %v376_v48 }
  0xab   : > { %8517 = vmatmul.mubr.msk.bf16.gmra.mrb[48].mxu0 %vm633_vm0, %v9839_v58 }
  0xac   : > { %892 = vmatprep.mubr.bf16.mxu0 %v12350_v1 }
  0xb1   : > { %8548 = vmatmul.mubr.msk.bf16.gmra.mrb[44].mxu1 %vm633_vm0, %v9824_v54  ;;  %v10023_v54 = vshrl.u32 %v1508_v46, 7 }
  0xb2   : > { %1235 = vmatprep.mubr.bf16.mxu1 %v12350_v1 }
  0xb3   : > { %8518 = vmatmul.mubr.msk.bf16.gmra.mrb[52].mxu0 %vm633_vm0, %v9848_v62  ;;  %v10032_v57 = vsub.s32 0, %v10023_v54 }
  0xb4   : > { %902 = vmatprep.mubr.bf16.mxu0 %v12350_v1 }
  0xb9   : > { %8549 = vmatmul.mubr.msk.bf16.gmra.mrb[48].mxu1 %vm633_vm0, %v9839_v58  ;;  %v10036_v58 = vpack.i.b16 %v10025_v55, %v10025_v55 }
  0xba   : > { %1245 = vmatprep.mubr.bf16.mxu1 %v12350_v1 }
  0xbb   : > { %8519 = vmatmul.mubr.msk.bf16.gmra.mrb[56].mxu0 %vm633_vm0, %v9857_v0  ;;  %v10056_v3 = vrot.slane %v10036_v58, %v10032_v57 }
  0xbc   : > { %912 = vmatprep.mubr.bf16.mxu0 %v12350_v1 }
  0xc1   : > { %8550 = vmatmul.mubr.msk.bf16.gmra.mrb[52].mxu1 %vm633_vm0, %v9848_v62 }
  0xc2   : > { %1255 = vmatprep.mubr.bf16.mxu1 %v12350_v1 }
  0xc3   : > { %8520 = vmatmul.mubr.msk.bf16.gmra.mrb[60].mxu0 %vm633_vm0, %v9866_v5 }
  0xc4   : > { %922 = vmatprep.mubr.bf16.mxu0 %v12350_v1 }
  0xc9   : > { %8551 = vmatmul.mubr.msk.bf16.gmra.mrb[56].mxu1 %vm633_vm0, %v9857_v0 }
  0xca   : > { %1265 = vmatprep.mubr.bf16.mxu1 %v12350_v1 }
  0xcb   : > { %8521 = vmatmul.mubr.msk.bf16.gmra.mrb[64].mxu0 %vm633_vm0, %v9877_v7 }
  0xcc   : > { %932 = vmatprep.mubr.bf16.mxu0 %v12350_v1 }
  0xd1   : > { %8552 = vmatmul.mubr.msk.bf16.gmra.mrb[60].mxu1 %vm633_vm0, %v9866_v5  ;;  %v9072_v5 = vld [vmem:[#allocation3 + $0x190] ss:$8 sps:$4 sm:$0xff]  }
  0xd2   : > { %1275 = vmatprep.mubr.bf16.mxu1 %v12350_v1  ;;  %2674 = vmatpush1.bf16.msra.mxu1 %v9072_v5 }
  0xd3   : > { %8522 = vmatmul.mubr.msk.bf16.gmra.mrb[68].mxu0 %vm633_vm0, %v9886_v10 }
  0xd4   : > { %942 = vmatprep.mubr.bf16.mxu0 %v12350_v1 }
  0xd9   : > { %8553 = vmatmul.mubr.msk.bf16.gmra.mrb[64].mxu1 %vm633_vm0, %v9877_v7  ;;  %v10064_v7 = vpack.i.b16 %v10050_v63, %v10050_v63 }
  0xda   : > { %1285 = vmatprep.mubr.bf16.mxu1 %v12350_v1 }
  0xdb   : > { %8523 = vmatmul.mubr.msk.bf16.gmra.mrb[72].mxu0 %vm633_vm0, %v9895_v11  ;;  %v10079_v13 = vrot.slane %v10064_v7, %v10032_v57 }
  0xdc   : > { %952 = vmatprep.mubr.bf16.mxu0 %v12350_v1 }
  0xe1   : > { %8554 = vmatmul.mubr.msk.bf16.gmra.mrb[68].mxu1 %vm633_vm0, %v9886_v10 }
  0xe2   : > { %1295 = vmatprep.mubr.bf16.mxu1 %v12350_v1 }
  0xe3   : > { %8524 = vmatmul.mubr.msk.bf16.gmra.mrb[76].mxu0 %vm633_vm0, %v9904_v14 }
  0xe4   : > { %962 = vmatprep.mubr.bf16.mxu0 %v12350_v1 }
  0xe9   : > { %8555 = vmatmul.mubr.msk.bf16.gmra.mrb[72].mxu1 %vm633_vm0, %v9895_v11  ;;  %v10072_v11 = vld [vmem:[%s9731_s15 + $0xf8] sm:$0xff]   ;;  %s12182_s15 = scalar_lea.hbm %s12332_s7, %s8883_s18 }
  0xea   : > { %1305 = vmatprep.mubr.bf16.mxu1 %v12350_v1 }
  0xeb   : > { %8525 = vmatmul.mubr.msk.bf16.gmra.mrb[80].mxu0 %vm633_vm0, %v9913_v15 }
  0xec   : > { %972 = vmatprep.mubr.bf16.mxu0 %v12350_v1 }
  0xf1   : > { %8556 = vmatmul.mubr.msk.bf16.gmra.mrb[76].mxu1 %vm633_vm0, %v9904_v14 }
  0xf2   : > { %1315 = vmatprep.mubr.bf16.mxu1 %v12350_v1 }
  0xf3   : > { %8526 = vmatmul.mubr.msk.bf16.gmra.mrb[84].mxu0 %vm633_vm0, %v9922_v18 }
  0xf4   : > { %982 = vmatprep.mubr.bf16.mxu0 %v12350_v1 }
  0xf9   : > { %8557 = vmatmul.mubr.msk.bf16.gmra.mrb[80].mxu1 %vm633_vm0, %v9913_v15 }
  0xfa   : > { %1325 = vmatprep.mubr.bf16.mxu1 %v12350_v1 }
  0xfb   : > { %8527 = vmatmul.mubr.msk.bf16.gmra.mrb[88].mxu0 %vm633_vm0, %v9931_v19 }
  0xfc   : > { %992 = vmatprep.mubr.bf16.mxu0 %v12350_v1 }
 0x101   : > { %8558 = vmatmul.mubr.msk.bf16.gmra.mrb[84].mxu1 %vm633_vm0, %v9922_v18 }
 0x102   : > { %1335 = vmatprep.mubr.bf16.mxu1 %v12350_v1 }
 0x103   : > { %8528 = vmatmul.mubr.msk.bf16.gmra.mrb[92].mxu0 %vm633_vm0, %v9940_v22 }
 0x104   : > { %1002 = vmatprep.mubr.bf16.mxu0 %v12350_v1 }
 0x109   : > { %8559 = vmatmul.mubr.msk.bf16.gmra.mrb[88].mxu1 %vm633_vm0, %v9931_v19 }
 0x10a   : > { %1345 = vmatprep.mubr.bf16.mxu1 %v12350_v1 }
 0x10b   : > { %8529 = vmatmul.mubr.msk.bf16.gmra.mrb[96].mxu0 %vm633_vm0, %v9949_v23 }
 0x10c   : > { %1012 = vmatprep.mubr.bf16.mxu0 %v12350_v1 }
 0x111   : > { %8560 = vmatmul.mubr.msk.bf16.gmra.mrb[92].mxu1 %vm633_vm0, %v9940_v22 }
 0x112   : > { %1355 = vmatprep.mubr.bf16.mxu1 %v12350_v1 }
 0x113   : > { %8530 = vmatmul.mubr.msk.bf16.gmra.mrb[100].mxu0 %vm633_vm0, %v9958_v26 }
 0x114   : > { %1022 = vmatprep.mubr.bf16.mxu0 %v12350_v1 }
 0x119   : > { %8561 = vmatmul.mubr.msk.bf16.gmra.mrb[96].mxu1 %vm633_vm0, %v9949_v23  ;;  %v9081_v23 = vld [vmem:[#allocation3 + $0x1c0] ss:$8 sps:$4 sm:$0xff]  }
 0x11a   : > { %1365 = vmatprep.mubr.bf16.mxu1 %v12350_v1 }
 0x11b   : > { %8531 = vmatmul.mubr.msk.bf16.gmra.mrb[104].mxu0 %vm633_vm0, %v9967_v27 }
 0x11c   : > { %1032 = vmatprep.mubr.bf16.mxu0 %v12350_v1 }
 0x11e   : > { %v9973_v30 = vpop.f32.mrb[0].mxu0 }
 0x11f   : > { %v766_v31 = vpop.f32.mrb[1].mxu0 }
 0x120   : > { %v9981_v33 = vpop.f32.mrb[2].mxu0 }
 0x121   : > { %v1436_v34 = vpack.c.bf16 %v9981_v33, %v9973_v30  ;;  %v770_v35 = vpop.f32.mrb[3].mxu0  ;;  %8562 = vmatmul.mubr.msk.bf16.gmra.mrb[100].mxu1 %vm633_vm0, %v9958_v26 }
 0x122   : > { %v1437_v36 = vpack.c.bf16 %v770_v35, %v766_v31  ;;  %1375 = vmatprep.mubr.bf16.mxu1 %v12350_v1 }
 0x123   : > { %8532 = vmatmul.mubr.msk.bf16.gmra.mrb[108].mxu0 %vm633_vm0, %v9978_v32  ;;  %v1519_v14 = vadd.bf16 %v10079_v13, %v1436_v34 }
 0x124   : > { %1042 = vmatprep.mubr.bf16.mxu0 %v12350_v1  ;;  %v1520_v8 = vadd.bf16 %v10056_v3, %v1437_v36  ;;  %v9075_v36 = vld [vmem:[#allocation3 + $0x1a0] ss:$8 sps:$4 sm:$0xff]  }
 0x125   : > { %v1583_v31 = vmax.bf16 %v12350_v1, %v1519_v14 }
 0x126   : > { %v9988_v37 = vpop.f32.mrb[4].mxu0  ;;  %v1584_v21 = vmax.bf16 %v12350_v1, %v1520_v8 }
 0x127   : > { %v9992_v38 = vpop.f32.mrb[5].mxu0 }
 0x128   : > { %v9998_v40 = vpop.f32.mrb[6].mxu0 }
 0x129   : > { %v1438_v41 = vpack.c.bf16 %v9998_v40, %v9988_v37  ;;  %v780_v42 = vpop.f32.mrb[7].mxu0  ;;  %8563 = vmatmul.mubr.msk.bf16.gmra.mrb[104].mxu1 %vm633_vm0, %v9967_v27 }
 0x12a   : > { %v1439_v43 = vpack.c.bf16 %v780_v42, %v9992_v38  ;;  %v9077_v38 = vld [vmem:[#allocation3 + $0x1a4] ss:$8 sps:$4 sm:$0xff]   ;;  %1385 = vmatprep.mubr.bf16.mxu1 %v12350_v1 }
 0x12b   : > { %8533 = vmatmul.mubr.msk.bf16.gmra.mrb[112].mxu0 %vm633_vm0, %v9995_v39  ;;  %v1521_v15 = vadd.bf16 %v10079_v13, %v1438_v41  ;;  %2675 = vmatprep.subr.bf16.mxu1 %v9077_v38 }
 0x12c   : > { %1052 = vmatprep.mubr.bf16.mxu0 %v12350_v1  ;;  %v1522_v24 = vadd.bf16 %v10056_v3, %v1439_v43  ;;  %2676 = vmatpush1.bf16.msra.mxu1 %v9075_v36 }
 0x12d   : > { %v1585_v40 = vmax.bf16 %v12350_v1, %v1521_v15  ;;  %2677 = vmatprep.subr.bf16.mxu1 %v9080_v6  ;;  %v9086_v6 = vld [vmem:[#allocation3 + $0x1d4] ss:$8 sps:$4 sm:$0xff]  }
 0x12e   : > { %v10006_v47 = vpop.f32.mrb[8].mxu0  ;;  %v1586_v34 = vmax.bf16 %v12350_v1, %v1522_v24 }
 0x12f   : > { %v10013_v49 = vpop.f32.mrb[9].mxu0 }
 0x130   : > { %v10019_v51 = vpop.f32.mrb[10].mxu0 }
 0x131   : > { %v1440_v52 = vpack.c.bf16 %v10019_v51, %v10006_v47  ;;  %v790_v53 = vpop.f32.mrb[11].mxu0  ;;  %8564 = vmatmul.mubr.msk.bf16.gmra.mrb[108].mxu1 %vm633_vm0, %v9978_v32 }
 0x132   : > { %v1441_v56 = vpack.c.bf16 %v790_v53, %v10013_v49  ;;  %1395 = vmatprep.mubr.bf16.mxu1 %v12350_v1 }
 0x133   : > { %8534 = vmatmul.mubr.msk.bf16.gmra.mrb[116].mxu0 %vm633_vm0, %v10016_v50  ;;  %v1523_v18 = vadd.bf16 %v10079_v13, %v1440_v52 }
 0x134   : > { %1062 = vmatprep.mubr.bf16.mxu0 %v12350_v1  ;;  %v1524_v42 = vadd.bf16 %v10056_v3, %v1441_v56 }
 0x135   : > { %v1587_v47 = vmax.bf16 %v12350_v1, %v1523_v18 }
 0x136   : > { %v10038_v59 = vpop.f32.mrb[12].mxu0  ;;  %v1588_v48 = vmax.bf16 %v12350_v1, %v1524_v42 }
 0x137   : > { %v10042_v60 = vpop.f32.mrb[13].mxu0 }
 0x138   : > { %v10048_v62 = vpop.f32.mrb[14].mxu0 }
 0x139   : > { %v1442_v0 = vpack.c.bf16 %v10048_v62, %v10038_v59  ;;  %v800_v2 = vpop.f32.mrb[15].mxu0  ;;  %8565 = vmatmul.mubr.msk.bf16.gmra.mrb[112].mxu1 %vm633_vm0, %v9995_v39 }
 0x13a   : > { %v1443_v4 = vpack.c.bf16 %v800_v2, %v10042_v60  ;;  %1405 = vmatprep.mubr.bf16.mxu1 %v12350_v1 }
 0x13b   : > { %8535 = vmatmul.mubr.msk.bf16.gmra.mrb[120].mxu0 %vm633_vm0, %v10045_v61  ;;  %v1525_v19 = vadd.bf16 %v10079_v13, %v1442_v0 }
 0x13c   : > { %1072 = vmatprep.mubr.bf16.mxu0 %v12350_v1  ;;  %v1526_v49 = vadd.bf16 %v10056_v3, %v1443_v4  ;;  %v9078_v4 = vld [vmem:[#allocation3 + $0x1b0] ss:$8 sps:$4 sm:$0xff]  }
 0x13d   : > { %2678 = vmatpush1.bf16.msra.mxu1 %v9078_v4  ;;  %v1589_v0 = vmax.bf16 %v12350_v1, %v1525_v19  ;;  %v9084_v4 = vld [vmem:[#allocation3 + $0x1d0] ss:$8 sps:$4 sm:$0xff]  }
 0x13e   : > { %v10067_v9 = vpop.f32.mrb[16].mxu0  ;;  %v1590_v52 = vmax.bf16 %v12350_v1, %v1526_v49 }
 0x13f   : > { %v806_v10 = vpop.f32.mrb[17].mxu0 }
 0x140   : > { %v10075_v12 = vpop.f32.mrb[18].mxu0 }
 0x141   : > { %v1444_v16 = vpack.c.bf16 %v10075_v12, %v10067_v9  ;;  %v810_v17 = vpop.f32.mrb[19].mxu0  ;;  %8566 = vmatmul.mubr.msk.bf16.gmra.mrb[116].mxu1 %vm633_vm0, %v10016_v50 }
 0x142   : > { %v1445_v20 = vpack.c.bf16 %v810_v17, %v806_v10  ;;  %1415 = vmatprep.mubr.bf16.mxu1 %v12350_v1 }
 0x143   : > { %8536 = vmatmul.mubr.msk.bf16.gmra.mrb[124].mxu0 %vm633_vm0, %v10072_v11  ;;  %v1527_v22 = vadd.bf16 %v10079_v13, %v1444_v16 }
 0x144   : > { %1935 = vmatprep.mubr.bf16.mxu0 %v1584_v21  ;;  %v1528_v8 = vadd.bf16 %v10056_v3, %v1445_v20 }
 0x145   : > { %v1591_v9 = vmax.bf16 %v12350_v1, %v1527_v22 }
 0x146   : > { %v10091_v25 = vpop.f32.mrb[20].mxu0  ;;  %v1592_v14 = vmax.bf16 %v12350_v1, %v1528_v8 }
 0x147   : > { %v816_v28 = vpop.f32.mrb[21].mxu0 }
 0x148   : > { %v10096_v29 = vpop.f32.mrb[22].mxu0 }
 0x149   : > { %v1446_v35 = vpack.c.bf16 %v10096_v29, %v10091_v25  ;;  %v820_v30 = vpop.f32.mrb[23].mxu0  ;;  %8567 = vmatmul.mubr.msk.bf16.gmra.mrb[120].mxu1 %vm633_vm0, %v10045_v61 }
 0x14a   : > { %v1447_v33 = vpack.c.bf16 %v820_v30, %v816_v28  ;;  %1425 = vmatprep.mubr.bf16.mxu1 %v12350_v1 }
 0x14b   : > { %1936 = vmatmul.mubr.bf16.vlgmr.msra.gmra.mrb[128].mxu0 %v1583_v31  ;;  %v1529_v38 = vadd.bf16 %v10079_v13, %v1446_v35 }
 0x14c   : > { %1945 = vmatprep.mubr.bf16.mxu0 %v1586_v34  ;;  %v1530_v24 = vadd.bf16 %v10056_v3, %v1447_v33  ;;  %v9083_v33 = vld [vmem:[#allocation3 + $0x1c4] ss:$8 sps:$4 sm:$0xff]  }
 0x14d   : > { %2679 = vmatprep.subr.bf16.mxu1 %v9083_v33  ;;  %v1593_v35 = vmax.bf16 %v12350_v1, %v1529_v38 }
 0x14e   : > { %v10107_v43 = vpop.f32.mrb[24].mxu0  ;;  %v1594_v16 = vmax.bf16 %v12350_v1, %v1530_v24  ;;  %2680 = vmatpush1.bf16.msra.mxu1 %v9081_v23 }
 0x14f   : > { %v826_v44 = vpop.f32.mrb[25].mxu0  ;;  %2681 = vmatprep.subr.bf16.mxu1 %v9086_v6 }
 0x150   : > { %v10112_v45 = vpop.f32.mrb[26].mxu0 }
 0x151   : > { %v1448_v46 = vpack.c.bf16 %v10112_v45, %v10107_v43  ;;  %v830_v37 = vpop.f32.mrb[27].mxu0  ;;  %v1117_v45 = vpop.f32.mrb[0].mxu1  ;;  %8568 = vmatmul.mubr.msk.bf16.gmra.mrb[124].mxu1 %vm633_vm0, %v10072_v11 }
 0x152   : > { %v1449_v41 = vpack.c.bf16 %v830_v37, %v826_v44  ;;  %v1119_v27 = vpop.f32.mrb[1].mxu1  ;;  %2682 = vmatpush1.bf16.msra.mxu1 %v9084_v4  ;;  %v9092_v4 = vld [vmem:[#allocation3 + $0x1e4] ss:$8 sps:$4 sm:$0xff]  }
 0x153   : > { %1946 = vmatmul.mubr.bf16.gmra.mrb[132].mxu0 %v1585_v40  ;;  %v1531_v26 = vadd.bf16 %v10079_v13, %v1448_v46  ;;  %2683 = vmatprep.subr.bf16.mxu1 %v9092_v4  ;;  %v9096_v4 = vld [vmem:[#allocation3 + $0x1f0] ss:$8 sps:$4 sm:$0xff]  }
 0x154   : > { %1955 = vmatprep.mubr.bf16.mxu0 %v1588_v48  ;;  %v1532_v15 = vadd.bf16 %v10056_v3, %v1449_v41 }
 0x155   : > { %v1595_v43 = vmax.bf16 %v12350_v1, %v1531_v26 }
 0x156   : > { %v10123_v53 = vpop.f32.mrb[28].mxu0  ;;  %v1596_v41 = vmax.bf16 %v12350_v1, %v1532_v15 }
 0x157   : > { %v836_v56 = vpop.f32.mrb[29].mxu0 }
 0x158   : > { %v10128_v60 = vpop.f32.mrb[30].mxu0 }
 0x159   : > { %v1450_v2 = vpack.c.bf16 %v10128_v60, %v10123_v53  ;;  %v840_v5 = vpop.f32.mrb[31].mxu0 }
 0x15a   : > { %v1451_v51 = vpack.c.bf16 %v840_v5, %v836_v56 }
 0x15b   : > { %1956 = vmatmul.mubr.bf16.gmra.mrb[136].mxu0 %v1587_v47 }
 0x15c   : > { %1965 = vmatprep.mubr.bf16.mxu0 %v1590_v52  ;;  %v1534_v48 = vadd.bf16 %v10056_v3, %v1451_v51  ;;  %v1121_v52 = vpop.f32.mrb[2].mxu1 }
 0x15d   : > { %v10219_v19 = vpack.c.bf16 %v1121_v52, %v1117_v45  ;;  %v1123_v8 = vpop.f32.mrb[3].mxu1  ;;  %v9089_v45 = vld [vmem:[#allocation3 + $0x204] ss:$8 sps:$4 sm:$0xff]   ;;  %v9090_v52 = vld [vmem:[#allocation3 + $0x1e0] ss:$8 sps:$4 sm:$0xff]  }
 0x15e   : > { %v10139_v10 = vpop.f32.mrb[32].mxu0  ;;  %v1598_v51 = vmax.bf16 %v12350_v1, %v1534_v48  ;;  %3401 = vmatprep.subr.bf16.mxu0 %v9089_v45  ;;  %2684 = vmatpush1.bf16.msra.mxu1 %v9090_v52 }
 0x15f   : > { %v10143_v17 = vpop.f32.mrb[33].mxu0 }
 0x160   : > { %v10146_v21 = vpop.f32.mrb[34].mxu0 }
 0x161   : > { %v1452_v59 = vpack.c.bf16 %v10146_v21, %v10139_v10  ;;  %v850_v62 = vpop.f32.mrb[35].mxu0 }
 0x162   : > { %v1453_v20 = vpack.c.bf16 %v850_v62, %v10143_v17  ;;  %v1533_v17 = vadd.bf16 %v10079_v13, %v1450_v2  ;;  %v10225_v62 = vpack.c.bf16 %v1123_v8, %v1119_v27 }
 0x163   : > { %1966 = vmatmul.mubr.bf16.gmra.mrb[140].mxu0 %v1589_v0  ;;  %v1535_v15 = vadd.bf16 %v10079_v13, %v1452_v59 }
 0x164   : > { %1975 = vmatprep.mubr.bf16.mxu0 %v1592_v14  ;;  %v1536_v0 = vadd.bf16 %v10056_v3, %v1453_v20  ;;  %v1597_v2 = vmax.bf16 %v12350_v1, %v1533_v17  ;;  %v1127_v20 = vpop.f32.mrb[4].mxu1 }
 0x166   : > { %v10158_v28 = vpop.f32.mrb[36].mxu0  ;;  %v1600_v32 = vmax.bf16 %v12350_v1, %v1536_v0 }
 0x167   : > { %v10162_v31 = vpop.f32.mrb[37].mxu0 }
 0x168   : > { %v10165_v30 = vpop.f32.mrb[38].mxu0 }
 0x169   : > { %v1454_v34 = vpack.c.bf16 %v10165_v30, %v10158_v28  ;;  %v10169_v36 = vpop.f32.mrb[39].mxu0 }
 0x16a   : > { %v1455_v12 = vpack.c.bf16 %v10169_v36, %v10162_v31  ;;  %v1599_v31 = vmax.bf16 %v12350_v1, %v1535_v15 }
 0x16b   : > { %1976 = vmatmul.mubr.bf16.gmra.mrb[144].mxu0 %v1591_v9  ;;  %v1537_v17 = vadd.bf16 %v10079_v13, %v1454_v34 }
 0x16c   : > { %1985 = vmatprep.mubr.bf16.mxu0 %v1594_v16  ;;  %v1129_v16 = vpop.f32.mrb[5].mxu1 }
 0x16d   : > { %v1131_v23 = vpop.f32.mrb[6].mxu1 }
 0x16e   : > { %v10180_v42 = vpop.f32.mrb[40].mxu0  ;;  %v10245_v33 = vpack.c.bf16 %v1131_v23, %v1127_v20  ;;  %v1133_v38 = vpop.f32.mrb[7].mxu1 }
 0x16f   : > { %v10184_v44 = vpop.f32.mrb[41].mxu0  ;;  %v1137_v36 = vpop.f32.mrb[8].mxu1 }
 0x170   : > { %v10187_v37 = vpop.f32.mrb[42].mxu0 }
 0x171   : > { %v1456_v25 = vpack.c.bf16 %v10187_v37, %v10180_v42  ;;  %v10191_v29 = vpop.f32.mrb[43].mxu0 }
 0x172   : > { %v1457_v40 = vpack.c.bf16 %v10191_v29, %v10184_v44  ;;  %v1601_v44 = vmax.bf16 %v12350_v1, %v1537_v17 }
 0x173   : > { %1986 = vmatmul.mubr.bf16.gmra.mrb[148].mxu0 %v1593_v35  ;;  %v10251_v35 = vpack.c.bf16 %v1133_v38, %v1129_v16 }
 0x174   : > { %1995 = vmatprep.mubr.bf16.mxu0 %v1596_v41  ;;  %v1538_v41 = vadd.bf16 %v10056_v3, %v1455_v12 }
 0x176   : > { %v10202_v18 = vpop.f32.mrb[44].mxu0  ;;  %v1602_v12 = vmax.bf16 %v12350_v1, %v1538_v41  ;;  %v1539_v41 = vadd.bf16 %v10079_v13, %v1456_v25 }
 0x177   : > { %v10206_v49 = vpop.f32.mrb[45].mxu0 }
 0x178   : > { %v10209_v56 = vpop.f32.mrb[46].mxu0 }
 0x179   : > { %v1458_v5 = vpack.c.bf16 %v10209_v56, %v10202_v18  ;;  %v10213_v47 = vpop.f32.mrb[47].mxu0 }
 0x17a   : > { %v1459_v46 = vpack.c.bf16 %v10213_v47, %v10206_v49  ;;  %v1603_v49 = vmax.bf16 %v12350_v1, %v1539_v41 }
 0x17b   : > { %1996 = vmatmul.mubr.bf16.gmra.mrb[152].mxu0 %v1595_v43  ;;  %v9087_v43 = vld [vmem:[#allocation3 + $0x200] ss:$8 sps:$4 sm:$0xff]  }
 0x17c   : > { %2005 = vmatprep.mubr.bf16.mxu0 %v1598_v51  ;;  %3402 = vmatpush1.bf16.msra.mxu0 %v9087_v43  ;;  %v1139_v51 = vpop.f32.mrb[9].mxu1  ;;  %v1542_v45 = vadd.bf16 %v10056_v3, %v1459_v46 }
 0x17d   : > { %v1141_v27 = vpop.f32.mrb[10].mxu1 }
 0x17e   : > { %v10228_v14 = vpop.f32.mrb[48].mxu0  ;;  %v10274_v6 = vpack.c.bf16 %v1141_v27, %v1137_v36  ;;  %v1143_v8 = vpop.f32.mrb[11].mxu1  ;;  %v1606_v46 = vmax.bf16 %v12350_v1, %v1542_v45 }
 0x17f   : > { %v10232_v22 = vpop.f32.mrb[49].mxu0  ;;  %v10280_v0 = vpack.c.bf16 %v1143_v8, %v1139_v51  ;;  %v1147_v29 = vpop.f32.mrb[12].mxu1  ;;  %v9095_v51 = vld [vmem:[#allocation3 + $0x214] ss:$8 sps:$4 sm:$0xff]  }
 0x180   : > { %v10235_v24 = vpop.f32.mrb[50].mxu0  ;;  %v1149_v16 = vpop.f32.mrb[13].mxu1  ;;  %3403 = vmatprep.subr.bf16.mxu0 %v9095_v51  ;;  %v9098_v8 = vld [vmem:[#allocation3 + $0x1f4] ss:$8 sps:$4 sm:$0xff]  }
 0x181   : > { %v1460_v53 = vpack.c.bf16 %v10235_v24, %v10228_v14  ;;  %v10239_v60 = vpop.f32.mrb[51].mxu0  ;;  %v1151_v23 = vpop.f32.mrb[14].mxu1  ;;  %2685 = vmatprep.subr.bf16.mxu1 %v9098_v8 }
 0x182   : > { %v1461_v9 = vpack.c.bf16 %v10239_v60, %v10232_v22  ;;  %v10303_v38 = vpack.c.bf16 %v1151_v23, %v1147_v29  ;;  %v1153_v15 = vpop.f32.mrb[15].mxu1  ;;  %2686 = vmatpush1.bf16.msra.mxu1 %v9096_v4  ;;  %v9101_v4 = vld [vmem:[#allocation3 + $0x224] ss:$8 sps:$4 sm:$0xff]  }
 0x183   : > { %2006 = vmatmul.mubr.bf16.gmra.mrb[156].mxu0 %v1597_v2  ;;  %v1540_v2 = vadd.bf16 %v10056_v3, %v1457_v40  ;;  %v10309_v43 = vpack.c.bf16 %v1153_v15, %v1149_v16  ;;  %v1157_v47 = vpop.f32.mrb[16].mxu1 }
 0x184   : > { %2015 = vmatprep.mubr.bf16.mxu0 %v1600_v32  ;;  %v1159_v27 = vpop.f32.mrb[17].mxu1 }
 0x185   : > { %v1604_v50 = vmax.bf16 %v12350_v1, %v1540_v2  ;;  %v1161_v52 = vpop.f32.mrb[18].mxu1 }
 0x186   : > { %v10257_v26 = vpop.f32.mrb[52].mxu0  ;;  %v10332_v17 = vpack.c.bf16 %v1161_v52, %v1157_v47  ;;  %v1163_v2 = vpop.f32.mrb[19].mxu1  ;;  %v9099_v52 = vld [vmem:[#allocation3 + $0x220] ss:$8 sps:$4 sm:$0xff]  }
 0x187   : > { %v10261_v48 = vpop.f32.mrb[53].mxu0  ;;  %v10338_v29 = vpack.c.bf16 %v1163_v2, %v1159_v27  ;;  %v1167_v22 = vpop.f32.mrb[20].mxu1 }
 0x188   : > { %v10264_v10 = vpop.f32.mrb[54].mxu0  ;;  %v1169_v41 = vpop.f32.mrb[21].mxu1 }
 0x189   : > { %v1462_v21 = vpack.c.bf16 %v10264_v10, %v10257_v26  ;;  %v10268_v59 = vpop.f32.mrb[55].mxu0  ;;  %v1171_v11 = vpop.f32.mrb[22].mxu1 }
 0x18a   : > { %v1463_v39 = vpack.c.bf16 %v10268_v59, %v10261_v48  ;;  %v1173_v45 = vpop.f32.mrb[23].mxu1  ;;  %v10364_v51 = vpack.c.bf16 %v1171_v11, %v1167_v22 }
 0x18b   : > { %2016 = vmatmul.mubr.bf16.gmra.mrb[160].mxu0 %v1599_v31  ;;  %v1177_v2 = vpop.f32.mrb[24].mxu1  ;;  %v1545_v22 = vadd.bf16 %v10079_v13, %v1462_v21 }
 0x18c   : > { %2025 = vmatprep.mubr.bf16.mxu0 %v1602_v12  ;;  %v9093_v12 = vld [vmem:[#allocation3 + $0x210] ss:$8 sps:$4 sm:$0xff]   ;;  %v1546_v47 = vadd.bf16 %v10056_v3, %v1463_v39  ;;  %v1179_v39 = vpop.f32.mrb[25].mxu1 }
 0x18d   : > { %3404 = vmatpush1.bf16.msra.mxu0 %v9093_v12  ;;  %v1543_v12 = vadd.bf16 %v10079_v13, %v1460_v53  ;;  %v1609_v26 = vmax.bf16 %v12350_v1, %v1545_v22  ;;  %v9102_v22 = vld [vmem:[#allocation3 + $0x230] ss:$8 sps:$4 sm:$0xff]  }
 0x18e   : > { %v10286_v20 = vpop.f32.mrb[56].mxu0  ;;  %3405 = vmatprep.subr.bf16.mxu0 %v9101_v4  ;;  %v1610_v59 = vmax.bf16 %v12350_v1, %v1546_v47 }
 0x18f   : > { %v10290_v32 = vpop.f32.mrb[57].mxu0  ;;  %v1607_v53 = vmax.bf16 %v12350_v1, %v1543_v12 }
 0x190   : > { %v10293_v28 = vpop.f32.mrb[58].mxu0 }
 0x191   : > { %v1464_v30 = vpack.c.bf16 %v10293_v28, %v10286_v20  ;;  %v10297_v34 = vpop.f32.mrb[59].mxu0  ;;  %3406 = vmatpush1.bf16.msra.mxu0 %v9099_v52 }
 0x192   : > { %v1465_v40 = vpack.c.bf16 %v10297_v34, %v10290_v32 }
 0x193   : > { %2026 = vmatmul.mubr.bf16.gmra.mrb[164].mxu0 %v1601_v44  ;;  %v1541_v44 = vadd.bf16 %v10079_v13, %v1458_v5 }
 0x194   : > { %2035 = vmatprep.mubr.bf16.mxu0 %v1604_v50  ;;  %v1544_v50 = vadd.bf16 %v10056_v3, %v1461_v9 }
 0x195   : > { %v1605_v5 = vmax.bf16 %v12350_v1, %v1541_v44  ;;  %v1181_v44 = vpop.f32.mrb[26].mxu1 }
 0x196   : > { %v10315_v31 = vpop.f32.mrb[60].mxu0  ;;  %v1608_v9 = vmax.bf16 %v12350_v1, %v1544_v50  ;;  %v10386_v50 = vpack.c.bf16 %v1181_v44, %v1177_v2  ;;  %v1547_v2 = vadd.bf16 %v10079_v13, %v1464_v30 }
 0x197   : > { %v10319_v36 = vpop.f32.mrb[61].mxu0 }
 0x198   : > { %v10322_v42 = vpop.f32.mrb[62].mxu0  ;;  %v1611_v30 = vmax.bf16 %v12350_v1, %v1547_v2 }
 0x199   : > { %v1466_v37 = vpack.c.bf16 %v10322_v42, %v10315_v31  ;;  %v10326_v25 = vpop.f32.mrb[63].mxu0 }
 0x19a   : > { %v1467_v61 = vpack.c.bf16 %v10326_v25, %v10319_v36 }
 0x19b   : > { %2036 = vmatmul.mubr.bf16.gmra.mrb[168].mxu0 %v1603_v49  ;;  %v10366_v49 = vpack.c.bf16 %v1173_v45, %v1169_v41  ;;  %v1548_v41 = vadd.bf16 %v10056_v3, %v1465_v40 }
 0x19c   : > { %2045 = vmatprep.mubr.bf16.mxu0 %v1606_v46 }
 0x19d   : > { %v1612_v32 = vmax.bf16 %v12350_v1, %v1548_v41  ;;  %v9104_v41 = vld [vmem:[#allocation3 + $0x234] ss:$8 sps:$4 sm:$0xff]  }
 0x19e   : > { %v10344_v16 = vpop.f32.mrb[64].mxu0  ;;  %3407 = vmatprep.subr.bf16.mxu0 %v9104_v41 }
 0x19f   : > { %v10348_v23 = vpop.f32.mrb[65].mxu0  ;;  %3408 = vmatpush1.bf16.msra.mxu0 %v9102_v22 }
 0x1a0   : > { %v10350_v15 = vpop.f32.mrb[66].mxu0 }
 0x1a1   : > { %v1468_v18 = vpack.c.bf16 %v10350_v15, %v10344_v16  ;;  %v10354_v56 = vpop.f32.mrb[67].mxu0 }
 0x1a2   : > { %v1469_v60 = vpack.c.bf16 %v10354_v56, %v10348_v23 }
 0x1a3   : > { %2046 = vmatmul.mubr.bf16.gmra.mrb[172].mxu0 %v1605_v5  ;;  %v1183_v5 = vpop.f32.mrb[27].mxu1 }
 0x1a4   : > { %2055 = vmatprep.mubr.bf16.mxu0 %v1608_v9  ;;  %v10392_v9 = vpack.c.bf16 %v1183_v5, %v1179_v39  ;;  %v1187_v10 = vpop.f32.mrb[28].mxu1  ;;  %v1550_v39 = vadd.bf16 %v10056_v3, %v1467_v61 }
 0x1a5   : > { %v1189_v34 = vpop.f32.mrb[29].mxu1 }
 0x1a6   : > { %v10372_v46 = vpop.f32.mrb[68].mxu0  ;;  %v1191_v40 = vpop.f32.mrb[30].mxu1  ;;  %v1614_v25 = vmax.bf16 %v12350_v1, %v1550_v39  ;;  %v1552_v39 = vadd.bf16 %v10056_v3, %v1469_v60 }
 0x1a7   : > { %v10374_v27 = vpop.f32.mrb[69].mxu0  ;;  %v10412_v4 = vpack.c.bf16 %v1191_v40, %v1187_v10 }
 0x1a8   : > { %v10376_v8 = vpop.f32.mrb[70].mxu0  ;;  %v1616_v23 = vmax.bf16 %v12350_v1, %v1552_v39 }
 0x1a9   : > { %v1470_v14 = vpack.c.bf16 %v10376_v8, %v10372_v46  ;;  %v10380_v24 = vpop.f32.mrb[71].mxu0 }
 0x1aa   : > { %v1471_v48 = vpack.c.bf16 %v10380_v24, %v10374_v27 }
 0x1ab   : > { %2056 = vmatmul.mubr.bf16.gmra.mrb[176].mxu0 %v1607_v53  ;;  %v1193_v53 = vpop.f32.mrb[31].mxu1 }
 0x1ac   : > { %2065 = vmatprep.mubr.bf16.mxu0 %v1610_v59  ;;  %v10418_v59 = vpack.c.bf16 %v1193_v53, %v1189_v34  ;;  %v1197_v10 = vpop.f32.mrb[32].mxu1  ;;  %v1549_v53 = vadd.bf16 %v10079_v13, %v1466_v37 }
 0x1ad   : > { %v1199_v61 = vpop.f32.mrb[33].mxu1 }
 0x1ae   : > { %v10398_v11 = vpop.f32.mrb[72].mxu0  ;;  %v1613_v31 = vmax.bf16 %v12350_v1, %v1549_v53  ;;  %v1554_v53 = vadd.bf16 %v10056_v3, %v1471_v48 }
 0x1af   : > { %v10400_v45 = vpop.f32.mrb[73].mxu0 }
 0x1b0   : > { %v10402_v12 = vpop.f32.mrb[74].mxu0  ;;  %v1618_v24 = vmax.bf16 %v12350_v1, %v1554_v53 }
 0x1b1   : > { %v1472_v47 = vpack.c.bf16 %v10402_v12, %v10398_v11  ;;  %v10406_v52 = vpop.f32.mrb[75].mxu0 }
 0x1b2   : > { %v1473_v21 = vpack.c.bf16 %v10406_v52, %v10400_v45 }
 0x1b3   : > { %2066 = vmatmul.mubr.bf16.gmra.mrb[180].mxu0 %v1609_v26 }
 0x1b4   : > { %2075 = vmatprep.mubr.bf16.mxu0 %v1612_v32  ;;  %v1201_v32 = vpop.f32.mrb[34].mxu1  ;;  %v1556_v53 = vadd.bf16 %v10056_v3, %v1473_v21 }
 0x1b5   : > { %v10438_v34 = vpack.c.bf16 %v1201_v32, %v1197_v10  ;;  %v1203_v40 = vpop.f32.mrb[35].mxu1 }
 0x1b6   : > { %v10424_v44 = vpop.f32.mrb[76].mxu0  ;;  %v10444_v2 = vpack.c.bf16 %v1203_v40, %v1199_v61  ;;  %v1207_v42 = vpop.f32.mrb[36].mxu1  ;;  %v1551_v40 = vadd.bf16 %v10079_v13, %v1468_v18  ;;  %v1620_v45 = vmax.bf16 %v12350_v1, %v1556_v53 }
 0x1b7   : > { %v10426_v5 = vpop.f32.mrb[77].mxu0  ;;  %v1209_v56 = vpop.f32.mrb[37].mxu1 }
 0x1b8   : > { %v10428_v26 = vpop.f32.mrb[78].mxu0  ;;  %v1211_v60 = vpop.f32.mrb[38].mxu1  ;;  %v1615_v18 = vmax.bf16 %v12350_v1, %v1551_v40  ;;  %v1553_v40 = vadd.bf16 %v10079_v13, %v1470_v14 }
 0x1b9   : > { %v10432_v28 = vpop.f32.mrb[79].mxu0  ;;  %v10464_v61 = vpack.c.bf16 %v1211_v60, %v1207_v42  ;;  %v1213_v32 = vpop.f32.mrb[39].mxu1  ;;  %v9107_v42 = vld [vmem:[#allocation3 + $0x244] ss:$8 sps:$4 sm:$0xff]   ;;  %v12379_v11 = vpack.c.bf16 %v10428_v26, %v10424_v44 }
 0x1ba   : > { %v1475_v36 = vpack.c.bf16 %v10432_v28, %v10426_v5  ;;  %v10470_v10 = vpack.c.bf16 %v1213_v32, %v1209_v56  ;;  %3409 = vmatprep.subr.bf16.mxu0 %v9107_v42  ;;  %v1217_v56 = vpop.f32.mrb[40].mxu1  ;;  %v1617_v46 = vmax.bf16 %v12350_v1, %v1553_v40 }
 0x1bb   : > { %2076 = vmatmul.mubr.bf16.gmra.mrb[184].mxu0 %v1611_v30  ;;  %v1219_v48 = vpop.f32.mrb[41].mxu1 }
 0x1bc   : > { %2085 = vmatprep.mubr.bf16.mxu0 %v1614_v25  ;;  %v1221_v32 = vpop.f32.mrb[42].mxu1  ;;  %v1558_v40 = vadd.bf16 %v10056_v3, %v1475_v36 }
 0x1bd   : > { %v10490_v37 = vpack.c.bf16 %v1221_v32, %v1217_v56  ;;  %v1223_v20 = vpop.f32.mrb[43].mxu1  ;;  %v1555_v56 = vadd.bf16 %v10079_v13, %v1472_v47 }
 0x1be   : > { %v10450_v22 = vpop.f32.mrb[80].mxu0  ;;  %v10496_v42 = vpack.c.bf16 %v1223_v20, %v1219_v48  ;;  %v1227_v8 = vpop.f32.mrb[44].mxu1  ;;  %v1622_v28 = vmax.bf16 %v12350_v1, %v1558_v40 }
 0x1bf   : > { %v10452_v41 = vpop.f32.mrb[81].mxu0  ;;  %v1229_v52 = vpop.f32.mrb[45].mxu1  ;;  %v1619_v47 = vmax.bf16 %v12350_v1, %v1555_v56  ;;  %v1557_v56 = vadd.bf16 %v10079_v13, %v12379_v11 }
 0x1c0   : > { %v10454_v30 = vpop.f32.mrb[82].mxu0  ;;  %v1231_v21 = vpop.f32.mrb[46].mxu1 }
 0x1c1   : > { %v10458_v25 = vpop.f32.mrb[83].mxu0  ;;  %v10516_v20 = vpack.c.bf16 %v1231_v21, %v1227_v8  ;;  %v1233_v48 = vpop.f32.mrb[47].mxu1  ;;  %v9110_v8 = vld [vmem:[#allocation3 + $0x254] ss:$8 sps:$4 sm:$0xff]   ;;  %v1621_v44 = vmax.bf16 %v12350_v1, %v1557_v56 }
 0x1c2   : > { %v10522_v16 = vpack.c.bf16 %v1233_v48, %v1229_v52  ;;  %v1237_v52 = vpop.f32.mrb[48].mxu1  ;;  %v12381_v5 = vpack.c.bf16 %v10458_v25, %v10452_v41 }
 0x1c3   : > { %2086 = vmatmul.mubr.bf16.gmra.mrb[188].mxu0 %v1613_v31  ;;  %v1239_v36 = vpop.f32.mrb[49].mxu1 }
 0x1c4   : > { %2095 = vmatprep.mubr.bf16.mxu0 %v1616_v23  ;;  %v9105_v23 = vld [vmem:[#allocation3 + $0x240] ss:$8 sps:$4 sm:$0xff]   ;;  %12377 = vst [vmem:[#allocation9_spill] sm:$0xff] %v10522_v16  ;;  %v1241_v48 = vpop.f32.mrb[50].mxu1  ;;  %v1560_v40 = vadd.bf16 %v10056_v3, %v12381_v5 }
 0x1c5   : > { %3410 = vmatpush1.bf16.msra.mxu0 %v9105_v23  ;;  %v10542_v14 = vpack.c.bf16 %v1241_v48, %v1237_v52  ;;  %v1243_v27 = vpop.f32.mrb[51].mxu1  ;;  %v12383_v52 = vpack.c.bf16 %v10454_v30, %v10450_v22 }
 0x1c6   : > { %v10476_v39 = vpop.f32.mrb[84].mxu0  ;;  %3411 = vmatprep.subr.bf16.mxu0 %v9110_v8  ;;  %v10548_v8 = vpack.c.bf16 %v1243_v27, %v1239_v36  ;;  %v1247_v26 = vpop.f32.mrb[52].mxu1  ;;  %v1624_v41 = vmax.bf16 %v12350_v1, %v1560_v40 }
 0x1c7   : > { %v10478_v31 = vpop.f32.mrb[85].mxu0  ;;  %12378 = vst [vmem:[#allocation10_spill] sm:$0xff] %v10542_v14  ;;  %v1249_v25 = vpop.f32.mrb[53].mxu1 }
 0x1c8   : > { %v10480_v60 = vpop.f32.mrb[86].mxu0  ;;  %12380 = vst [vmem:[#allocation11_spill] sm:$0xff] %v10548_v8  ;;  %v1251_v11 = vpop.f32.mrb[54].mxu1  ;;  %v1559_v8 = vadd.bf16 %v10079_v13, %v12383_v52 }
 0x1c9   : > { %v10484_v15 = vpop.f32.mrb[87].mxu0  ;;  %v10568_v5 = vpack.c.bf16 %v1251_v11, %v1247_v26  ;;  %v1253_v36 = vpop.f32.mrb[55].mxu1  ;;  %v9113_v26 = vld [vmem:[#allocation3 + $0x264] ss:$8 sps:$4 sm:$0xff]   ;;  %v12387_v22 = vpack.c.bf16 %v10480_v60, %v10476_v39 }
 0x1ca   : > { %v10574_v14 = vpack.c.bf16 %v1253_v36, %v1249_v25  ;;  %v12385_v56 = vpack.c.bf16 %v10484_v15, %v10478_v31  ;;  %v1623_v52 = vmax.bf16 %v12350_v1, %v1559_v8  ;;  %v1257_v25 = vpop.f32.mrb[56].mxu1 }
 0x1cb   : > { %2096 = vmatmul.mubr.bf16.gmra.mrb[192].mxu0 %v1615_v18  ;;  %12382 = vst [vmem:[#allocation12_spill] sm:$0xff] %v10568_v5  ;;  %v1259_v36 = vpop.f32.mrb[57].mxu1  ;;  %v1561_v8 = vadd.bf16 %v10079_v13, %v12387_v22 }
 0x1cc   : > { %2105 = vmatprep.mubr.bf16.mxu0 %v1618_v24  ;;  %12384 = vst [vmem:[#allocation13_spill] sm:$0xff] %v10574_v14  ;;  %v1562_v27 = vadd.bf16 %v10056_v3, %v12385_v56  ;;  %v1261_v56 = vpop.f32.mrb[58].mxu1 }
 0x1cd   : > { %v10594_v14 = vpack.c.bf16 %v1261_v56, %v1257_v25  ;;  %v1263_v5 = vpop.f32.mrb[59].mxu1  ;;  %v1625_v39 = vmax.bf16 %v12350_v1, %v1561_v8 }
 0x1ce   : > { %v10502_v23 = vpop.f32.mrb[88].mxu0  ;;  %v1626_v15 = vmax.bf16 %v12350_v1, %v1562_v27  ;;  %v1267_v60 = vpop.f32.mrb[60].mxu1 }
 0x1cf   : > { %v10504_v18 = vpop.f32.mrb[89].mxu0  ;;  %12386 = vst [vmem:[#allocation14_spill] sm:$0xff] %v10594_v14 }
 0x1d0   : > { %v10506_v24 = vpop.f32.mrb[90].mxu0 }
 0x1d1   : > { %v10510_v32 = vpop.f32.mrb[91].mxu0  ;;  %v12391_v25 = vpack.c.bf16 %v10506_v24, %v10502_v23 }
 0x1d2   : > { %v12389_v31 = vpack.c.bf16 %v10510_v32, %v10504_v18  ;;  %v1269_v32 = vpop.f32.mrb[61].mxu1 }
 0x1d3   : > { %2106 = vmatmul.mubr.bf16.gmra.mrb[196].mxu0 %v1617_v46  ;;  %v1271_v22 = vpop.f32.mrb[62].mxu1 }
 0x1d4   : > { %2115 = vmatprep.mubr.bf16.mxu0 %v1620_v45  ;;  %v9108_v45 = vld [vmem:[#allocation3 + $0x250] ss:$8 sps:$4 sm:$0xff]   ;;  %v1564_v27 = vadd.bf16 %v10056_v3, %v12389_v31  ;;  %v10620_v31 = vpack.c.bf16 %v1271_v22, %v1267_v60  ;;  %v9116_v60 = vld [vmem:[#allocation3 + $0x274] ss:$8 sps:$4 sm:$0xff]  }
 0x1d5   : > { %3412 = vmatpush1.bf16.msra.mxu0 %v9108_v45 }
 0x1d6   : > { %v10528_v53 = vpop.f32.mrb[92].mxu0  ;;  %3413 = vmatprep.subr.bf16.mxu0 %v9113_v26  ;;  %v10600_v26 = vpack.c.bf16 %v1263_v5, %v1259_v36  ;;  %v1628_v18 = vmax.bf16 %v12350_v1, %v1564_v27  ;;  %12390 = vst [vmem:[#allocation16_spill] sm:$0xff] %v10620_v31  ;;  %v1273_v36 = vpop.f32.mrb[63].mxu1 }
 0x1d7   : > { %v10530_v46 = vpop.f32.mrb[93].mxu0  ;;  %v10626_v14 = vpack.c.bf16 %v1273_v36, %v1269_v32  ;;  %v1277_v32 = vpop.f32.mrb[64].mxu1 }
 0x1d8   : > { %v10532_v21 = vpop.f32.mrb[94].mxu0  ;;  %12388 = vst [vmem:[#allocation15_spill] sm:$0xff] %v10600_v26  ;;  %v1563_v26 = vadd.bf16 %v10079_v13, %v12391_v25  ;;  %v1279_v36 = vpop.f32.mrb[65].mxu1 }
 0x1d9   : > { %v10536_v12 = vpop.f32.mrb[95].mxu0  ;;  %12392 = vst [vmem:[#allocation17_spill] sm:$0xff] %v10626_v14  ;;  %v12395_v23 = vpack.c.bf16 %v10532_v21, %v10528_v53 }
 0x1da   : > { %v12393_v8 = vpack.c.bf16 %v10536_v12, %v10530_v46  ;;  %v1627_v25 = vmax.bf16 %v12350_v1, %v1563_v26 }
 0x1db   : > { %2116 = vmatmul.mubr.bf16.gmra.mrb[200].mxu0 %v1619_v47  ;;  %v1565_v26 = vadd.bf16 %v10079_v13, %v12395_v23 }
 0x1dc   : > { %2125 = vmatprep.mubr.bf16.mxu0 %v1622_v28  ;;  %v1566_v5 = vadd.bf16 %v10056_v3, %v12393_v8  ;;  %v1281_v8 = vpop.f32.mrb[66].mxu1 }
 0x1dd   : > { %v10646_v14 = vpack.c.bf16 %v1281_v8, %v1277_v32  ;;  %v1283_v31 = vpop.f32.mrb[67].mxu1  ;;  %v1629_v53 = vmax.bf16 %v12350_v1, %v1565_v26 }
 0x1de   : > { %v10554_v45 = vpop.f32.mrb[96].mxu0  ;;  %v1630_v12 = vmax.bf16 %v12350_v1, %v1566_v5  ;;  %v1287_v21 = vpop.f32.mrb[68].mxu1 }
 0x1df   : > { %v10556_v47 = vpop.f32.mrb[97].mxu0  ;;  %12394 = vst [vmem:[#allocation18_spill] sm:$0xff] %v10646_v14 }
 0x1e0   : > { %v10558_v28 = vpop.f32.mrb[98].mxu0 }
 0x1e1   : > { %v10562_v48 = vpop.f32.mrb[99].mxu0  ;;  %v12399_v32 = vpack.c.bf16 %v10558_v28, %v10554_v45 }
 0x1e2   : > { %v12397_v46 = vpack.c.bf16 %v10562_v48, %v10556_v47  ;;  %v1289_v48 = vpop.f32.mrb[69].mxu1 }
 0x1e3   : > { %2126 = vmatmul.mubr.bf16.gmra.mrb[204].mxu0 %v1621_v44  ;;  %v1291_v23 = vpop.f32.mrb[70].mxu1 }
 0x1e4   : > { %2135 = vmatprep.mubr.bf16.mxu0 %v1624_v41  ;;  %v9111_v41 = vld [vmem:[#allocation3 + $0x260] ss:$8 sps:$4 sm:$0xff]   ;;  %v1568_v5 = vadd.bf16 %v10056_v3, %v12397_v46  ;;  %v10672_v46 = vpack.c.bf16 %v1291_v23, %v1287_v21  ;;  %v9119_v21 = vld [vmem:[#allocation3 + $0x284] ss:$8 sps:$4 sm:$0xff]  }
 0x1e5   : > { %3414 = vmatpush1.bf16.msra.mxu0 %v9111_v41 }
 0x1e6   : > { %v10580_v40 = vpop.f32.mrb[100].mxu0  ;;  %3415 = vmatprep.subr.bf16.mxu0 %v9116_v60  ;;  %v10652_v60 = vpack.c.bf16 %v1283_v31, %v1279_v36  ;;  %v1632_v47 = vmax.bf16 %v12350_v1, %v1568_v5  ;;  %12398 = vst [vmem:[#allocation20_spill] sm:$0xff] %v10672_v46  ;;  %v1293_v36 = vpop.f32.mrb[71].mxu1 }
 0x1e7   : > { %v10582_v44 = vpop.f32.mrb[101].mxu0  ;;  %v10678_v14 = vpack.c.bf16 %v1293_v36, %v1289_v48  ;;  %v1297_v48 = vpop.f32.mrb[72].mxu1 }
 0x1e8   : > { %v10584_v11 = vpop.f32.mrb[102].mxu0  ;;  %12396 = vst [vmem:[#allocation19_spill] sm:$0xff] %v10652_v60  ;;  %v1567_v60 = vadd.bf16 %v10079_v13, %v12399_v32  ;;  %v1299_v36 = vpop.f32.mrb[73].mxu1 }
 0x1e9   : > { %v10588_v30 = vpop.f32.mrb[103].mxu0  ;;  %12400 = vst [vmem:[#allocation21_spill] sm:$0xff] %v10678_v14  ;;  %v12403_v45 = vpack.c.bf16 %v10584_v11, %v10580_v40 }
 0x1ea   : > { %v12401_v26 = vpack.c.bf16 %v10588_v30, %v10582_v44  ;;  %v1631_v32 = vmax.bf16 %v12350_v1, %v1567_v60 }
 0x1eb   : > { %2136 = vmatmul.mubr.bf16.gmra.mrb[208].mxu0 %v1623_v52  ;;  %v1569_v60 = vadd.bf16 %v10079_v13, %v12403_v45 }
 0x1ec   : > { %2145 = vmatprep.mubr.bf16.mxu0 %v1626_v15  ;;  %v1570_v31 = vadd.bf16 %v10056_v3, %v12401_v26  ;;  %v1301_v26 = vpop.f32.mrb[74].mxu1 }
 0x1ed   : > { %v10698_v14 = vpack.c.bf16 %v1301_v26, %v1297_v48  ;;  %v1303_v46 = vpop.f32.mrb[75].mxu1  ;;  %v1633_v40 = vmax.bf16 %v12350_v1, %v1569_v60 }
 0x1ee   : > { %v10606_v41 = vpop.f32.mrb[104].mxu0  ;;  %v1634_v30 = vmax.bf16 %v12350_v1, %v1570_v31  ;;  %v1307_v11 = vpop.f32.mrb[76].mxu1 }
 0x1ef   : > { %v10608_v52 = vpop.f32.mrb[105].mxu0  ;;  %12402 = vst [vmem:[#allocation22_spill] sm:$0xff] %v10698_v14 }
 0x1f0   : > { %v10610_v15 = vpop.f32.mrb[106].mxu0 }
 0x1f1   : > { %v10614_v56 = vpop.f32.mrb[107].mxu0  ;;  %v12407_v48 = vpack.c.bf16 %v10610_v15, %v10606_v41  ;;  %v2327_v41 = vshrl.u32 %v10025_v55, 16 }
 0x1f2   : > { %v12405_v44 = vpack.c.bf16 %v10614_v56, %v10608_v52  ;;  %v1309_v56 = vpop.f32.mrb[77].mxu1 }
 0x1f3   : > { %2146 = vmatmul.mubr.bf16.gmra.mrb[212].mxu0 %v1625_v39  ;;  %v1311_v45 = vpop.f32.mrb[78].mxu1 }
 0x1f4   : > { %2155 = vmatprep.mubr.bf16.mxu0 %v1628_v18  ;;  %v9114_v18 = vld [vmem:[#allocation3 + $0x270] ss:$8 sps:$4 sm:$0xff]   ;;  %v1572_v31 = vadd.bf16 %v10056_v3, %v12405_v44  ;;  %v10724_v44 = vpack.c.bf16 %v1311_v45, %v1307_v11  ;;  %v9122_v45 = vld [vmem:[#allocation3 + $0x294] ss:$8 sps:$4 sm:$0xff]  }
 0x1f5   : > { %3416 = vmatpush1.bf16.msra.mxu0 %v9114_v18  ;;  %v9120_v11 = vld [vmem:[#allocation3 + $0x290] ss:$8 sps:$4 sm:$0xff]  }
 0x1f6   : > { %v10632_v27 = vpop.f32.mrb[108].mxu0  ;;  %3417 = vmatprep.subr.bf16.mxu0 %v9119_v21  ;;  %v10704_v21 = vpack.c.bf16 %v1303_v46, %v1299_v36  ;;  %v1636_v52 = vmax.bf16 %v12350_v1, %v1572_v31  ;;  %12406 = vst [vmem:[#allocation24_spill] sm:$0xff] %v10724_v44  ;;  %v1313_v36 = vpop.f32.mrb[79].mxu1  ;;  %v10754_v44 = vpack.i.b16 %v2327_v41, %v2327_v41 }
 0x1f7   : > { %v10634_v39 = vpop.f32.mrb[109].mxu0  ;;  %v10730_v14 = vpack.c.bf16 %v1313_v36, %v1309_v56  ;;  %v1317_v56 = vpop.f32.mrb[80].mxu1 }
 0x1f8   : > { %v10636_v22 = vpop.f32.mrb[110].mxu0  ;;  %12404 = vst [vmem:[#allocation23_spill] sm:$0xff] %v10704_v21  ;;  %v1571_v21 = vadd.bf16 %v10079_v13, %v12407_v48 }
 0x1f9   : > { %v10640_v24 = vpop.f32.mrb[111].mxu0  ;;  %12408 = vst [vmem:[#allocation25_spill] sm:$0xff] %v10730_v14 }
 0x1fa   : > { %v12409_v60 = vpack.c.bf16 %v10640_v24, %v10634_v39  ;;  %v12410_v39 = vmov 0  }
 0x1fb   : > { %2156 = vmatmul.mubr.bf16.gmra.mrb[216].mxu0 %v1627_v25  ;;  %v1635_v24 = vmax.bf16 %v12410_v39, %v1571_v21  ;;  %v12412_v21 = vpack.c.bf16 %v10636_v22, %v10632_v27 }
 0x1fc   : > { %2165 = vmatprep.mubr.bf16.mxu0 %v1630_v12  ;;  %v1574_v46 = vadd.bf16 %v10056_v3, %v12409_v60  ;;  %v1319_v60 = vpop.f32.mrb[81].mxu1 }
 0x1fd   : > { %v1321_v55 = vpop.f32.mrb[82].mxu1 }
 0x1fe   : > { %v10658_v18 = vpop.f32.mrb[112].mxu0  ;;  %v1638_v36 = vmax.bf16 %v12410_v39, %v1574_v46  ;;  %v10756_v15 = vpack.c.bf16 %v1321_v55, %v1317_v56  ;;  %v1323_v16 = vpop.f32.mrb[83].mxu1 }
 0x1ff   : > { %v10660_v25 = vpop.f32.mrb[113].mxu0 }
 0x200   : > { %v10662_v12 = vpop.f32.mrb[114].mxu0  ;;  %12411 = vst [vmem:[#allocation26_spill] sm:$0xff] %v10756_v15 }
 0x201   : > { %v10666_v8 = vpop.f32.mrb[115].mxu0 }
 0x202   : > { %v12414_v46 = vpack.c.bf16 %v10666_v8, %v10660_v25 }
 0x203   : > { %2166 = vmatmul.mubr.bf16.gmra.mrb[220].mxu0 %v1629_v53 }
 0x204   : > { %2175 = vmatprep.mubr.bf16.mxu0 %v1632_v47  ;;  %v9117_v47 = vld [vmem:[#allocation3 + $0x280] ss:$8 sps:$4 sm:$0xff]  }
 0x205   : > { %3418 = vmatpush1.bf16.msra.mxu0 %v9117_v47 }
 0x206   : > { %v10684_v5 = vpop.f32.mrb[116].mxu0  ;;  %3419 = vmatprep.subr.bf16.mxu0 %v9122_v45  ;;  %v1573_v45 = vadd.bf16 %v10079_v13, %v12412_v21 }
 0x207   : > { %v10686_v53 = vpop.f32.mrb[117].mxu0 }
 0x208   : > { %v10688_v23 = vpop.f32.mrb[118].mxu0 }
 0x209   : > { %v10692_v28 = vpop.f32.mrb[119].mxu0  ;;  %3420 = vmatpush1.bf16.msra.mxu0 %v9120_v11 }
 0x20b   : > { %2176 = vmatmul.mubr.bf16.gmra.mrb[224].mxu0 %v1631_v32 }
 0x20c   : > { %2185 = vmatprep.mubr.bf16.mxu0 %v1634_v30 }
 0x20e   : > { %v10710_v47 = vpop.f32.mrb[120].mxu0 }
 0x20f   : > { %v10712_v32 = vpop.f32.mrb[121].mxu0 }
 0x210   : > { %v10714_v30 = vpop.f32.mrb[122].mxu0 }
 0x211   : > { %v10718_v26 = vpop.f32.mrb[123].mxu0 }
 0x213   : > { %2186 = vmatmul.mubr.bf16.gmra.mrb[228].mxu0 %v1633_v40  ;;  %v2320_v40 = vshrl.u32 %v10050_v63, 16  ;;  %v10762_v63 = vpack.c.bf16 %v1323_v16, %v1319_v60  ;;  %v1637_v16 = vmax.bf16 %v12410_v39, %v1573_v45  ;;  %v1327_v60 = vpop.f32.mrb[84].mxu1 }
 0x214   : > { %2195 = vmatprep.mubr.bf16.mxu0 %v1636_v52  ;;  %v1329_v8 = vpop.f32.mrb[85].mxu1 }
 0x215   : > { %v10752_v14 = vpack.i.b16 %v2320_v40, %v2320_v40  ;;  %12413 = vst [vmem:[#allocation27_spill] sm:$0xff] %v10762_v63  ;;  %v1576_v40 = vadd.bf16 %v10056_v3, %v12414_v46  ;;  %v1331_v46 = vpop.f32.mrb[86].mxu1 }
 0x216   : > { %v10736_v31 = vpop.f32.mrb[124].mxu0  ;;  %v10780_v15 = vpack.c.bf16 %v1331_v46, %v1327_v60 }
 0x217   : > { %v10739_v52 = vpop.f32.mrb[125].mxu0  ;;  %v10770_v41 = vrot.slane %v10752_v14, %v10032_v57  ;;  %v1640_v25 = vmax.bf16 %v12410_v39, %v1576_v40  ;;  %v12416_v40 = vpack.c.bf16 %v10692_v28, %v10686_v53 }
 0x218   : > { %v10741_v1 = vpop.f32.mrb[126].mxu0 }
 0x219   : > { %v10746_v48 = vpop.f32.mrb[127].mxu0 }
 0x21b   : > { %2196 = vmatmul.mubr.bf16.gmra.mrb[232].mxu0 %v1635_v24 }
 0x21c   : > { %2205 = vmatprep.mubr.bf16.mxu0 %v1638_v36  ;;  %v10774_v36 = vrot.slane %v10754_v44, %v10032_v57  ;;  %v1333_v57 = vpop.f32.mrb[87].mxu1 }
 0x21e   : > { %v1937_v11 = vpop.f32.mrb[128].mxu0 }
 0x21f   : > { %v1939_v24 = vpop.f32.mrb[129].mxu0 }
 0x220   : > { %v1941_v56 = vpop.f32.mrb[130].mxu0 }
 0x221   : > { %v2256_v27 = vpack.c.bf16 %v1941_v56, %v1937_v11  ;;  %v1943_v22 = vpop.f32.mrb[131].mxu0  ;;  %v12415_v11 = vpack.c.bf16 %v10662_v12, %v10658_v18  ;;  %v10786_v56 = vpack.c.bf16 %v1333_v57, %v1329_v8  ;;  %v1337_v57 = vpop.f32.mrb[88].mxu1 }
 0x222   : > { %v2257_v55 = vpack.c.bf16 %v1943_v22, %v1939_v24  ;;  %v1578_v24 = vadd.bf16 %v10056_v3, %v12416_v40 }
 0x223   : > { %v2334_v21 = vadd.bf16 %v10770_v41, %v2256_v27  ;;  %2206 = vmatmul.mubr.bf16.gmra.mrb[236].mxu0 %v1637_v16  ;;  %v1575_v45 = vadd.bf16 %v10079_v13, %v12415_v11  ;;  %v1339_v11 = vpop.f32.mrb[89].mxu1 }
 0x224   : > { %v2335_v63 = vadd.bf16 %v10774_v36, %v2257_v55  ;;  %2215 = vmatprep.mubr.bf16.mxu0 %v1640_v25  ;;  %v9123_v55 = vld [vmem:[#allocation3 + $0x2a0] ss:$8 sps:$4 sm:$0xff]   ;;  %v9125_v25 = vld [vmem:[#allocation3 + $0x2a4] ss:$8 sps:$4 sm:$0xff]   ;;  %v1642_v28 = vmax.bf16 %v12410_v39, %v1578_v24  ;;  %v12418_v24 = vpack.c.bf16 %v10718_v26, %v10712_v32 }
 0x225   : > { %v2398_v16 = vmax.bf16 %v12410_v39, %v2334_v21  ;;  %v1639_v8 = vmax.bf16 %v12410_v39, %v1575_v45  ;;  %3421 = vmatprep.subr.bf16.mxu0 %v9125_v25  ;;  %v1341_v21 = vpop.f32.mrb[90].mxu1  ;;  %v12417_v45 = vpack.c.bf16 %v10688_v23, %v10684_v5 }
 0x226   : > { %v1947_v27 = vpop.f32.mrb[132].mxu0  ;;  %v2399_v22 = vmax.bf16 %v12410_v39, %v2335_v63  ;;  %3422 = vmatpush1.bf16.msra.mxu0 %v9123_v55  ;;  %v1580_v55 = vadd.bf16 %v10056_v3, %v12418_v24 }
 0x227   : > { %v1949_v60 = vpop.f32.mrb[133].mxu0 }
 0x228   : > { %v1951_v46 = vpop.f32.mrb[134].mxu0  ;;  %2687 = vmatprep.mubr.bf16.mxu1 %v2399_v22  ;;  %v10798_v22 = vpack.c.bf16 %v1341_v21, %v1337_v57 }
 0x229   : > { %v2258_v18 = vpack.c.bf16 %v1951_v46, %v1947_v27  ;;  %v1953_v12 = vpop.f32.mrb[135].mxu0  ;;  %2688 = vmatmul.mubr.bf16.vlgmr.msra.gmra.mrb[128].mxu1 %v2398_v16  ;;  %v1343_v27 = vpop.f32.mrb[91].mxu1  ;;  %v1577_v16 = vadd.bf16 %v10079_v13, %v12417_v45  ;;  %v12419_v45 = vpack.c.bf16 %v10714_v30, %v10710_v47 }
 0x22a   : > { %v2259_v53 = vpack.c.bf16 %v1953_v12, %v1949_v60  ;;  %v10804_v60 = vpack.c.bf16 %v1343_v27, %v1339_v11  ;;  %v1347_v23 = vpop.f32.mrb[92].mxu1  ;;  %v1644_v11 = vmax.bf16 %v12410_v39, %v1580_v55  ;;  %v12420_v55 = vpack.c.bf16 %v10746_v48, %v10739_v52 }
 0x22b   : > { %v2336_v63 = vadd.bf16 %v10770_v41, %v2258_v18  ;;  %2216 = vmatmul.mubr.bf16.gmra.mrb[240].mxu0 %v1639_v8  ;;  %v1641_v5 = vmax.bf16 %v12410_v39, %v1577_v16  ;;  %v1349_v32 = vpop.f32.mrb[93].mxu1  ;;  %v1579_v16 = vadd.bf16 %v10079_v13, %v12419_v45 }
 0x22c   : > { %v2337_v40 = vadd.bf16 %v10774_v36, %v2259_v53  ;;  %2225 = vmatprep.mubr.bf16.mxu0 %v1642_v28  ;;  %v1351_v21 = vpop.f32.mrb[94].mxu1 }
 0x22d   : > { %v2400_v12 = vmax.bf16 %v12410_v39, %v2336_v63  ;;  %v10816_v63 = vpack.c.bf16 %v1351_v21, %v1347_v23  ;;  %v1353_v27 = vpop.f32.mrb[95].mxu1  ;;  %v1643_v23 = vmax.bf16 %v12410_v39, %v1579_v16 }
 0x22e   : > { %v1957_v25 = vpop.f32.mrb[136].mxu0  ;;  %v2401_v46 = vmax.bf16 %v12410_v39, %v2337_v40  ;;  %v10822_v24 = vpack.c.bf16 %v1353_v27, %v1349_v32  ;;  %v12421_v27 = vpack.c.bf16 %v10741_v1, %v10736_v31 }
 0x22f   : > { %v1959_v18 = vpop.f32.mrb[137].mxu0 }
 0x230   : > { %v1961_v8 = vpop.f32.mrb[138].mxu0  ;;  %2697 = vmatprep.mubr.bf16.mxu1 %v2401_v46  ;;  %v1581_v45 = vadd.bf16 %v10079_v13, %v12421_v27 }
 0x231   : > { %v2260_v57 = vpack.c.bf16 %v1961_v8, %v1957_v25  ;;  %v1963_v53 = vpop.f32.mrb[139].mxu0  ;;  %2698 = vmatmul.mubr.bf16.gmra.mrb[132].mxu1 %v2400_v12  ;;  %v1582_v25 = vadd.bf16 %v10056_v3, %v12420_v55 }
 0x232   : > { %v2261_v28 = vpack.c.bf16 %v1963_v53, %v1959_v18  ;;  %v9128_v53 = vld [vmem:[#allocation3 + $0x2b4] ss:$8 sps:$4 sm:$0xff]  }
 0x233   : > { %v2338_v26 = vadd.bf16 %v10770_v41, %v2260_v57  ;;  %2226 = vmatmul.mubr.bf16.gmra.mrb[244].mxu0 %v1641_v5  ;;  %v9126_v57 = vld [vmem:[#allocation3 + $0x2b0] ss:$8 sps:$4 sm:$0xff]   ;;  %3423 = vmatprep.subr.bf16.mxu0 %v9128_v53  ;;  %v1646_v3 = vmax.bf16 %v12410_v39, %v1582_v25  ;;  %v1645_v53 = vmax.bf16 %v12410_v39, %v1581_v45 }
 0x234   : > { %v2339_v40 = vadd.bf16 %v10774_v36, %v2261_v28  ;;  %2235 = vmatprep.mubr.bf16.mxu0 %v1644_v11  ;;  %v1357_v28 = vpop.f32.mrb[96].mxu1  ;;  %3424 = vmatpush1.bf16.msra.mxu0 %v9126_v57 }
 0x235   : > { %v2402_v8 = vmax.bf16 %v12410_v39, %v2338_v26  ;;  %v1359_v48 = vpop.f32.mrb[97].mxu1 }
 0x236   : > { %v1967_v46 = vpop.f32.mrb[140].mxu0  ;;  %v2403_v18 = vmax.bf16 %v12410_v39, %v2339_v40  ;;  %v1361_v32 = vpop.f32.mrb[98].mxu1 }
 0x237   : > { %v1969_v12 = vpop.f32.mrb[141].mxu0  ;;  %v10834_v21 = vpack.c.bf16 %v1361_v32, %v1357_v28  ;;  %v1363_v40 = vpop.f32.mrb[99].mxu1 }
 0x238   : > { %v1971_v5 = vpop.f32.mrb[142].mxu0  ;;  %2707 = vmatprep.mubr.bf16.mxu1 %v2403_v18  ;;  %v10840_v16 = vpack.c.bf16 %v1363_v40, %v1359_v48  ;;  %v9131_v40 = vld [vmem:[#allocation3 + $0x2c4] ss:$8 sps:$4 sm:$0xff]  }
 0x239   : > { %v2262_v47 = vpack.c.bf16 %v1971_v5, %v1967_v46  ;;  %v1973_v30 = vpop.f32.mrb[143].mxu0  ;;  %2708 = vmatmul.mubr.bf16.gmra.mrb[136].mxu1 %v2402_v8  ;;  %v1367_v5 = vpop.f32.mrb[100].mxu1  ;;  %3425 = vmatprep.subr.bf16.mxu0 %v9131_v40 }
 0x23a   : > { %v2263_v52 = vpack.c.bf16 %v1973_v30, %v1969_v12  ;;  %v1369_v1 = vpop.f32.mrb[101].mxu1 }
 0x23b   : > { %v2340_v11 = vadd.bf16 %v10770_v41, %v2262_v47  ;;  %2236 = vmatmul.mubr.bf16.gmra.mrb[248].mxu0 %v1643_v23  ;;  %v1371_v31 = vpop.f32.mrb[102].mxu1 }
 0x23c   : > { %v2341_v26 = vadd.bf16 %v10774_v36, %v2263_v52  ;;  %2245 = vmatprep.mubr.bf16.mxu0 %v1646_v3  ;;  %v10847_v23 = vpack.c.bf16 %v1371_v31, %v1367_v5  ;;  %v1373_v28 = vpop.f32.mrb[103].mxu1 }
 0x23d   : > { %v2404_v18 = vmax.bf16 %v12410_v39, %v2340_v11  ;;  %v10849_v52 = vpack.c.bf16 %v1373_v28, %v1369_v1 }
 0x23e   : > { %v1977_v55 = vpop.f32.mrb[144].mxu0  ;;  %v2405_v25 = vmax.bf16 %v12410_v39, %v2341_v26  ;;  %v9129_v26 = vld [vmem:[#allocation3 + $0x2c0] ss:$8 sps:$4 sm:$0xff]  }
 0x23f   : > { %v1979_v46 = vpop.f32.mrb[145].mxu0  ;;  %12422 = vst [vmem:[#allocation28_spill] sm:$0xff] %v10849_v52  ;;  %3426 = vmatpush1.bf16.msra.mxu0 %v9129_v26 }
 0x240   : > { %v1981_v12 = vpop.f32.mrb[146].mxu0  ;;  %2717 = vmatprep.mubr.bf16.mxu1 %v2405_v25  ;;  %v1377_v25 = vpop.f32.mrb[104].mxu1 }
 0x241   : > { %v2264_v8 = vpack.c.bf16 %v1981_v12, %v1977_v55  ;;  %v1983_v57 = vpop.f32.mrb[147].mxu0  ;;  %2718 = vmatmul.mubr.bf16.gmra.mrb[140].mxu1 %v2404_v18  ;;  %v1379_v18 = vpop.f32.mrb[105].mxu1 }
 0x242   : > { %v2265_v47 = vpack.c.bf16 %v1983_v57, %v1979_v46 }
 0x243   : > { %v2342_v13 = vadd.bf16 %v10770_v41, %v2264_v8  ;;  %2246 = vmatmul.mubr.bf16.gmra.mrb[252].mxu0 %v1645_v53  ;;  %v1381_v8 = vpop.f32.mrb[106].mxu1 }
 0x244   : > { %v2343_v30 = vadd.bf16 %v10774_v36, %v2265_v47  ;;  %v10855_v53 = vpack.c.bf16 %v1381_v8, %v1377_v25  ;;  %v1383_v5 = vpop.f32.mrb[107].mxu1 }
 0x245   : > { %v2406_v32 = vmax.bf16 %v12410_v39, %v2342_v13  ;;  %v10857_v47 = vpack.c.bf16 %v1383_v5, %v1379_v18  ;;  %v9132_v5 = vld [vmem:[#allocation3 + $0x2d0] ss:$8 sps:$4 sm:$0xff]  }
 0x246   : > { %v1987_v3 = vpop.f32.mrb[148].mxu0  ;;  %v2407_v48 = vmax.bf16 %v12410_v39, %v2343_v30  ;;  %12423 = vst [vmem:[#allocation29_spill] sm:$0xff] %v10855_v53 }
 0x247   : > { %v1989_v11 = vpop.f32.mrb[149].mxu0  ;;  %12424 = vst [vmem:[#allocation30_spill] sm:$0xff] %v10857_v47 }
 0x248   : > { %v1991_v27 = vpop.f32.mrb[150].mxu0  ;;  %2727 = vmatprep.mubr.bf16.mxu1 %v2407_v48 }
 0x249   : > { %v2266_v45 = vpack.c.bf16 %v1991_v27, %v1987_v3  ;;  %v1993_v55 = vpop.f32.mrb[151].mxu0  ;;  %2728 = vmatmul.mubr.bf16.gmra.mrb[144].mxu1 %v2406_v32 }
 0x24a   : > { %v2267_v46 = vpack.c.bf16 %v1993_v55, %v1989_v11  ;;  %v1387_v11 = vpop.f32.mrb[108].mxu1 }
 0x24b   : > { %v2344_v12 = vadd.bf16 %v10770_v41, %v2266_v45  ;;  %v1389_v26 = vpop.f32.mrb[109].mxu1 }
 0x24c   : > { %v2345_v57 = vadd.bf16 %v10774_v36, %v2267_v46  ;;  %v1391_v27 = vpop.f32.mrb[110].mxu1 }
 0x24d   : > { %v2408_v30 = vmax.bf16 %v12410_v39, %v2344_v12  ;;  %v10863_v55 = vpack.c.bf16 %v1391_v27, %v1387_v11  ;;  %v1393_v25 = vpop.f32.mrb[111].mxu1 }
 0x24e   : > { %v1997_v1 = vpop.f32.mrb[152].mxu0  ;;  %v2409_v13 = vmax.bf16 %v12410_v39, %v2345_v57  ;;  %v10865_v46 = vpack.c.bf16 %v1393_v25, %v1389_v26 }
 0x24f   : > { %v1999_v31 = vpop.f32.mrb[153].mxu0  ;;  %12425 = vst [vmem:[#allocation31_spill] sm:$0xff] %v10863_v55 }
 0x250   : > { %v2001_v28 = vpop.f32.mrb[154].mxu0  ;;  %2737 = vmatprep.mubr.bf16.mxu1 %v2409_v13  ;;  %12426 = vst [vmem:[#allocation32_spill] sm:$0xff] %v10865_v46 }
 0x251   : > { %v2268_v3 = vpack.c.bf16 %v2001_v28, %v1997_v1  ;;  %v2003_v48 = vpop.f32.mrb[155].mxu0  ;;  %2738 = vmatmul.mubr.bf16.gmra.mrb[148].mxu1 %v2408_v30  ;;  %v9134_v1 = vld [vmem:[#allocation3 + $0x2d4] ss:$8 sps:$4 sm:$0xff]   ;;  %v1397_v28 = vpop.f32.mrb[112].mxu1 }
 0x252   : > { %v2269_v32 = vpack.c.bf16 %v2003_v48, %v1999_v31  ;;  %3427 = vmatprep.subr.bf16.mxu0 %v9134_v1  ;;  %v1399_v48 = vpop.f32.mrb[113].mxu1 }
 0x253   : > { %v2346_v40 = vadd.bf16 %v10770_v41, %v2268_v3  ;;  %3428 = vmatpush1.bf16.msra.mxu0 %v9132_v5 }
 0x254   : > { %v2347_v45 = vadd.bf16 %v10774_v36, %v2269_v32  ;;  %v1401_v32 = vpop.f32.mrb[114].mxu1 }
 0x255   : > { %v2410_v57 = vmax.bf16 %v12410_v39, %v2346_v40  ;;  %v10871_v27 = vpack.c.bf16 %v1401_v32, %v1397_v28  ;;  %v1403_v40 = vpop.f32.mrb[115].mxu1 }
 0x256   : > { %v2007_v18 = vpop.f32.mrb[156].mxu0  ;;  %v2411_v12 = vmax.bf16 %v12410_v39, %v2347_v45  ;;  %v10873_v45 = vpack.c.bf16 %v1403_v40, %v1399_v48 }
 0x257   : > { %v2009_v8 = vpop.f32.mrb[157].mxu0  ;;  %12427 = vst [vmem:[#allocation33_spill] sm:$0xff] %v10871_v27 }
 0x258   : > { %v2011_v13 = vpop.f32.mrb[158].mxu0  ;;  %2747 = vmatprep.mubr.bf16.mxu1 %v2411_v12  ;;  %12428 = vst [vmem:[#allocation34_spill] sm:$0xff] %v10873_v45  ;;  %v9137_v45 = vld [vmem:[#allocation3 + $0x304] ss:$8 sps:$4 sm:$0xff]  }
 0x259   : > { %v2270_v31 = vpack.c.bf16 %v2011_v13, %v2007_v18  ;;  %v2013_v30 = vpop.f32.mrb[159].mxu0  ;;  %2748 = vmatmul.mubr.bf16.gmra.mrb[152].mxu1 %v2410_v57  ;;  %v1407_v13 = vpop.f32.mrb[116].mxu1  ;;  %4147 = vmatprep.subr.bf16.mxu1 %v9137_v45 }
 0x25a   : > { %v2271_v3 = vpack.c.bf16 %v2013_v30, %v2009_v8  ;;  %v1409_v30 = vpop.f32.mrb[117].mxu1 }
 0x25b   : > { %v2348_v11 = vadd.bf16 %v10770_v41, %v2270_v31 }
 0x25c   : > { %v2349_v26 = vadd.bf16 %v10774_v36, %v2271_v3  ;;  %v1411_v3 = vpop.f32.mrb[118].mxu1 }
 0x25d   : > { %v2412_v57 = vmax.bf16 %v12410_v39, %v2348_v11  ;;  %v10879_v32 = vpack.c.bf16 %v1411_v3, %v1407_v13  ;;  %v1413_v40 = vpop.f32.mrb[119].mxu1 }
 0x25e   : > { %v2017_v25 = vpop.f32.mrb[160].mxu0  ;;  %v2413_v18 = vmax.bf16 %v12410_v39, %v2349_v26  ;;  %v9135_v26 = vld [vmem:[#allocation3 + $0x300] ss:$8 sps:$4 sm:$0xff]   ;;  %v10881_v27 = vpack.c.bf16 %v1413_v40, %v1409_v30 }
 0x25f   : > { %v2019_v12 = vpop.f32.mrb[161].mxu0  ;;  %12429 = vst [vmem:[#allocation35_spill] sm:$0xff] %v10879_v32  ;;  %4148 = vmatpush1.bf16.msra.mxu1 %v9135_v26 }
 0x260   : > { %v2021_v1 = vpop.f32.mrb[162].mxu0  ;;  %2757 = vmatprep.mubr.bf16.mxu1 %v2413_v18  ;;  %12430 = vst [vmem:[#allocation36_spill] sm:$0xff] %v10881_v27 }
 0x261   : > { %v2272_v8 = vpack.c.bf16 %v2021_v1, %v2017_v25  ;;  %v2023_v5 = vpop.f32.mrb[163].mxu0  ;;  %2758 = vmatmul.mubr.bf16.gmra.mrb[156].mxu1 %v2412_v57  ;;  %v9138_v57 = vld [vmem:[#allocation3 + $0x2e0] ss:$8 sps:$4 sm:$0xff]   ;;  %v9140_v1 = vld [vmem:[#allocation3 + $0x2e4] ss:$8 sps:$4 sm:$0xff]  }
 0x262   : > { %v2273_v31 = vpack.c.bf16 %v2023_v5, %v2019_v12  ;;  %3429 = vmatprep.subr.bf16.mxu0 %v9140_v1 }
 0x263   : > { %v2350_v28 = vadd.bf16 %v10770_v41, %v2272_v8  ;;  %3430 = vmatpush1.bf16.msra.mxu0 %v9138_v57 }
 0x264   : > { %v2351_v48 = vadd.bf16 %v10774_v36, %v2273_v31  ;;  %v1417_v31 = vpop.f32.mrb[120].mxu1 }
 0x265   : > { %v2414_v12 = vmax.bf16 %v12410_v39, %v2350_v28  ;;  %v1419_v30 = vpop.f32.mrb[121].mxu1 }
 0x266   : > { %v2027_v11 = vpop.f32.mrb[164].mxu0  ;;  %v2415_v25 = vmax.bf16 %v12410_v39, %v2351_v48  ;;  %v1421_v48 = vpop.f32.mrb[122].mxu1 }
 0x267   : > { %v2029_v18 = vpop.f32.mrb[165].mxu0  ;;  %v10887_v27 = vpack.c.bf16 %v1421_v48, %v1417_v31  ;;  %v1423_v28 = vpop.f32.mrb[123].mxu1 }
 0x268   : > { %v2031_v8 = vpop.f32.mrb[166].mxu0  ;;  %2767 = vmatprep.mubr.bf16.mxu1 %v2415_v25  ;;  %v10889_v26 = vpack.c.bf16 %v1423_v28, %v1419_v30 }
 0x269   : > { %v2274_v5 = vpack.c.bf16 %v2031_v8, %v2027_v11  ;;  %v2033_v13 = vpop.f32.mrb[167].mxu0  ;;  %2768 = vmatmul.mubr.bf16.gmra.mrb[160].mxu1 %v2414_v12  ;;  %12431 = vst [vmem:[#allocation37_spill] sm:$0xff] %v10887_v27  ;;  %v1427_v8 = vpop.f32.mrb[124].mxu1 }
 0x26a   : > { %v2275_v3 = vpack.c.bf16 %v2033_v13, %v2029_v18  ;;  %12432 = vst [vmem:[#allocation38_spill] sm:$0xff] %v10889_v26  ;;  %v1429_v13 = vpop.f32.mrb[125].mxu1  ;;  %v9143_v26 = vld [vmem:[#allocation3 + $0x314] ss:$8 sps:$4 sm:$0xff]  }
 0x26b   : > { %v2352_v40 = vadd.bf16 %v10770_v41, %v2274_v5  ;;  %4149 = vmatprep.subr.bf16.mxu1 %v9143_v26 }
 0x26c   : > { %v2353_v45 = vadd.bf16 %v10774_v36, %v2275_v3  ;;  %v1431_v3 = vpop.f32.mrb[126].mxu1 }
 0x26d   : > { %v2416_v12 = vmax.bf16 %v12410_v39, %v2352_v40  ;;  %v10895_v48 = vpack.c.bf16 %v1431_v3, %v1427_v8  ;;  %v1433_v28 = vpop.f32.mrb[127].mxu1 }
 0x26e   : > { %v2037_v32 = vpop.f32.mrb[168].mxu0  ;;  %v2417_v11 = vmax.bf16 %v12410_v39, %v2353_v45  ;;  %v9141_v45 = vld [vmem:[#allocation3 + $0x310] ss:$8 sps:$4 sm:$0xff]   ;;  %v10897_v27 = vpack.c.bf16 %v1433_v28, %v1429_v13 }
 0x26f   : > { %v2039_v25 = vpop.f32.mrb[169].mxu0  ;;  %12433 = vst [vmem:[#allocation39_spill] sm:$0xff] %v10895_v48  ;;  %4150 = vmatpush1.bf16.msra.mxu1 %v9141_v45 }
 0x270   : > { %v2041_v1 = vpop.f32.mrb[170].mxu0  ;;  %2777 = vmatprep.mubr.bf16.mxu1 %v2417_v11  ;;  %12434 = vst [vmem:[#allocation40_spill] sm:$0xff] %v10897_v27 }
 0x271   : > { %v2276_v18 = vpack.c.bf16 %v2041_v1, %v2037_v32  ;;  %v2043_v57 = vpop.f32.mrb[171].mxu0  ;;  %2778 = vmatmul.mubr.bf16.gmra.mrb[164].mxu1 %v2416_v12  ;;  %v9144_v12 = vld [vmem:[#allocation3 + $0x2f0] ss:$8 sps:$4 sm:$0xff]   ;;  %v9146_v1 = vld [vmem:[#allocation3 + $0x2f4] ss:$8 sps:$4 sm:$0xff]  }
 0x272   : > { %v2277_v5 = vpack.c.bf16 %v2043_v57, %v2039_v25  ;;  %3431 = vmatprep.subr.bf16.mxu0 %v9146_v1  ;;  %v9149_v1 = vld [vmem:[#allocation3 + $0x324] ss:$8 sps:$4 sm:$0xff]  }
 0x273   : > { %v2354_v31 = vadd.bf16 %v10770_v41, %v2276_v18  ;;  %3432 = vmatpush1.bf16.msra.mxu0 %v9144_v12  ;;  %v9147_v12 = vld [vmem:[#allocation3 + $0x320] ss:$8 sps:$4 sm:$0xff]   ;;  %4151 = vmatprep.subr.bf16.mxu1 %v9149_v1 }
 0x274   : > { %v2355_v30 = vadd.bf16 %v10774_v36, %v2277_v5  ;;  %4152 = vmatpush1.bf16.msra.mxu1 %v9147_v12 }
 0x275   : > { %v2418_v25 = vmax.bf16 %v12410_v39, %v2354_v31 }
 0x276   : > { %v2047_v40 = vpop.f32.mrb[172].mxu0  ;;  %v2419_v32 = vmax.bf16 %v12410_v39, %v2355_v30 }
 0x277   : > { %v2049_v11 = vpop.f32.mrb[173].mxu0 }
 0x278   : > { %v2051_v18 = vpop.f32.mrb[174].mxu0  ;;  %2787 = vmatprep.mubr.bf16.mxu1 %v2419_v32 }
 0x279   : > { %v2278_v57 = vpack.c.bf16 %v2051_v18, %v2047_v40  ;;  %v2053_v8 = vpop.f32.mrb[175].mxu0  ;;  %2788 = vmatmul.mubr.bf16.gmra.mrb[168].mxu1 %v2418_v25 }
 0x27a   : > { %v2279_v5 = vpack.c.bf16 %v2053_v8, %v2049_v11 }
 0x27b   : > { %v2356_v13 = vadd.bf16 %v10770_v41, %v2278_v57 }
 0x27c   : > { %v2357_v3 = vadd.bf16 %v10774_v36, %v2279_v5 }
 0x27d   : > { %v2420_v31 = vmax.bf16 %v12410_v39, %v2356_v13 }
 0x27e   : > { %v2057_v30 = vpop.f32.mrb[176].mxu0  ;;  %v2421_v26 = vmax.bf16 %v12410_v39, %v2357_v3 }
 0x27f   : > { %v2059_v28 = vpop.f32.mrb[177].mxu0 }
 0x280   : > { %v2061_v45 = vpop.f32.mrb[178].mxu0  ;;  %2797 = vmatprep.mubr.bf16.mxu1 %v2421_v26 }
 0x281   : > { %v2280_v27 = vpack.c.bf16 %v2061_v45, %v2057_v30  ;;  %v2063_v32 = vpop.f32.mrb[179].mxu0  ;;  %2798 = vmatmul.mubr.bf16.gmra.mrb[172].mxu1 %v2420_v31 }
 0x282   : > { %v2281_v40 = vpack.c.bf16 %v2063_v32, %v2059_v28 }
 0x283   : > { %v2358_v25 = vadd.bf16 %v10770_v41, %v2280_v27 }
 0x284   : > { %v2359_v11 = vadd.bf16 %v10774_v36, %v2281_v40 }
 0x285   : > { %v2422_v5 = vmax.bf16 %v12410_v39, %v2358_v25 }
 0x286   : > { %v2067_v18 = vpop.f32.mrb[180].mxu0  ;;  %v2423_v57 = vmax.bf16 %v12410_v39, %v2359_v11 }
 0x287   : > { %v2069_v8 = vpop.f32.mrb[181].mxu0 }
 0x288   : > { %v2071_v13 = vpop.f32.mrb[182].mxu0  ;;  %2807 = vmatprep.mubr.bf16.mxu1 %v2423_v57 }
 0x289   : > { %v2282_v3 = vpack.c.bf16 %v2071_v13, %v2067_v18  ;;  %v2073_v30 = vpop.f32.mrb[183].mxu0  ;;  %2808 = vmatmul.mubr.bf16.gmra.mrb[176].mxu1 %v2422_v5  ;;  %v9152_v5 = vld [vmem:[#allocation3 + $0x334] ss:$8 sps:$4 sm:$0xff]  }
 0x28a   : > { %v2283_v26 = vpack.c.bf16 %v2073_v30, %v2069_v8  ;;  %v9150_v8 = vld [vmem:[#allocation3 + $0x330] ss:$8 sps:$4 sm:$0xff]   ;;  %4153 = vmatprep.subr.bf16.mxu1 %v9152_v5 }
 0x28b   : > { %v2360_v27 = vadd.bf16 %v10770_v41, %v2282_v3  ;;  %4154 = vmatpush1.bf16.msra.mxu1 %v9150_v8 }
 0x28c   : > { %v2361_v28 = vadd.bf16 %v10774_v36, %v2283_v26 }
 0x28d   : > { %v2424_v40 = vmax.bf16 %v12410_v39, %v2360_v27 }
 0x28e   : > { %v2077_v31 = vpop.f32.mrb[184].mxu0  ;;  %v2425_v45 = vmax.bf16 %v12410_v39, %v2361_v28 }
 0x28f   : > { %v2079_v32 = vpop.f32.mrb[185].mxu0 }
 0x290   : > { %v2081_v11 = vpop.f32.mrb[186].mxu0  ;;  %2817 = vmatprep.mubr.bf16.mxu1 %v2425_v45 }
 0x291   : > { %v2284_v25 = vpack.c.bf16 %v2081_v11, %v2077_v31  ;;  %v2083_v1 = vpop.f32.mrb[187].mxu0  ;;  %2818 = vmatmul.mubr.bf16.gmra.mrb[180].mxu1 %v2424_v40 }
 0x292   : > { %v2285_v12 = vpack.c.bf16 %v2083_v1, %v2079_v32 }
 0x293   : > { %v2362_v18 = vadd.bf16 %v10770_v41, %v2284_v25 }
 0x294   : > { %v2363_v57 = vadd.bf16 %v10774_v36, %v2285_v12 }
 0x295   : > { %v2426_v26 = vmax.bf16 %v12410_v39, %v2362_v18 }
 0x296   : > { %v2087_v13 = vpop.f32.mrb[188].mxu0  ;;  %v2427_v3 = vmax.bf16 %v12410_v39, %v2363_v57 }
 0x297   : > { %v2089_v30 = vpop.f32.mrb[189].mxu0 }
 0x298   : > { %v2091_v27 = vpop.f32.mrb[190].mxu0  ;;  %2827 = vmatprep.mubr.bf16.mxu1 %v2427_v3 }
 0x299   : > { %v2286_v28 = vpack.c.bf16 %v2091_v27, %v2087_v13  ;;  %v2093_v31 = vpop.f32.mrb[191].mxu0  ;;  %2828 = vmatmul.mubr.bf16.gmra.mrb[184].mxu1 %v2426_v26  ;;  %v9155_v26 = vld [vmem:[#allocation3 + $0x344] ss:$8 sps:$4 sm:$0xff]  }
 0x29a   : > { %v2287_v45 = vpack.c.bf16 %v2093_v31, %v2089_v30  ;;  %v9153_v30 = vld [vmem:[#allocation3 + $0x340] ss:$8 sps:$4 sm:$0xff]   ;;  %4155 = vmatprep.subr.bf16.mxu1 %v9155_v26 }
 0x29b   : > { %v2364_v32 = vadd.bf16 %v10770_v41, %v2286_v28  ;;  %4156 = vmatpush1.bf16.msra.mxu1 %v9153_v30 }
 0x29c   : > { %v2365_v40 = vadd.bf16 %v10774_v36, %v2287_v45 }
 0x29d   : > { %v2428_v12 = vmax.bf16 %v12410_v39, %v2364_v32 }
 0x29e   : > { %v2097_v11 = vpop.f32.mrb[192].mxu0  ;;  %v2429_v25 = vmax.bf16 %v12410_v39, %v2365_v40 }
 0x29f   : > { %v2099_v1 = vpop.f32.mrb[193].mxu0 }
 0x2a0   : > { %v2101_v57 = vpop.f32.mrb[194].mxu0  ;;  %2837 = vmatprep.mubr.bf16.mxu1 %v2429_v25 }
 0x2a1   : > { %v2288_v18 = vpack.c.bf16 %v2101_v57, %v2097_v11  ;;  %v2103_v5 = vpop.f32.mrb[195].mxu0  ;;  %2838 = vmatmul.mubr.bf16.gmra.mrb[188].mxu1 %v2428_v12 }
 0x2a2   : > { %v2289_v8 = vpack.c.bf16 %v2103_v5, %v2099_v1 }
 0x2a3   : > { %v2366_v13 = vadd.bf16 %v10770_v41, %v2288_v18 }
 0x2a4   : > { %v2367_v3 = vadd.bf16 %v10774_v36, %v2289_v8 }
 0x2a5   : > { %v2430_v45 = vmax.bf16 %v12410_v39, %v2366_v13 }
 0x2a6   : > { %v2107_v27 = vpop.f32.mrb[196].mxu0  ;;  %v2431_v28 = vmax.bf16 %v12410_v39, %v2367_v3 }
 0x2a7   : > { %v2109_v31 = vpop.f32.mrb[197].mxu0 }
 0x2a8   : > { %v2111_v32 = vpop.f32.mrb[198].mxu0  ;;  %2847 = vmatprep.mubr.bf16.mxu1 %v2431_v28 }
 0x2a9   : > { %v2290_v40 = vpack.c.bf16 %v2111_v32, %v2107_v27  ;;  %v2113_v11 = vpop.f32.mrb[199].mxu0  ;;  %2848 = vmatmul.mubr.bf16.gmra.mrb[192].mxu1 %v2430_v45  ;;  %v9158_v45 = vld [vmem:[#allocation3 + $0x354] ss:$8 sps:$4 sm:$0xff]  }
 0x2aa   : > { %v2291_v25 = vpack.c.bf16 %v2113_v11, %v2109_v31  ;;  %v9156_v31 = vld [vmem:[#allocation3 + $0x350] ss:$8 sps:$4 sm:$0xff]   ;;  %4157 = vmatprep.subr.bf16.mxu1 %v9158_v45 }
 0x2ab   : > { %v2368_v1 = vadd.bf16 %v10770_v41, %v2290_v40  ;;  %4158 = vmatpush1.bf16.msra.mxu1 %v9156_v31 }
 0x2ac   : > { %v2369_v12 = vadd.bf16 %v10774_v36, %v2291_v25 }
 0x2ad   : > { %v2432_v8 = vmax.bf16 %v12410_v39, %v2368_v1 }
 0x2ae   : > { %v2117_v57 = vpop.f32.mrb[200].mxu0  ;;  %v2433_v18 = vmax.bf16 %v12410_v39, %v2369_v12 }
 0x2af   : > { %v2119_v5 = vpop.f32.mrb[201].mxu0 }
 0x2b0   : > { %v2121_v3 = vpop.f32.mrb[202].mxu0  ;;  %2857 = vmatprep.mubr.bf16.mxu1 %v2433_v18 }
 0x2b1   : > { %v2292_v13 = vpack.c.bf16 %v2121_v3, %v2117_v57  ;;  %v2123_v26 = vpop.f32.mrb[203].mxu0  ;;  %2858 = vmatmul.mubr.bf16.gmra.mrb[196].mxu1 %v2432_v8 }
 0x2b2   : > { %v2293_v30 = vpack.c.bf16 %v2123_v26, %v2119_v5 }
 0x2b3   : > { %v2370_v27 = vadd.bf16 %v10770_v41, %v2292_v13 }
 0x2b4   : > { %v2371_v28 = vadd.bf16 %v10774_v36, %v2293_v30 }
 0x2b5   : > { %v2434_v25 = vmax.bf16 %v12410_v39, %v2370_v27 }
 0x2b6   : > { %v2127_v32 = vpop.f32.mrb[204].mxu0  ;;  %v2435_v40 = vmax.bf16 %v12410_v39, %v2371_v28 }
 0x2b7   : > { %v2129_v11 = vpop.f32.mrb[205].mxu0 }
 0x2b8   : > { %v2131_v1 = vpop.f32.mrb[206].mxu0  ;;  %2867 = vmatprep.mubr.bf16.mxu1 %v2435_v40 }
 0x2b9   : > { %v2294_v12 = vpack.c.bf16 %v2131_v1, %v2127_v32  ;;  %v2133_v57 = vpop.f32.mrb[207].mxu0  ;;  %2868 = vmatmul.mubr.bf16.gmra.mrb[200].mxu1 %v2434_v25  ;;  %v9161_v25 = vld [vmem:[#allocation3 + $0x364] ss:$8 sps:$4 sm:$0xff]  }
 0x2ba   : > { %v2295_v18 = vpack.c.bf16 %v2133_v57, %v2129_v11  ;;  %v9159_v11 = vld [vmem:[#allocation3 + $0x360] ss:$8 sps:$4 sm:$0xff]   ;;  %4159 = vmatprep.subr.bf16.mxu1 %v9161_v25 }
 0x2bb   : > { %v2372_v5 = vadd.bf16 %v10770_v41, %v2294_v12  ;;  %4160 = vmatpush1.bf16.msra.mxu1 %v9159_v11 }
 0x2bc   : > { %v2373_v8 = vadd.bf16 %v10774_v36, %v2295_v18 }
 0x2bd   : > { %v2436_v30 = vmax.bf16 %v12410_v39, %v2372_v5 }
 0x2be   : > { %v2137_v3 = vpop.f32.mrb[208].mxu0  ;;  %v2437_v13 = vmax.bf16 %v12410_v39, %v2373_v8 }
 0x2bf   : > { %v2139_v26 = vpop.f32.mrb[209].mxu0 }
 0x2c0   : > { %v2141_v28 = vpop.f32.mrb[210].mxu0  ;;  %2877 = vmatprep.mubr.bf16.mxu1 %v2437_v13 }
 0x2c1   : > { %v2296_v27 = vpack.c.bf16 %v2141_v28, %v2137_v3  ;;  %v2143_v45 = vpop.f32.mrb[211].mxu0  ;;  %2878 = vmatmul.mubr.bf16.gmra.mrb[204].mxu1 %v2436_v30 }
 0x2c2   : > { %v2297_v31 = vpack.c.bf16 %v2143_v45, %v2139_v26 }
 0x2c3   : > { %v2374_v32 = vadd.bf16 %v10770_v41, %v2296_v27 }
 0x2c4   : > { %v2375_v40 = vadd.bf16 %v10774_v36, %v2297_v31 }
 0x2c5   : > { %v2438_v18 = vmax.bf16 %v12410_v39, %v2374_v32 }
 0x2c6   : > { %v2147_v1 = vpop.f32.mrb[212].mxu0  ;;  %v2439_v12 = vmax.bf16 %v12410_v39, %v2375_v40 }
 0x2c7   : > { %v2149_v57 = vpop.f32.mrb[213].mxu0 }
 0x2c8   : > { %v2151_v5 = vpop.f32.mrb[214].mxu0  ;;  %2887 = vmatprep.mubr.bf16.mxu1 %v2439_v12 }
 0x2c9   : > { %v2298_v8 = vpack.c.bf16 %v2151_v5, %v2147_v1  ;;  %v2153_v3 = vpop.f32.mrb[215].mxu0  ;;  %2888 = vmatmul.mubr.bf16.gmra.mrb[208].mxu1 %v2438_v18  ;;  %v9164_v18 = vld [vmem:[#allocation3 + $0x374] ss:$8 sps:$4 sm:$0xff]  }
 0x2ca   : > { %v2299_v13 = vpack.c.bf16 %v2153_v3, %v2149_v57  ;;  %v9162_v57 = vld [vmem:[#allocation3 + $0x370] ss:$8 sps:$4 sm:$0xff]   ;;  %4161 = vmatprep.subr.bf16.mxu1 %v9164_v18 }
 0x2cb   : > { %v2376_v26 = vadd.bf16 %v10770_v41, %v2298_v8  ;;  %4162 = vmatpush1.bf16.msra.mxu1 %v9162_v57 }
 0x2cc   : > { %v2377_v30 = vadd.bf16 %v10774_v36, %v2299_v13 }
 0x2cd   : > { %v2440_v31 = vmax.bf16 %v12410_v39, %v2376_v26 }
 0x2ce   : > { %v2157_v28 = vpop.f32.mrb[216].mxu0  ;;  %v2441_v27 = vmax.bf16 %v12410_v39, %v2377_v30 }
 0x2cf   : > { %v2159_v45 = vpop.f32.mrb[217].mxu0 }
 0x2d0   : > { %v2161_v40 = vpop.f32.mrb[218].mxu0  ;;  %2897 = vmatprep.mubr.bf16.mxu1 %v2441_v27 }
 0x2d1   : > { %v2300_v32 = vpack.c.bf16 %v2161_v40, %v2157_v28  ;;  %v2163_v25 = vpop.f32.mrb[219].mxu0  ;;  %2898 = vmatmul.mubr.bf16.gmra.mrb[212].mxu1 %v2440_v31 }
 0x2d2   : > { %v2301_v11 = vpack.c.bf16 %v2163_v25, %v2159_v45 }
 0x2d3   : > { %v2378_v1 = vadd.bf16 %v10770_v41, %v2300_v32 }
 0x2d4   : > { %v2379_v12 = vadd.bf16 %v10774_v36, %v2301_v11 }
 0x2d5   : > { %v2442_v13 = vmax.bf16 %v12410_v39, %v2378_v1 }
 0x2d6   : > { %v2167_v5 = vpop.f32.mrb[220].mxu0  ;;  %v2443_v8 = vmax.bf16 %v12410_v39, %v2379_v12 }
 0x2d7   : > { %v2169_v3 = vpop.f32.mrb[221].mxu0 }
 0x2d8   : > { %v2171_v26 = vpop.f32.mrb[222].mxu0  ;;  %2907 = vmatprep.mubr.bf16.mxu1 %v2443_v8 }
 0x2d9   : > { %v2302_v30 = vpack.c.bf16 %v2171_v26, %v2167_v5  ;;  %v2173_v28 = vpop.f32.mrb[223].mxu0  ;;  %2908 = vmatmul.mubr.bf16.gmra.mrb[216].mxu1 %v2442_v13  ;;  %v9167_v13 = vld [vmem:[#allocation3 + $0x384] ss:$8 sps:$4 sm:$0xff]  }
 0x2da   : > { %v2303_v27 = vpack.c.bf16 %v2173_v28, %v2169_v3  ;;  %v9165_v3 = vld [vmem:[#allocation3 + $0x380] ss:$8 sps:$4 sm:$0xff]   ;;  %4163 = vmatprep.subr.bf16.mxu1 %v9167_v13 }
 0x2db   : > { %v2380_v45 = vadd.bf16 %v10770_v41, %v2302_v30  ;;  %4164 = vmatpush1.bf16.msra.mxu1 %v9165_v3 }
 0x2dc   : > { %v2381_v31 = vadd.bf16 %v10774_v36, %v2303_v27 }
 0x2dd   : > { %v2444_v11 = vmax.bf16 %v12410_v39, %v2380_v45 }
 0x2de   : > { %v2177_v40 = vpop.f32.mrb[224].mxu0  ;;  %v2445_v32 = vmax.bf16 %v12410_v39, %v2381_v31 }
 0x2df   : > { %v2179_v25 = vpop.f32.mrb[225].mxu0 }
 0x2e0   : > { %v2181_v12 = vpop.f32.mrb[226].mxu0  ;;  %2917 = vmatprep.mubr.bf16.mxu1 %v2445_v32 }
 0x2e1   : > { %v2304_v1 = vpack.c.bf16 %v2181_v12, %v2177_v40  ;;  %v2183_v18 = vpop.f32.mrb[227].mxu0  ;;  %2918 = vmatmul.mubr.bf16.gmra.mrb[220].mxu1 %v2444_v11 }
 0x2e2   : > { %v2305_v57 = vpack.c.bf16 %v2183_v18, %v2179_v25 }
 0x2e3   : > { %v2382_v5 = vadd.bf16 %v10770_v41, %v2304_v1 }
 0x2e4   : > { %v2383_v8 = vadd.bf16 %v10774_v36, %v2305_v57 }
 0x2e5   : > { %v2446_v27 = vmax.bf16 %v12410_v39, %v2382_v5 }
 0x2e6   : > { %v2187_v26 = vpop.f32.mrb[228].mxu0  ;;  %v2447_v30 = vmax.bf16 %v12410_v39, %v2383_v8 }
 0x2e7   : > { %v2189_v28 = vpop.f32.mrb[229].mxu0 }
 0x2e8   : > { %v2191_v45 = vpop.f32.mrb[230].mxu0  ;;  %2927 = vmatprep.mubr.bf16.mxu1 %v2447_v30 }
 0x2e9   : > { %v2306_v31 = vpack.c.bf16 %v2191_v45, %v2187_v26  ;;  %v2193_v40 = vpop.f32.mrb[231].mxu0  ;;  %2928 = vmatmul.mubr.bf16.gmra.mrb[224].mxu1 %v2446_v27  ;;  %v9170_v27 = vld [vmem:[#allocation3 + $0x394] ss:$8 sps:$4 sm:$0xff]  }
 0x2ea   : > { %v2307_v32 = vpack.c.bf16 %v2193_v40, %v2189_v28  ;;  %v9168_v28 = vld [vmem:[#allocation3 + $0x390] ss:$8 sps:$4 sm:$0xff]   ;;  %4165 = vmatprep.subr.bf16.mxu1 %v9170_v27 }
 0x2eb   : > { %v2384_v25 = vadd.bf16 %v10770_v41, %v2306_v31  ;;  %4166 = vmatpush1.bf16.msra.mxu1 %v9168_v28 }
 0x2ec   : > { %v2385_v11 = vadd.bf16 %v10774_v36, %v2307_v32 }
 0x2ed   : > { %v2448_v57 = vmax.bf16 %v12410_v39, %v2384_v25 }
 0x2ee   : > { %v2197_v12 = vpop.f32.mrb[232].mxu0  ;;  %v2449_v1 = vmax.bf16 %v12410_v39, %v2385_v11 }
 0x2ef   : > { %v2199_v18 = vpop.f32.mrb[233].mxu0 }
 0x2f0   : > { %v2201_v8 = vpop.f32.mrb[234].mxu0  ;;  %2937 = vmatprep.mubr.bf16.mxu1 %v2449_v1  ;;  %v10966_v1 = vsub.s32 1, %v10023_v54 }
 0x2f1   : > { %v2308_v5 = vpack.c.bf16 %v2201_v8, %v2197_v12  ;;  %v2203_v13 = vpop.f32.mrb[235].mxu0  ;;  %2938 = vmatmul.mubr.bf16.gmra.mrb[228].mxu1 %v2448_v57 }
 0x2f2   : > { %v2309_v3 = vpack.c.bf16 %v2203_v13, %v2199_v18  ;;  %v10976_v28 = vrot.slane %v10036_v58, %v10966_v1 }
 0x2f3   : > { %v2386_v26 = vadd.bf16 %v10770_v41, %v2308_v5 }
 0x2f4   : > { %v2387_v30 = vadd.bf16 %v10774_v36, %v2309_v3  ;;  %v10972_v3 = vrot.slane %v10064_v7, %v10966_v1 }
 0x2f5   : > { %v2450_v32 = vmax.bf16 %v12410_v39, %v2386_v26 }
 0x2f6   : > { %v2207_v45 = vpop.f32.mrb[236].mxu0  ;;  %v2451_v31 = vmax.bf16 %v12410_v39, %v2387_v30 }
 0x2f7   : > { %v2209_v40 = vpop.f32.mrb[237].mxu0 }
 0x2f8   : > { %v2211_v25 = vpop.f32.mrb[238].mxu0  ;;  %2947 = vmatprep.mubr.bf16.mxu1 %v2451_v31 }
 0x2f9   : > { %v2310_v11 = vpack.c.bf16 %v2211_v25, %v2207_v45  ;;  %v2213_v12 = vpop.f32.mrb[239].mxu0  ;;  %2948 = vmatmul.mubr.bf16.gmra.mrb[232].mxu1 %v2450_v32 }
 0x2fa   : > { %v2311_v18 = vpack.c.bf16 %v2213_v12, %v2209_v40 }
 0x2fb   : > { %v2388_v57 = vadd.bf16 %v10770_v41, %v2310_v11 }
 0x2fc   : > { %v2389_v8 = vadd.bf16 %v10774_v36, %v2311_v18  ;;  %v2689_v5 = vpop.f32.mrb[128].mxu1 }
 0x2fd   : > { %v2691_v13 = vpop.f32.mrb[129].mxu1  ;;  %v2452_v32 = vmax.bf16 %v12410_v39, %v2388_v57 }
 0x2fe   : > { %v2217_v26 = vpop.f32.mrb[240].mxu0  ;;  %v2693_v30 = vpop.f32.mrb[130].mxu1  ;;  %v2453_v27 = vmax.bf16 %v12410_v39, %v2389_v8 }
 0x2ff   : > { %v3008_v45 = vpack.c.bf16 %v2693_v30, %v2689_v5  ;;  %v2219_v31 = vpop.f32.mrb[241].mxu0  ;;  %v2695_v40 = vpop.f32.mrb[131].mxu1 }
 0x300   : > { %v3009_v25 = vpack.c.bf16 %v2695_v40, %v2691_v13  ;;  %v2221_v11 = vpop.f32.mrb[242].mxu0  ;;  %2957 = vmatprep.mubr.bf16.mxu1 %v2453_v27  ;;  %v9171_v40 = vld [vmem:[#allocation3 + $0x3a0] ss:$8 sps:$4 sm:$0xff]   ;;  %v9173_v27 = vld [vmem:[#allocation3 + $0x3a4] ss:$8 sps:$4 sm:$0xff]  }
 0x301   : > { %v3080_v12 = vadd.bf16 %v10972_v3, %v3008_v45  ;;  %v2312_v18 = vpack.c.bf16 %v2221_v11, %v2217_v26  ;;  %v2223_v48 = vpop.f32.mrb[243].mxu0  ;;  %2958 = vmatmul.mubr.bf16.gmra.mrb[236].mxu1 %v2452_v32  ;;  %4167 = vmatprep.subr.bf16.mxu1 %v9173_v27 }
 0x302   : > { %v3081_v46 = vadd.bf16 %v10976_v28, %v3009_v25  ;;  %v2313_v55 = vpack.c.bf16 %v2223_v48, %v2219_v31  ;;  %4168 = vmatpush1.bf16.msra.mxu1 %v9171_v40 }
 0x303   : > { %v2390_v47 = vadd.bf16 %v10770_v41, %v2312_v18  ;;  %v3144_v57 = vmax.bf16 %v12410_v39, %v3080_v12 }
 0x304   : > { %v2391_v8 = vadd.bf16 %v10774_v36, %v2313_v55  ;;  %v2699_v5 = vpop.f32.mrb[132].mxu1  ;;  %v3145_v30 = vmax.bf16 %v12410_v39, %v3081_v46 }
 0x305   : > { %v2701_v13 = vpop.f32.mrb[133].mxu1  ;;  %v2454_v31 = vmax.bf16 %v12410_v39, %v2390_v47 }
 0x306   : > { %v2227_v53 = vpop.f32.mrb[244].mxu0  ;;  %v2703_v45 = vpop.f32.mrb[134].mxu1  ;;  %3433 = vmatprep.mubr.bf16.mxu0 %v3145_v30  ;;  %v2455_v26 = vmax.bf16 %v12410_v39, %v2391_v8 }
 0x307   : > { %v3010_v32 = vpack.c.bf16 %v2703_v45, %v2699_v5  ;;  %v2229_v25 = vpop.f32.mrb[245].mxu0  ;;  %v2705_v48 = vpop.f32.mrb[135].mxu1  ;;  %3434 = vmatmul.mubr.bf16.vlgmr.msra.gmra.mrb[0].mxu0 %v3144_v57 }
 0x308   : > { %v3011_v55 = vpack.c.bf16 %v2705_v48, %v2701_v13  ;;  %v2231_v11 = vpop.f32.mrb[246].mxu0  ;;  %2967 = vmatprep.mubr.bf16.mxu1 %v2455_v26 }
 0x309   : > { %v3082_v46 = vadd.bf16 %v10972_v3, %v3010_v32  ;;  %v2314_v12 = vpack.c.bf16 %v2231_v11, %v2227_v53  ;;  %v2233_v18 = vpop.f32.mrb[247].mxu0  ;;  %2968 = vmatmul.mubr.bf16.gmra.mrb[240].mxu1 %v2454_v31 }
 0x30a   : > { %v3083_v30 = vadd.bf16 %v10976_v28, %v3011_v55  ;;  %v2315_v52 = vpack.c.bf16 %v2233_v18, %v2229_v25 }
 0x30b   : > { %v2392_v8 = vadd.bf16 %v10770_v41, %v2314_v12  ;;  %v3146_v13 = vmax.bf16 %v12410_v39, %v3082_v46 }
 0x30c   : > { %v2393_v5 = vadd.bf16 %v10774_v36, %v2315_v52  ;;  %v2709_v57 = vpop.f32.mrb[136].mxu1  ;;  %v3147_v47 = vmax.bf16 %v12410_v39, %v3083_v30 }
 0x30d   : > { %v2711_v27 = vpop.f32.mrb[137].mxu1  ;;  %v2456_v25 = vmax.bf16 %v12410_v39, %v2392_v8 }
 0x30e   : > { %v2237_v45 = vpop.f32.mrb[248].mxu0  ;;  %v2713_v40 = vpop.f32.mrb[138].mxu1  ;;  %3443 = vmatprep.mubr.bf16.mxu0 %v3147_v47  ;;  %v2457_v53 = vmax.bf16 %v12410_v39, %v2393_v5 }
 0x30f   : > { %v3012_v26 = vpack.c.bf16 %v2713_v40, %v2709_v57  ;;  %v2239_v32 = vpop.f32.mrb[249].mxu0  ;;  %v2715_v48 = vpop.f32.mrb[139].mxu1  ;;  %3444 = vmatmul.mubr.bf16.gmra.mrb[4].mxu0 %v3146_v13  ;;  %v9176_v40 = vld [vmem:[#allocation3 + $0x3b4] ss:$8 sps:$4 sm:$0xff]  }
 0x310   : > { %v3013_v31 = vpack.c.bf16 %v2715_v48, %v2711_v27  ;;  %v2241_v55 = vpop.f32.mrb[250].mxu0  ;;  %2977 = vmatprep.mubr.bf16.mxu1 %v2457_v53  ;;  %v9174_v27 = vld [vmem:[#allocation3 + $0x3b0] ss:$8 sps:$4 sm:$0xff]   ;;  %4169 = vmatprep.subr.bf16.mxu1 %v9176_v40 }
 0x311   : > { %v3084_v52 = vadd.bf16 %v10972_v3, %v3012_v26  ;;  %v2316_v11 = vpack.c.bf16 %v2241_v55, %v2237_v45  ;;  %v2243_v12 = vpop.f32.mrb[251].mxu0  ;;  %2978 = vmatmul.mubr.bf16.gmra.mrb[244].mxu1 %v2456_v25 }
 0x312   : > { %v3085_v46 = vadd.bf16 %v10976_v28, %v3013_v31  ;;  %v2317_v18 = vpack.c.bf16 %v2243_v12, %v2239_v32  ;;  %4170 = vmatpush1.bf16.msra.mxu1 %v9174_v27 }
 0x313   : > { %v2394_v30 = vadd.bf16 %v10770_v41, %v2316_v11  ;;  %v3148_v8 = vmax.bf16 %v12410_v39, %v3084_v52 }
 0x314   : > { %v2395_v5 = vadd.bf16 %v10774_v36, %v2317_v18  ;;  %v2719_v57 = vpop.f32.mrb[140].mxu1  ;;  %v3149_v47 = vmax.bf16 %v12410_v39, %v3085_v46 }
 0x315   : > { %v2721_v13 = vpop.f32.mrb[141].mxu1  ;;  %v2458_v31 = vmax.bf16 %v12410_v39, %v2394_v30 }
 0x316   : > { %v2247_v53 = vpop.f32.mrb[252].mxu0  ;;  %v2723_v26 = vpop.f32.mrb[142].mxu1  ;;  %3453 = vmatprep.mubr.bf16.mxu0 %v3149_v47  ;;  %v2459_v45 = vmax.bf16 %v12410_v39, %v2395_v5 }
 0x317   : > { %v3014_v48 = vpack.c.bf16 %v2723_v26, %v2719_v57  ;;  %v2249_v25 = vpop.f32.mrb[253].mxu0  ;;  %v2725_v32 = vpop.f32.mrb[143].mxu1  ;;  %3454 = vmatmul.mubr.bf16.gmra.mrb[8].mxu0 %v3148_v8 }
 0x318   : > { %v3015_v55 = vpack.c.bf16 %v2725_v32, %v2721_v13  ;;  %v2251_v11 = vpop.f32.mrb[254].mxu0  ;;  %2987 = vmatprep.mubr.bf16.mxu1 %v2459_v45 }
 0x319   : > { %v3086_v52 = vadd.bf16 %v10972_v3, %v3014_v48  ;;  %v2318_v12 = vpack.c.bf16 %v2251_v11, %v2247_v53  ;;  %v2253_v46 = vpop.f32.mrb[255].mxu0  ;;  %2988 = vmatmul.mubr.bf16.gmra.mrb[248].mxu1 %v2458_v31 }
 0x31a   : > { %v3087_v18 = vadd.bf16 %v10976_v28, %v3015_v55  ;;  %v2319_v47 = vpack.c.bf16 %v2253_v46, %v2249_v25 }
 0x31b   : > { %v2396_v5 = vadd.bf16 %v10770_v41, %v2318_v12  ;;  %v3150_v13 = vmax.bf16 %v12410_v39, %v3086_v52  ;;  %v9177_v52 = vld [vmem:[#allocation3 + $0x3c0] ss:$8 sps:$4 sm:$0xff]   ;;  %v9179_v12 = vld [vmem:[#allocation3 + $0x3c4] ss:$8 sps:$4 sm:$0xff]  }
 0x31c   : > { %v2397_v57 = vadd.bf16 %v10774_v36, %v2319_v47  ;;  %v2729_v8 = vpop.f32.mrb[144].mxu1  ;;  %v3151_v30 = vmax.bf16 %v12410_v39, %v3087_v18  ;;  %4171 = vmatprep.subr.bf16.mxu1 %v9179_v12 }
 0x31d   : > { %v2731_v40 = vpop.f32.mrb[145].mxu1  ;;  %v2460_v48 = vmax.bf16 %v12410_v39, %v2396_v5  ;;  %4172 = vmatpush1.bf16.msra.mxu1 %v9177_v52  ;;  %v9182_v52 = vld [vmem:[#allocation3 + $0x3d4] ss:$8 sps:$4 sm:$0xff]  }
 0x31e   : > { %v2733_v26 = vpop.f32.mrb[146].mxu1  ;;  %3463 = vmatprep.mubr.bf16.mxu0 %v3151_v30  ;;  %v2461_v27 = vmax.bf16 %v12410_v39, %v2397_v57  ;;  %4173 = vmatprep.subr.bf16.mxu1 %v9182_v52  ;;  %v9186_v52 = vld [vmem:[#allocation3 + $0x3e0] ss:$8 sps:$4 sm:$0xff]  }
 0x31f   : > { %v3016_v53 = vpack.c.bf16 %v2733_v26, %v2729_v8  ;;  %v2735_v45 = vpop.f32.mrb[147].mxu1  ;;  %3464 = vmatmul.mubr.bf16.gmra.mrb[12].mxu0 %v3150_v13 }
 0x320   : > { %v3017_v25 = vpack.c.bf16 %v2735_v45, %v2731_v40  ;;  %2997 = vmatprep.mubr.bf16.mxu1 %v2461_v27 }
 0x321   : > { %v3088_v41 = vadd.bf16 %v10972_v3, %v3016_v53  ;;  %2998 = vmatmul.mubr.bf16.gmra.mrb[252].mxu1 %v2460_v48 }
 0x322   : > { %v3089_v36 = vadd.bf16 %v10976_v28, %v3017_v25 }
 0x323   : > { %v3152_v55 = vmax.bf16 %v12410_v39, %v3088_v41 }
 0x324   : > { %v2739_v32 = vpop.f32.mrb[148].mxu1  ;;  %v3153_v31 = vmax.bf16 %v12410_v39, %v3089_v36 }
 0x325   : > { %v2741_v11 = vpop.f32.mrb[149].mxu1 }
 0x326   : > { %v2743_v46 = vpop.f32.mrb[150].mxu1  ;;  %3473 = vmatprep.mubr.bf16.mxu0 %v3153_v31 }
 0x327   : > { %v3018_v18 = vpack.c.bf16 %v2743_v46, %v2739_v32  ;;  %v2745_v47 = vpop.f32.mrb[151].mxu1  ;;  %3474 = vmatmul.mubr.bf16.gmra.mrb[16].mxu0 %v3152_v55 }
 0x328   : > { %v3019_v5 = vpack.c.bf16 %v2745_v47, %v2741_v11  ;;  %v9180_v11 = vld [vmem:[#allocation3 + $0x3d0] ss:$8 sps:$4 sm:$0xff]  }
 0x329   : > { %v3090_v57 = vadd.bf16 %v10972_v3, %v3018_v18  ;;  %4174 = vmatpush1.bf16.msra.mxu1 %v9180_v11 }
 0x32a   : > { %v3091_v8 = vadd.bf16 %v10976_v28, %v3019_v5 }
 0x32b   : > { %v3154_v40 = vmax.bf16 %v12410_v39, %v3090_v57 }
 0x32c   : > { %v2749_v30 = vpop.f32.mrb[152].mxu1  ;;  %v3155_v13 = vmax.bf16 %v12410_v39, %v3091_v8 }
 0x32d   : > { %v2751_v26 = vpop.f32.mrb[153].mxu1 }
 0x32e   : > { %v2753_v27 = vpop.f32.mrb[154].mxu1  ;;  %3483 = vmatprep.mubr.bf16.mxu0 %v3155_v13 }
 0x32f   : > { %v3020_v53 = vpack.c.bf16 %v2753_v27, %v2749_v30  ;;  %v2755_v45 = vpop.f32.mrb[155].mxu1  ;;  %3484 = vmatmul.mubr.bf16.gmra.mrb[20].mxu0 %v3154_v40 }
 0x330   : > { %v3021_v48 = vpack.c.bf16 %v2755_v45, %v2751_v26 }
 0x331   : > { %v3092_v25 = vadd.bf16 %v10972_v3, %v3020_v53 }
 0x332   : > { %v3093_v41 = vadd.bf16 %v10976_v28, %v3021_v48 }
 0x333   : > { %v3156_v31 = vmax.bf16 %v12410_v39, %v3092_v25 }
 0x334   : > { %v2759_v36 = vpop.f32.mrb[156].mxu1  ;;  %v3157_v32 = vmax.bf16 %v12410_v39, %v3093_v41  ;;  %v9183_v41 = vld [vmem:[#allocation3 + $0x400] ss:$8 sps:$4 sm:$0xff]  }
 0x335   : > { %v2761_v55 = vpop.f32.mrb[157].mxu1 }
 0x336   : > { %v2763_v12 = vpop.f32.mrb[158].mxu1  ;;  %3493 = vmatprep.mubr.bf16.mxu0 %v3157_v32 }
 0x337   : > { %v3022_v46 = vpack.c.bf16 %v2763_v12, %v2759_v36  ;;  %v2765_v18 = vpop.f32.mrb[159].mxu1  ;;  %3494 = vmatmul.mubr.bf16.gmra.mrb[24].mxu0 %v3156_v31  ;;  %v9185_v36 = vld [vmem:[#allocation3 + $0x404] ss:$8 sps:$4 sm:$0xff]  }
 0x338   : > { %v3023_v47 = vpack.c.bf16 %v2765_v18, %v2761_v55  ;;  %5021 = vmatprep.subr.bf16.mxu0 %v9185_v36  ;;  %v9188_v12 = vld [vmem:[#allocation3 + $0x3e4] ss:$8 sps:$4 sm:$0xff]   ;;  %v9189_v36 = vld [vmem:[#allocation3 + $0x410] ss:$8 sps:$4 sm:$0xff]  }
 0x339   : > { %v3094_v5 = vadd.bf16 %v10972_v3, %v3022_v46  ;;  %5022 = vmatpush1.bf16.msra.mxu0 %v9183_v41  ;;  %4175 = vmatprep.subr.bf16.mxu1 %v9188_v12  ;;  %v9192_v12 = vld [vmem:[#allocation3 + $0x3f0] ss:$8 sps:$4 sm:$0xff]  }
 0x33a   : > { %v3095_v57 = vadd.bf16 %v10976_v28, %v3023_v47  ;;  %4176 = vmatpush1.bf16.msra.mxu1 %v9186_v52 }
 0x33b   : > { %v3158_v13 = vmax.bf16 %v12410_v39, %v3094_v5 }
 0x33c   : > { %v2769_v8 = vpop.f32.mrb[160].mxu1  ;;  %v3159_v30 = vmax.bf16 %v12410_v39, %v3095_v57 }
 0x33d   : > { %v2771_v40 = vpop.f32.mrb[161].mxu1 }
 0x33e   : > { %v2773_v26 = vpop.f32.mrb[162].mxu1  ;;  %3503 = vmatprep.mubr.bf16.mxu0 %v3159_v30 }
 0x33f   : > { %v3024_v27 = vpack.c.bf16 %v2773_v26, %v2769_v8  ;;  %v2775_v53 = vpop.f32.mrb[163].mxu1  ;;  %3504 = vmatmul.mubr.bf16.gmra.mrb[28].mxu0 %v3158_v13 }
 0x340   : > { %v3025_v45 = vpack.c.bf16 %v2775_v53, %v2771_v40 }
 0x341   : > { %v3096_v48 = vadd.bf16 %v10972_v3, %v3024_v27 }
 0x342   : > { %v3097_v25 = vadd.bf16 %v10976_v28, %v3025_v45 }
 0x343   : > { %v3160_v55 = vmax.bf16 %v12410_v39, %v3096_v48 }
 0x344   : > { %v2779_v32 = vpop.f32.mrb[164].mxu1  ;;  %v3161_v31 = vmax.bf16 %v12410_v39, %v3097_v25 }
 0x345   : > { %v2781_v11 = vpop.f32.mrb[165].mxu1 }
 0x346   : > { %v2783_v46 = vpop.f32.mrb[166].mxu1  ;;  %3513 = vmatprep.mubr.bf16.mxu0 %v3161_v31 }
 0x347   : > { %v3026_v18 = vpack.c.bf16 %v2783_v46, %v2779_v32  ;;  %v2785_v47 = vpop.f32.mrb[167].mxu1  ;;  %3514 = vmatmul.mubr.bf16.gmra.mrb[32].mxu0 %v3160_v55  ;;  %v9191_v32 = vld [vmem:[#allocation3 + $0x414] ss:$8 sps:$4 sm:$0xff]  }
 0x348   : > { %v3027_v5 = vpack.c.bf16 %v2785_v47, %v2781_v11  ;;  %5023 = vmatprep.subr.bf16.mxu0 %v9191_v32  ;;  %v9194_v46 = vld [vmem:[#allocation3 + $0x3f4] ss:$8 sps:$4 sm:$0xff]   ;;  %v9195_v32 = vld [vmem:[#allocation3 + $0x420] ss:$8 sps:$4 sm:$0xff]  }
 0x349   : > { %v3098_v57 = vadd.bf16 %v10972_v3, %v3026_v18  ;;  %5024 = vmatpush1.bf16.msra.mxu0 %v9189_v36  ;;  %4177 = vmatprep.subr.bf16.mxu1 %v9194_v46 }
 0x34a   : > { %v3099_v8 = vadd.bf16 %v10976_v28, %v3027_v5  ;;  %4178 = vmatpush1.bf16.msra.mxu1 %v9192_v12 }
 0x34b   : > { %v3162_v40 = vmax.bf16 %v12410_v39, %v3098_v57 }
 0x34c   : > { %v2789_v30 = vpop.f32.mrb[168].mxu1  ;;  %v3163_v13 = vmax.bf16 %v12410_v39, %v3099_v8 }
 0x34d   : > { %v2791_v26 = vpop.f32.mrb[169].mxu1 }
 0x34e   : > { %v2793_v27 = vpop.f32.mrb[170].mxu1  ;;  %3523 = vmatprep.mubr.bf16.mxu0 %v3163_v13 }
 0x34f   : > { %v3028_v53 = vpack.c.bf16 %v2793_v27, %v2789_v30  ;;  %v2795_v45 = vpop.f32.mrb[171].mxu1  ;;  %3524 = vmatmul.mubr.bf16.gmra.mrb[36].mxu0 %v3162_v40 }
 0x350   : > { %v3029_v48 = vpack.c.bf16 %v2795_v45, %v2791_v26 }
 0x351   : > { %v3100_v25 = vadd.bf16 %v10972_v3, %v3028_v53 }
 0x352   : > { %v3101_v41 = vadd.bf16 %v10976_v28, %v3029_v48 }
 0x353   : > { %v3164_v11 = vmax.bf16 %v12410_v39, %v3100_v25 }
 0x354   : > { %v2799_v31 = vpop.f32.mrb[172].mxu1  ;;  %v3165_v55 = vmax.bf16 %v12410_v39, %v3101_v41 }
 0x355   : > { %v2801_v52 = vpop.f32.mrb[173].mxu1 }
 0x356   : > { %v2803_v18 = vpop.f32.mrb[174].mxu1  ;;  %3533 = vmatprep.mubr.bf16.mxu0 %v3165_v55 }
 0x357   : > { %v3030_v47 = vpack.c.bf16 %v2803_v18, %v2799_v31  ;;  %v2805_v5 = vpop.f32.mrb[175].mxu1  ;;  %3534 = vmatmul.mubr.bf16.gmra.mrb[40].mxu0 %v3164_v11  ;;  %v9197_v31 = vld [vmem:[#allocation3 + $0x424] ss:$8 sps:$4 sm:$0xff]  }
 0x358   : > { %v3031_v57 = vpack.c.bf16 %v2805_v5, %v2801_v52  ;;  %5025 = vmatprep.subr.bf16.mxu0 %v9197_v31 }
 0x359   : > { %v3102_v8 = vadd.bf16 %v10972_v3, %v3030_v47  ;;  %5026 = vmatpush1.bf16.msra.mxu0 %v9195_v32  ;;  %v9200_v32 = vld [vmem:[#allocation3 + $0x434] ss:$8 sps:$4 sm:$0xff]  }
 0x35a   : > { %v3103_v30 = vadd.bf16 %v10976_v28, %v3031_v57  ;;  %5027 = vmatprep.subr.bf16.mxu0 %v9200_v32 }
 0x35b   : > { %v3166_v26 = vmax.bf16 %v12410_v39, %v3102_v8 }
 0x35c   : > { %v2809_v13 = vpop.f32.mrb[176].mxu1  ;;  %v3167_v40 = vmax.bf16 %v12410_v39, %v3103_v30 }
 0x35d   : > { %v2811_v27 = vpop.f32.mrb[177].mxu1 }
 0x35e   : > { %v2813_v53 = vpop.f32.mrb[178].mxu1  ;;  %3543 = vmatprep.mubr.bf16.mxu0 %v3167_v40 }
 0x35f   : > { %v3032_v45 = vpack.c.bf16 %v2813_v53, %v2809_v13  ;;  %v2815_v48 = vpop.f32.mrb[179].mxu1  ;;  %3544 = vmatmul.mubr.bf16.gmra.mrb[44].mxu0 %v3166_v26 }
 0x360   : > { %v3033_v25 = vpack.c.bf16 %v2815_v48, %v2811_v27 }
 0x361   : > { %v3104_v41 = vadd.bf16 %v10972_v3, %v3032_v45 }
 0x362   : > { %v3105_v36 = vadd.bf16 %v10976_v28, %v3033_v25 }
 0x363   : > { %v3168_v52 = vmax.bf16 %v12410_v39, %v3104_v41 }
 0x364   : > { %v2819_v55 = vpop.f32.mrb[180].mxu1  ;;  %v3169_v11 = vmax.bf16 %v12410_v39, %v3105_v36  ;;  %v9198_v36 = vld [vmem:[#allocation3 + $0x430] ss:$8 sps:$4 sm:$0xff]  }
 0x365   : > { %v2821_v12 = vpop.f32.mrb[181].mxu1  ;;  %5028 = vmatpush1.bf16.msra.mxu0 %v9198_v36  ;;  %v9203_v36 = vld [vmem:[#allocation3 + $0x444] ss:$8 sps:$4 sm:$0xff]  }
 0x366   : > { %v2823_v46 = vpop.f32.mrb[182].mxu1  ;;  %3553 = vmatprep.mubr.bf16.mxu0 %v3169_v11  ;;  %5029 = vmatprep.subr.bf16.mxu0 %v9203_v36 }
 0x367   : > { %v3034_v18 = vpack.c.bf16 %v2823_v46, %v2819_v55  ;;  %v2825_v47 = vpop.f32.mrb[183].mxu1  ;;  %3554 = vmatmul.mubr.bf16.gmra.mrb[48].mxu0 %v3168_v52 }
 0x368   : > { %v3035_v5 = vpack.c.bf16 %v2825_v47, %v2821_v12 }
 0x369   : > { %v3106_v57 = vadd.bf16 %v10972_v3, %v3034_v18 }
 0x36a   : > { %v3107_v8 = vadd.bf16 %v10976_v28, %v3035_v5 }
 0x36b   : > { %v3170_v40 = vmax.bf16 %v12410_v39, %v3106_v57 }
 0x36c   : > { %v2829_v30 = vpop.f32.mrb[184].mxu1  ;;  %v3171_v13 = vmax.bf16 %v12410_v39, %v3107_v8 }
 0x36d   : > { %v2831_v26 = vpop.f32.mrb[185].mxu1 }
 0x36e   : > { %v2833_v27 = vpop.f32.mrb[186].mxu1  ;;  %3563 = vmatprep.mubr.bf16.mxu0 %v3171_v13 }
 0x36f   : > { %v3036_v53 = vpack.c.bf16 %v2833_v27, %v2829_v30  ;;  %v2835_v45 = vpop.f32.mrb[187].mxu1  ;;  %3564 = vmatmul.mubr.bf16.gmra.mrb[52].mxu0 %v3170_v40 }
 0x370   : > { %v3037_v48 = vpack.c.bf16 %v2835_v45, %v2831_v26 }
 0x371   : > { %v3108_v25 = vadd.bf16 %v10972_v3, %v3036_v53 }
 0x372   : > { %v3109_v41 = vadd.bf16 %v10976_v28, %v3037_v48 }
 0x373   : > { %v3172_v11 = vmax.bf16 %v12410_v39, %v3108_v25 }
 0x374   : > { %v2839_v31 = vpop.f32.mrb[188].mxu1  ;;  %v3173_v55 = vmax.bf16 %v12410_v39, %v3109_v41  ;;  %v9201_v41 = vld [vmem:[#allocation3 + $0x440] ss:$8 sps:$4 sm:$0xff]  }
 0x375   : > { %v2841_v52 = vpop.f32.mrb[189].mxu1  ;;  %5030 = vmatpush1.bf16.msra.mxu0 %v9201_v41  ;;  %v9206_v41 = vld [vmem:[#allocation3 + $0x454] ss:$8 sps:$4 sm:$0xff]  }
 0x376   : > { %v2843_v12 = vpop.f32.mrb[190].mxu1  ;;  %3573 = vmatprep.mubr.bf16.mxu0 %v3173_v55  ;;  %5031 = vmatprep.subr.bf16.mxu0 %v9206_v41 }
 0x377   : > { %v3038_v46 = vpack.c.bf16 %v2843_v12, %v2839_v31  ;;  %v2845_v18 = vpop.f32.mrb[191].mxu1  ;;  %3574 = vmatmul.mubr.bf16.gmra.mrb[56].mxu0 %v3172_v11 }
 0x378   : > { %v3039_v47 = vpack.c.bf16 %v2845_v18, %v2841_v52 }
 0x379   : > { %v3110_v5 = vadd.bf16 %v10972_v3, %v3038_v46 }
 0x37a   : > { %v3111_v57 = vadd.bf16 %v10976_v28, %v3039_v47 }
 0x37b   : > { %v3174_v13 = vmax.bf16 %v12410_v39, %v3110_v5 }
 0x37c   : > { %v2849_v8 = vpop.f32.mrb[192].mxu1  ;;  %v3175_v30 = vmax.bf16 %v12410_v39, %v3111_v57 }
 0x37d   : > { %v2851_v40 = vpop.f32.mrb[193].mxu1 }
 0x37e   : > { %v2853_v26 = vpop.f32.mrb[194].mxu1  ;;  %3583 = vmatprep.mubr.bf16.mxu0 %v3175_v30 }
 0x37f   : > { %v3040_v27 = vpack.c.bf16 %v2853_v26, %v2849_v8  ;;  %v2855_v53 = vpop.f32.mrb[195].mxu1  ;;  %3584 = vmatmul.mubr.bf16.gmra.mrb[60].mxu0 %v3174_v13 }
 0x380   : > { %v3041_v45 = vpack.c.bf16 %v2855_v53, %v2851_v40 }
 0x381   : > { %v3112_v48 = vadd.bf16 %v10972_v3, %v3040_v27 }
 0x382   : > { %v3113_v25 = vadd.bf16 %v10976_v28, %v3041_v45 }
 0x383   : > { %v3176_v55 = vmax.bf16 %v12410_v39, %v3112_v48 }
 0x384   : > { %v2859_v32 = vpop.f32.mrb[196].mxu1  ;;  %v3177_v31 = vmax.bf16 %v12410_v39, %v3113_v25  ;;  %v9204_v25 = vld [vmem:[#allocation3 + $0x450] ss:$8 sps:$4 sm:$0xff]  }
 0x385   : > { %v2861_v11 = vpop.f32.mrb[197].mxu1  ;;  %5032 = vmatpush1.bf16.msra.mxu0 %v9204_v25  ;;  %v9209_v25 = vld [vmem:[#allocation3 + $0x464] ss:$8 sps:$4 sm:$0xff]  }
 0x386   : > { %v2863_v52 = vpop.f32.mrb[198].mxu1  ;;  %3593 = vmatprep.mubr.bf16.mxu0 %v3177_v31  ;;  %5033 = vmatprep.subr.bf16.mxu0 %v9209_v25 }
 0x387   : > { %v3042_v12 = vpack.c.bf16 %v2863_v52, %v2859_v32  ;;  %v2865_v46 = vpop.f32.mrb[199].mxu1  ;;  %3594 = vmatmul.mubr.bf16.gmra.mrb[64].mxu0 %v3176_v55 }
 0x388   : > { %v3043_v18 = vpack.c.bf16 %v2865_v46, %v2861_v11 }
 0x389   : > { %v3114_v47 = vadd.bf16 %v10972_v3, %v3042_v12 }
 0x38a   : > { %v3115_v5 = vadd.bf16 %v10976_v28, %v3043_v18 }
 0x38b   : > { %v3178_v30 = vmax.bf16 %v12410_v39, %v3114_v47 }
 0x38c   : > { %v2869_v57 = vpop.f32.mrb[200].mxu1  ;;  %v3179_v8 = vmax.bf16 %v12410_v39, %v3115_v5 }
 0x38d   : > { %v2871_v13 = vpop.f32.mrb[201].mxu1 }
 0x38e   : > { %v2873_v40 = vpop.f32.mrb[202].mxu1  ;;  %3603 = vmatprep.mubr.bf16.mxu0 %v3179_v8 }
 0x38f   : > { %v3044_v26 = vpack.c.bf16 %v2873_v40, %v2869_v57  ;;  %v2875_v27 = vpop.f32.mrb[203].mxu1  ;;  %3604 = vmatmul.mubr.bf16.gmra.mrb[68].mxu0 %v3178_v30 }
 0x390   : > { %v3045_v53 = vpack.c.bf16 %v2875_v27, %v2871_v13 }
 0x391   : > { %v3116_v45 = vadd.bf16 %v10972_v3, %v3044_v26 }
 0x392   : > { %v3117_v48 = vadd.bf16 %v10976_v28, %v3045_v53 }
 0x393   : > { %v3180_v31 = vmax.bf16 %v12410_v39, %v3116_v45 }
 0x394   : > { %v2879_v36 = vpop.f32.mrb[204].mxu1  ;;  %v3181_v32 = vmax.bf16 %v12410_v39, %v3117_v48  ;;  %v9207_v48 = vld [vmem:[#allocation3 + $0x460] ss:$8 sps:$4 sm:$0xff]  }
 0x395   : > { %v2881_v55 = vpop.f32.mrb[205].mxu1  ;;  %5034 = vmatpush1.bf16.msra.mxu0 %v9207_v48  ;;  %v9212_v48 = vld [vmem:[#allocation3 + $0x474] ss:$8 sps:$4 sm:$0xff]  }
 0x396   : > { %v2883_v11 = vpop.f32.mrb[206].mxu1  ;;  %3613 = vmatprep.mubr.bf16.mxu0 %v3181_v32  ;;  %5035 = vmatprep.subr.bf16.mxu0 %v9212_v48 }
 0x397   : > { %v3046_v52 = vpack.c.bf16 %v2883_v11, %v2879_v36  ;;  %v2885_v12 = vpop.f32.mrb[207].mxu1  ;;  %3614 = vmatmul.mubr.bf16.gmra.mrb[72].mxu0 %v3180_v31 }
 0x398   : > { %v3047_v46 = vpack.c.bf16 %v2885_v12, %v2881_v55 }
 0x399   : > { %v3118_v18 = vadd.bf16 %v10972_v3, %v3046_v52 }
 0x39a   : > { %v3119_v47 = vadd.bf16 %v10976_v28, %v3047_v46 }
 0x39b   : > { %v3182_v8 = vmax.bf16 %v12410_v39, %v3118_v18 }
 0x39c   : > { %v2889_v5 = vpop.f32.mrb[208].mxu1  ;;  %v3183_v57 = vmax.bf16 %v12410_v39, %v3119_v47 }
 0x39d   : > { %v2891_v30 = vpop.f32.mrb[209].mxu1 }
 0x39e   : > { %v2893_v13 = vpop.f32.mrb[210].mxu1  ;;  %3623 = vmatprep.mubr.bf16.mxu0 %v3183_v57 }
 0x39f   : > { %v3048_v40 = vpack.c.bf16 %v2893_v13, %v2889_v5  ;;  %v2895_v26 = vpop.f32.mrb[211].mxu1  ;;  %3624 = vmatmul.mubr.bf16.gmra.mrb[76].mxu0 %v3182_v8 }
 0x3a0   : > { %v3049_v27 = vpack.c.bf16 %v2895_v26, %v2891_v30 }
 0x3a1   : > { %v3120_v53 = vadd.bf16 %v10972_v3, %v3048_v40 }
 0x3a2   : > { %v3121_v45 = vadd.bf16 %v10976_v28, %v3049_v27 }
 0x3a3   : > { %v3184_v32 = vmax.bf16 %v12410_v39, %v3120_v53 }
 0x3a4   : > { %v2899_v41 = vpop.f32.mrb[212].mxu1  ;;  %v3185_v36 = vmax.bf16 %v12410_v39, %v3121_v45  ;;  %v9210_v45 = vld [vmem:[#allocation3 + $0x470] ss:$8 sps:$4 sm:$0xff]  }
 0x3a5   : > { %v2901_v31 = vpop.f32.mrb[213].mxu1  ;;  %5036 = vmatpush1.bf16.msra.mxu0 %v9210_v45  ;;  %v9215_v45 = vld [vmem:[#allocation3 + $0x484] ss:$8 sps:$4 sm:$0xff]  }
 0x3a6   : > { %v2903_v55 = vpop.f32.mrb[214].mxu1  ;;  %3633 = vmatprep.mubr.bf16.mxu0 %v3185_v36  ;;  %5037 = vmatprep.subr.bf16.mxu0 %v9215_v45 }
 0x3a7   : > { %v3050_v11 = vpack.c.bf16 %v2903_v55, %v2899_v41  ;;  %v2905_v52 = vpop.f32.mrb[215].mxu1  ;;  %3634 = vmatmul.mubr.bf16.gmra.mrb[80].mxu0 %v3184_v32 }
 0x3a8   : > { %v3051_v12 = vpack.c.bf16 %v2905_v52, %v2901_v31 }
 0x3a9   : > { %v3122_v46 = vadd.bf16 %v10972_v3, %v3050_v11 }
 0x3aa   : > { %v3123_v18 = vadd.bf16 %v10976_v28, %v3051_v12 }
 0x3ab   : > { %v3186_v57 = vmax.bf16 %v12410_v39, %v3122_v46 }
 0x3ac   : > { %v2909_v47 = vpop.f32.mrb[216].mxu1  ;;  %v3187_v5 = vmax.bf16 %v12410_v39, %v3123_v18 }
 0x3ad   : > { %v2911_v8 = vpop.f32.mrb[217].mxu1 }
 0x3ae   : > { %v2913_v30 = vpop.f32.mrb[218].mxu1  ;;  %3643 = vmatprep.mubr.bf16.mxu0 %v3187_v5 }
 0x3af   : > { %v3052_v13 = vpack.c.bf16 %v2913_v30, %v2909_v47  ;;  %v2915_v40 = vpop.f32.mrb[219].mxu1  ;;  %3644 = vmatmul.mubr.bf16.gmra.mrb[84].mxu0 %v3186_v57 }
 0x3b0   : > { %v3053_v26 = vpack.c.bf16 %v2915_v40, %v2911_v8 }
 0x3b1   : > { %v3124_v27 = vadd.bf16 %v10972_v3, %v3052_v13 }
 0x3b2   : > { %v3125_v53 = vadd.bf16 %v10976_v28, %v3053_v26 }
 0x3b3   : > { %v3188_v36 = vmax.bf16 %v12410_v39, %v3124_v27 }
 0x3b4   : > { %v2919_v25 = vpop.f32.mrb[220].mxu1  ;;  %v3189_v41 = vmax.bf16 %v12410_v39, %v3125_v53  ;;  %v9213_v53 = vld [vmem:[#allocation3 + $0x480] ss:$8 sps:$4 sm:$0xff]  }
 0x3b5   : > { %v2921_v32 = vpop.f32.mrb[221].mxu1  ;;  %5038 = vmatpush1.bf16.msra.mxu0 %v9213_v53  ;;  %v9218_v53 = vld [vmem:[#allocation3 + $0x494] ss:$8 sps:$4 sm:$0xff]  }
 0x3b6   : > { %v2923_v31 = vpop.f32.mrb[222].mxu1  ;;  %3653 = vmatprep.mubr.bf16.mxu0 %v3189_v41  ;;  %5039 = vmatprep.subr.bf16.mxu0 %v9218_v53 }
 0x3b7   : > { %v3054_v55 = vpack.c.bf16 %v2923_v31, %v2919_v25  ;;  %v2925_v11 = vpop.f32.mrb[223].mxu1  ;;  %3654 = vmatmul.mubr.bf16.gmra.mrb[88].mxu0 %v3188_v36 }
 0x3b8   : > { %v3055_v52 = vpack.c.bf16 %v2925_v11, %v2921_v32 }
 0x3b9   : > { %v3126_v12 = vadd.bf16 %v10972_v3, %v3054_v55 }
 0x3ba   : > { %v3127_v46 = vadd.bf16 %v10976_v28, %v3055_v52 }
 0x3bb   : > { %v3190_v5 = vmax.bf16 %v12410_v39, %v3126_v12 }
 0x3bc   : > { %v2929_v18 = vpop.f32.mrb[224].mxu1  ;;  %v3191_v47 = vmax.bf16 %v12410_v39, %v3127_v46 }
 0x3bd   : > { %v2931_v57 = vpop.f32.mrb[225].mxu1 }
 0x3be   : > { %v2933_v8 = vpop.f32.mrb[226].mxu1  ;;  %3663 = vmatprep.mubr.bf16.mxu0 %v3191_v47 }
 0x3bf   : > { %v3056_v30 = vpack.c.bf16 %v2933_v8, %v2929_v18  ;;  %v2935_v13 = vpop.f32.mrb[227].mxu1  ;;  %3664 = vmatmul.mubr.bf16.gmra.mrb[92].mxu0 %v3190_v5 }
 0x3c0   : > { %v3057_v40 = vpack.c.bf16 %v2935_v13, %v2931_v57 }
 0x3c1   : > { %v3128_v26 = vadd.bf16 %v10972_v3, %v3056_v30 }
 0x3c2   : > { %v3129_v27 = vadd.bf16 %v10976_v28, %v3057_v40 }
 0x3c3   : > { %v3192_v41 = vmax.bf16 %v12410_v39, %v3128_v26 }
 0x3c4   : > { %v2939_v48 = vpop.f32.mrb[228].mxu1  ;;  %v3193_v25 = vmax.bf16 %v12410_v39, %v3129_v27  ;;  %v9216_v27 = vld [vmem:[#allocation3 + $0x490] ss:$8 sps:$4 sm:$0xff]  }
 0x3c5   : > { %v2941_v36 = vpop.f32.mrb[229].mxu1  ;;  %5040 = vmatpush1.bf16.msra.mxu0 %v9216_v27 }
 0x3c6   : > { %v2943_v32 = vpop.f32.mrb[230].mxu1  ;;  %3673 = vmatprep.mubr.bf16.mxu0 %v3193_v25 }
 0x3c7   : > { %v3058_v31 = vpack.c.bf16 %v2943_v32, %v2939_v48  ;;  %v2945_v55 = vpop.f32.mrb[231].mxu1  ;;  %3674 = vmatmul.mubr.bf16.gmra.mrb[96].mxu0 %v3192_v41 }
 0x3c8   : > { %v3059_v11 = vpack.c.bf16 %v2945_v55, %v2941_v36 }
 0x3c9   : > { %v3130_v52 = vadd.bf16 %v10972_v3, %v3058_v31 }
 0x3ca   : > { %v3131_v12 = vadd.bf16 %v10976_v28, %v3059_v11 }
 0x3cb   : > { %v3194_v47 = vmax.bf16 %v12410_v39, %v3130_v52 }
 0x3cc   : > { %v2949_v46 = vpop.f32.mrb[232].mxu1  ;;  %v3195_v18 = vmax.bf16 %v12410_v39, %v3131_v12 }
 0x3cd   : > { %v2951_v5 = vpop.f32.mrb[233].mxu1 }
 0x3ce   : > { %v2953_v57 = vpop.f32.mrb[234].mxu1  ;;  %3683 = vmatprep.mubr.bf16.mxu0 %v3195_v18  ;;  %v11108_v18 = vrot.slane %v10752_v14, %v10966_v1 }
 0x3cf   : > { %v3060_v8 = vpack.c.bf16 %v2953_v57, %v2949_v46  ;;  %v2955_v30 = vpop.f32.mrb[235].mxu1  ;;  %3684 = vmatmul.mubr.bf16.gmra.mrb[100].mxu0 %v3194_v47  ;;  %v11112_v57 = vrot.slane %v10754_v44, %v10966_v1 }
 0x3d0   : > { %v3061_v13 = vpack.c.bf16 %v2955_v30, %v2951_v5 }
 0x3d1   : > { %v3132_v40 = vadd.bf16 %v10972_v3, %v3060_v8 }
 0x3d2   : > { %v3133_v26 = vadd.bf16 %v10976_v28, %v3061_v13 }
 0x3d3   : > { %v3196_v25 = vmax.bf16 %v12410_v39, %v3132_v40 }
 0x3d4   : > { %v2959_v45 = vpop.f32.mrb[236].mxu1  ;;  %v3197_v48 = vmax.bf16 %v12410_v39, %v3133_v26 }
 0x3d5   : > { %v2961_v41 = vpop.f32.mrb[237].mxu1 }
 0x3d6   : > { %v2963_v36 = vpop.f32.mrb[238].mxu1  ;;  %3693 = vmatprep.mubr.bf16.mxu0 %v3197_v48 }
 0x3d7   : > { %v3062_v32 = vpack.c.bf16 %v2963_v36, %v2959_v45  ;;  %v2965_v31 = vpop.f32.mrb[239].mxu1  ;;  %3694 = vmatmul.mubr.bf16.gmra.mrb[104].mxu0 %v3196_v25 }
 0x3d8   : > { %v3063_v55 = vpack.c.bf16 %v2965_v31, %v2961_v41 }
 0x3d9   : > { %v3134_v11 = vadd.bf16 %v10972_v3, %v3062_v32 }
 0x3da   : > { %v3135_v52 = vadd.bf16 %v10976_v28, %v3063_v55  ;;  %v3435_v12 = vpop.f32.mrb[0].mxu0 }
 0x3db   : > { %v3437_v46 = vpop.f32.mrb[1].mxu0  ;;  %v3198_v30 = vmax.bf16 %v12410_v39, %v3134_v11 }
 0x3dc   : > { %v2969_v47 = vpop.f32.mrb[240].mxu1  ;;  %v3439_v5 = vpop.f32.mrb[2].mxu0  ;;  %v3199_v8 = vmax.bf16 %v12410_v39, %v3135_v52 }
 0x3dd   : > { %v3754_v13 = vpack.c.bf16 %v3439_v5, %v3435_v12  ;;  %v2971_v40 = vpop.f32.mrb[241].mxu1  ;;  %v3441_v26 = vpop.f32.mrb[3].mxu0  ;;  %v9219_v12 = vld [vmem:[#allocation3 + $0x4a0] ss:$8 sps:$4 sm:$0xff]  }
 0x3de   : > { %v3755_v27 = vpack.c.bf16 %v3441_v26, %v3437_v46  ;;  %v2973_v53 = vpop.f32.mrb[242].mxu1  ;;  %3703 = vmatprep.mubr.bf16.mxu0 %v3199_v8  ;;  %v9221_v46 = vld [vmem:[#allocation3 + $0x4a4] ss:$8 sps:$4 sm:$0xff]  }
 0x3df   : > { %v3826_v45 = vadd.bf16 %v11108_v18, %v3754_v13  ;;  %v3064_v48 = vpack.c.bf16 %v2973_v53, %v2969_v47  ;;  %v2975_v25 = vpop.f32.mrb[243].mxu1  ;;  %3704 = vmatmul.mubr.bf16.gmra.mrb[108].mxu0 %v3198_v30  ;;  %5041 = vmatprep.subr.bf16.mxu0 %v9221_v46 }
 0x3e0   : > { %v3827_v41 = vadd.bf16 %v11112_v57, %v3755_v27  ;;  %v3065_v36 = vpack.c.bf16 %v2975_v25, %v2971_v40  ;;  %5042 = vmatpush1.bf16.msra.mxu0 %v9219_v12 }
 0x3e1   : > { %v3136_v1 = vadd.bf16 %v10972_v3, %v3064_v48  ;;  %v3890_v11 = vmax.bf16 %v12410_v39, %v3826_v45 }
 0x3e2   : > { %v3137_v32 = vadd.bf16 %v10976_v28, %v3065_v36  ;;  %v3445_v31 = vpop.f32.mrb[4].mxu0  ;;  %v3891_v55 = vmax.bf16 %v12410_v39, %v3827_v41 }
 0x3e3   : > { %v3447_v52 = vpop.f32.mrb[5].mxu0  ;;  %v3200_v30 = vmax.bf16 %v12410_v39, %v3136_v1 }
 0x3e4   : > { %v2979_v5 = vpop.f32.mrb[244].mxu1  ;;  %v3449_v8 = vpop.f32.mrb[6].mxu0  ;;  %4179 = vmatprep.mubr.bf16.mxu1 %v3891_v55  ;;  %v3201_v47 = vmax.bf16 %v12410_v39, %v3137_v32 }
 0x3e5   : > { %v3756_v13 = vpack.c.bf16 %v3449_v8, %v3445_v31  ;;  %v2981_v40 = vpop.f32.mrb[245].mxu1  ;;  %v3451_v26 = vpop.f32.mrb[7].mxu0  ;;  %4180 = vmatmul.mubr.bf16.vlgmr.msra.gmra.mrb[0].mxu1 %v3890_v11 }
 0x3e6   : > { %v3757_v27 = vpack.c.bf16 %v3451_v26, %v3447_v52  ;;  %v2983_v53 = vpop.f32.mrb[246].mxu1  ;;  %3713 = vmatprep.mubr.bf16.mxu0 %v3201_v47 }
 0x3e7   : > { %v3828_v45 = vadd.bf16 %v11108_v18, %v3756_v13  ;;  %v3066_v48 = vpack.c.bf16 %v2983_v53, %v2979_v5  ;;  %v2985_v25 = vpop.f32.mrb[247].mxu1  ;;  %3714 = vmatmul.mubr.bf16.gmra.mrb[112].mxu0 %v3200_v30 }
 0x3e8   : > { %v3829_v41 = vadd.bf16 %v11112_v57, %v3757_v27  ;;  %v3067_v36 = vpack.c.bf16 %v2985_v25, %v2981_v40 }
 0x3e9   : > { %v3138_v32 = vadd.bf16 %v10972_v3, %v3066_v48  ;;  %v3892_v11 = vmax.bf16 %v12410_v39, %v3828_v45 }
 0x3ea   : > { %v3139_v1 = vadd.bf16 %v10976_v28, %v3067_v36  ;;  %v3455_v31 = vpop.f32.mrb[8].mxu0  ;;  %v3893_v55 = vmax.bf16 %v12410_v39, %v3829_v41 }
 0x3eb   : > { %v3457_v52 = vpop.f32.mrb[9].mxu0  ;;  %v3202_v8 = vmax.bf16 %v12410_v39, %v3138_v32 }
 0x3ec   : > { %v2989_v46 = vpop.f32.mrb[248].mxu1  ;;  %v3459_v12 = vpop.f32.mrb[10].mxu0  ;;  %4189 = vmatprep.mubr.bf16.mxu1 %v3893_v55  ;;  %v3203_v5 = vmax.bf16 %v12410_v39, %v3139_v1 }
 0x3ed   : > { %v3758_v47 = vpack.c.bf16 %v3459_v12, %v3455_v31  ;;  %v2991_v30 = vpop.f32.mrb[249].mxu1  ;;  %v3461_v13 = vpop.f32.mrb[11].mxu0  ;;  %4190 = vmatmul.mubr.bf16.gmra.mrb[4].mxu1 %v3892_v11  ;;  %v9222_v11 = vld [vmem:[#allocation3 + $0x4b0] ss:$8 sps:$4 sm:$0xff]  }
 0x3ee   : > { %v3759_v40 = vpack.c.bf16 %v3461_v13, %v3457_v52  ;;  %v2993_v26 = vpop.f32.mrb[250].mxu1  ;;  %3723 = vmatprep.mubr.bf16.mxu0 %v3203_v5  ;;  %v9224_v52 = vld [vmem:[#allocation3 + $0x4b4] ss:$8 sps:$4 sm:$0xff]  }
 0x3ef   : > { %v3830_v27 = vadd.bf16 %v11108_v18, %v3758_v47  ;;  %v3068_v53 = vpack.c.bf16 %v2993_v26, %v2989_v46  ;;  %v2995_v48 = vpop.f32.mrb[251].mxu1  ;;  %3724 = vmatmul.mubr.bf16.gmra.mrb[116].mxu0 %v3202_v8  ;;  %5043 = vmatprep.subr.bf16.mxu0 %v9224_v52 }
 0x3f0   : > { %v3831_v45 = vadd.bf16 %v11112_v57, %v3759_v40  ;;  %v3069_v25 = vpack.c.bf16 %v2995_v48, %v2991_v30  ;;  %5044 = vmatpush1.bf16.msra.mxu0 %v9222_v11 }
 0x3f1   : > { %v3140_v41 = vadd.bf16 %v10972_v3, %v3068_v53  ;;  %v3894_v31 = vmax.bf16 %v12410_v39, %v3830_v27 }
 0x3f2   : > { %v3141_v36 = vadd.bf16 %v10976_v28, %v3069_v25  ;;  %v3465_v32 = vpop.f32.mrb[12].mxu0  ;;  %v3895_v1 = vmax.bf16 %v12410_v39, %v3831_v45 }
 0x3f3   : > { %v3467_v55 = vpop.f32.mrb[13].mxu0  ;;  %v3204_v8 = vmax.bf16 %v12410_v39, %v3140_v41 }
 0x3f4   : > { %v2999_v12 = vpop.f32.mrb[252].mxu1  ;;  %v3469_v5 = vpop.f32.mrb[14].mxu0  ;;  %4199 = vmatprep.mubr.bf16.mxu1 %v3895_v1  ;;  %v3205_v46 = vmax.bf16 %v12410_v39, %v3141_v36 }
 0x3f5   : > { %v3760_v47 = vpack.c.bf16 %v3469_v5, %v3465_v32  ;;  %v3001_v30 = vpop.f32.mrb[253].mxu1  ;;  %v3471_v13 = vpop.f32.mrb[15].mxu0  ;;  %4200 = vmatmul.mubr.bf16.gmra.mrb[8].mxu1 %v3894_v31 }
 0x3f6   : > { %v3761_v40 = vpack.c.bf16 %v3471_v13, %v3467_v55  ;;  %v3003_v26 = vpop.f32.mrb[254].mxu1  ;;  %3733 = vmatprep.mubr.bf16.mxu0 %v3205_v46 }
 0x3f7   : > { %v3832_v27 = vadd.bf16 %v11108_v18, %v3760_v47  ;;  %v3070_v53 = vpack.c.bf16 %v3003_v26, %v2999_v12  ;;  %v3005_v48 = vpop.f32.mrb[255].mxu1  ;;  %3734 = vmatmul.mubr.bf16.gmra.mrb[120].mxu0 %v3204_v8  ;;  %v9225_v26 = vld [vmem:[#allocation3 + $0x4c0] ss:$8 sps:$4 sm:$0xff]  }
 0x3f8   : > { %v3833_v45 = vadd.bf16 %v11112_v57, %v3761_v40  ;;  %v3071_v25 = vpack.c.bf16 %v3005_v48, %v3001_v30 }
 0x3f9   : > { %v3142_v36 = vadd.bf16 %v10972_v3, %v3070_v53  ;;  %v3896_v31 = vmax.bf16 %v12410_v39, %v3832_v27  ;;  %v9227_v27 = vld [vmem:[#allocation3 + $0x4c4] ss:$8 sps:$4 sm:$0xff]  }
 0x3fa   : > { %v3143_v41 = vadd.bf16 %v10976_v28, %v3071_v25  ;;  %v3475_v32 = vpop.f32.mrb[16].mxu0  ;;  %v3897_v1 = vmax.bf16 %v12410_v39, %v3833_v45  ;;  %5045 = vmatprep.subr.bf16.mxu0 %v9227_v27 }
 0x3fb   : > { %v3477_v55 = vpop.f32.mrb[17].mxu0  ;;  %v3206_v12 = vmax.bf16 %v12410_v39, %v3142_v36  ;;  %5046 = vmatpush1.bf16.msra.mxu0 %v9225_v26 }
 0x3fc   : > { %v3479_v52 = vpop.f32.mrb[18].mxu0  ;;  %4209 = vmatprep.mubr.bf16.mxu1 %v3897_v1  ;;  %v3207_v11 = vmax.bf16 %v12410_v39, %v3143_v41 }
 0x3fd   : > { %v3762_v5 = vpack.c.bf16 %v3479_v52, %v3475_v32  ;;  %v3481_v46 = vpop.f32.mrb[19].mxu0  ;;  %4210 = vmatmul.mubr.bf16.gmra.mrb[12].mxu1 %v3896_v31 }
 0x3fe   : > { %v3763_v8 = vpack.c.bf16 %v3481_v46, %v3477_v55  ;;  %3743 = vmatprep.mubr.bf16.mxu0 %v3207_v11 }
 0x3ff   : > { %v3834_v3 = vadd.bf16 %v11108_v18, %v3762_v5  ;;  %3744 = vmatmul.mubr.bf16.gmra.mrb[124].mxu0 %v3206_v12 }
 0x400   : > { %v3835_v28 = vadd.bf16 %v11112_v57, %v3763_v8 }
 0x401   : > { %v3898_v13 = vmax.bf16 %v12410_v39, %v3834_v3 }
 0x402   : > { %v3485_v47 = vpop.f32.mrb[20].mxu0  ;;  %v3899_v30 = vmax.bf16 %v12410_v39, %v3835_v28 }
 0x403   : > { %v3487_v40 = vpop.f32.mrb[21].mxu0 }
 0x404   : > { %v3489_v53 = vpop.f32.mrb[22].mxu0  ;;  %4219 = vmatprep.mubr.bf16.mxu1 %v3899_v30 }
 0x405   : > { %v3764_v48 = vpack.c.bf16 %v3489_v53, %v3485_v47  ;;  %v3491_v45 = vpop.f32.mrb[23].mxu0  ;;  %4220 = vmatmul.mubr.bf16.gmra.mrb[16].mxu1 %v3898_v13  ;;  %v9228_v13 = vld [vmem:[#allocation3 + $0x4d0] ss:$8 sps:$4 sm:$0xff]  }
 0x406   : > { %v3765_v25 = vpack.c.bf16 %v3491_v45, %v3487_v40  ;;  %v9230_v40 = vld [vmem:[#allocation3 + $0x4d4] ss:$8 sps:$4 sm:$0xff]  }
 0x407   : > { %v3836_v36 = vadd.bf16 %v11108_v18, %v3764_v48  ;;  %5047 = vmatprep.subr.bf16.mxu0 %v9230_v40  ;;  %v9234_v40 = vld [vmem:[#allocation3 + $0x500] ss:$8 sps:$4 sm:$0xff]  }
 0x408   : > { %v3837_v41 = vadd.bf16 %v11112_v57, %v3765_v25  ;;  %5048 = vmatpush1.bf16.msra.mxu0 %v9228_v13 }
 0x409   : > { %v3900_v31 = vmax.bf16 %v12410_v39, %v3836_v36 }
 0x40a   : > { %v3495_v32 = vpop.f32.mrb[24].mxu0  ;;  %v3901_v1 = vmax.bf16 %v12410_v39, %v3837_v41 }
 0x40b   : > { %v3497_v55 = vpop.f32.mrb[25].mxu0 }
 0x40c   : > { %v3499_v52 = vpop.f32.mrb[26].mxu0  ;;  %4229 = vmatprep.mubr.bf16.mxu1 %v3901_v1 }
 0x40d   : > { %v3766_v11 = vpack.c.bf16 %v3499_v52, %v3495_v32  ;;  %v3501_v12 = vpop.f32.mrb[27].mxu0  ;;  %4230 = vmatmul.mubr.bf16.gmra.mrb[20].mxu1 %v3900_v31 }
 0x40e   : > { %v3767_v5 = vpack.c.bf16 %v3501_v12, %v3497_v55 }
 0x40f   : > { %v3838_v46 = vadd.bf16 %v11108_v18, %v3766_v11 }
 0x410   : > { %v3839_v8 = vadd.bf16 %v11112_v57, %v3767_v5 }
 0x411   : > { %v3902_v47 = vmax.bf16 %v12410_v39, %v3838_v46 }
 0x412   : > { %v3505_v3 = vpop.f32.mrb[28].mxu0  ;;  %v3903_v28 = vmax.bf16 %v12410_v39, %v3839_v8 }
 0x413   : > { %v3507_v30 = vpop.f32.mrb[29].mxu0 }
 0x414   : > { %v3509_v26 = vpop.f32.mrb[30].mxu0  ;;  %4239 = vmatprep.mubr.bf16.mxu1 %v3903_v28 }
 0x415   : > { %v3768_v27 = vpack.c.bf16 %v3509_v26, %v3505_v3  ;;  %v3511_v53 = vpop.f32.mrb[31].mxu0  ;;  %4240 = vmatmul.mubr.bf16.gmra.mrb[24].mxu1 %v3902_v47  ;;  %v9231_v47 = vld [vmem:[#allocation3 + $0x4e0] ss:$8 sps:$4 sm:$0xff]   ;;  %v9236_v26 = vld [vmem:[#allocation3 + $0x504] ss:$8 sps:$4 sm:$0xff]  }
 0x416   : > { %v3769_v48 = vpack.c.bf16 %v3511_v53, %v3507_v30  ;;  %v9233_v30 = vld [vmem:[#allocation3 + $0x4e4] ss:$8 sps:$4 sm:$0xff]   ;;  %5767 = vmatprep.subr.bf16.mxu1 %v9236_v26  ;;  %v9242_v26 = vld [vmem:[#allocation3 + $0x514] ss:$8 sps:$4 sm:$0xff]  }
 0x417   : > { %v3840_v45 = vadd.bf16 %v11108_v18, %v3768_v27  ;;  %5049 = vmatprep.subr.bf16.mxu0 %v9233_v30  ;;  %5768 = vmatpush1.bf16.msra.mxu1 %v9234_v40  ;;  %v9239_v30 = vld [vmem:[#allocation3 + $0x4f4] ss:$8 sps:$4 sm:$0xff]   ;;  %v9240_v40 = vld [vmem:[#allocation3 + $0x510] ss:$8 sps:$4 sm:$0xff]  }
 0x418   : > { %v3841_v25 = vadd.bf16 %v11112_v57, %v3769_v48  ;;  %5050 = vmatpush1.bf16.msra.mxu0 %v9231_v47  ;;  %v9237_v47 = vld [vmem:[#allocation3 + $0x4f0] ss:$8 sps:$4 sm:$0xff]   ;;  %5769 = vmatprep.subr.bf16.mxu1 %v9242_v26 }
 0x419   : > { %v3904_v32 = vmax.bf16 %v12410_v39, %v3840_v45  ;;  %5051 = vmatprep.subr.bf16.mxu0 %v9239_v30 }
 0x41a   : > { %v3515_v36 = vpop.f32.mrb[32].mxu0  ;;  %v3905_v41 = vmax.bf16 %v12410_v39, %v3841_v25 }
 0x41b   : > { %v3517_v1 = vpop.f32.mrb[33].mxu0  ;;  %5770 = vmatpush1.bf16.msra.mxu1 %v9240_v40 }
 0x41c   : > { %v3519_v31 = vpop.f32.mrb[34].mxu0  ;;  %4249 = vmatprep.mubr.bf16.mxu1 %v3905_v41  ;;  %5052 = vmatpush1.bf16.msra.mxu0 %v9237_v47 }
 0x41d   : > { %v3770_v55 = vpack.c.bf16 %v3519_v31, %v3515_v36  ;;  %v3521_v52 = vpop.f32.mrb[35].mxu0  ;;  %4250 = vmatmul.mubr.bf16.gmra.mrb[28].mxu1 %v3904_v32 }
 0x41e   : > { %v3771_v11 = vpack.c.bf16 %v3521_v52, %v3517_v1 }
 0x41f   : > { %v3842_v12 = vadd.bf16 %v11108_v18, %v3770_v55 }
 0x420   : > { %v3843_v5 = vadd.bf16 %v11112_v57, %v3771_v11 }
 0x421   : > { %v3906_v3 = vmax.bf16 %v12410_v39, %v3842_v12 }
 0x422   : > { %v3525_v46 = vpop.f32.mrb[36].mxu0  ;;  %v3907_v8 = vmax.bf16 %v12410_v39, %v3843_v5 }
 0x423   : > { %v3527_v28 = vpop.f32.mrb[37].mxu0 }
 0x424   : > { %v3529_v13 = vpop.f32.mrb[38].mxu0  ;;  %4259 = vmatprep.mubr.bf16.mxu1 %v3907_v8 }
 0x425   : > { %v3772_v27 = vpack.c.bf16 %v3529_v13, %v3525_v46  ;;  %v3531_v53 = vpop.f32.mrb[39].mxu0  ;;  %4260 = vmatmul.mubr.bf16.gmra.mrb[32].mxu1 %v3906_v3 }
 0x426   : > { %v3773_v48 = vpack.c.bf16 %v3531_v53, %v3527_v28 }
 0x427   : > { %v3844_v45 = vadd.bf16 %v11108_v18, %v3772_v27 }
 0x428   : > { %v3845_v25 = vadd.bf16 %v11112_v57, %v3773_v48 }
 0x429   : > { %v3908_v32 = vmax.bf16 %v12410_v39, %v3844_v45 }
 0x42a   : > { %v3535_v36 = vpop.f32.mrb[40].mxu0  ;;  %v3909_v41 = vmax.bf16 %v12410_v39, %v3845_v25 }
 0x42b   : > { %v3537_v1 = vpop.f32.mrb[41].mxu0 }
 0x42c   : > { %v3539_v31 = vpop.f32.mrb[42].mxu0  ;;  %4269 = vmatprep.mubr.bf16.mxu1 %v3909_v41 }
 0x42d   : > { %v3774_v55 = vpack.c.bf16 %v3539_v31, %v3535_v36  ;;  %v3541_v52 = vpop.f32.mrb[43].mxu0  ;;  %4270 = vmatmul.mubr.bf16.gmra.mrb[36].mxu1 %v3908_v32 }
 0x42e   : > { %v3775_v11 = vpack.c.bf16 %v3541_v52, %v3537_v1 }
 0x42f   : > { %v3846_v12 = vadd.bf16 %v11108_v18, %v3774_v55 }
 0x430   : > { %v3847_v5 = vadd.bf16 %v11112_v57, %v3775_v11 }
 0x431   : > { %v3910_v3 = vmax.bf16 %v12410_v39, %v3846_v12 }
 0x432   : > { %v3545_v46 = vpop.f32.mrb[44].mxu0  ;;  %v3911_v8 = vmax.bf16 %v12410_v39, %v3847_v5 }
 0x433   : > { %v3547_v28 = vpop.f32.mrb[45].mxu0 }
 0x434   : > { %v3549_v13 = vpop.f32.mrb[46].mxu0  ;;  %4279 = vmatprep.mubr.bf16.mxu1 %v3911_v8 }
 0x435   : > { %v3776_v27 = vpack.c.bf16 %v3549_v13, %v3545_v46  ;;  %v3551_v53 = vpop.f32.mrb[47].mxu0  ;;  %4280 = vmatmul.mubr.bf16.gmra.mrb[40].mxu1 %v3910_v3 }
 0x436   : > { %v3777_v48 = vpack.c.bf16 %v3551_v53, %v3547_v28  ;;  %v9245_v53 = vld [vmem:[#allocation3 + $0x524] ss:$8 sps:$4 sm:$0xff]  }
 0x437   : > { %v3848_v45 = vadd.bf16 %v11108_v18, %v3776_v27  ;;  %v9243_v27 = vld [vmem:[#allocation3 + $0x520] ss:$8 sps:$4 sm:$0xff]   ;;  %5771 = vmatprep.subr.bf16.mxu1 %v9245_v53 }
 0x438   : > { %v3849_v25 = vadd.bf16 %v11112_v57, %v3777_v48  ;;  %5772 = vmatpush1.bf16.msra.mxu1 %v9243_v27 }
 0x439   : > { %v3912_v32 = vmax.bf16 %v12410_v39, %v3848_v45 }
 0x43a   : > { %v3555_v36 = vpop.f32.mrb[48].mxu0  ;;  %v3913_v41 = vmax.bf16 %v12410_v39, %v3849_v25 }
 0x43b   : > { %v3557_v1 = vpop.f32.mrb[49].mxu0 }
 0x43c   : > { %v3559_v31 = vpop.f32.mrb[50].mxu0  ;;  %4289 = vmatprep.mubr.bf16.mxu1 %v3913_v41 }
 0x43d   : > { %v3778_v55 = vpack.c.bf16 %v3559_v31, %v3555_v36  ;;  %v3561_v52 = vpop.f32.mrb[51].mxu0  ;;  %4290 = vmatmul.mubr.bf16.gmra.mrb[44].mxu1 %v3912_v32 }
 0x43e   : > { %v3779_v11 = vpack.c.bf16 %v3561_v52, %v3557_v1 }
 0x43f   : > { %v3850_v12 = vadd.bf16 %v11108_v18, %v3778_v55 }
 0x440   : > { %v3851_v5 = vadd.bf16 %v11112_v57, %v3779_v11 }
 0x441   : > { %v3914_v3 = vmax.bf16 %v12410_v39, %v3850_v12 }
 0x442   : > { %v3565_v46 = vpop.f32.mrb[52].mxu0  ;;  %v3915_v8 = vmax.bf16 %v12410_v39, %v3851_v5 }
 0x443   : > { %v3567_v28 = vpop.f32.mrb[53].mxu0 }
 0x444   : > { %v3569_v47 = vpop.f32.mrb[54].mxu0  ;;  %4299 = vmatprep.mubr.bf16.mxu1 %v3915_v8 }
 0x445   : > { %v3780_v30 = vpack.c.bf16 %v3569_v47, %v3565_v46  ;;  %v3571_v13 = vpop.f32.mrb[55].mxu0  ;;  %4300 = vmatmul.mubr.bf16.gmra.mrb[48].mxu1 %v3914_v3 }
 0x446   : > { %v3781_v40 = vpack.c.bf16 %v3571_v13, %v3567_v28 }
 0x447   : > { %v3852_v26 = vadd.bf16 %v11108_v18, %v3780_v30 }
 0x448   : > { %v3853_v48 = vadd.bf16 %v11112_v57, %v3781_v40  ;;  %v9246_v40 = vld [vmem:[#allocation3 + $0x530] ss:$8 sps:$4 sm:$0xff]  }
 0x449   : > { %v3916_v36 = vmax.bf16 %v12410_v39, %v3852_v26  ;;  %v9248_v26 = vld [vmem:[#allocation3 + $0x534] ss:$8 sps:$4 sm:$0xff]  }
 0x44a   : > { %v3575_v45 = vpop.f32.mrb[56].mxu0  ;;  %v3917_v25 = vmax.bf16 %v12410_v39, %v3853_v48  ;;  %5773 = vmatprep.subr.bf16.mxu1 %v9248_v26 }
 0x44b   : > { %v3577_v41 = vpop.f32.mrb[57].mxu0  ;;  %5774 = vmatpush1.bf16.msra.mxu1 %v9246_v40 }
 0x44c   : > { %v3579_v32 = vpop.f32.mrb[58].mxu0  ;;  %4309 = vmatprep.mubr.bf16.mxu1 %v3917_v25 }
 0x44d   : > { %v3782_v1 = vpack.c.bf16 %v3579_v32, %v3575_v45  ;;  %v3581_v31 = vpop.f32.mrb[59].mxu0  ;;  %4310 = vmatmul.mubr.bf16.gmra.mrb[52].mxu1 %v3916_v36 }
 0x44e   : > { %v3783_v55 = vpack.c.bf16 %v3581_v31, %v3577_v41 }
 0x44f   : > { %v3854_v52 = vadd.bf16 %v11108_v18, %v3782_v1 }
 0x450   : > { %v3855_v11 = vadd.bf16 %v11112_v57, %v3783_v55 }
 0x451   : > { %v3918_v46 = vmax.bf16 %v12410_v39, %v3854_v52 }
 0x452   : > { %v3585_v12 = vpop.f32.mrb[60].mxu0  ;;  %v3919_v5 = vmax.bf16 %v12410_v39, %v3855_v11 }
 0x453   : > { %v3587_v8 = vpop.f32.mrb[61].mxu0 }
 0x454   : > { %v3589_v3 = vpop.f32.mrb[62].mxu0  ;;  %4319 = vmatprep.mubr.bf16.mxu1 %v3919_v5 }
 0x455   : > { %v3784_v28 = vpack.c.bf16 %v3589_v3, %v3585_v12  ;;  %v3591_v47 = vpop.f32.mrb[63].mxu0  ;;  %4320 = vmatmul.mubr.bf16.gmra.mrb[56].mxu1 %v3918_v46 }
 0x456   : > { %v3785_v30 = vpack.c.bf16 %v3591_v47, %v3587_v8 }
 0x457   : > { %v3856_v13 = vadd.bf16 %v11108_v18, %v3784_v28 }
 0x458   : > { %v3857_v27 = vadd.bf16 %v11112_v57, %v3785_v30  ;;  %v9249_v30 = vld [vmem:[#allocation3 + $0x540] ss:$8 sps:$4 sm:$0xff]  }
 0x459   : > { %v3920_v45 = vmax.bf16 %v12410_v39, %v3856_v13  ;;  %v9251_v13 = vld [vmem:[#allocation3 + $0x544] ss:$8 sps:$4 sm:$0xff]  }
 0x45a   : > { %v3595_v53 = vpop.f32.mrb[64].mxu0  ;;  %v3921_v48 = vmax.bf16 %v12410_v39, %v3857_v27  ;;  %5775 = vmatprep.subr.bf16.mxu1 %v9251_v13 }
 0x45b   : > { %v3597_v25 = vpop.f32.mrb[65].mxu0  ;;  %5776 = vmatpush1.bf16.msra.mxu1 %v9249_v30 }
 0x45c   : > { %v3599_v36 = vpop.f32.mrb[66].mxu0  ;;  %4329 = vmatprep.mubr.bf16.mxu1 %v3921_v48 }
 0x45d   : > { %v3786_v41 = vpack.c.bf16 %v3599_v36, %v3595_v53  ;;  %v3601_v32 = vpop.f32.mrb[67].mxu0  ;;  %4330 = vmatmul.mubr.bf16.gmra.mrb[60].mxu1 %v3920_v45 }
 0x45e   : > { %v3787_v1 = vpack.c.bf16 %v3601_v32, %v3597_v25 }
 0x45f   : > { %v3858_v31 = vadd.bf16 %v11108_v18, %v3786_v41 }
 0x460   : > { %v3859_v55 = vadd.bf16 %v11112_v57, %v3787_v1 }
 0x461   : > { %v3922_v12 = vmax.bf16 %v12410_v39, %v3858_v31 }
 0x462   : > { %v3605_v52 = vpop.f32.mrb[68].mxu0  ;;  %v3923_v11 = vmax.bf16 %v12410_v39, %v3859_v55 }
 0x463   : > { %v3607_v5 = vpop.f32.mrb[69].mxu0 }
 0x464   : > { %v3609_v46 = vpop.f32.mrb[70].mxu0  ;;  %4339 = vmatprep.mubr.bf16.mxu1 %v3923_v11 }
 0x465   : > { %v3788_v8 = vpack.c.bf16 %v3609_v46, %v3605_v52  ;;  %v3611_v3 = vpop.f32.mrb[71].mxu0  ;;  %4340 = vmatmul.mubr.bf16.gmra.mrb[64].mxu1 %v3922_v12 }
 0x466   : > { %v3789_v28 = vpack.c.bf16 %v3611_v3, %v3607_v5 }
 0x467   : > { %v3860_v47 = vadd.bf16 %v11108_v18, %v3788_v8 }
 0x468   : > { %v3861_v40 = vadd.bf16 %v11112_v57, %v3789_v28  ;;  %v9252_v28 = vld [vmem:[#allocation3 + $0x550] ss:$8 sps:$4 sm:$0xff]  }
 0x469   : > { %v3924_v53 = vmax.bf16 %v12410_v39, %v3860_v47  ;;  %v9254_v47 = vld [vmem:[#allocation3 + $0x554] ss:$8 sps:$4 sm:$0xff]  }
 0x46a   : > { %v3615_v26 = vpop.f32.mrb[72].mxu0  ;;  %v3925_v27 = vmax.bf16 %v12410_v39, %v3861_v40  ;;  %5777 = vmatprep.subr.bf16.mxu1 %v9254_v47 }
 0x46b   : > { %v3617_v48 = vpop.f32.mrb[73].mxu0  ;;  %5778 = vmatpush1.bf16.msra.mxu1 %v9252_v28 }
 0x46c   : > { %v3619_v45 = vpop.f32.mrb[74].mxu0  ;;  %4349 = vmatprep.mubr.bf16.mxu1 %v3925_v27 }
 0x46d   : > { %v3790_v25 = vpack.c.bf16 %v3619_v45, %v3615_v26  ;;  %v3621_v36 = vpop.f32.mrb[75].mxu0  ;;  %4350 = vmatmul.mubr.bf16.gmra.mrb[68].mxu1 %v3924_v53 }
 0x46e   : > { %v3791_v41 = vpack.c.bf16 %v3621_v36, %v3617_v48 }
 0x46f   : > { %v3862_v32 = vadd.bf16 %v11108_v18, %v3790_v25 }
 0x470   : > { %v3863_v1 = vadd.bf16 %v11112_v57, %v3791_v41 }
 0x471   : > { %v3926_v52 = vmax.bf16 %v12410_v39, %v3862_v32 }
 0x472   : > { %v3625_v31 = vpop.f32.mrb[76].mxu0  ;;  %v3927_v55 = vmax.bf16 %v12410_v39, %v3863_v1 }
 0x473   : > { %v3627_v11 = vpop.f32.mrb[77].mxu0 }
 0x474   : > { %v3629_v12 = vpop.f32.mrb[78].mxu0  ;;  %4359 = vmatprep.mubr.bf16.mxu1 %v3927_v55 }
 0x475   : > { %v3792_v5 = vpack.c.bf16 %v3629_v12, %v3625_v31  ;;  %v3631_v46 = vpop.f32.mrb[79].mxu0  ;;  %4360 = vmatmul.mubr.bf16.gmra.mrb[72].mxu1 %v3926_v52 }
 0x476   : > { %v3793_v8 = vpack.c.bf16 %v3631_v46, %v3627_v11 }
 0x477   : > { %v3864_v3 = vadd.bf16 %v11108_v18, %v3792_v5 }
 0x478   : > { %v3865_v30 = vadd.bf16 %v11112_v57, %v3793_v8  ;;  %v9255_v8 = vld [vmem:[#allocation3 + $0x560] ss:$8 sps:$4 sm:$0xff]  }
 0x479   : > { %v3928_v26 = vmax.bf16 %v12410_v39, %v3864_v3  ;;  %v9257_v3 = vld [vmem:[#allocation3 + $0x564] ss:$8 sps:$4 sm:$0xff]  }
 0x47a   : > { %v3635_v13 = vpop.f32.mrb[80].mxu0  ;;  %v3929_v40 = vmax.bf16 %v12410_v39, %v3865_v30  ;;  %5779 = vmatprep.subr.bf16.mxu1 %v9257_v3 }
 0x47b   : > { %v3637_v27 = vpop.f32.mrb[81].mxu0  ;;  %5780 = vmatpush1.bf16.msra.mxu1 %v9255_v8 }
 0x47c   : > { %v3639_v53 = vpop.f32.mrb[82].mxu0  ;;  %4369 = vmatprep.mubr.bf16.mxu1 %v3929_v40 }
 0x47d   : > { %v3794_v48 = vpack.c.bf16 %v3639_v53, %v3635_v13  ;;  %v3641_v45 = vpop.f32.mrb[83].mxu0  ;;  %4370 = vmatmul.mubr.bf16.gmra.mrb[76].mxu1 %v3928_v26 }
 0x47e   : > { %v3795_v25 = vpack.c.bf16 %v3641_v45, %v3637_v27 }
 0x47f   : > { %v3866_v36 = vadd.bf16 %v11108_v18, %v3794_v48 }
 0x480   : > { %v3867_v41 = vadd.bf16 %v11112_v57, %v3795_v25 }
 0x481   : > { %v3930_v31 = vmax.bf16 %v12410_v39, %v3866_v36 }
 0x482   : > { %v3645_v32 = vpop.f32.mrb[84].mxu0  ;;  %v3931_v1 = vmax.bf16 %v12410_v39, %v3867_v41 }
 0x483   : > { %v3647_v55 = vpop.f32.mrb[85].mxu0 }
 0x484   : > { %v3649_v52 = vpop.f32.mrb[86].mxu0  ;;  %4379 = vmatprep.mubr.bf16.mxu1 %v3931_v1 }
 0x485   : > { %v3796_v11 = vpack.c.bf16 %v3649_v52, %v3645_v32  ;;  %v3651_v12 = vpop.f32.mrb[87].mxu0  ;;  %4380 = vmatmul.mubr.bf16.gmra.mrb[80].mxu1 %v3930_v31 }
 0x486   : > { %v3797_v5 = vpack.c.bf16 %v3651_v12, %v3647_v55 }
 0x487   : > { %v3868_v46 = vadd.bf16 %v11108_v18, %v3796_v11 }
 0x488   : > { %v3869_v28 = vadd.bf16 %v11112_v57, %v3797_v5  ;;  %v9258_v5 = vld [vmem:[#allocation3 + $0x570] ss:$8 sps:$4 sm:$0xff]  }
 0x489   : > { %v3932_v13 = vmax.bf16 %v12410_v39, %v3868_v46  ;;  %v9260_v46 = vld [vmem:[#allocation3 + $0x574] ss:$8 sps:$4 sm:$0xff]  }
 0x48a   : > { %v3655_v47 = vpop.f32.mrb[88].mxu0  ;;  %v3933_v30 = vmax.bf16 %v12410_v39, %v3869_v28  ;;  %5781 = vmatprep.subr.bf16.mxu1 %v9260_v46 }
 0x48b   : > { %v3657_v40 = vpop.f32.mrb[89].mxu0  ;;  %5782 = vmatpush1.bf16.msra.mxu1 %v9258_v5 }
 0x48c   : > { %v3659_v26 = vpop.f32.mrb[90].mxu0  ;;  %4389 = vmatprep.mubr.bf16.mxu1 %v3933_v30 }
 0x48d   : > { %v3798_v27 = vpack.c.bf16 %v3659_v26, %v3655_v47  ;;  %v3661_v53 = vpop.f32.mrb[91].mxu0  ;;  %4390 = vmatmul.mubr.bf16.gmra.mrb[84].mxu1 %v3932_v13 }
 0x48e   : > { %v3799_v48 = vpack.c.bf16 %v3661_v53, %v3657_v40 }
 0x48f   : > { %v3870_v45 = vadd.bf16 %v11108_v18, %v3798_v27 }
 0x490   : > { %v3871_v25 = vadd.bf16 %v11112_v57, %v3799_v48 }
 0x491   : > { %v3934_v32 = vmax.bf16 %v12410_v39, %v3870_v45 }
 0x492   : > { %v3665_v36 = vpop.f32.mrb[92].mxu0  ;;  %v3935_v41 = vmax.bf16 %v12410_v39, %v3871_v25 }
 0x493   : > { %v3667_v1 = vpop.f32.mrb[93].mxu0 }
 0x494   : > { %v3669_v31 = vpop.f32.mrb[94].mxu0  ;;  %4399 = vmatprep.mubr.bf16.mxu1 %v3935_v41 }
 0x495   : > { %v3800_v55 = vpack.c.bf16 %v3669_v31, %v3665_v36  ;;  %v3671_v52 = vpop.f32.mrb[95].mxu0  ;;  %4400 = vmatmul.mubr.bf16.gmra.mrb[88].mxu1 %v3934_v32 }
 0x496   : > { %v3801_v11 = vpack.c.bf16 %v3671_v52, %v3667_v1 }
 0x497   : > { %v3872_v12 = vadd.bf16 %v11108_v18, %v3800_v55 }
 0x498   : > { %v3873_v8 = vadd.bf16 %v11112_v57, %v3801_v11  ;;  %v9261_v11 = vld [vmem:[#allocation3 + $0x580] ss:$8 sps:$4 sm:$0xff]  }
 0x499   : > { %v3936_v47 = vmax.bf16 %v12410_v39, %v3872_v12  ;;  %v9263_v12 = vld [vmem:[#allocation3 + $0x584] ss:$8 sps:$4 sm:$0xff]  }
 0x49a   : > { %v3675_v3 = vpop.f32.mrb[96].mxu0  ;;  %v3937_v28 = vmax.bf16 %v12410_v39, %v3873_v8  ;;  %5783 = vmatprep.subr.bf16.mxu1 %v9263_v12 }
 0x49b   : > { %v3677_v30 = vpop.f32.mrb[97].mxu0  ;;  %5784 = vmatpush1.bf16.msra.mxu1 %v9261_v11  ;;  %v9266_v11 = vld [vmem:[#allocation3 + $0x594] ss:$8 sps:$4 sm:$0xff]  }
 0x49c   : > { %v3679_v13 = vpop.f32.mrb[98].mxu0  ;;  %4409 = vmatprep.mubr.bf16.mxu1 %v3937_v28  ;;  %5785 = vmatprep.subr.bf16.mxu1 %v9266_v11 }
 0x49d   : > { %v3802_v40 = vpack.c.bf16 %v3679_v13, %v3675_v3  ;;  %v3681_v26 = vpop.f32.mrb[99].mxu0  ;;  %4410 = vmatmul.mubr.bf16.gmra.mrb[92].mxu1 %v3936_v47 }
 0x49e   : > { %v3803_v27 = vpack.c.bf16 %v3681_v26, %v3677_v30 }
 0x49f   : > { %v3874_v53 = vadd.bf16 %v11108_v18, %v3802_v40 }
 0x4a0   : > { %v3875_v48 = vadd.bf16 %v11112_v57, %v3803_v27 }
 0x4a1   : > { %v3938_v36 = vmax.bf16 %v12410_v39, %v3874_v53 }
 0x4a2   : > { %v3685_v45 = vpop.f32.mrb[100].mxu0  ;;  %v3939_v25 = vmax.bf16 %v12410_v39, %v3875_v48 }
 0x4a3   : > { %v3687_v41 = vpop.f32.mrb[101].mxu0 }
 0x4a4   : > { %v3689_v32 = vpop.f32.mrb[102].mxu0  ;;  %4419 = vmatprep.mubr.bf16.mxu1 %v3939_v25 }
 0x4a5   : > { %v3804_v1 = vpack.c.bf16 %v3689_v32, %v3685_v45  ;;  %v3691_v31 = vpop.f32.mrb[103].mxu0  ;;  %4420 = vmatmul.mubr.bf16.gmra.mrb[96].mxu1 %v3938_v36 }
 0x4a6   : > { %v3805_v55 = vpack.c.bf16 %v3691_v31, %v3687_v41 }
 0x4a7   : > { %v3876_v52 = vadd.bf16 %v11108_v18, %v3804_v1  ;;  %v11241_v1 = vsub.s32 2, %v10023_v54 }
 0x4a8   : > { %v3877_v5 = vadd.bf16 %v11112_v57, %v3805_v55 }
 0x4a9   : > { %v3940_v3 = vmax.bf16 %v12410_v39, %v3876_v52  ;;  %v9264_v52 = vld [vmem:[#allocation3 + $0x590] ss:$8 sps:$4 sm:$0xff]  }
 0x4aa   : > { %v3695_v46 = vpop.f32.mrb[104].mxu0  ;;  %v3941_v8 = vmax.bf16 %v12410_v39, %v3877_v5  ;;  %5786 = vmatpush1.bf16.msra.mxu1 %v9264_v52 }
 0x4ab   : > { %v3697_v28 = vpop.f32.mrb[105].mxu0 }
 0x4ac   : > { %v3699_v47 = vpop.f32.mrb[106].mxu0  ;;  %4429 = vmatprep.mubr.bf16.mxu1 %v3941_v8  ;;  %v11247_v8 = vrot.slane %v10064_v7, %v11241_v1 }
 0x4ad   : > { %v3806_v30 = vpack.c.bf16 %v3699_v47, %v3695_v46  ;;  %v3701_v13 = vpop.f32.mrb[107].mxu0  ;;  %4430 = vmatmul.mubr.bf16.gmra.mrb[100].mxu1 %v3940_v3  ;;  %v11251_v47 = vrot.slane %v10036_v58, %v11241_v1 }
 0x4ae   : > { %v3807_v40 = vpack.c.bf16 %v3701_v13, %v3697_v28 }
 0x4af   : > { %v3878_v26 = vadd.bf16 %v11108_v18, %v3806_v30 }
 0x4b0   : > { %v3879_v27 = vadd.bf16 %v11112_v57, %v3807_v40 }
 0x4b1   : > { %v3942_v45 = vmax.bf16 %v12410_v39, %v3878_v26 }
 0x4b2   : > { %v3705_v53 = vpop.f32.mrb[108].mxu0  ;;  %v3943_v48 = vmax.bf16 %v12410_v39, %v3879_v27 }
 0x4b3   : > { %v3707_v25 = vpop.f32.mrb[109].mxu0 }
 0x4b4   : > { %v3709_v36 = vpop.f32.mrb[110].mxu0  ;;  %4439 = vmatprep.mubr.bf16.mxu1 %v3943_v48 }
 0x4b5   : > { %v3808_v41 = vpack.c.bf16 %v3709_v36, %v3705_v53  ;;  %v3711_v32 = vpop.f32.mrb[111].mxu0  ;;  %4440 = vmatmul.mubr.bf16.gmra.mrb[104].mxu1 %v3942_v45 }
 0x4b6   : > { %v3809_v31 = vpack.c.bf16 %v3711_v32, %v3707_v25 }
 0x4b7   : > { %v3880_v55 = vadd.bf16 %v11108_v18, %v3808_v41 }
 0x4b8   : > { %v3881_v12 = vadd.bf16 %v11112_v57, %v3809_v31  ;;  %v4181_v5 = vpop.f32.mrb[0].mxu1 }
 0x4b9   : > { %v4183_v46 = vpop.f32.mrb[1].mxu1  ;;  %v3944_v13 = vmax.bf16 %v12410_v39, %v3880_v55 }
 0x4ba   : > { %v3715_v3 = vpop.f32.mrb[112].mxu0  ;;  %v4185_v28 = vpop.f32.mrb[2].mxu1  ;;  %v3945_v30 = vmax.bf16 %v12410_v39, %v3881_v12 }
 0x4bb   : > { %v4500_v40 = vpack.c.bf16 %v4185_v28, %v4181_v5  ;;  %v3717_v26 = vpop.f32.mrb[113].mxu0  ;;  %v4187_v27 = vpop.f32.mrb[3].mxu1 }
 0x4bc   : > { %v4501_v53 = vpack.c.bf16 %v4187_v27, %v4183_v46  ;;  %v3719_v48 = vpop.f32.mrb[114].mxu0  ;;  %4449 = vmatprep.mubr.bf16.mxu1 %v3945_v30 }
 0x4bd   : > { %v4572_v45 = vadd.bf16 %v11247_v8, %v4500_v40  ;;  %v3810_v25 = vpack.c.bf16 %v3719_v48, %v3715_v3  ;;  %v3721_v36 = vpop.f32.mrb[115].mxu0  ;;  %4450 = vmatmul.mubr.bf16.gmra.mrb[108].mxu1 %v3944_v13 }
 0x4be   : > { %v4573_v41 = vadd.bf16 %v11251_v47, %v4501_v53  ;;  %v3811_v32 = vpack.c.bf16 %v3721_v36, %v3717_v26 }
 0x4bf   : > { %v3882_v31 = vadd.bf16 %v11108_v18, %v3810_v25  ;;  %v4636_v12 = vmax.bf16 %v12410_v39, %v4572_v45 }
 0x4c0   : > { %v3883_v52 = vadd.bf16 %v11112_v57, %v3811_v32  ;;  %v4191_v11 = vpop.f32.mrb[4].mxu1  ;;  %v4637_v55 = vmax.bf16 %v12410_v39, %v4573_v41 }
 0x4c1   : > { %v4193_v5 = vpop.f32.mrb[5].mxu1  ;;  %v3946_v30 = vmax.bf16 %v12410_v39, %v3882_v31 }
 0x4c2   : > { %v3725_v46 = vpop.f32.mrb[116].mxu0  ;;  %v4195_v28 = vpop.f32.mrb[6].mxu1  ;;  %5053 = vmatprep.mubr.bf16.mxu0 %v4637_v55  ;;  %v3947_v3 = vmax.bf16 %v12410_v39, %v3883_v52  ;;  %v9267_v52 = vld [vmem:[#allocation3 + $0x5a0] ss:$8 sps:$4 sm:$0xff]   ;;  %v9269_v55 = vld [vmem:[#allocation3 + $0x5a4] ss:$8 sps:$4 sm:$0xff]  }
 0x4c3   : > { %v4502_v13 = vpack.c.bf16 %v4195_v28, %v4191_v11  ;;  %v3727_v40 = vpop.f32.mrb[117].mxu0  ;;  %v4197_v26 = vpop.f32.mrb[7].mxu1  ;;  %5054 = vmatmul.mubr.bf16.vlgmr.msra.gmra.mrb[128].mxu0 %v4636_v12  ;;  %5787 = vmatprep.subr.bf16.mxu1 %v9269_v55 }
 0x4c4   : > { %v4503_v27 = vpack.c.bf16 %v4197_v26, %v4193_v5  ;;  %v3729_v53 = vpop.f32.mrb[118].mxu0  ;;  %4459 = vmatprep.mubr.bf16.mxu1 %v3947_v3  ;;  %5788 = vmatpush1.bf16.msra.mxu1 %v9267_v52 }
 0x4c5   : > { %v4574_v48 = vadd.bf16 %v11247_v8, %v4502_v13  ;;  %v3812_v25 = vpack.c.bf16 %v3729_v53, %v3725_v46  ;;  %v3731_v36 = vpop.f32.mrb[119].mxu0  ;;  %4460 = vmatmul.mubr.bf16.gmra.mrb[112].mxu1 %v3946_v30 }
 0x4c6   : > { %v4575_v45 = vadd.bf16 %v11251_v47, %v4503_v27  ;;  %v3813_v41 = vpack.c.bf16 %v3731_v36, %v3727_v40 }
 0x4c7   : > { %v3884_v32 = vadd.bf16 %v11108_v18, %v3812_v25  ;;  %v4638_v5 = vmax.bf16 %v12410_v39, %v4574_v48 }
 0x4c8   : > { %v3885_v31 = vadd.bf16 %v11112_v57, %v3813_v41  ;;  %v4201_v11 = vpop.f32.mrb[8].mxu1  ;;  %v4639_v12 = vmax.bf16 %v12410_v39, %v4575_v45 }
 0x4c9   : > { %v4203_v28 = vpop.f32.mrb[9].mxu1  ;;  %v3948_v13 = vmax.bf16 %v12410_v39, %v3884_v32 }
 0x4ca   : > { %v3735_v3 = vpop.f32.mrb[120].mxu0  ;;  %v4205_v46 = vpop.f32.mrb[10].mxu1  ;;  %5063 = vmatprep.mubr.bf16.mxu0 %v4639_v12  ;;  %v3949_v30 = vmax.bf16 %v12410_v39, %v3885_v31 }
 0x4cb   : > { %v4504_v40 = vpack.c.bf16 %v4205_v46, %v4201_v11  ;;  %v3737_v26 = vpop.f32.mrb[121].mxu0  ;;  %v4207_v27 = vpop.f32.mrb[11].mxu1  ;;  %5064 = vmatmul.mubr.bf16.gmra.mrb[132].mxu0 %v4638_v5 }
 0x4cc   : > { %v4505_v53 = vpack.c.bf16 %v4207_v27, %v4203_v28  ;;  %v3739_v25 = vpop.f32.mrb[122].mxu0  ;;  %4469 = vmatprep.mubr.bf16.mxu1 %v3949_v30 }
 0x4cd   : > { %v4576_v36 = vadd.bf16 %v11247_v8, %v4504_v40  ;;  %v3814_v48 = vpack.c.bf16 %v3739_v25, %v3735_v3  ;;  %v3741_v45 = vpop.f32.mrb[123].mxu0  ;;  %4470 = vmatmul.mubr.bf16.gmra.mrb[116].mxu1 %v3948_v13 }
 0x4ce   : > { %v4577_v41 = vadd.bf16 %v11251_v47, %v4505_v53  ;;  %v3815_v55 = vpack.c.bf16 %v3741_v45, %v3737_v26 }
 0x4cf   : > { %v3886_v31 = vadd.bf16 %v11108_v18, %v3814_v48  ;;  %v4640_v12 = vmax.bf16 %v12410_v39, %v4576_v36 }
 0x4d0   : > { %v3887_v52 = vadd.bf16 %v11112_v57, %v3815_v55  ;;  %v4211_v32 = vpop.f32.mrb[12].mxu1  ;;  %v4641_v11 = vmax.bf16 %v12410_v39, %v4577_v41 }
 0x4d1   : > { %v4213_v5 = vpop.f32.mrb[13].mxu1  ;;  %v3950_v30 = vmax.bf16 %v12410_v39, %v3886_v31 }
 0x4d2   : > { %v3745_v28 = vpop.f32.mrb[124].mxu0  ;;  %v4215_v46 = vpop.f32.mrb[14].mxu1  ;;  %5073 = vmatprep.mubr.bf16.mxu0 %v4641_v11  ;;  %v3951_v3 = vmax.bf16 %v12410_v39, %v3887_v52  ;;  %v9270_v52 = vld [vmem:[#allocation3 + $0x5b0] ss:$8 sps:$4 sm:$0xff]   ;;  %v9272_v11 = vld [vmem:[#allocation3 + $0x5b4] ss:$8 sps:$4 sm:$0xff]  }
 0x4d3   : > { %v4506_v13 = vpack.c.bf16 %v4215_v46, %v4211_v32  ;;  %v3747_v40 = vpop.f32.mrb[125].mxu0  ;;  %v4217_v26 = vpop.f32.mrb[15].mxu1  ;;  %5074 = vmatmul.mubr.bf16.gmra.mrb[136].mxu0 %v4640_v12  ;;  %5789 = vmatprep.subr.bf16.mxu1 %v9272_v11 }
 0x4d4   : > { %v4507_v27 = vpack.c.bf16 %v4217_v26, %v4213_v5  ;;  %v3749_v53 = vpop.f32.mrb[126].mxu0  ;;  %4479 = vmatprep.mubr.bf16.mxu1 %v3951_v3  ;;  %5790 = vmatpush1.bf16.msra.mxu1 %v9270_v52 }
 0x4d5   : > { %v4578_v25 = vadd.bf16 %v11247_v8, %v4506_v13  ;;  %v3816_v48 = vpack.c.bf16 %v3749_v53, %v3745_v28  ;;  %v3751_v45 = vpop.f32.mrb[127].mxu0  ;;  %4480 = vmatmul.mubr.bf16.gmra.mrb[120].mxu1 %v3950_v30 }
 0x4d6   : > { %v4579_v36 = vadd.bf16 %v11251_v47, %v4507_v27  ;;  %v3817_v41 = vpack.c.bf16 %v3751_v45, %v3747_v40 }
 0x4d7   : > { %v3888_v55 = vadd.bf16 %v11108_v18, %v3816_v48  ;;  %v4642_v5 = vmax.bf16 %v12410_v39, %v4578_v25 }
 0x4d8   : > { %v3889_v31 = vadd.bf16 %v11112_v57, %v3817_v41  ;;  %v4221_v32 = vpop.f32.mrb[16].mxu1  ;;  %v4643_v12 = vmax.bf16 %v12410_v39, %v4579_v36 }
 0x4d9   : > { %v4223_v46 = vpop.f32.mrb[17].mxu1  ;;  %v3952_v30 = vmax.bf16 %v12410_v39, %v3888_v55 }
 0x4da   : > { %v4225_v3 = vpop.f32.mrb[18].mxu1  ;;  %5083 = vmatprep.mubr.bf16.mxu0 %v4643_v12  ;;  %v3953_v28 = vmax.bf16 %v12410_v39, %v3889_v31  ;;  %v9273_v31 = vld [vmem:[#allocation3 + $0x5c0] ss:$8 sps:$4 sm:$0xff]  }
 0x4db   : > { %v4508_v13 = vpack.c.bf16 %v4225_v3, %v4221_v32  ;;  %v4227_v18 = vpop.f32.mrb[19].mxu1  ;;  %5084 = vmatmul.mubr.bf16.gmra.mrb[140].mxu0 %v4642_v5  ;;  %v9275_v32 = vld [vmem:[#allocation3 + $0x5c4] ss:$8 sps:$4 sm:$0xff]  }
 0x4dc   : > { %v4509_v40 = vpack.c.bf16 %v4227_v18, %v4223_v46  ;;  %4489 = vmatprep.mubr.bf16.mxu1 %v3953_v28  ;;  %5791 = vmatprep.subr.bf16.mxu1 %v9275_v32 }
 0x4dd   : > { %v4580_v57 = vadd.bf16 %v11247_v8, %v4508_v13  ;;  %4490 = vmatmul.mubr.bf16.gmra.mrb[124].mxu1 %v3952_v30 }
 0x4de   : > { %v4581_v26 = vadd.bf16 %v11251_v47, %v4509_v40  ;;  %5792 = vmatpush1.bf16.msra.mxu1 %v9273_v31  ;;  %v9278_v31 = vld [vmem:[#allocation3 + $0x5d4] ss:$8 sps:$4 sm:$0xff]  }
 0x4df   : > { %v4644_v25 = vmax.bf16 %v12410_v39, %v4580_v57  ;;  %5793 = vmatprep.subr.bf16.mxu1 %v9278_v31  ;;  %v9282_v31 = vld [vmem:[#allocation3 + $0x5e0] ss:$8 sps:$4 sm:$0xff]  }
 0x4e0   : > { %v4231_v27 = vpop.f32.mrb[20].mxu1  ;;  %v4645_v53 = vmax.bf16 %v12410_v39, %v4581_v26 }
 0x4e1   : > { %v4233_v48 = vpop.f32.mrb[21].mxu1 }
 0x4e2   : > { %v4235_v45 = vpop.f32.mrb[22].mxu1  ;;  %5093 = vmatprep.mubr.bf16.mxu0 %v4645_v53 }
 0x4e3   : > { %v4510_v36 = vpack.c.bf16 %v4235_v45, %v4231_v27  ;;  %v4237_v41 = vpop.f32.mrb[23].mxu1  ;;  %5094 = vmatmul.mubr.bf16.gmra.mrb[144].mxu0 %v4644_v25 }
 0x4e4   : > { %v4511_v55 = vpack.c.bf16 %v4237_v41, %v4233_v48 }
 0x4e5   : > { %v4582_v52 = vadd.bf16 %v11247_v8, %v4510_v36 }
 0x4e6   : > { %v4583_v11 = vadd.bf16 %v11251_v47, %v4511_v55 }
 0x4e7   : > { %v4646_v46 = vmax.bf16 %v12410_v39, %v4582_v52 }
 0x4e8   : > { %v4241_v12 = vpop.f32.mrb[24].mxu1  ;;  %v4647_v5 = vmax.bf16 %v12410_v39, %v4583_v11  ;;  %v9276_v11 = vld [vmem:[#allocation3 + $0x5d0] ss:$8 sps:$4 sm:$0xff]  }
 0x4e9   : > { %v4243_v3 = vpop.f32.mrb[25].mxu1  ;;  %5794 = vmatpush1.bf16.msra.mxu1 %v9276_v11 }
 0x4ea   : > { %v4245_v28 = vpop.f32.mrb[26].mxu1  ;;  %5103 = vmatprep.mubr.bf16.mxu0 %v4647_v5 }
 0x4eb   : > { %v4512_v30 = vpack.c.bf16 %v4245_v28, %v4241_v12  ;;  %v4247_v13 = vpop.f32.mrb[27].mxu1  ;;  %5104 = vmatmul.mubr.bf16.gmra.mrb[148].mxu0 %v4646_v46 }
 0x4ec   : > { %v4513_v18 = vpack.c.bf16 %v4247_v13, %v4243_v3 }
 0x4ed   : > { %v4584_v40 = vadd.bf16 %v11247_v8, %v4512_v30 }
 0x4ee   : > { %v4585_v57 = vadd.bf16 %v11251_v47, %v4513_v18 }
 0x4ef   : > { %v4648_v53 = vmax.bf16 %v12410_v39, %v4584_v40 }
 0x4f0   : > { %v4251_v26 = vpop.f32.mrb[28].mxu1  ;;  %v4649_v27 = vmax.bf16 %v12410_v39, %v4585_v57 }
 0x4f1   : > { %v4253_v25 = vpop.f32.mrb[29].mxu1 }
 0x4f2   : > { %v4255_v48 = vpop.f32.mrb[30].mxu1  ;;  %5113 = vmatprep.mubr.bf16.mxu0 %v4649_v27 }
 0x4f3   : > { %v4514_v45 = vpack.c.bf16 %v4255_v48, %v4251_v26  ;;  %v4257_v36 = vpop.f32.mrb[31].mxu1  ;;  %5114 = vmatmul.mubr.bf16.gmra.mrb[152].mxu0 %v4648_v53  ;;  %v9281_v48 = vld [vmem:[#allocation3 + $0x604] ss:$8 sps:$4 sm:$0xff]  }
 0x4f4   : > { %v4515_v41 = vpack.c.bf16 %v4257_v36, %v4253_v25  ;;  %v9279_v25 = vld [vmem:[#allocation3 + $0x600] ss:$8 sps:$4 sm:$0xff]   ;;  %6513 = vmatprep.subr.bf16.mxu0 %v9281_v48  ;;  %v9285_v48 = vld [vmem:[#allocation3 + $0x610] ss:$8 sps:$4 sm:$0xff]  }
 0x4f5   : > { %v4586_v55 = vadd.bf16 %v11247_v8, %v4514_v45  ;;  %6514 = vmatpush1.bf16.msra.mxu0 %v9279_v25 }
 0x4f6   : > { %v4587_v52 = vadd.bf16 %v11251_v47, %v4515_v41 }
 0x4f7   : > { %v4650_v5 = vmax.bf16 %v12410_v39, %v4586_v55 }
 0x4f8   : > { %v4261_v32 = vpop.f32.mrb[32].mxu1  ;;  %v4651_v12 = vmax.bf16 %v12410_v39, %v4587_v52 }
 0x4f9   : > { %v4263_v46 = vpop.f32.mrb[33].mxu1 }
 0x4fa   : > { %v4265_v3 = vpop.f32.mrb[34].mxu1  ;;  %5123 = vmatprep.mubr.bf16.mxu0 %v4651_v12 }
 0x4fb   : > { %v4516_v28 = vpack.c.bf16 %v4265_v3, %v4261_v32  ;;  %v4267_v30 = vpop.f32.mrb[35].mxu1  ;;  %5124 = vmatmul.mubr.bf16.gmra.mrb[156].mxu0 %v4650_v5  ;;  %v9284_v32 = vld [vmem:[#allocation3 + $0x5e4] ss:$8 sps:$4 sm:$0xff]  }
 0x4fc   : > { %v4517_v13 = vpack.c.bf16 %v4267_v30, %v4263_v46  ;;  %5795 = vmatprep.subr.bf16.mxu1 %v9284_v32  ;;  %v9288_v32 = vld [vmem:[#allocation3 + $0x5f0] ss:$8 sps:$4 sm:$0xff]  }
 0x4fd   : > { %v4588_v18 = vadd.bf16 %v11247_v8, %v4516_v28  ;;  %5796 = vmatpush1.bf16.msra.mxu1 %v9282_v31 }
 0x4fe   : > { %v4589_v40 = vadd.bf16 %v11251_v47, %v4517_v13 }
 0x4ff   : > { %v4652_v27 = vmax.bf16 %v12410_v39, %v4588_v18 }
 0x500   : > { %v4271_v57 = vpop.f32.mrb[36].mxu1  ;;  %v4653_v26 = vmax.bf16 %v12410_v39, %v4589_v40 }
 0x501   : > { %v4273_v53 = vpop.f32.mrb[37].mxu1 }
 0x502   : > { %v4275_v45 = vpop.f32.mrb[38].mxu1  ;;  %5133 = vmatprep.mubr.bf16.mxu0 %v4653_v26 }
 0x503   : > { %v4518_v36 = vpack.c.bf16 %v4275_v45, %v4271_v57  ;;  %v4277_v41 = vpop.f32.mrb[39].mxu1  ;;  %5134 = vmatmul.mubr.bf16.gmra.mrb[160].mxu0 %v4652_v27  ;;  %v9287_v45 = vld [vmem:[#allocation3 + $0x614] ss:$8 sps:$4 sm:$0xff]  }
 0x504   : > { %v4519_v55 = vpack.c.bf16 %v4277_v41, %v4273_v53  ;;  %6515 = vmatprep.subr.bf16.mxu0 %v9287_v45 }
 0x505   : > { %v4590_v52 = vadd.bf16 %v11247_v8, %v4518_v36  ;;  %6516 = vmatpush1.bf16.msra.mxu0 %v9285_v48 }
 0x506   : > { %v4591_v11 = vadd.bf16 %v11251_v47, %v4519_v55 }
 0x507   : > { %v4654_v46 = vmax.bf16 %v12410_v39, %v4590_v52 }
 0x508   : > { %v4281_v12 = vpop.f32.mrb[40].mxu1  ;;  %v4655_v5 = vmax.bf16 %v12410_v39, %v4591_v11 }
 0x509   : > { %v4283_v3 = vpop.f32.mrb[41].mxu1 }
 0x50a   : > { %v4285_v28 = vpop.f32.mrb[42].mxu1  ;;  %5143 = vmatprep.mubr.bf16.mxu0 %v4655_v5 }
 0x50b   : > { %v4520_v30 = vpack.c.bf16 %v4285_v28, %v4281_v12  ;;  %v4287_v13 = vpop.f32.mrb[43].mxu1  ;;  %5144 = vmatmul.mubr.bf16.gmra.mrb[164].mxu0 %v4654_v46  ;;  %v9290_v12 = vld [vmem:[#allocation3 + $0x5f4] ss:$8 sps:$4 sm:$0xff]  }
 0x50c   : > { %v4521_v18 = vpack.c.bf16 %v4287_v13, %v4283_v3  ;;  %5797 = vmatprep.subr.bf16.mxu1 %v9290_v12 }
 0x50d   : > { %v4592_v40 = vadd.bf16 %v11247_v8, %v4520_v30  ;;  %5798 = vmatpush1.bf16.msra.mxu1 %v9288_v32  ;;  %v9293_v32 = vld [vmem:[#allocation3 + $0x624] ss:$8 sps:$4 sm:$0xff]  }
 0x50e   : > { %v4593_v57 = vadd.bf16 %v11251_v47, %v4521_v18  ;;  %7194 = vmatprep.subr.bf16.mxu1 %v12410_v39  ;;  %6517 = vmatprep.subr.bf16.mxu0 %v9293_v32 }
 0x50f   : > { %v4656_v53 = vmax.bf16 %v12410_v39, %v4592_v40 }
 0x510   : > { %v4291_v26 = vpop.f32.mrb[44].mxu1  ;;  %v4657_v27 = vmax.bf16 %v12410_v39, %v4593_v57 }
 0x511   : > { %v4293_v25 = vpop.f32.mrb[45].mxu1 }
 0x512   : > { %v4295_v36 = vpop.f32.mrb[46].mxu1  ;;  %5153 = vmatprep.mubr.bf16.mxu0 %v4657_v27 }
 0x513   : > { %v4522_v41 = vpack.c.bf16 %v4295_v36, %v4291_v26  ;;  %v4297_v55 = vpop.f32.mrb[47].mxu1  ;;  %5154 = vmatmul.mubr.bf16.gmra.mrb[168].mxu0 %v4656_v53 }
 0x514   : > { %v4523_v52 = vpack.c.bf16 %v4297_v55, %v4293_v25 }
 0x515   : > { %v4594_v11 = vadd.bf16 %v11247_v8, %v4522_v41 }
 0x516   : > { %v4595_v31 = vadd.bf16 %v11251_v47, %v4523_v52 }
 0x517   : > { %v4658_v3 = vmax.bf16 %v12410_v39, %v4594_v11 }
 0x518   : > { %v4301_v5 = vpop.f32.mrb[48].mxu1  ;;  %v4659_v46 = vmax.bf16 %v12410_v39, %v4595_v31  ;;  %v9291_v31 = vld [vmem:[#allocation3 + $0x620] ss:$8 sps:$4 sm:$0xff]  }
 0x519   : > { %v4303_v28 = vpop.f32.mrb[49].mxu1  ;;  %6518 = vmatpush1.bf16.msra.mxu0 %v9291_v31  ;;  %v9296_v31 = vld [vmem:[#allocation3 + $0x634] ss:$8 sps:$4 sm:$0xff]  }
 0x51a   : > { %v4305_v30 = vpop.f32.mrb[50].mxu1  ;;  %5163 = vmatprep.mubr.bf16.mxu0 %v4659_v46  ;;  %6519 = vmatprep.subr.bf16.mxu0 %v9296_v31 }
 0x51b   : > { %v4524_v13 = vpack.c.bf16 %v4305_v30, %v4301_v5  ;;  %v4307_v18 = vpop.f32.mrb[51].mxu1  ;;  %5164 = vmatmul.mubr.bf16.gmra.mrb[172].mxu0 %v4658_v3 }
 0x51c   : > { %v4525_v40 = vpack.c.bf16 %v4307_v18, %v4303_v28 }
 0x51d   : > { %v4596_v57 = vadd.bf16 %v11247_v8, %v4524_v13 }
 0x51e   : > { %v4597_v26 = vadd.bf16 %v11251_v47, %v4525_v40 }
 0x51f   : > { %v4660_v25 = vmax.bf16 %v12410_v39, %v4596_v57 }
 0x520   : > { %v4311_v27 = vpop.f32.mrb[52].mxu1  ;;  %v4661_v53 = vmax.bf16 %v12410_v39, %v4597_v26 }
 0x521   : > { %v4313_v48 = vpop.f32.mrb[53].mxu1 }
 0x522   : > { %v4315_v45 = vpop.f32.mrb[54].mxu1  ;;  %5173 = vmatprep.mubr.bf16.mxu0 %v4661_v53 }
 0x523   : > { %v4526_v36 = vpack.c.bf16 %v4315_v45, %v4311_v27  ;;  %v4317_v41 = vpop.f32.mrb[55].mxu1  ;;  %5174 = vmatmul.mubr.bf16.gmra.mrb[176].mxu0 %v4660_v25 }
 0x524   : > { %v4527_v55 = vpack.c.bf16 %v4317_v41, %v4313_v48 }
 0x525   : > { %v4598_v52 = vadd.bf16 %v11247_v8, %v4526_v36 }
 0x526   : > { %v4599_v11 = vadd.bf16 %v11251_v47, %v4527_v55 }
 0x527   : > { %v4662_v46 = vmax.bf16 %v12410_v39, %v4598_v52 }
 0x528   : > { %v4321_v12 = vpop.f32.mrb[56].mxu1  ;;  %v4663_v5 = vmax.bf16 %v12410_v39, %v4599_v11  ;;  %v9294_v11 = vld [vmem:[#allocation3 + $0x630] ss:$8 sps:$4 sm:$0xff]  }
 0x529   : > { %v4323_v3 = vpop.f32.mrb[57].mxu1  ;;  %6520 = vmatpush1.bf16.msra.mxu0 %v9294_v11  ;;  %v9299_v11 = vld [vmem:[#allocation3 + $0x644] ss:$8 sps:$4 sm:$0xff]  }
 0x52a   : > { %v4325_v28 = vpop.f32.mrb[58].mxu1  ;;  %5183 = vmatprep.mubr.bf16.mxu0 %v4663_v5  ;;  %6521 = vmatprep.subr.bf16.mxu0 %v9299_v11 }
 0x52b   : > { %v4528_v30 = vpack.c.bf16 %v4325_v28, %v4321_v12  ;;  %v4327_v13 = vpop.f32.mrb[59].mxu1  ;;  %5184 = vmatmul.mubr.bf16.gmra.mrb[180].mxu0 %v4662_v46 }
 0x52c   : > { %v4529_v18 = vpack.c.bf16 %v4327_v13, %v4323_v3 }
 0x52d   : > { %v4600_v40 = vadd.bf16 %v11247_v8, %v4528_v30 }
 0x52e   : > { %v4601_v57 = vadd.bf16 %v11251_v47, %v4529_v18 }
 0x52f   : > { %v4664_v53 = vmax.bf16 %v12410_v39, %v4600_v40 }
 0x530   : > { %v4331_v26 = vpop.f32.mrb[60].mxu1  ;;  %v4665_v27 = vmax.bf16 %v12410_v39, %v4601_v57 }
 0x531   : > { %v4333_v25 = vpop.f32.mrb[61].mxu1 }
 0x532   : > { %v4335_v48 = vpop.f32.mrb[62].mxu1  ;;  %5193 = vmatprep.mubr.bf16.mxu0 %v4665_v27 }
 0x533   : > { %v4530_v45 = vpack.c.bf16 %v4335_v48, %v4331_v26  ;;  %v4337_v36 = vpop.f32.mrb[63].mxu1  ;;  %5194 = vmatmul.mubr.bf16.gmra.mrb[184].mxu0 %v4664_v53 }
 0x534   : > { %v4531_v41 = vpack.c.bf16 %v4337_v36, %v4333_v25 }
 0x535   : > { %v4602_v55 = vadd.bf16 %v11247_v8, %v4530_v45 }
 0x536   : > { %v4603_v52 = vadd.bf16 %v11251_v47, %v4531_v41 }
 0x537   : > { %v4666_v5 = vmax.bf16 %v12410_v39, %v4602_v55 }
 0x538   : > { %v4341_v32 = vpop.f32.mrb[64].mxu1  ;;  %v4667_v12 = vmax.bf16 %v12410_v39, %v4603_v52  ;;  %v9297_v52 = vld [vmem:[#allocation3 + $0x640] ss:$8 sps:$4 sm:$0xff]  }
 0x539   : > { %v4343_v46 = vpop.f32.mrb[65].mxu1  ;;  %6522 = vmatpush1.bf16.msra.mxu0 %v9297_v52  ;;  %v9302_v52 = vld [vmem:[#allocation3 + $0x654] ss:$8 sps:$4 sm:$0xff]  }
 0x53a   : > { %v4345_v3 = vpop.f32.mrb[66].mxu1  ;;  %5203 = vmatprep.mubr.bf16.mxu0 %v4667_v12  ;;  %6523 = vmatprep.subr.bf16.mxu0 %v9302_v52 }
 0x53b   : > { %v4532_v28 = vpack.c.bf16 %v4345_v3, %v4341_v32  ;;  %v4347_v30 = vpop.f32.mrb[67].mxu1  ;;  %5204 = vmatmul.mubr.bf16.gmra.mrb[188].mxu0 %v4666_v5 }
 0x53c   : > { %v4533_v13 = vpack.c.bf16 %v4347_v30, %v4343_v46 }
 0x53d   : > { %v4604_v18 = vadd.bf16 %v11247_v8, %v4532_v28 }
 0x53e   : > { %v4605_v40 = vadd.bf16 %v11251_v47, %v4533_v13 }
 0x53f   : > { %v4668_v27 = vmax.bf16 %v12410_v39, %v4604_v18 }
 0x540   : > { %v4351_v57 = vpop.f32.mrb[68].mxu1  ;;  %v4669_v26 = vmax.bf16 %v12410_v39, %v4605_v40 }
 0x541   : > { %v4353_v53 = vpop.f32.mrb[69].mxu1 }
 0x542   : > { %v4355_v25 = vpop.f32.mrb[70].mxu1  ;;  %5213 = vmatprep.mubr.bf16.mxu0 %v4669_v26 }
 0x543   : > { %v4534_v48 = vpack.c.bf16 %v4355_v25, %v4351_v57  ;;  %v4357_v45 = vpop.f32.mrb[71].mxu1  ;;  %5214 = vmatmul.mubr.bf16.gmra.mrb[192].mxu0 %v4668_v27 }
 0x544   : > { %v4535_v36 = vpack.c.bf16 %v4357_v45, %v4353_v53 }
 0x545   : > { %v4606_v41 = vadd.bf16 %v11247_v8, %v4534_v48 }
 0x546   : > { %v4607_v55 = vadd.bf16 %v11251_v47, %v4535_v36 }
 0x547   : > { %v4670_v12 = vmax.bf16 %v12410_v39, %v4606_v41 }
 0x548   : > { %v4361_v31 = vpop.f32.mrb[72].mxu1  ;;  %v4671_v32 = vmax.bf16 %v12410_v39, %v4607_v55  ;;  %v9300_v55 = vld [vmem:[#allocation3 + $0x650] ss:$8 sps:$4 sm:$0xff]  }
 0x549   : > { %v4363_v5 = vpop.f32.mrb[73].mxu1  ;;  %6524 = vmatpush1.bf16.msra.mxu0 %v9300_v55  ;;  %v9305_v55 = vld [vmem:[#allocation3 + $0x664] ss:$8 sps:$4 sm:$0xff]  }
 0x54a   : > { %v4365_v46 = vpop.f32.mrb[74].mxu1  ;;  %5223 = vmatprep.mubr.bf16.mxu0 %v4671_v32  ;;  %6525 = vmatprep.subr.bf16.mxu0 %v9305_v55 }
 0x54b   : > { %v4536_v3 = vpack.c.bf16 %v4365_v46, %v4361_v31  ;;  %v4367_v28 = vpop.f32.mrb[75].mxu1  ;;  %5224 = vmatmul.mubr.bf16.gmra.mrb[196].mxu0 %v4670_v12 }
 0x54c   : > { %v4537_v30 = vpack.c.bf16 %v4367_v28, %v4363_v5 }
 0x54d   : > { %v4608_v13 = vadd.bf16 %v11247_v8, %v4536_v3 }
 0x54e   : > { %v4609_v18 = vadd.bf16 %v11251_v47, %v4537_v30 }
 0x54f   : > { %v4672_v26 = vmax.bf16 %v12410_v39, %v4608_v13 }
 0x550   : > { %v4371_v40 = vpop.f32.mrb[76].mxu1  ;;  %v4673_v57 = vmax.bf16 %v12410_v39, %v4609_v18 }
 0x551   : > { %v4373_v27 = vpop.f32.mrb[77].mxu1 }
 0x552   : > { %v4375_v53 = vpop.f32.mrb[78].mxu1  ;;  %5233 = vmatprep.mubr.bf16.mxu0 %v4673_v57 }
 0x553   : > { %v4538_v25 = vpack.c.bf16 %v4375_v53, %v4371_v40  ;;  %v4377_v48 = vpop.f32.mrb[79].mxu1  ;;  %5234 = vmatmul.mubr.bf16.gmra.mrb[200].mxu0 %v4672_v26 }
 0x554   : > { %v4539_v45 = vpack.c.bf16 %v4377_v48, %v4373_v27 }
 0x555   : > { %v4610_v36 = vadd.bf16 %v11247_v8, %v4538_v25 }
 0x556   : > { %v4611_v41 = vadd.bf16 %v11251_v47, %v4539_v45 }
 0x557   : > { %v4674_v32 = vmax.bf16 %v12410_v39, %v4610_v36 }
 0x558   : > { %v4381_v11 = vpop.f32.mrb[80].mxu1  ;;  %v4675_v31 = vmax.bf16 %v12410_v39, %v4611_v41  ;;  %v9303_v41 = vld [vmem:[#allocation3 + $0x660] ss:$8 sps:$4 sm:$0xff]  }
 0x559   : > { %v4383_v12 = vpop.f32.mrb[81].mxu1  ;;  %6526 = vmatpush1.bf16.msra.mxu0 %v9303_v41  ;;  %v9308_v41 = vld [vmem:[#allocation3 + $0x674] ss:$8 sps:$4 sm:$0xff]  }
 0x55a   : > { %v4385_v5 = vpop.f32.mrb[82].mxu1  ;;  %5243 = vmatprep.mubr.bf16.mxu0 %v4675_v31  ;;  %6527 = vmatprep.subr.bf16.mxu0 %v9308_v41 }
 0x55b   : > { %v4540_v46 = vpack.c.bf16 %v4385_v5, %v4381_v11  ;;  %v4387_v3 = vpop.f32.mrb[83].mxu1  ;;  %5244 = vmatmul.mubr.bf16.gmra.mrb[204].mxu0 %v4674_v32 }
 0x55c   : > { %v4541_v28 = vpack.c.bf16 %v4387_v3, %v4383_v12 }
 0x55d   : > { %v4612_v30 = vadd.bf16 %v11247_v8, %v4540_v46 }
 0x55e   : > { %v4613_v13 = vadd.bf16 %v11251_v47, %v4541_v28 }
 0x55f   : > { %v4676_v57 = vmax.bf16 %v12410_v39, %v4612_v30 }
 0x560   : > { %v4391_v18 = vpop.f32.mrb[84].mxu1  ;;  %v4677_v40 = vmax.bf16 %v12410_v39, %v4613_v13 }
 0x561   : > { %v4393_v26 = vpop.f32.mrb[85].mxu1 }
 0x562   : > { %v4395_v27 = vpop.f32.mrb[86].mxu1  ;;  %5253 = vmatprep.mubr.bf16.mxu0 %v4677_v40 }
 0x563   : > { %v4542_v53 = vpack.c.bf16 %v4395_v27, %v4391_v18  ;;  %v4397_v25 = vpop.f32.mrb[87].mxu1  ;;  %5254 = vmatmul.mubr.bf16.gmra.mrb[208].mxu0 %v4676_v57 }
 0x564   : > { %v4543_v48 = vpack.c.bf16 %v4397_v25, %v4393_v26 }
 0x565   : > { %v4614_v45 = vadd.bf16 %v11247_v8, %v4542_v53 }
 0x566   : > { %v4615_v36 = vadd.bf16 %v11251_v47, %v4543_v48 }
 0x567   : > { %v4678_v31 = vmax.bf16 %v12410_v39, %v4614_v45 }
 0x568   : > { %v4401_v52 = vpop.f32.mrb[88].mxu1  ;;  %v4679_v11 = vmax.bf16 %v12410_v39, %v4615_v36  ;;  %v9306_v36 = vld [vmem:[#allocation3 + $0x670] ss:$8 sps:$4 sm:$0xff]  }
 0x569   : > { %v4403_v32 = vpop.f32.mrb[89].mxu1  ;;  %6528 = vmatpush1.bf16.msra.mxu0 %v9306_v36  ;;  %v9311_v36 = vld [vmem:[#allocation3 + $0x684] ss:$8 sps:$4 sm:$0xff]  }
 0x56a   : > { %v4405_v12 = vpop.f32.mrb[90].mxu1  ;;  %5263 = vmatprep.mubr.bf16.mxu0 %v4679_v11  ;;  %6529 = vmatprep.subr.bf16.mxu0 %v9311_v36  ;;  %v4734_v36 = vunpack.c.l.bf16 %v10225_v62 }
 0x56b   : > { %v4544_v5 = vpack.c.bf16 %v4405_v12, %v4401_v52  ;;  %v4407_v46 = vpop.f32.mrb[91].mxu1  ;;  %5264 = vmatmul.mubr.bf16.gmra.mrb[212].mxu0 %v4678_v31 }
 0x56c   : > { %v4545_v3 = vpack.c.bf16 %v4407_v46, %v4403_v32 }
 0x56d   : > { %v4616_v28 = vadd.bf16 %v11247_v8, %v4544_v5 }
 0x56e   : > { %v4617_v30 = vadd.bf16 %v11251_v47, %v4545_v3 }
 0x56f   : > { %v4680_v40 = vmax.bf16 %v12410_v39, %v4616_v28 }
 0x570   : > { %v4411_v13 = vpop.f32.mrb[92].mxu1  ;;  %v4681_v18 = vmax.bf16 %v12410_v39, %v4617_v30 }
 0x571   : > { %v4413_v57 = vpop.f32.mrb[93].mxu1 }
 0x572   : > { %v4415_v26 = vpop.f32.mrb[94].mxu1  ;;  %5273 = vmatprep.mubr.bf16.mxu0 %v4681_v18 }
 0x573   : > { %v4546_v27 = vpack.c.bf16 %v4415_v26, %v4411_v13  ;;  %v4417_v53 = vpop.f32.mrb[95].mxu1  ;;  %5274 = vmatmul.mubr.bf16.gmra.mrb[216].mxu0 %v4680_v40 }
 0x574   : > { %v4547_v25 = vpack.c.bf16 %v4417_v53, %v4413_v57 }
 0x575   : > { %v4618_v48 = vadd.bf16 %v11247_v8, %v4546_v27 }
 0x576   : > { %v4619_v45 = vadd.bf16 %v11251_v47, %v4547_v25 }
 0x577   : > { %v4682_v11 = vmax.bf16 %v12410_v39, %v4618_v48 }
 0x578   : > { %v4421_v55 = vpop.f32.mrb[96].mxu1  ;;  %v4683_v52 = vmax.bf16 %v12410_v39, %v4619_v45  ;;  %v9309_v45 = vld [vmem:[#allocation3 + $0x680] ss:$8 sps:$4 sm:$0xff]  }
 0x579   : > { %v4423_v31 = vpop.f32.mrb[97].mxu1  ;;  %6530 = vmatpush1.bf16.msra.mxu0 %v9309_v45 }
 0x57a   : > { %v4425_v32 = vpop.f32.mrb[98].mxu1  ;;  %5283 = vmatprep.mubr.bf16.mxu0 %v4683_v52 }
 0x57b   : > { %v4548_v12 = vpack.c.bf16 %v4425_v32, %v4421_v55  ;;  %v4427_v5 = vpop.f32.mrb[99].mxu1  ;;  %5284 = vmatmul.mubr.bf16.gmra.mrb[220].mxu0 %v4682_v11 }
 0x57c   : > { %v4549_v46 = vpack.c.bf16 %v4427_v5, %v4423_v31 }
 0x57d   : > { %v4620_v3 = vadd.bf16 %v11247_v8, %v4548_v12 }
 0x57e   : > { %v4621_v28 = vadd.bf16 %v11251_v47, %v4549_v46 }
 0x57f   : > { %v4684_v18 = vmax.bf16 %v12410_v39, %v4620_v3 }
 0x580   : > { %v4431_v30 = vpop.f32.mrb[100].mxu1  ;;  %v4685_v13 = vmax.bf16 %v12410_v39, %v4621_v28 }
 0x581   : > { %v4433_v40 = vpop.f32.mrb[101].mxu1 }
 0x582   : > { %v4435_v57 = vpop.f32.mrb[102].mxu1  ;;  %5293 = vmatprep.mubr.bf16.mxu0 %v4685_v13 }
 0x583   : > { %v4550_v26 = vpack.c.bf16 %v4435_v57, %v4431_v30  ;;  %v4437_v27 = vpop.f32.mrb[103].mxu1  ;;  %5294 = vmatmul.mubr.bf16.gmra.mrb[224].mxu0 %v4684_v18 }
 0x584   : > { %v4551_v53 = vpack.c.bf16 %v4437_v27, %v4433_v40 }
 0x585   : > { %v4622_v25 = vadd.bf16 %v11247_v8, %v4550_v26 }
 0x586   : > { %v4623_v48 = vadd.bf16 %v11251_v47, %v4551_v53 }
 0x587   : > { %v4686_v52 = vmax.bf16 %v12410_v39, %v4622_v25  ;;  %v4733_v25 = vunpack.c.l.bf16 %v10219_v19 }
 0x588   : > { %v4441_v41 = vpop.f32.mrb[104].mxu1  ;;  %v4687_v55 = vmax.bf16 %v12410_v39, %v4623_v48 }
 0x589   : > { %v4443_v11 = vpop.f32.mrb[105].mxu1 }
 0x58a   : > { %v4445_v31 = vpop.f32.mrb[106].mxu1  ;;  %5303 = vmatprep.mubr.bf16.mxu0 %v4687_v55 }
 0x58b   : > { %v4552_v32 = vpack.c.bf16 %v4445_v31, %v4441_v41  ;;  %v4447_v12 = vpop.f32.mrb[107].mxu1  ;;  %5304 = vmatmul.mubr.bf16.gmra.mrb[228].mxu0 %v4686_v52  ;;  %v4735_v52 = vunpack.c.h.bf16 %v10219_v19  ;;  %v9314_v31 = vld [vmem:[#allocation3 + $0x694] ss:$8 sps:$4 sm:$0xff]  }
 0x58c   : > { %v4553_v5 = vpack.c.bf16 %v4447_v12, %v4443_v11  ;;  %v9312_v11 = vld [vmem:[#allocation3 + $0x690] ss:$8 sps:$4 sm:$0xff]   ;;  %6531 = vmatprep.subr.bf16.mxu0 %v9314_v31 }
 0x58d   : > { %v4624_v46 = vadd.bf16 %v11247_v8, %v4552_v32  ;;  %6532 = vmatpush1.bf16.msra.mxu0 %v9312_v11 }
 0x58e   : > { %v4625_v3 = vadd.bf16 %v11251_v47, %v4553_v5 }
 0x58f   : > { %v4688_v13 = vmax.bf16 %v12410_v39, %v4624_v46  ;;  %v4736_v46 = vunpack.c.h.bf16 %v10225_v62 }
 0x590   : > { %v4451_v28 = vpop.f32.mrb[108].mxu1  ;;  %v4689_v30 = vmax.bf16 %v12410_v39, %v4625_v3 }
 0x591   : > { %v4453_v18 = vpop.f32.mrb[109].mxu1 }
 0x592   : > { %v4455_v40 = vpop.f32.mrb[110].mxu1  ;;  %5313 = vmatprep.mubr.bf16.mxu0 %v4689_v30 }
 0x593   : > { %v4554_v57 = vpack.c.bf16 %v4455_v40, %v4451_v28  ;;  %v4457_v26 = vpop.f32.mrb[111].mxu1  ;;  %5314 = vmatmul.mubr.bf16.gmra.mrb[232].mxu0 %v4688_v13  ;;  %v11390_v13 = vrot.slane %v10752_v14, %v11241_v1 }
 0x594   : > { %v4555_v27 = vpack.c.bf16 %v4457_v26, %v4453_v18 }
 0x595   : > { %v4626_v53 = vadd.bf16 %v11247_v8, %v4554_v57  ;;  %v11394_v57 = vrot.slane %v10754_v44, %v11241_v1 }
 0x596   : > { %v4627_v48 = vadd.bf16 %v11251_v47, %v4555_v27  ;;  %v5055_v45 = vpop.f32.mrb[128].mxu0 }
 0x597   : > { %v5056_v41 = vadd.f32 %v5055_v45, %v4733_v25  ;;  %v5057_v55 = vpop.f32.mrb[129].mxu0  ;;  %v4690_v28 = vmax.bf16 %v12410_v39, %v4626_v53 }
 0x598   : > { %v5058_v32 = vadd.f32 %v5057_v55, %v4734_v36  ;;  %v4461_v12 = vpop.f32.mrb[112].mxu1  ;;  %v5059_v5 = vpop.f32.mrb[130].mxu0  ;;  %v4691_v3 = vmax.bf16 %v12410_v39, %v4627_v48  ;;  %v4737_v55 = vunpack.c.l.bf16 %v10245_v33 }
 0x599   : > { %v5060_v30 = vadd.f32 %v5059_v5, %v4735_v52  ;;  %v4463_v18 = vpop.f32.mrb[113].mxu1  ;;  %v5061_v40 = vpop.f32.mrb[131].mxu0  ;;  %v4738_v5 = vunpack.c.l.bf16 %v10251_v35 }
 0x59a   : > { %v5062_v19 = vadd.f32 %v5061_v40, %v4736_v46  ;;  %v4465_v26 = vpop.f32.mrb[114].mxu1  ;;  %5323 = vmatprep.mubr.bf16.mxu0 %v4691_v3 }
 0x59b   : > { %v5374_v62 = vpack.c.bf16 %v5060_v30, %v5056_v41  ;;  %v4556_v27 = vpack.c.bf16 %v4465_v26, %v4461_v12  ;;  %v4467_v25 = vpop.f32.mrb[115].mxu1  ;;  %5324 = vmatmul.mubr.bf16.gmra.mrb[236].mxu0 %v4690_v28  ;;  %v4739_v12 = vunpack.c.h.bf16 %v10245_v33  ;;  %v4740_v28 = vunpack.c.h.bf16 %v10251_v35 }
 0x59c   : > { %v5375_v53 = vpack.c.bf16 %v5062_v19, %v5058_v32  ;;  %v4557_v48 = vpack.c.bf16 %v4467_v25, %v4463_v18 }
 0x59d   : > { %v5446_v45 = vadd.bf16 %v11390_v13, %v5374_v62  ;;  %v4628_v36 = vadd.bf16 %v11247_v8, %v4556_v27 }
 0x59e   : > { %v5447_v52 = vadd.bf16 %v11394_v57, %v5375_v53  ;;  %v4629_v1 = vadd.bf16 %v11251_v47, %v4557_v48  ;;  %v5065_v31 = vpop.f32.mrb[132].mxu0 }
 0x59f   : > { %v5066_v11 = vadd.f32 %v5065_v31, %v4737_v55  ;;  %v5067_v41 = vpop.f32.mrb[133].mxu0  ;;  %v5510_v40 = vmax.bf16 %v12410_v39, %v5446_v45  ;;  %v4692_v19 = vmax.bf16 %v12410_v39, %v4628_v36  ;;  %v4741_v36 = vunpack.c.l.bf16 %v10274_v6 }
 0x5a0   : > { %v5068_v46 = vadd.f32 %v5067_v41, %v4738_v5  ;;  %v4471_v32 = vpop.f32.mrb[116].mxu1  ;;  %v5069_v3 = vpop.f32.mrb[134].mxu0  ;;  %v4693_v30 = vmax.bf16 %v12410_v39, %v4629_v1  ;;  %v5511_v18 = vmax.bf16 %v12410_v39, %v5447_v52 }
 0x5a1   : > { %v5070_v26 = vadd.f32 %v5069_v3, %v4739_v12  ;;  %v4473_v62 = vpop.f32.mrb[117].mxu1  ;;  %v5071_v27 = vpop.f32.mrb[135].mxu0  ;;  %v4742_v12 = vunpack.c.l.bf16 %v10280_v0  ;;  %v4743_v3 = vunpack.c.h.bf16 %v10274_v6 }
 0x5a2   : > { %v5072_v25 = vadd.f32 %v5071_v27, %v4740_v28  ;;  %v4475_v53 = vpop.f32.mrb[118].mxu1  ;;  %5333 = vmatprep.mubr.bf16.mxu0 %v4693_v30  ;;  %5799 = vmatprep.mubr.bf16.mxu1 %v5511_v18  ;;  %v9317_v28 = vld [vmem:[#allocation3 + $0x6a4] ss:$8 sps:$4 sm:$0xff]  }
 0x5a3   : > { %v5376_v33 = vpack.c.bf16 %v5070_v26, %v5066_v11  ;;  %v4558_v48 = vpack.c.bf16 %v4475_v53, %v4471_v32  ;;  %v4477_v55 = vpop.f32.mrb[119].mxu1  ;;  %5334 = vmatmul.mubr.bf16.gmra.mrb[240].mxu0 %v4692_v19  ;;  %5800 = vmatmul.mubr.bf16.vlgmr.msra.gmra.mrb[128].mxu1 %v5510_v40  ;;  %v4744_v40 = vunpack.c.h.bf16 %v10280_v0 }
 0x5a4   : > { %v5377_v35 = vpack.c.bf16 %v5072_v25, %v5068_v46  ;;  %v4559_v1 = vpack.c.bf16 %v4477_v55, %v4473_v62  ;;  %v9315_v62 = vld [vmem:[#allocation3 + $0x6a0] ss:$8 sps:$4 sm:$0xff]   ;;  %6533 = vmatprep.subr.bf16.mxu0 %v9317_v28 }
 0x5a5   : > { %v5448_v52 = vadd.bf16 %v11390_v13, %v5376_v33  ;;  %v4630_v45 = vadd.bf16 %v11247_v8, %v4558_v48  ;;  %6534 = vmatpush1.bf16.msra.mxu0 %v9315_v62 }
 0x5a6   : > { %v5449_v31 = vadd.bf16 %v11394_v57, %v5377_v35  ;;  %v4631_v5 = vadd.bf16 %v11251_v47, %v4559_v1  ;;  %v5075_v41 = vpop.f32.mrb[136].mxu0 }
 0x5a7   : > { %v5076_v11 = vadd.f32 %v5075_v41, %v4741_v36  ;;  %v5077_v32 = vpop.f32.mrb[137].mxu0  ;;  %v5512_v27 = vmax.bf16 %v12410_v39, %v5448_v52  ;;  %v4694_v25 = vmax.bf16 %v12410_v39, %v4630_v45 }
 0x5a8   : > { %v5078_v46 = vadd.f32 %v5077_v32, %v4742_v12  ;;  %v4481_v30 = vpop.f32.mrb[120].mxu1  ;;  %v5079_v18 = vpop.f32.mrb[138].mxu0  ;;  %v4695_v19 = vmax.bf16 %v12410_v39, %v4631_v5  ;;  %v5513_v26 = vmax.bf16 %v12410_v39, %v5449_v31  ;;  %v4745_v5 = vunpack.c.l.bf16 %v10303_v38 }
 0x5a9   : > { %v5080_v53 = vadd.f32 %v5079_v18, %v4743_v3  ;;  %v4483_v33 = vpop.f32.mrb[121].mxu1  ;;  %v5081_v48 = vpop.f32.mrb[139].mxu0 }
 0x5aa   : > { %v5082_v6 = vadd.f32 %v5081_v48, %v4744_v40  ;;  %v4485_v55 = vpop.f32.mrb[122].mxu1  ;;  %5343 = vmatprep.mubr.bf16.mxu0 %v4695_v19  ;;  %5809 = vmatprep.mubr.bf16.mxu1 %v5513_v26  ;;  %v4748_v19 = vunpack.c.h.bf16 %v10309_v43 }
 0x5ab   : > { %v5378_v35 = vpack.c.bf16 %v5080_v53, %v5076_v11  ;;  %v4560_v1 = vpack.c.bf16 %v4485_v55, %v4481_v30  ;;  %v4487_v0 = vpop.f32.mrb[123].mxu1  ;;  %5344 = vmatmul.mubr.bf16.gmra.mrb[244].mxu0 %v4694_v25  ;;  %5810 = vmatmul.mubr.bf16.gmra.mrb[132].mxu1 %v5512_v27  ;;  %v4746_v11 = vunpack.c.l.bf16 %v10309_v43  ;;  %v4747_v30 = vunpack.c.h.bf16 %v10303_v38 }
 0x5ac   : > { %v5379_v36 = vpack.c.bf16 %v5082_v6, %v5078_v46  ;;  %v4561_v31 = vpack.c.bf16 %v4487_v0, %v4483_v33 }
 0x5ad   : > { %v5450_v52 = vadd.bf16 %v11390_v13, %v5378_v35  ;;  %v4632_v45 = vadd.bf16 %v11247_v8, %v4560_v1 }
 0x5ae   : > { %v5451_v41 = vadd.bf16 %v11394_v57, %v5379_v36  ;;  %v4633_v12 = vadd.bf16 %v11251_v47, %v4561_v31  ;;  %v5085_v32 = vpop.f32.mrb[140].mxu0 }
 0x5af   : > { %v5086_v3 = vadd.f32 %v5085_v32, %v4745_v5  ;;  %v5087_v28 = vpop.f32.mrb[141].mxu0  ;;  %v5514_v27 = vmax.bf16 %v12410_v39, %v5450_v52  ;;  %v4696_v25 = vmax.bf16 %v12410_v39, %v4632_v45  ;;  %v4749_v52 = vunpack.c.l.bf16 %v10332_v17 }
 0x5b0   : > { %v5088_v46 = vadd.f32 %v5087_v28, %v4746_v11  ;;  %v4491_v18 = vpop.f32.mrb[124].mxu1  ;;  %v5089_v40 = vpop.f32.mrb[142].mxu0  ;;  %v4697_v26 = vmax.bf16 %v12410_v39, %v4633_v12  ;;  %v5515_v62 = vmax.bf16 %v12410_v39, %v5451_v41  ;;  %v4750_v12 = vunpack.c.l.bf16 %v10338_v29  ;;  %v9320_v28 = vld [vmem:[#allocation3 + $0x6b4] ss:$8 sps:$4 sm:$0xff]  }
 0x5b1   : > { %v5090_v53 = vadd.f32 %v5089_v40, %v4747_v30  ;;  %v4493_v33 = vpop.f32.mrb[125].mxu1  ;;  %v5091_v48 = vpop.f32.mrb[143].mxu0  ;;  %6535 = vmatprep.subr.bf16.mxu0 %v9320_v28 }
 0x5b2   : > { %v5092_v6 = vadd.f32 %v5091_v48, %v4748_v19  ;;  %v4495_v55 = vpop.f32.mrb[126].mxu1  ;;  %5353 = vmatprep.mubr.bf16.mxu0 %v4697_v26  ;;  %5819 = vmatprep.mubr.bf16.mxu1 %v5515_v62  ;;  %v9318_v19 = vld [vmem:[#allocation3 + $0x6b0] ss:$8 sps:$4 sm:$0xff]  }
 0x5b3   : > { %v5380_v38 = vpack.c.bf16 %v5090_v53, %v5086_v3  ;;  %v4562_v35 = vpack.c.bf16 %v4495_v55, %v4491_v18  ;;  %v4497_v1 = vpop.f32.mrb[127].mxu1  ;;  %5354 = vmatmul.mubr.bf16.gmra.mrb[248].mxu0 %v4696_v25  ;;  %5820 = vmatmul.mubr.bf16.gmra.mrb[136].mxu1 %v5514_v27  ;;  %v4751_v3 = vunpack.c.h.bf16 %v10332_v17  ;;  %v4752_v18 = vunpack.c.h.bf16 %v10338_v29 }
 0x5b4   : > { %v5381_v43 = vpack.c.bf16 %v5092_v6, %v5088_v46  ;;  %v4563_v0 = vpack.c.bf16 %v4497_v1, %v4493_v33  ;;  %6536 = vmatpush1.bf16.msra.mxu0 %v9318_v19  ;;  %v4753_v33 = vunpack.c.l.bf16 %v10364_v51  ;;  %v4754_v55 = vunpack.c.l.bf16 %v10366_v49 }
 0x5b5   : > { %v5452_v36 = vadd.bf16 %v11390_v13, %v5380_v38  ;;  %v4634_v31 = vadd.bf16 %v11247_v8, %v4562_v35  ;;  %v4755_v1 = vunpack.c.h.bf16 %v10364_v51 }
 0x5b6   : > { %v5453_v45 = vadd.bf16 %v11394_v57, %v5381_v43  ;;  %v4635_v5 = vadd.bf16 %v11251_v47, %v4563_v0  ;;  %v5095_v41 = vpop.f32.mrb[144].mxu0 }
 0x5b7   : > { %v5096_v32 = vadd.f32 %v5095_v41, %v4749_v52  ;;  %v5097_v11 = vpop.f32.mrb[145].mxu0  ;;  %v5516_v26 = vmax.bf16 %v12410_v39, %v5452_v36  ;;  %v4698_v47 = vmax.bf16 %v12410_v39, %v4634_v31  ;;  %v4756_v36 = vunpack.c.h.bf16 %v10366_v49 }
 0x5b8   : > { %v5098_v30 = vadd.f32 %v5097_v11, %v4750_v12  ;;  %v5099_v46 = vpop.f32.mrb[146].mxu0  ;;  %v4699_v8 = vmax.bf16 %v12410_v39, %v4635_v5  ;;  %v5517_v40 = vmax.bf16 %v12410_v39, %v5453_v45  ;;  %v4758_v49 = vunpack.c.l.bf16 %v10392_v9 }
 0x5b9   : > { %v5100_v62 = vadd.f32 %v5099_v46, %v4751_v3  ;;  %v5101_v27 = vpop.f32.mrb[147].mxu0  ;;  %v4757_v3 = vunpack.c.l.bf16 %v10386_v50 }
 0x5ba   : > { %v5102_v25 = vadd.f32 %v5101_v27, %v4752_v18  ;;  %5363 = vmatprep.mubr.bf16.mxu0 %v4699_v8  ;;  %5829 = vmatprep.mubr.bf16.mxu1 %v5517_v40  ;;  %v4759_v18 = vunpack.c.h.bf16 %v10386_v50  ;;  %v9321_v8 = vld [vmem:[#allocation3 + $0x6c0] ss:$8 sps:$4 sm:$0xff]   ;;  %v9323_v40 = vld [vmem:[#allocation3 + $0x6c4] ss:$8 sps:$4 sm:$0xff]  }
 0x5bb   : > { %v5382_v17 = vpack.c.bf16 %v5100_v62, %v5096_v32  ;;  %5364 = vmatmul.mubr.bf16.gmra.mrb[252].mxu0 %v4698_v47  ;;  %5830 = vmatmul.mubr.bf16.gmra.mrb[140].mxu1 %v5516_v26  ;;  %v4760_v47 = vunpack.c.h.bf16 %v10392_v9 }
 0x5bc   : > { %v5383_v53 = vpack.c.bf16 %v5102_v25, %v5098_v30  ;;  %6537 = vmatprep.subr.bf16.mxu0 %v9323_v40 }
 0x5bd   : > { %v5454_v29 = vadd.bf16 %v11390_v13, %v5382_v17  ;;  %6538 = vmatpush1.bf16.msra.mxu0 %v9321_v8 }
 0x5be   : > { %v5455_v48 = vadd.bf16 %v11394_v57, %v5383_v53  ;;  %v5105_v6 = vpop.f32.mrb[148].mxu0 }
 0x5bf   : > { %v5106_v38 = vadd.f32 %v5105_v6, %v4753_v33  ;;  %v5107_v35 = vpop.f32.mrb[149].mxu0  ;;  %v5518_v52 = vmax.bf16 %v12410_v39, %v5454_v29 }
 0x5c0   : > { %v5108_v43 = vadd.f32 %v5107_v35, %v4754_v55  ;;  %v5109_v0 = vpop.f32.mrb[150].mxu0  ;;  %v5519_v31 = vmax.bf16 %v12410_v39, %v5455_v48  ;;  %v4761_v48 = vunpack.c.l.bf16 %v10412_v4  ;;  %v4762_v55 = vunpack.c.l.bf16 %v10418_v59 }
 0x5c1   : > { %v5110_v45 = vadd.f32 %v5109_v0, %v4755_v1  ;;  %v5111_v5 = vpop.f32.mrb[151].mxu0  ;;  %v4763_v1 = vunpack.c.h.bf16 %v10412_v4 }
 0x5c2   : > { %v5112_v41 = vadd.f32 %v5111_v5, %v4756_v36  ;;  %5839 = vmatprep.mubr.bf16.mxu1 %v5519_v31  ;;  %v4764_v36 = vunpack.c.h.bf16 %v10418_v59  ;;  %v4766_v59 = vunpack.c.l.bf16 %v10444_v2 }
 0x5c3   : > { %v5384_v12 = vpack.c.bf16 %v5110_v45, %v5106_v38  ;;  %5840 = vmatmul.mubr.bf16.gmra.mrb[144].mxu1 %v5518_v52 }
 0x5c4   : > { %v5385_v32 = vpack.c.bf16 %v5112_v41, %v5108_v43 }
 0x5c5   : > { %v5456_v11 = vadd.bf16 %v11390_v13, %v5384_v12 }
 0x5c6   : > { %v5457_v51 = vadd.bf16 %v11394_v57, %v5385_v32  ;;  %v5115_v28 = vpop.f32.mrb[152].mxu0 }
 0x5c7   : > { %v5116_v30 = vadd.f32 %v5115_v28, %v4757_v3  ;;  %v5117_v46 = vpop.f32.mrb[153].mxu0  ;;  %v5520_v27 = vmax.bf16 %v12410_v39, %v5456_v11  ;;  %v4765_v3 = vunpack.c.l.bf16 %v10438_v34 }
 0x5c8   : > { %v5118_v19 = vadd.f32 %v5117_v46, %v4758_v49  ;;  %v5119_v26 = vpop.f32.mrb[154].mxu0  ;;  %v5521_v62 = vmax.bf16 %v12410_v39, %v5457_v51  ;;  %v9324_v46 = vld [vmem:[#allocation3 + $0x6d0] ss:$8 sps:$4 sm:$0xff]  }
 0x5c9   : > { %v5120_v25 = vadd.f32 %v5119_v26, %v4759_v18  ;;  %v5121_v17 = vpop.f32.mrb[155].mxu0  ;;  %v9326_v18 = vld [vmem:[#allocation3 + $0x6d4] ss:$8 sps:$4 sm:$0xff]  }
 0x5ca   : > { %v5122_v53 = vadd.f32 %v5121_v17, %v4760_v47  ;;  %5849 = vmatprep.mubr.bf16.mxu1 %v5521_v62  ;;  %6539 = vmatprep.subr.bf16.mxu0 %v9326_v18 }
 0x5cb   : > { %v5386_v29 = vpack.c.bf16 %v5120_v25, %v5116_v30  ;;  %5850 = vmatmul.mubr.bf16.gmra.mrb[148].mxu1 %v5520_v27  ;;  %v4767_v30 = vunpack.c.h.bf16 %v10438_v34  ;;  %6540 = vmatpush1.bf16.msra.mxu0 %v9324_v46 }
 0x5cc   : > { %v5387_v33 = vpack.c.bf16 %v5122_v53, %v5118_v19  ;;  %v4768_v19 = vunpack.c.h.bf16 %v10444_v2 }
 0x5cd   : > { %v5458_v50 = vadd.bf16 %v11390_v13, %v5386_v29  ;;  %v4769_v29 = vunpack.c.l.bf16 %v10464_v61 }
 0x5ce   : > { %v5459_v6 = vadd.bf16 %v11394_v57, %v5387_v33  ;;  %v5125_v9 = vpop.f32.mrb[156].mxu0 }
 0x5cf   : > { %v5126_v38 = vadd.f32 %v5125_v9, %v4761_v48  ;;  %v5127_v35 = vpop.f32.mrb[157].mxu0  ;;  %v5522_v52 = vmax.bf16 %v12410_v39, %v5458_v50  ;;  %v4770_v50 = vunpack.c.l.bf16 %v10470_v10  ;;  %v4771_v9 = vunpack.c.h.bf16 %v10464_v61 }
 0x5d0   : > { %v5128_v43 = vadd.f32 %v5127_v35, %v4762_v55  ;;  %v5129_v0 = vpop.f32.mrb[158].mxu0  ;;  %v5523_v31 = vmax.bf16 %v12410_v39, %v5459_v6  ;;  %v4772_v35 = vunpack.c.h.bf16 %v10470_v10  ;;  %v4774_v10 = vunpack.c.l.bf16 %v10496_v42 }
 0x5d1   : > { %v5130_v45 = vadd.f32 %v5129_v0, %v4763_v1  ;;  %v5131_v5 = vpop.f32.mrb[159].mxu0 }
 0x5d2   : > { %v5132_v41 = vadd.f32 %v5131_v5, %v4764_v36  ;;  %5859 = vmatprep.mubr.bf16.mxu1 %v5523_v31 }
 0x5d3   : > { %v5388_v12 = vpack.c.bf16 %v5130_v45, %v5126_v38  ;;  %5860 = vmatmul.mubr.bf16.gmra.mrb[152].mxu1 %v5522_v52 }
 0x5d4   : > { %v5389_v32 = vpack.c.bf16 %v5132_v41, %v5128_v43  ;;  %v4773_v41 = vunpack.c.l.bf16 %v10490_v37 }
 0x5d5   : > { %v5460_v11 = vadd.bf16 %v11390_v13, %v5388_v12 }
 0x5d6   : > { %v5461_v4 = vadd.bf16 %v11394_v57, %v5389_v32  ;;  %v5135_v51 = vpop.f32.mrb[160].mxu0 }
 0x5d7   : > { %v5136_v28 = vadd.f32 %v5135_v51, %v4765_v3  ;;  %v5137_v49 = vpop.f32.mrb[161].mxu0  ;;  %v5524_v47 = vmax.bf16 %v12410_v39, %v5460_v11  ;;  %v4775_v3 = vunpack.c.h.bf16 %v10490_v37  ;;  %v9328_v51 = vld [vmem:[#allocation3 + $0x6e0] ss:$8 sps:$4 sm:$0xff]  }
 0x5d8   : > { %v5138_v8 = vadd.f32 %v5137_v49, %v4766_v59  ;;  %v5139_v40 = vpop.f32.mrb[162].mxu0  ;;  %v5525_v26 = vmax.bf16 %v12410_v39, %v5461_v4  ;;  %v9327_v4 = vld [vmem:[%s12329_s4] sm:$0xff]  }
 0x5d9   : > { %v5140_v62 = vadd.f32 %v5139_v40, %v4767_v30  ;;  %v5141_v27 = vpop.f32.mrb[163].mxu0  ;;  %v9330_v59 = vld [vmem:[#allocation3 + $0x6e4] ss:$8 sps:$4 sm:$0xff]   ;;  %v4776_v30 = vunpack.c.h.bf16 %v10496_v42  ;;  %7195 = vmatpush1.bf16.msra.mxu1 %v9327_v4  ;;  %v4777_v42 = vunpack.c.l.bf16 %v10516_v20 }
 0x5da   : > { %v5142_v25 = vadd.f32 %v5141_v27, %v4768_v19  ;;  %5869 = vmatprep.mubr.bf16.mxu1 %v5525_v26  ;;  %6541 = vmatprep.subr.bf16.mxu0 %v9330_v59 }
 0x5db   : > { %v5390_v17 = vpack.c.bf16 %v5140_v62, %v5136_v28  ;;  %5870 = vmatmul.mubr.bf16.gmra.mrb[156].mxu1 %v5524_v47  ;;  %6542 = vmatpush1.bf16.msra.mxu0 %v9328_v51 }
 0x5dc   : > { %v5391_v53 = vpack.c.bf16 %v5142_v25, %v5138_v8  ;;  %7196 = vmatprep.subr.bf16.mxu1 %v12410_v39  ;;  %v12435_v25 = vld [vmem:[#allocation9_spill] sm:$0xff] }
 0x5dd   : > { %v5462_v34 = vadd.bf16 %v11390_v13, %v5390_v17  ;;  %v4778_v17 = vunpack.c.l.bf16 %v12435_v25 }
 0x5de   : > { %v5463_v33 = vadd.bf16 %v11394_v57, %v5391_v53  ;;  %v5145_v2 = vpop.f32.mrb[164].mxu0 }
 0x5df   : > { %v5146_v48 = vadd.f32 %v5145_v2, %v4769_v29  ;;  %v5147_v6 = vpop.f32.mrb[165].mxu0  ;;  %v5526_v43 = vmax.bf16 %v12410_v39, %v5462_v34  ;;  %v4779_v29 = vunpack.c.h.bf16 %v10516_v20 }
 0x5e0   : > { %v5148_v55 = vadd.f32 %v5147_v6, %v4770_v50  ;;  %v5149_v38 = vpop.f32.mrb[166].mxu0  ;;  %v5527_v1 = vmax.bf16 %v12410_v39, %v5463_v33  ;;  %v4780_v50 = vunpack.c.h.bf16 %v12435_v25 }
 0x5e1   : > { %v5150_v0 = vadd.f32 %v5149_v38, %v4771_v9  ;;  %v5151_v36 = vpop.f32.mrb[167].mxu0 }
 0x5e2   : > { %v5152_v31 = vadd.f32 %v5151_v36, %v4772_v35  ;;  %5879 = vmatprep.mubr.bf16.mxu1 %v5527_v1 }
 0x5e3   : > { %v5392_v52 = vpack.c.bf16 %v5150_v0, %v5146_v48  ;;  %5880 = vmatmul.mubr.bf16.gmra.mrb[160].mxu1 %v5526_v43  ;;  %v12436_v0 = vld [vmem:[#allocation10_spill] sm:$0xff] }
 0x5e4   : > { %v5393_v45 = vpack.c.bf16 %v5152_v31, %v5148_v55  ;;  %v4781_v36 = vunpack.c.l.bf16 %v12436_v0 }
 0x5e5   : > { %v5464_v5 = vadd.bf16 %v11390_v13, %v5392_v52  ;;  %v12437_v52 = vld [vmem:[#allocation11_spill] sm:$0xff] }
 0x5e6   : > { %v5465_v61 = vadd.bf16 %v11394_v57, %v5393_v45  ;;  %v5155_v12 = vpop.f32.mrb[168].mxu0  ;;  %v4782_v45 = vunpack.c.l.bf16 %v12437_v52  ;;  %v4784_v4 = vunpack.c.h.bf16 %v12437_v52 }
 0x5e7   : > { %v5156_v32 = vadd.f32 %v5155_v12, %v4773_v41  ;;  %v5157_v11 = vpop.f32.mrb[169].mxu0  ;;  %v5528_v18 = vmax.bf16 %v12410_v39, %v5464_v5  ;;  %v9331_v12 = vld [vmem:[%s12329_s4 + $0x8] sm:$0xff]  }
 0x5e8   : > { %v5158_v28 = vadd.f32 %v5157_v11, %v4774_v10  ;;  %v5159_v49 = vpop.f32.mrb[170].mxu0  ;;  %v5529_v46 = vmax.bf16 %v12410_v39, %v5465_v61  ;;  %v4783_v61 = vunpack.c.h.bf16 %v12436_v0  ;;  %v9332_v10 = vld [vmem:[#allocation3 + $0x6f0] ss:$8 sps:$4 sm:$0xff]   ;;  %7197 = vmatpush1.bf16.msra.mxu1 %v9331_v12 }
 0x5e9   : > { %v5160_v8 = vadd.f32 %v5159_v49, %v4775_v3  ;;  %v5161_v40 = vpop.f32.mrb[171].mxu0  ;;  %7198 = vmatprep.subr.bf16.mxu1 %v12410_v39  ;;  %v12441_v0 = vld [vmem:[#allocation15_spill] sm:$0xff] }
 0x5ea   : > { %v5162_v19 = vadd.f32 %v5161_v40, %v4776_v30  ;;  %5889 = vmatprep.mubr.bf16.mxu1 %v5529_v46  ;;  %v12438_v40 = vld [vmem:[#allocation12_spill] sm:$0xff] }
 0x5eb   : > { %v5394_v37 = vpack.c.bf16 %v5160_v8, %v5156_v32  ;;  %5890 = vmatmul.mubr.bf16.gmra.mrb[164].mxu1 %v5528_v18  ;;  %v9334_v32 = vld [vmem:[#allocation3 + $0x6f4] ss:$8 sps:$4 sm:$0xff]   ;;  %v4787_v25 = vunpack.c.h.bf16 %v12438_v40 }
 0x5ec   : > { %v5395_v26 = vpack.c.bf16 %v5162_v19, %v5158_v28  ;;  %6543 = vmatprep.subr.bf16.mxu0 %v9334_v32  ;;  %v4785_v19 = vunpack.c.l.bf16 %v12438_v40 }
 0x5ed   : > { %v5466_v47 = vadd.bf16 %v11390_v13, %v5394_v37  ;;  %6544 = vmatpush1.bf16.msra.mxu0 %v9332_v10 }
 0x5ee   : > { %v5467_v62 = vadd.bf16 %v11394_v57, %v5395_v26  ;;  %v5165_v27 = vpop.f32.mrb[172].mxu0 }
 0x5ef   : > { %v5166_v53 = vadd.f32 %v5165_v27, %v4777_v42  ;;  %v5167_v34 = vpop.f32.mrb[173].mxu0  ;;  %v5530_v6 = vmax.bf16 %v12410_v39, %v5466_v47  ;;  %v12439_v47 = vld [vmem:[#allocation13_spill] sm:$0xff] }
 0x5f0   : > { %v5168_v33 = vadd.f32 %v5167_v34, %v4778_v17  ;;  %v5169_v2 = vpop.f32.mrb[174].mxu0  ;;  %v5531_v48 = vmax.bf16 %v12410_v39, %v5467_v62  ;;  %v4786_v42 = vunpack.c.l.bf16 %v12439_v47  ;;  %v4788_v34 = vunpack.c.h.bf16 %v12439_v47 }
 0x5f1   : > { %v5170_v9 = vadd.f32 %v5169_v2, %v4779_v29  ;;  %v5171_v55 = vpop.f32.mrb[175].mxu0 }
 0x5f2   : > { %v5172_v38 = vadd.f32 %v5171_v55, %v4780_v50  ;;  %5899 = vmatprep.mubr.bf16.mxu1 %v5531_v48 }
 0x5f3   : > { %v5396_v35 = vpack.c.bf16 %v5170_v9, %v5166_v53  ;;  %5900 = vmatmul.mubr.bf16.gmra.mrb[168].mxu1 %v5530_v6 }
 0x5f4   : > { %v5397_v1 = vpack.c.bf16 %v5172_v38, %v5168_v33  ;;  %v12440_v38 = vld [vmem:[#allocation14_spill] sm:$0xff] }
 0x5f5   : > { %v5468_v43 = vadd.bf16 %v11390_v13, %v5396_v35  ;;  %v4789_v35 = vunpack.c.l.bf16 %v12440_v38  ;;  %v4791_v52 = vunpack.c.h.bf16 %v12440_v38 }
 0x5f6   : > { %v5469_v20 = vadd.bf16 %v11394_v57, %v5397_v1  ;;  %v5175_v31 = vpop.f32.mrb[176].mxu0 }
 0x5f7   : > { %v5176_v5 = vadd.f32 %v5175_v31, %v4781_v36  ;;  %v5177_v41 = vpop.f32.mrb[177].mxu0  ;;  %v5532_v59 = vmax.bf16 %v12410_v39, %v5468_v43  ;;  %v4790_v36 = vunpack.c.l.bf16 %v12441_v0 }
 0x5f8   : > { %v5178_v11 = vadd.f32 %v5177_v41, %v4782_v45  ;;  %v5179_v3 = vpop.f32.mrb[178].mxu0  ;;  %v5533_v51 = vmax.bf16 %v12410_v39, %v5469_v20  ;;  %v9335_v45 = vld [vmem:[%s12329_s4 + $0x10] sm:$0xff]  }
 0x5f9   : > { %v5180_v28 = vadd.f32 %v5179_v3, %v4783_v61  ;;  %v5181_v49 = vpop.f32.mrb[179].mxu0  ;;  %v4792_v61 = vunpack.c.h.bf16 %v12441_v0  ;;  %7199 = vmatpush1.bf16.msra.mxu1 %v9335_v45 }
 0x5fa   : > { %v5182_v30 = vadd.f32 %v5181_v49, %v4784_v4  ;;  %5909 = vmatprep.mubr.bf16.mxu1 %v5533_v51  ;;  %7200 = vmatprep.subr.bf16.mxu1 %v12410_v39 }
 0x5fb   : > { %v5398_v46 = vpack.c.bf16 %v5180_v28, %v5176_v5  ;;  %5910 = vmatmul.mubr.bf16.gmra.mrb[172].mxu1 %v5532_v59  ;;  %v12442_v28 = vld [vmem:[#allocation16_spill] sm:$0xff] }
 0x5fc   : > { %v5399_v18 = vpack.c.bf16 %v5182_v30, %v5178_v11  ;;  %v4793_v49 = vunpack.c.l.bf16 %v12442_v28 }
 0x5fd   : > { %v5470_v8 = vadd.bf16 %v11390_v13, %v5398_v46 }
 0x5fe   : > { %v5471_v37 = vadd.bf16 %v11394_v57, %v5399_v18  ;;  %v5185_v26 = vpop.f32.mrb[180].mxu0  ;;  %v12443_v18 = vld [vmem:[#allocation17_spill] sm:$0xff] }
 0x5ff   : > { %v5186_v62 = vadd.f32 %v5185_v26, %v4785_v19  ;;  %v5187_v27 = vpop.f32.mrb[181].mxu0  ;;  %v5534_v33 = vmax.bf16 %v12410_v39, %v5470_v8  ;;  %v4794_v8 = vunpack.c.l.bf16 %v12443_v18 }
 0x600   : > { %v5188_v17 = vadd.f32 %v5187_v27, %v4786_v42  ;;  %v5189_v53 = vpop.f32.mrb[182].mxu0  ;;  %v5535_v29 = vmax.bf16 %v12410_v39, %v5471_v37  ;;  %v4795_v37 = vunpack.c.h.bf16 %v12442_v28  ;;  %v4796_v42 = vunpack.c.h.bf16 %v12443_v18 }
 0x601   : > { %v5190_v2 = vadd.f32 %v5189_v53, %v4787_v25  ;;  %v5191_v50 = vpop.f32.mrb[183].mxu0 }
 0x602   : > { %v5192_v48 = vadd.f32 %v5191_v50, %v4788_v34  ;;  %5919 = vmatprep.mubr.bf16.mxu1 %v5535_v29 }
 0x603   : > { %v5400_v6 = vpack.c.bf16 %v5190_v2, %v5186_v62  ;;  %5920 = vmatmul.mubr.bf16.gmra.mrb[176].mxu1 %v5534_v33  ;;  %v12444_v2 = vld [vmem:[#allocation18_spill] sm:$0xff] }
 0x604   : > { %v5401_v9 = vpack.c.bf16 %v5192_v48, %v5188_v17  ;;  %v4797_v50 = vunpack.c.l.bf16 %v12444_v2 }
 0x605   : > { %v5472_v55 = vadd.bf16 %v11390_v13, %v5400_v6 }
 0x606   : > { %v5473_v1 = vadd.bf16 %v11394_v57, %v5401_v9  ;;  %v5195_v43 = vpop.f32.mrb[184].mxu0  ;;  %v12445_v9 = vld [vmem:[#allocation19_spill] sm:$0xff] }
 0x607   : > { %v5196_v20 = vadd.f32 %v5195_v43, %v4789_v35  ;;  %v5197_v31 = vpop.f32.mrb[185].mxu0  ;;  %v5536_v10 = vmax.bf16 %v12410_v39, %v5472_v55  ;;  %v4798_v55 = vunpack.c.l.bf16 %v12445_v9  ;;  %v9336_v43 = vld [vmem:[%s12329_s4 + $0x18] sm:$0xff]  }
 0x608   : > { %v5198_v5 = vadd.f32 %v5197_v31, %v4790_v36  ;;  %v5199_v41 = vpop.f32.mrb[186].mxu0  ;;  %v5537_v12 = vmax.bf16 %v12410_v39, %v5473_v1  ;;  %v4799_v1 = vunpack.c.h.bf16 %v12444_v2  ;;  %7201 = vmatpush1.bf16.msra.mxu1 %v9336_v43 }
 0x609   : > { %v5200_v32 = vadd.f32 %v5199_v41, %v4791_v52  ;;  %v5201_v11 = vpop.f32.mrb[187].mxu0  ;;  %7202 = vmatprep.subr.bf16.mxu1 %v12410_v39 }
 0x60a   : > { %v5202_v3 = vadd.f32 %v5201_v11, %v4792_v61  ;;  %5929 = vmatprep.mubr.bf16.mxu1 %v5537_v12 }
 0x60b   : > { %v5402_v4 = vpack.c.bf16 %v5200_v32, %v5196_v20  ;;  %5930 = vmatmul.mubr.bf16.gmra.mrb[180].mxu1 %v5536_v10  ;;  %v4800_v20 = vunpack.c.h.bf16 %v12445_v9  ;;  %v12446_v32 = vld [vmem:[#allocation20_spill] sm:$0xff] }
 0x60c   : > { %v5403_v51 = vpack.c.bf16 %v5202_v3, %v5198_v5  ;;  %v4801_v11 = vunpack.c.l.bf16 %v12446_v32 }
 0x60d   : > { %v5474_v59 = vadd.bf16 %v11390_v13, %v5402_v4 }
 0x60e   : > { %v5475_v30 = vadd.bf16 %v11394_v57, %v5403_v51  ;;  %v5205_v46 = vpop.f32.mrb[188].mxu0  ;;  %v12447_v51 = vld [vmem:[#allocation21_spill] sm:$0xff] }
 0x60f   : > { %v5206_v40 = vadd.f32 %v5205_v46, %v4793_v49  ;;  %v5207_v19 = vpop.f32.mrb[189].mxu0  ;;  %v5538_v27 = vmax.bf16 %v12410_v39, %v5474_v59  ;;  %v4802_v59 = vunpack.c.l.bf16 %v12447_v51 }
 0x610   : > { %v5208_v26 = vadd.f32 %v5207_v19, %v4794_v8  ;;  %v5209_v47 = vpop.f32.mrb[190].mxu0  ;;  %v5539_v62 = vmax.bf16 %v12410_v39, %v5475_v30  ;;  %v4803_v30 = vunpack.c.h.bf16 %v12446_v32  ;;  %v4804_v8 = vunpack.c.h.bf16 %v12447_v51 }
 0x611   : > { %v5210_v25 = vadd.f32 %v5209_v47, %v4795_v37  ;;  %v5211_v17 = vpop.f32.mrb[191].mxu0 }
 0x612   : > { %v5212_v53 = vadd.f32 %v5211_v17, %v4796_v42  ;;  %5939 = vmatprep.mubr.bf16.mxu1 %v5539_v62 }
 0x613   : > { %v5404_v34 = vpack.c.bf16 %v5210_v25, %v5206_v40  ;;  %5940 = vmatmul.mubr.bf16.gmra.mrb[184].mxu1 %v5538_v27  ;;  %v12448_v25 = vld [vmem:[#allocation22_spill] sm:$0xff] }
 0x614   : > { %v5405_v29 = vpack.c.bf16 %v5212_v53, %v5208_v26  ;;  %v4805_v17 = vunpack.c.l.bf16 %v12448_v25  ;;  %v9337_v53 = vld [vmem:[%s12329_s4 + $0x20] sm:$0xff]  }
 0x615   : > { %v5476_v33 = vadd.bf16 %v11390_v13, %v5404_v34  ;;  %7203 = vmatpush1.bf16.msra.mxu1 %v9337_v53 }
 0x616   : > { %v5477_v48 = vadd.bf16 %v11394_v57, %v5405_v29  ;;  %v5215_v6 = vpop.f32.mrb[192].mxu0  ;;  %7204 = vmatprep.subr.bf16.mxu1 %v12410_v39 }
 0x617   : > { %v5216_v38 = vadd.f32 %v5215_v6, %v4797_v50  ;;  %v5217_v35 = vpop.f32.mrb[193].mxu0  ;;  %v5540_v52 = vmax.bf16 %v12410_v39, %v5476_v33  ;;  %v12449_v33 = vld [vmem:[#allocation23_spill] sm:$0xff]  ;;  %v4807_v6 = vunpack.c.h.bf16 %v12448_v25 }
 0x618   : > { %v5218_v0 = vadd.f32 %v5217_v35, %v4798_v55  ;;  %v5219_v36 = vpop.f32.mrb[194].mxu0  ;;  %v5541_v31 = vmax.bf16 %v12410_v39, %v5477_v48  ;;  %v4806_v2 = vunpack.c.l.bf16 %v12449_v33 }
 0x619   : > { %v5220_v45 = vadd.f32 %v5219_v36, %v4799_v1  ;;  %v5221_v5 = vpop.f32.mrb[195].mxu0 }
 0x61a   : > { %v5222_v41 = vadd.f32 %v5221_v5, %v4800_v20  ;;  %5949 = vmatprep.mubr.bf16.mxu1 %v5541_v31 }
 0x61b   : > { %v5406_v61 = vpack.c.bf16 %v5220_v45, %v5216_v38  ;;  %5950 = vmatmul.mubr.bf16.gmra.mrb[188].mxu1 %v5540_v52  ;;  %v4808_v38 = vunpack.c.h.bf16 %v12449_v33  ;;  %v12450_v45 = vld [vmem:[#allocation24_spill] sm:$0xff] }
 0x61c   : > { %v5407_v12 = vpack.c.bf16 %v5222_v41, %v5218_v0  ;;  %v4809_v5 = vunpack.c.l.bf16 %v12450_v45 }
 0x61d   : > { %v5478_v10 = vadd.bf16 %v11390_v13, %v5406_v61 }
 0x61e   : > { %v5479_v3 = vadd.bf16 %v11394_v57, %v5407_v12  ;;  %v5225_v4 = vpop.f32.mrb[196].mxu0  ;;  %v12451_v12 = vld [vmem:[#allocation25_spill] sm:$0xff] }
 0x61f   : > { %v5226_v28 = vadd.f32 %v5225_v4, %v4801_v11  ;;  %v5227_v49 = vpop.f32.mrb[197].mxu0  ;;  %v5542_v19 = vmax.bf16 %v12410_v39, %v5478_v10  ;;  %v4810_v10 = vunpack.c.l.bf16 %v12451_v12 }
 0x620   : > { %v5228_v46 = vadd.f32 %v5227_v49, %v4802_v59  ;;  %v5229_v18 = vpop.f32.mrb[198].mxu0  ;;  %v5543_v40 = vmax.bf16 %v12410_v39, %v5479_v3  ;;  %v4811_v3 = vunpack.c.h.bf16 %v12450_v45  ;;  %v4812_v59 = vunpack.c.h.bf16 %v12451_v12 }
 0x621   : > { %v5230_v37 = vadd.f32 %v5229_v18, %v4803_v30  ;;  %v5231_v26 = vpop.f32.mrb[199].mxu0  ;;  %v4819_v45 = vunpack.c.h.bf16 %v10780_v15 }
 0x622   : > { %v5232_v47 = vadd.f32 %v5231_v26, %v4804_v8  ;;  %5959 = vmatprep.mubr.bf16.mxu1 %v5543_v40 }
 0x623   : > { %v5408_v42 = vpack.c.bf16 %v5230_v37, %v5226_v28  ;;  %5960 = vmatmul.mubr.bf16.gmra.mrb[192].mxu1 %v5542_v19  ;;  %v12452_v37 = vld [vmem:[#allocation26_spill] sm:$0xff] }
 0x624   : > { %v5409_v62 = vpack.c.bf16 %v5232_v47, %v5228_v46  ;;  %v4813_v26 = vunpack.c.l.bf16 %v12452_v37  ;;  %v9338_v47 = vld [vmem:[%s12329_s4 + $0x28] sm:$0xff]  }
 0x625   : > { %v5480_v27 = vadd.bf16 %v11390_v13, %v5408_v42  ;;  %7205 = vmatpush1.bf16.msra.mxu1 %v9338_v47 }
 0x626   : > { %v5481_v34 = vadd.bf16 %v11394_v57, %v5409_v62  ;;  %v5235_v29 = vpop.f32.mrb[200].mxu0  ;;  %7206 = vmatprep.subr.bf16.mxu1 %v12410_v39 }
 0x627   : > { %v5236_v50 = vadd.f32 %v5235_v29, %v4805_v17  ;;  %v5237_v48 = vpop.f32.mrb[201].mxu0  ;;  %v5544_v1 = vmax.bf16 %v12410_v39, %v5480_v27  ;;  %v12453_v27 = vld [vmem:[#allocation27_spill] sm:$0xff] }
 0x628   : > { %v5238_v9 = vadd.f32 %v5237_v48, %v4806_v2  ;;  %v5239_v55 = vpop.f32.mrb[202].mxu0  ;;  %v5545_v35 = vmax.bf16 %v12410_v39, %v5481_v34  ;;  %v4814_v25 = vunpack.c.l.bf16 %v12453_v27  ;;  %v4815_v34 = vunpack.c.h.bf16 %v12452_v37 }
 0x629   : > { %v5240_v43 = vadd.f32 %v5239_v55, %v4807_v6  ;;  %v5241_v0 = vpop.f32.mrb[203].mxu0  ;;  %v4816_v2 = vunpack.c.h.bf16 %v12453_v27  ;;  %v4824_v37 = vunpack.c.h.bf16 %v10804_v60 }
 0x62a   : > { %v5242_v36 = vadd.f32 %v5241_v0, %v4808_v38  ;;  %5969 = vmatprep.mubr.bf16.mxu1 %v5545_v35 }
 0x62b   : > { %v5410_v20 = vpack.c.bf16 %v5240_v43, %v5236_v50  ;;  %5970 = vmatmul.mubr.bf16.gmra.mrb[196].mxu1 %v5544_v1  ;;  %v4817_v43 = vunpack.c.l.bf16 %v10780_v15  ;;  %v9339_v15 = vld [vmem:[%s12329_s4 + $0x30] sm:$0xff]  }
 0x62c   : > { %v5411_v31 = vpack.c.bf16 %v5242_v36, %v5238_v9  ;;  %7207 = vmatpush1.bf16.msra.mxu1 %v9339_v15 }
 0x62d   : > { %v5482_v52 = vadd.bf16 %v11390_v13, %v5410_v20  ;;  %v4818_v20 = vunpack.c.l.bf16 %v10786_v56  ;;  %7208 = vmatprep.subr.bf16.mxu1 %v12410_v39 }
 0x62e   : > { %v5483_v41 = vadd.bf16 %v11394_v57, %v5411_v31  ;;  %v5245_v61 = vpop.f32.mrb[204].mxu0 }
 0x62f   : > { %v5246_v32 = vadd.f32 %v5245_v61, %v4809_v5  ;;  %v5247_v11 = vpop.f32.mrb[205].mxu0  ;;  %v5546_v49 = vmax.bf16 %v12410_v39, %v5482_v52  ;;  %v4820_v61 = vunpack.c.h.bf16 %v10786_v56 }
 0x630   : > { %v5248_v4 = vadd.f32 %v5247_v11, %v4810_v10  ;;  %v5249_v51 = vpop.f32.mrb[206].mxu0  ;;  %v5547_v28 = vmax.bf16 %v12410_v39, %v5483_v41 }
 0x631   : > { %v5250_v30 = vadd.f32 %v5249_v51, %v4811_v3  ;;  %v5251_v46 = vpop.f32.mrb[207].mxu0 }
 0x632   : > { %v5252_v18 = vadd.f32 %v5251_v46, %v4812_v59  ;;  %5979 = vmatprep.mubr.bf16.mxu1 %v5547_v28  ;;  %v4821_v28 = vunpack.c.l.bf16 %v10798_v22 }
 0x633   : > { %v5412_v8 = vpack.c.bf16 %v5250_v30, %v5246_v32  ;;  %5980 = vmatmul.mubr.bf16.gmra.mrb[200].mxu1 %v5546_v49  ;;  %v4822_v30 = vunpack.c.l.bf16 %v10804_v60 }
 0x634   : > { %v5413_v40 = vpack.c.bf16 %v5252_v18, %v5248_v4 }
 0x635   : > { %v5484_v19 = vadd.bf16 %v11390_v13, %v5412_v8  ;;  %v4823_v8 = vunpack.c.h.bf16 %v10798_v22 }
 0x636   : > { %v5485_v42 = vadd.bf16 %v11394_v57, %v5413_v40  ;;  %v5255_v62 = vpop.f32.mrb[208].mxu0 }
 0x637   : > { %v5256_v17 = vadd.f32 %v5255_v62, %v4813_v26  ;;  %v5257_v53 = vpop.f32.mrb[209].mxu0  ;;  %v5548_v48 = vmax.bf16 %v12410_v39, %v5484_v19 }
 0x638   : > { %v5258_v29 = vadd.f32 %v5257_v53, %v4814_v25  ;;  %v5259_v33 = vpop.f32.mrb[210].mxu0  ;;  %v5549_v50 = vmax.bf16 %v12410_v39, %v5485_v42  ;;  %v4825_v53 = vunpack.c.l.bf16 %v10816_v63 }
 0x639   : > { %v5260_v6 = vadd.f32 %v5259_v33, %v4815_v34  ;;  %v5261_v9 = vpop.f32.mrb[211].mxu0 }
 0x63a   : > { %v5262_v55 = vadd.f32 %v5261_v9, %v4816_v2  ;;  %5989 = vmatprep.mubr.bf16.mxu1 %v5549_v50  ;;  %v4827_v50 = vunpack.c.h.bf16 %v10816_v63  ;;  %v4828_v9 = vunpack.c.h.bf16 %v10822_v24  ;;  %v9340_v63 = vld [vmem:[%s12329_s4 + $0x38] sm:$0xff]  }
 0x63b   : > { %v5414_v38 = vpack.c.bf16 %v5260_v6, %v5256_v17  ;;  %5990 = vmatmul.mubr.bf16.gmra.mrb[204].mxu1 %v5548_v48 }
 0x63c   : > { %v5415_v35 = vpack.c.bf16 %v5262_v55, %v5258_v29  ;;  %v4826_v29 = vunpack.c.l.bf16 %v10822_v24  ;;  %7209 = vmatpush1.bf16.msra.mxu1 %v9340_v63 }
 0x63d   : > { %v5486_v1 = vadd.bf16 %v11390_v13, %v5414_v38  ;;  %7210 = vmatprep.subr.bf16.mxu1 %v12410_v39 }
 0x63e   : > { %v5487_v0 = vadd.bf16 %v11394_v57, %v5415_v35  ;;  %v5265_v36 = vpop.f32.mrb[212].mxu0 }
 0x63f   : > { %v5266_v31 = vadd.f32 %v5265_v36, %v4817_v43  ;;  %v5267_v52 = vpop.f32.mrb[213].mxu0  ;;  %v5550_v10 = vmax.bf16 %v12410_v39, %v5486_v1 }
 0x640   : > { %v5268_v5 = vadd.f32 %v5267_v52, %v4818_v20  ;;  %v5269_v41 = vpop.f32.mrb[214].mxu0  ;;  %v5551_v12 = vmax.bf16 %v12410_v39, %v5487_v0 }
 0x641   : > { %v5270_v32 = vadd.f32 %v5269_v41, %v4819_v45  ;;  %v5271_v11 = vpop.f32.mrb[215].mxu0  ;;  %v4830_v45 = vunpack.c.l.bf16 %v10840_v16 }
 0x642   : > { %v5272_v3 = vadd.f32 %v5271_v11, %v4820_v61  ;;  %5999 = vmatprep.mubr.bf16.mxu1 %v5551_v12  ;;  %v4831_v61 = vunpack.c.h.bf16 %v10834_v21 }
 0x643   : > { %v5416_v4 = vpack.c.bf16 %v5270_v32, %v5266_v31  ;;  %6000 = vmatmul.mubr.bf16.gmra.mrb[208].mxu1 %v5550_v10  ;;  %v4829_v31 = vunpack.c.l.bf16 %v10834_v21  ;;  %v4832_v32 = vunpack.c.h.bf16 %v10840_v16 }
 0x644   : > { %v5417_v51 = vpack.c.bf16 %v5272_v3, %v5268_v5 }
 0x645   : > { %v5488_v59 = vadd.bf16 %v11390_v13, %v5416_v4 }
 0x646   : > { %v5489_v56 = vadd.bf16 %v11394_v57, %v5417_v51  ;;  %v5275_v49 = vpop.f32.mrb[216].mxu0 }
 0x647   : > { %v5276_v46 = vadd.f32 %v5275_v49, %v4821_v28  ;;  %v5277_v18 = vpop.f32.mrb[217].mxu0  ;;  %v5552_v47 = vmax.bf16 %v12410_v39, %v5488_v59 }
 0x648   : > { %v5278_v40 = vadd.f32 %v5277_v18, %v4822_v30  ;;  %v5279_v19 = vpop.f32.mrb[218].mxu0  ;;  %v5553_v26 = vmax.bf16 %v12410_v39, %v5489_v56  ;;  %v4833_v56 = vunpack.c.l.bf16 %v10847_v23  ;;  %v12454_v30 = vld [vmem:[#allocation28_spill] sm:$0xff] }
 0x649   : > { %v5280_v42 = vadd.f32 %v5279_v19, %v4823_v8  ;;  %v5281_v62 = vpop.f32.mrb[219].mxu0 }
 0x64a   : > { %v5282_v27 = vadd.f32 %v5281_v62, %v4824_v37  ;;  %6009 = vmatprep.mubr.bf16.mxu1 %v5553_v26  ;;  %v4836_v26 = vunpack.c.h.bf16 %v12454_v30 }
 0x64b   : > { %v5418_v25 = vpack.c.bf16 %v5280_v42, %v5276_v46  ;;  %6010 = vmatmul.mubr.bf16.gmra.mrb[212].mxu1 %v5552_v47  ;;  %v4834_v46 = vunpack.c.l.bf16 %v12454_v30 }
 0x64c   : > { %v5419_v17 = vpack.c.bf16 %v5282_v27, %v5278_v40  ;;  %v4835_v40 = vunpack.c.h.bf16 %v10847_v23  ;;  %v9341_v23 = vld [vmem:[%s12329_s4 + $0x40] sm:$0xff]  }
 0x64d   : > { %v5490_v22 = vadd.bf16 %v11390_v13, %v5418_v25  ;;  %7211 = vmatpush1.bf16.msra.mxu1 %v9341_v23 }
 0x64e   : > { %v5491_v34 = vadd.bf16 %v11394_v57, %v5419_v17  ;;  %v5285_v60 = vpop.f32.mrb[220].mxu0  ;;  %7212 = vmatprep.subr.bf16.mxu1 %v12410_v39 }
 0x64f   : > { %v5286_v33 = vadd.f32 %v5285_v60, %v4825_v53  ;;  %v5287_v2 = vpop.f32.mrb[221].mxu0  ;;  %v5554_v38 = vmax.bf16 %v12410_v39, %v5490_v22 }
 0x650   : > { %v5288_v48 = vadd.f32 %v5287_v2, %v4826_v29  ;;  %v5289_v6 = vpop.f32.mrb[222].mxu0  ;;  %v5555_v55 = vmax.bf16 %v12410_v39, %v5491_v34  ;;  %v12455_v34 = vld [vmem:[#allocation29_spill] sm:$0xff]  ;;  %v12456_v2 = vld [vmem:[#allocation30_spill] sm:$0xff] }
 0x651   : > { %v5290_v35 = vadd.f32 %v5289_v6, %v4827_v50  ;;  %v5291_v1 = vpop.f32.mrb[223].mxu0  ;;  %v4837_v60 = vunpack.c.l.bf16 %v12455_v34  ;;  %v4838_v50 = vunpack.c.l.bf16 %v12456_v2 }
 0x652   : > { %v5292_v43 = vadd.f32 %v5291_v1, %v4828_v9  ;;  %6019 = vmatprep.mubr.bf16.mxu1 %v5555_v55  ;;  %v4839_v9 = vunpack.c.h.bf16 %v12455_v34 }
 0x653   : > { %v5420_v0 = vpack.c.bf16 %v5290_v35, %v5286_v33  ;;  %6020 = vmatmul.mubr.bf16.gmra.mrb[216].mxu1 %v5554_v38  ;;  %v4840_v35 = vunpack.c.h.bf16 %v12456_v2 }
 0x654   : > { %v5421_v36 = vpack.c.bf16 %v5292_v43, %v5288_v48 }
 0x655   : > { %v5492_v20 = vadd.bf16 %v11390_v13, %v5420_v0 }
 0x656   : > { %v5493_v24 = vadd.bf16 %v11394_v57, %v5421_v36  ;;  %v5295_v52 = vpop.f32.mrb[224].mxu0 }
 0x657   : > { %v5296_v5 = vadd.f32 %v5295_v52, %v4829_v31  ;;  %v5297_v41 = vpop.f32.mrb[225].mxu0  ;;  %v5556_v3 = vmax.bf16 %v12410_v39, %v5492_v20  ;;  %v12457_v52 = vld [vmem:[#allocation31_spill] sm:$0xff] }
 0x658   : > { %v5298_v12 = vadd.f32 %v5297_v41, %v4830_v45  ;;  %v5299_v10 = vpop.f32.mrb[226].mxu0  ;;  %v5557_v11 = vmax.bf16 %v12410_v39, %v5493_v24  ;;  %v4841_v45 = vunpack.c.l.bf16 %v12457_v52 }
 0x659   : > { %v5300_v4 = vadd.f32 %v5299_v10, %v4831_v61  ;;  %v5301_v51 = vpop.f32.mrb[227].mxu0  ;;  %v12458_v61 = vld [vmem:[#allocation32_spill] sm:$0xff] }
 0x65a   : > { %v5302_v59 = vadd.f32 %v5301_v51, %v4832_v32  ;;  %6029 = vmatprep.mubr.bf16.mxu1 %v5557_v11  ;;  %v4843_v11 = vunpack.c.h.bf16 %v12457_v52  ;;  %v4844_v51 = vunpack.c.h.bf16 %v12458_v61 }
 0x65b   : > { %v5422_v28 = vpack.c.bf16 %v5300_v4, %v5296_v5  ;;  %6030 = vmatmul.mubr.bf16.gmra.mrb[220].mxu1 %v5556_v3 }
 0x65c   : > { %v5423_v15 = vpack.c.bf16 %v5302_v59, %v5298_v12  ;;  %v4842_v12 = vunpack.c.l.bf16 %v12458_v61 }
 0x65d   : > { %v5494_v21 = vadd.bf16 %v11390_v13, %v5422_v28 }
 0x65e   : > { %v5495_v49 = vadd.bf16 %v11394_v57, %v5423_v15  ;;  %v5305_v16 = vpop.f32.mrb[228].mxu0 }
 0x65f   : > { %v5306_v18 = vadd.f32 %v5305_v16, %v4833_v56  ;;  %v5307_v8 = vpop.f32.mrb[229].mxu0  ;;  %v5558_v42 = vmax.bf16 %v12410_v39, %v5494_v21  ;;  %v11665_v16 = vsub.s32 3, %v10023_v54 }
 0x660   : > { %v5308_v19 = vadd.f32 %v5307_v8, %v4834_v46  ;;  %v5309_v37 = vpop.f32.mrb[230].mxu0  ;;  %v5559_v47 = vmax.bf16 %v12410_v39, %v5495_v49 }
 0x661   : > { %v5310_v62 = vadd.f32 %v5309_v37, %v4835_v40  ;;  %v5311_v27 = vpop.f32.mrb[231].mxu0  ;;  %v9342_v40 = vld [vmem:[%s12329_s4 + $0x48] sm:$0xff]   ;;  %v11682_v23 = vrot.slane %v10036_v58, %v11665_v16 }
 0x662   : > { %v5312_v25 = vadd.f32 %v5311_v27, %v4836_v26  ;;  %6039 = vmatprep.mubr.bf16.mxu1 %v5559_v47  ;;  %v12460_v47 = vld [vmem:[#allocation34_spill] sm:$0xff]  ;;  %7213 = vmatpush1.bf16.msra.mxu1 %v9342_v40 }
 0x663   : > { %v5424_v17 = vpack.c.bf16 %v5310_v62, %v5306_v18  ;;  %6040 = vmatmul.mubr.bf16.gmra.mrb[224].mxu1 %v5558_v42  ;;  %v12459_v18 = vld [vmem:[#allocation33_spill] sm:$0xff]  ;;  %v4846_v42 = vunpack.c.l.bf16 %v12460_v47  ;;  %7214 = vmatprep.subr.bf16.mxu1 %v12410_v39 }
 0x664   : > { %v5425_v22 = vpack.c.bf16 %v5312_v25, %v5308_v19  ;;  %v4845_v8 = vunpack.c.l.bf16 %v12459_v18  ;;  %v4847_v54 = vunpack.c.h.bf16 %v12459_v18 }
 0x665   : > { %v5496_v53 = vadd.bf16 %v11390_v13, %v5424_v17  ;;  %v11677_v17 = vrot.slane %v10064_v7, %v11665_v16 }
 0x666   : > { %v5497_v29 = vadd.bf16 %v11394_v57, %v5425_v22  ;;  %v5315_v33 = vpop.f32.mrb[232].mxu0 }
 0x667   : > { %v5316_v48 = vadd.f32 %v5315_v33, %v4837_v60  ;;  %v5317_v6 = vpop.f32.mrb[233].mxu0  ;;  %v5560_v43 = vmax.bf16 %v12410_v39, %v5496_v53  ;;  %v4848_v60 = vunpack.c.h.bf16 %v12460_v47 }
 0x668   : > { %v5318_v55 = vadd.f32 %v5317_v6, %v4838_v50  ;;  %v5319_v38 = vpop.f32.mrb[234].mxu0  ;;  %v5561_v1 = vmax.bf16 %v12410_v39, %v5497_v29 }
 0x669   : > { %v5320_v0 = vadd.f32 %v5319_v38, %v4839_v9  ;;  %v5321_v36 = vpop.f32.mrb[235].mxu0 }
 0x66a   : > { %v5322_v20 = vadd.f32 %v5321_v36, %v4840_v35  ;;  %6049 = vmatprep.mubr.bf16.mxu1 %v5561_v1 }
 0x66b   : > { %v5426_v31 = vpack.c.bf16 %v5320_v0, %v5316_v48  ;;  %6050 = vmatmul.mubr.bf16.gmra.mrb[228].mxu1 %v5560_v43  ;;  %v12461_v43 = vld [vmem:[#allocation35_spill] sm:$0xff] }
 0x66c   : > { %v5427_v63 = vpack.c.bf16 %v5322_v20, %v5318_v55  ;;  %v4849_v0 = vunpack.c.l.bf16 %v12461_v43 }
 0x66d   : > { %v5498_v24 = vadd.bf16 %v11390_v13, %v5426_v31 }
 0x66e   : > { %v5499_v5 = vadd.bf16 %v11394_v57, %v5427_v63  ;;  %v5325_v41 = vpop.f32.mrb[236].mxu0  ;;  %v12462_v63 = vld [vmem:[#allocation36_spill] sm:$0xff] }
 0x66f   : > { %v5326_v10 = vadd.f32 %v5325_v41, %v4841_v45  ;;  %v5327_v32 = vpop.f32.mrb[237].mxu0  ;;  %v5562_v28 = vmax.bf16 %v12410_v39, %v5498_v24  ;;  %v4850_v24 = vunpack.c.l.bf16 %v12462_v63 }
 0x670   : > { %v5328_v3 = vadd.f32 %v5327_v32, %v4842_v12  ;;  %v5329_v4 = vpop.f32.mrb[238].mxu0  ;;  %v5563_v59 = vmax.bf16 %v12410_v39, %v5499_v5  ;;  %v4851_v12 = vunpack.c.h.bf16 %v12461_v43 }
 0x671   : > { %v5330_v15 = vadd.f32 %v5329_v4, %v4843_v11  ;;  %v5331_v21 = vpop.f32.mrb[239].mxu0 }
 0x672   : > { %v5332_v56 = vadd.f32 %v5331_v21, %v4844_v51  ;;  %6059 = vmatprep.mubr.bf16.mxu1 %v5563_v59 }
 0x673   : > { %v5428_v49 = vpack.c.bf16 %v5330_v15, %v5326_v10  ;;  %6060 = vmatmul.mubr.bf16.gmra.mrb[232].mxu1 %v5562_v28 }
 0x674   : > { %v5429_v30 = vpack.c.bf16 %v5332_v56, %v5328_v3  ;;  %v4852_v3 = vunpack.c.h.bf16 %v12462_v63  ;;  %v12465_v63 = vld [vmem:[#allocation39_spill] sm:$0xff] }
 0x675   : > { %v5500_v46 = vadd.bf16 %v11390_v13, %v5428_v49 }
 0x676   : > { %v5501_v19 = vadd.bf16 %v11394_v57, %v5429_v30  ;;  %v5335_v37 = vpop.f32.mrb[240].mxu0  ;;  %v5801_v26 = vpop.f32.mrb[128].mxu1 }
 0x677   : > { %v5336_v62 = vadd.f32 %v5335_v37, %v4845_v8  ;;  %v5337_v27 = vpop.f32.mrb[241].mxu0  ;;  %v5803_v25 = vpop.f32.mrb[129].mxu1  ;;  %v5564_v33 = vmax.bf16 %v12410_v39, %v5500_v46 }
 0x678   : > { %v5338_v22 = vadd.f32 %v5337_v27, %v4846_v42  ;;  %v5339_v53 = vpop.f32.mrb[242].mxu0  ;;  %v5805_v34 = vpop.f32.mrb[130].mxu1  ;;  %v5565_v29 = vmax.bf16 %v12410_v39, %v5501_v19  ;;  %v12463_v19 = vld [vmem:[#allocation37_spill] sm:$0xff]  ;;  %v12464_v27 = vld [vmem:[#allocation38_spill] sm:$0xff] }
 0x679   : > { %v5340_v2 = vadd.f32 %v5339_v53, %v4847_v54  ;;  %v6120_v50 = vpack.c.bf16 %v5805_v34, %v5801_v26  ;;  %v5341_v7 = vpop.f32.mrb[243].mxu0  ;;  %v5807_v48 = vpop.f32.mrb[131].mxu1  ;;  %v4853_v37 = vunpack.c.l.bf16 %v12463_v19  ;;  %v9343_v26 = vld [vmem:[%s12329_s4 + $0x50] sm:$0xff]  }
 0x67a   : > { %v5342_v6 = vadd.f32 %v5341_v7, %v4848_v60  ;;  %v6121_v9 = vpack.c.bf16 %v5807_v48, %v5803_v25  ;;  %6069 = vmatprep.mubr.bf16.mxu1 %v5565_v29  ;;  %v4854_v25 = vunpack.c.l.bf16 %v12464_v27  ;;  %v4855_v29 = vunpack.c.h.bf16 %v12463_v19  ;;  %7215 = vmatpush1.bf16.msra.mxu1 %v9343_v26 }
 0x67b   : > { %v5430_v55 = vpack.c.bf16 %v5340_v2, %v5336_v62  ;;  %v6192_v38 = vadd.bf16 %v11677_v17, %v6120_v50  ;;  %6070 = vmatmul.mubr.bf16.gmra.mrb[236].mxu1 %v5564_v33  ;;  %v4856_v7 = vunpack.c.h.bf16 %v12464_v27  ;;  %7216 = vmatprep.subr.bf16.mxu1 %v12410_v39 }
 0x67c   : > { %v5431_v35 = vpack.c.bf16 %v5342_v6, %v5338_v22  ;;  %v6193_v58 = vadd.bf16 %v11682_v23, %v6121_v9 }
 0x67d   : > { %v5502_v1 = vadd.bf16 %v11390_v13, %v5430_v55  ;;  %v6256_v45 = vmax.bf16 %v12410_v39, %v6192_v38 }
 0x67e   : > { %v5503_v36 = vadd.bf16 %v11394_v57, %v5431_v35  ;;  %v5345_v20 = vpop.f32.mrb[244].mxu0  ;;  %v5811_v31 = vpop.f32.mrb[132].mxu1  ;;  %v6257_v52 = vmax.bf16 %v12410_v39, %v6193_v58 }
 0x67f   : > { %v5346_v5 = vadd.f32 %v5345_v20, %v4849_v0  ;;  %v5347_v41 = vpop.f32.mrb[245].mxu0  ;;  %v5813_v61 = vpop.f32.mrb[133].mxu1  ;;  %v5566_v51 = vmax.bf16 %v12410_v39, %v5502_v1 }
 0x680   : > { %v5348_v10 = vadd.f32 %v5347_v41, %v4850_v24  ;;  %v5349_v32 = vpop.f32.mrb[246].mxu0  ;;  %v5815_v11 = vpop.f32.mrb[134].mxu1  ;;  %6545 = vmatprep.mubr.bf16.mxu0 %v6257_v52  ;;  %v5567_v4 = vmax.bf16 %v12410_v39, %v5503_v36  ;;  %v4857_v24 = vunpack.c.l.bf16 %v12465_v63  ;;  %v12466_v41 = vld [vmem:[#allocation40_spill] sm:$0xff] }
 0x681   : > { %v5350_v59 = vadd.f32 %v5349_v32, %v4851_v12  ;;  %v6122_v28 = vpack.c.bf16 %v5815_v11, %v5811_v31  ;;  %v5351_v15 = vpop.f32.mrb[247].mxu0  ;;  %v5817_v21 = vpop.f32.mrb[135].mxu1  ;;  %6546 = vmatmul.mubr.bf16.vlgmr.msra.gmra.mrb[0].mxu0 %v6256_v45 }
 0x682   : > { %v5352_v56 = vadd.f32 %v5351_v15, %v4852_v3  ;;  %v6123_v49 = vpack.c.bf16 %v5817_v21, %v5813_v61  ;;  %6079 = vmatprep.mubr.bf16.mxu1 %v5567_v4  ;;  %v4858_v61 = vunpack.c.l.bf16 %v12466_v41  ;;  %v4859_v4 = vunpack.c.h.bf16 %v12465_v63 }
 0x683   : > { %v5432_v30 = vpack.c.bf16 %v5350_v59, %v5346_v5  ;;  %v6194_v46 = vadd.bf16 %v11677_v17, %v6122_v28  ;;  %6080 = vmatmul.mubr.bf16.gmra.mrb[240].mxu1 %v5566_v51  ;;  %v4860_v15 = vunpack.c.h.bf16 %v12466_v41 }
 0x684   : > { %v5433_v18 = vpack.c.bf16 %v5352_v56, %v5348_v10  ;;  %v6195_v8 = vadd.bf16 %v11682_v23, %v6123_v49 }
 0x685   : > { %v5504_v40 = vadd.bf16 %v11390_v13, %v5432_v30  ;;  %v6258_v22 = vmax.bf16 %v12410_v39, %v6194_v46 }
 0x686   : > { %v5505_v47 = vadd.bf16 %v11394_v57, %v5433_v18  ;;  %v5355_v42 = vpop.f32.mrb[248].mxu0  ;;  %v5821_v62 = vpop.f32.mrb[136].mxu1  ;;  %v6259_v54 = vmax.bf16 %v12410_v39, %v6195_v8 }
 0x687   : > { %v5356_v53 = vadd.f32 %v5355_v42, %v4853_v37  ;;  %v5357_v34 = vpop.f32.mrb[249].mxu0  ;;  %v5823_v60 = vpop.f32.mrb[137].mxu1  ;;  %v5568_v6 = vmax.bf16 %v12410_v39, %v5504_v40 }
 0x688   : > { %v5358_v33 = vadd.f32 %v5357_v34, %v4854_v25  ;;  %v5359_v2 = vpop.f32.mrb[250].mxu0  ;;  %v5825_v50 = vpop.f32.mrb[138].mxu1  ;;  %6555 = vmatprep.mubr.bf16.mxu0 %v6259_v54  ;;  %v5569_v48 = vmax.bf16 %v12410_v39, %v5505_v47 }
 0x689   : > { %v5360_v9 = vadd.f32 %v5359_v2, %v4855_v29  ;;  %v6124_v55 = vpack.c.bf16 %v5825_v50, %v5821_v62  ;;  %v5361_v38 = vpop.f32.mrb[251].mxu0  ;;  %v5827_v35 = vpop.f32.mrb[139].mxu1  ;;  %6556 = vmatmul.mubr.bf16.gmra.mrb[4].mxu0 %v6258_v22  ;;  %v9344_v62 = vld [vmem:[%s12329_s4 + $0x58] sm:$0xff]  }
 0x68a   : > { %v5362_v58 = vadd.f32 %v5361_v38, %v4856_v7  ;;  %v6125_v1 = vpack.c.bf16 %v5827_v35, %v5823_v60  ;;  %6089 = vmatprep.mubr.bf16.mxu1 %v5569_v48  ;;  %7217 = vmatpush1.bf16.msra.mxu1 %v9344_v62 }
 0x68b   : > { %v5434_v43 = vpack.c.bf16 %v5360_v9, %v5356_v53  ;;  %v6196_v0 = vadd.bf16 %v11677_v17, %v6124_v55  ;;  %6090 = vmatmul.mubr.bf16.gmra.mrb[244].mxu1 %v5568_v6  ;;  %7218 = vmatprep.subr.bf16.mxu1 %v12410_v39 }
 0x68c   : > { %v5435_v36 = vpack.c.bf16 %v5362_v58, %v5358_v33  ;;  %v6197_v20 = vadd.bf16 %v11682_v23, %v6125_v1 }
 0x68d   : > { %v5506_v31 = vadd.bf16 %v11390_v13, %v5434_v43  ;;  %v6260_v10 = vmax.bf16 %v12410_v39, %v6196_v0  ;;  %v9345_v0 = vld [vmem:[%s12329_s4 + $0x60] sm:$0xff]  }
 0x68e   : > { %v5507_v52 = vadd.bf16 %v11394_v57, %v5435_v36  ;;  %v5365_v45 = vpop.f32.mrb[252].mxu0  ;;  %v5831_v5 = vpop.f32.mrb[140].mxu1  ;;  %v6261_v12 = vmax.bf16 %v12410_v39, %v6197_v20  ;;  %7219 = vmatpush1.bf16.msra.mxu1 %v9345_v0 }
 0x68f   : > { %v5366_v32 = vadd.f32 %v5365_v45, %v4857_v24  ;;  %v5367_v11 = vpop.f32.mrb[253].mxu0  ;;  %v5833_v3 = vpop.f32.mrb[141].mxu1  ;;  %v5570_v56 = vmax.bf16 %v12410_v39, %v5506_v31  ;;  %7220 = vmatprep.subr.bf16.mxu1 %v12410_v39 }
 0x690   : > { %v5368_v51 = vadd.f32 %v5367_v11, %v4858_v61  ;;  %v5369_v59 = vpop.f32.mrb[254].mxu0  ;;  %v5835_v28 = vpop.f32.mrb[142].mxu1  ;;  %6565 = vmatprep.mubr.bf16.mxu0 %v6261_v12  ;;  %v5571_v21 = vmax.bf16 %v12410_v39, %v5507_v52 }
 0x691   : > { %v5370_v49 = vadd.f32 %v5369_v59, %v4859_v4  ;;  %v6126_v30 = vpack.c.bf16 %v5835_v28, %v5831_v5  ;;  %v5371_v46 = vpop.f32.mrb[255].mxu0  ;;  %v5837_v18 = vpop.f32.mrb[143].mxu1  ;;  %6566 = vmatmul.mubr.bf16.gmra.mrb[8].mxu0 %v6260_v10 }
 0x692   : > { %v5372_v8 = vadd.f32 %v5371_v46, %v4860_v15  ;;  %v6127_v40 = vpack.c.bf16 %v5837_v18, %v5833_v3  ;;  %6099 = vmatprep.mubr.bf16.mxu1 %v5571_v21  ;;  %v9346_v21 = vld [vmem:[%s12329_s4 + $0x68] sm:$0xff]  }
 0x693   : > { %v5436_v19 = vpack.c.bf16 %v5370_v49, %v5366_v32  ;;  %v6198_v37 = vadd.bf16 %v11677_v17, %v6126_v30  ;;  %6100 = vmatmul.mubr.bf16.gmra.mrb[248].mxu1 %v5570_v56 }
 0x694   : > { %v5437_v26 = vpack.c.bf16 %v5372_v8, %v5368_v51  ;;  %v6199_v47 = vadd.bf16 %v11682_v23, %v6127_v40  ;;  %7221 = vmatpush1.bf16.msra.mxu1 %v9346_v21 }
 0x695   : > { %v5508_v42 = vadd.bf16 %v11390_v13, %v5436_v19  ;;  %v6262_v22 = vmax.bf16 %v12410_v39, %v6198_v37  ;;  %7222 = vmatprep.subr.bf16.mxu1 %v12410_v39 }
 0x696   : > { %v5509_v27 = vadd.bf16 %v11394_v57, %v5437_v26  ;;  %v5841_v25 = vpop.f32.mrb[144].mxu1  ;;  %v6263_v54 = vmax.bf16 %v12410_v39, %v6199_v47 }
 0x697   : > { %v5843_v53 = vpop.f32.mrb[145].mxu1  ;;  %v5572_v13 = vmax.bf16 %v12410_v39, %v5508_v42 }
 0x698   : > { %v5845_v34 = vpop.f32.mrb[146].mxu1  ;;  %6575 = vmatprep.mubr.bf16.mxu0 %v6263_v54  ;;  %v5573_v60 = vmax.bf16 %v12410_v39, %v5509_v27 }
 0x699   : > { %v6128_v29 = vpack.c.bf16 %v5845_v34, %v5841_v25  ;;  %v5847_v33 = vpop.f32.mrb[147].mxu1  ;;  %6576 = vmatmul.mubr.bf16.gmra.mrb[12].mxu0 %v6262_v22 }
 0x69a   : > { %v6129_v2 = vpack.c.bf16 %v5847_v33, %v5843_v53  ;;  %6109 = vmatprep.mubr.bf16.mxu1 %v5573_v60 }
 0x69b   : > { %v6200_v57 = vadd.bf16 %v11677_v17, %v6128_v29  ;;  %6110 = vmatmul.mubr.bf16.gmra.mrb[252].mxu1 %v5572_v13  ;;  %v9347_v13 = vld [vmem:[%s12329_s4 + $0x70] sm:$0xff]  }
 0x69c   : > { %v6201_v50 = vadd.bf16 %v11682_v23, %v6129_v2  ;;  %7223 = vmatpush1.bf16.msra.mxu1 %v9347_v13 }
 0x69d   : > { %v6264_v6 = vmax.bf16 %v12410_v39, %v6200_v57  ;;  %7224 = vmatprep.subr.bf16.mxu1 %v12410_v39 }
 0x69e   : > { %v5851_v7 = vpop.f32.mrb[148].mxu1  ;;  %v6265_v48 = vmax.bf16 %v12410_v39, %v6201_v50 }
 0x69f   : > { %v5853_v9 = vpop.f32.mrb[149].mxu1 }
 0x6a0   : > { %v5855_v55 = vpop.f32.mrb[150].mxu1  ;;  %6585 = vmatprep.mubr.bf16.mxu0 %v6265_v48 }
 0x6a1   : > { %v6130_v38 = vpack.c.bf16 %v5855_v55, %v5851_v7  ;;  %v5857_v35 = vpop.f32.mrb[151].mxu1  ;;  %6586 = vmatmul.mubr.bf16.gmra.mrb[16].mxu0 %v6264_v6 }
 0x6a2   : > { %v6131_v58 = vpack.c.bf16 %v5857_v35, %v5853_v9 }
 0x6a3   : > { %v6202_v1 = vadd.bf16 %v11677_v17, %v6130_v38 }
 0x6a4   : > { %v6203_v43 = vadd.bf16 %v11682_v23, %v6131_v58 }
 0x6a5   : > { %v6266_v31 = vmax.bf16 %v12410_v39, %v6202_v1 }
 0x6a6   : > { %v5861_v36 = vpop.f32.mrb[152].mxu1  ;;  %v6267_v20 = vmax.bf16 %v12410_v39, %v6203_v43 }
 0x6a7   : > { %v5863_v63 = vpop.f32.mrb[153].mxu1 }
 0x6a8   : > { %v5865_v24 = vpop.f32.mrb[154].mxu1  ;;  %6595 = vmatprep.mubr.bf16.mxu0 %v6267_v20 }
 0x6a9   : > { %v6132_v52 = vpack.c.bf16 %v5865_v24, %v5861_v36  ;;  %v5867_v45 = vpop.f32.mrb[155].mxu1  ;;  %6596 = vmatmul.mubr.bf16.gmra.mrb[20].mxu0 %v6266_v31  ;;  %v9348_v24 = vld [vmem:[%s12329_s4 + $0x78] sm:$0xff]  }
 0x6aa   : > { %v6133_v5 = vpack.c.bf16 %v5867_v45, %v5863_v63  ;;  %7225 = vmatpush1.bf16.msra.mxu1 %v9348_v24 }
 0x6ab   : > { %v6204_v41 = vadd.bf16 %v11677_v17, %v6132_v52 }
 0x6ac   : > { %v6205_v61 = vadd.bf16 %v11682_v23, %v6133_v5 }
 0x6ad   : > { %v6268_v32 = vmax.bf16 %v12410_v39, %v6204_v41 }
 0x6ae   : > { %v5871_v12 = vpop.f32.mrb[156].mxu1  ;;  %v6269_v10 = vmax.bf16 %v12410_v39, %v6205_v61 }
 0x6af   : > { %v5873_v11 = vpop.f32.mrb[157].mxu1 }
 0x6b0   : > { %v5875_v3 = vpop.f32.mrb[158].mxu1  ;;  %6605 = vmatprep.mubr.bf16.mxu0 %v6269_v10 }
 0x6b1   : > { %v6134_v4 = vpack.c.bf16 %v5875_v3, %v5871_v12  ;;  %v5877_v51 = vpop.f32.mrb[159].mxu1  ;;  %6606 = vmatmul.mubr.bf16.gmra.mrb[24].mxu0 %v6268_v32 }
 0x6b2   : > { %v6135_v59 = vpack.c.bf16 %v5877_v51, %v5873_v11 }
 0x6b3   : > { %v6206_v28 = vadd.bf16 %v11677_v17, %v6134_v4 }
 0x6b4   : > { %v6207_v15 = vadd.bf16 %v11682_v23, %v6135_v59 }
 0x6b5   : > { %v6270_v30 = vmax.bf16 %v12410_v39, %v6206_v28 }
 0x6b6   : > { %v5881_v56 = vpop.f32.mrb[160].mxu1  ;;  %v6271_v49 = vmax.bf16 %v12410_v39, %v6207_v15 }
 0x6b7   : > { %v5883_v46 = vpop.f32.mrb[161].mxu1 }
 0x6b8   : > { %v5885_v18 = vpop.f32.mrb[162].mxu1  ;;  %6615 = vmatprep.mubr.bf16.mxu0 %v6271_v49 }
 0x6b9   : > { %v6136_v8 = vpack.c.bf16 %v5885_v18, %v5881_v56  ;;  %v5887_v40 = vpop.f32.mrb[163].mxu1  ;;  %6616 = vmatmul.mubr.bf16.gmra.mrb[28].mxu0 %v6270_v30 }
 0x6ba   : > { %v6137_v19 = vpack.c.bf16 %v5887_v40, %v5883_v46 }
 0x6bb   : > { %v6208_v37 = vadd.bf16 %v11677_v17, %v6136_v8 }
 0x6bc   : > { %v6209_v26 = vadd.bf16 %v11682_v23, %v6137_v19 }
 0x6bd   : > { %v6272_v62 = vmax.bf16 %v12410_v39, %v6208_v37 }
 0x6be   : > { %v5891_v47 = vpop.f32.mrb[164].mxu1  ;;  %v6273_v42 = vmax.bf16 %v12410_v39, %v6209_v26 }
 0x6bf   : > { %v5893_v27 = vpop.f32.mrb[165].mxu1 }
 0x6c0   : > { %v5895_v25 = vpop.f32.mrb[166].mxu1  ;;  %6625 = vmatprep.mubr.bf16.mxu0 %v6273_v42 }
 0x6c1   : > { %v6138_v54 = vpack.c.bf16 %v5895_v25, %v5891_v47  ;;  %v5897_v22 = vpop.f32.mrb[167].mxu1  ;;  %6626 = vmatmul.mubr.bf16.gmra.mrb[32].mxu0 %v6272_v62 }
 0x6c2   : > { %v6139_v53 = vpack.c.bf16 %v5897_v22, %v5893_v27 }
 0x6c3   : > { %v6210_v34 = vadd.bf16 %v11677_v17, %v6138_v54 }
 0x6c4   : > { %v6211_v60 = vadd.bf16 %v11682_v23, %v6139_v53 }
 0x6c5   : > { %v6274_v2 = vmax.bf16 %v12410_v39, %v6210_v34 }
 0x6c6   : > { %v5901_v29 = vpop.f32.mrb[168].mxu1  ;;  %v6275_v33 = vmax.bf16 %v12410_v39, %v6211_v60 }
 0x6c7   : > { %v5903_v57 = vpop.f32.mrb[169].mxu1 }
 0x6c8   : > { %v5905_v50 = vpop.f32.mrb[170].mxu1  ;;  %6635 = vmatprep.mubr.bf16.mxu0 %v6275_v33 }
 0x6c9   : > { %v6140_v7 = vpack.c.bf16 %v5905_v50, %v5901_v29  ;;  %v5907_v48 = vpop.f32.mrb[171].mxu1  ;;  %6636 = vmatmul.mubr.bf16.gmra.mrb[36].mxu0 %v6274_v2 }
 0x6ca   : > { %v6141_v6 = vpack.c.bf16 %v5907_v48, %v5903_v57 }
 0x6cb   : > { %v6212_v9 = vadd.bf16 %v11677_v17, %v6140_v7 }
 0x6cc   : > { %v6213_v55 = vadd.bf16 %v11682_v23, %v6141_v6 }
 0x6cd   : > { %v6276_v58 = vmax.bf16 %v12410_v39, %v6212_v9 }
 0x6ce   : > { %v5911_v38 = vpop.f32.mrb[172].mxu1  ;;  %v6277_v35 = vmax.bf16 %v12410_v39, %v6213_v55 }
 0x6cf   : > { %v5913_v1 = vpop.f32.mrb[173].mxu1 }
 0x6d0   : > { %v5915_v43 = vpop.f32.mrb[174].mxu1  ;;  %6645 = vmatprep.mubr.bf16.mxu0 %v6277_v35 }
 0x6d1   : > { %v6142_v0 = vpack.c.bf16 %v5915_v43, %v5911_v38  ;;  %v5917_v36 = vpop.f32.mrb[175].mxu1  ;;  %6646 = vmatmul.mubr.bf16.gmra.mrb[40].mxu0 %v6276_v58 }
 0x6d2   : > { %v6143_v20 = vpack.c.bf16 %v5917_v36, %v5913_v1 }
 0x6d3   : > { %v6214_v31 = vadd.bf16 %v11677_v17, %v6142_v0 }
 0x6d4   : > { %v6215_v63 = vadd.bf16 %v11682_v23, %v6143_v20 }
 0x6d5   : > { %v6278_v5 = vmax.bf16 %v12410_v39, %v6214_v31 }
 0x6d6   : > { %v5921_v52 = vpop.f32.mrb[176].mxu1  ;;  %v6279_v45 = vmax.bf16 %v12410_v39, %v6215_v63 }
 0x6d7   : > { %v5923_v41 = vpop.f32.mrb[177].mxu1 }
 0x6d8   : > { %v5925_v61 = vpop.f32.mrb[178].mxu1  ;;  %6655 = vmatprep.mubr.bf16.mxu0 %v6279_v45 }
 0x6d9   : > { %v6144_v12 = vpack.c.bf16 %v5925_v61, %v5921_v52  ;;  %v5927_v10 = vpop.f32.mrb[179].mxu1  ;;  %6656 = vmatmul.mubr.bf16.gmra.mrb[44].mxu0 %v6278_v5 }
 0x6da   : > { %v6145_v32 = vpack.c.bf16 %v5927_v10, %v5923_v41 }
 0x6db   : > { %v6216_v11 = vadd.bf16 %v11677_v17, %v6144_v12 }
 0x6dc   : > { %v6217_v3 = vadd.bf16 %v11682_v23, %v6145_v32 }
 0x6dd   : > { %v6280_v59 = vmax.bf16 %v12410_v39, %v6216_v11 }
 0x6de   : > { %v5931_v4 = vpop.f32.mrb[180].mxu1  ;;  %v6281_v51 = vmax.bf16 %v12410_v39, %v6217_v3 }
 0x6df   : > { %v5933_v28 = vpop.f32.mrb[181].mxu1 }
 0x6e0   : > { %v5935_v15 = vpop.f32.mrb[182].mxu1  ;;  %6665 = vmatprep.mubr.bf16.mxu0 %v6281_v51 }
 0x6e1   : > { %v6146_v21 = vpack.c.bf16 %v5935_v15, %v5931_v4  ;;  %v5937_v56 = vpop.f32.mrb[183].mxu1  ;;  %6666 = vmatmul.mubr.bf16.gmra.mrb[48].mxu0 %v6280_v59 }
 0x6e2   : > { %v6147_v49 = vpack.c.bf16 %v5937_v56, %v5933_v28 }
 0x6e3   : > { %v6218_v30 = vadd.bf16 %v11677_v17, %v6146_v21 }
 0x6e4   : > { %v6219_v46 = vadd.bf16 %v11682_v23, %v6147_v49 }
 0x6e5   : > { %v6282_v40 = vmax.bf16 %v12410_v39, %v6218_v30 }
 0x6e6   : > { %v5941_v18 = vpop.f32.mrb[184].mxu1  ;;  %v6283_v8 = vmax.bf16 %v12410_v39, %v6219_v46 }
 0x6e7   : > { %v5943_v19 = vpop.f32.mrb[185].mxu1 }
 0x6e8   : > { %v5945_v37 = vpop.f32.mrb[186].mxu1  ;;  %6675 = vmatprep.mubr.bf16.mxu0 %v6283_v8 }
 0x6e9   : > { %v6148_v26 = vpack.c.bf16 %v5945_v37, %v5941_v18  ;;  %v5947_v47 = vpop.f32.mrb[187].mxu1  ;;  %6676 = vmatmul.mubr.bf16.gmra.mrb[52].mxu0 %v6282_v40 }
 0x6ea   : > { %v6149_v42 = vpack.c.bf16 %v5947_v47, %v5943_v19 }
 0x6eb   : > { %v6220_v62 = vadd.bf16 %v11677_v17, %v6148_v26 }
 0x6ec   : > { %v6221_v27 = vadd.bf16 %v11682_v23, %v6149_v42 }
 0x6ed   : > { %v6284_v22 = vmax.bf16 %v12410_v39, %v6220_v62 }
 0x6ee   : > { %v5951_v25 = vpop.f32.mrb[188].mxu1  ;;  %v6285_v54 = vmax.bf16 %v12410_v39, %v6221_v27 }
 0x6ef   : > { %v5953_v53 = vpop.f32.mrb[189].mxu1 }
 0x6f0   : > { %v5955_v34 = vpop.f32.mrb[190].mxu1  ;;  %6685 = vmatprep.mubr.bf16.mxu0 %v6285_v54 }
 0x6f1   : > { %v6150_v60 = vpack.c.bf16 %v5955_v34, %v5951_v25  ;;  %v5957_v13 = vpop.f32.mrb[191].mxu1  ;;  %6686 = vmatmul.mubr.bf16.gmra.mrb[56].mxu0 %v6284_v22 }
 0x6f2   : > { %v6151_v29 = vpack.c.bf16 %v5957_v13, %v5953_v53 }
 0x6f3   : > { %v6222_v33 = vadd.bf16 %v11677_v17, %v6150_v60 }
 0x6f4   : > { %v6223_v2 = vadd.bf16 %v11682_v23, %v6151_v29 }
 0x6f5   : > { %v6286_v7 = vmax.bf16 %v12410_v39, %v6222_v33 }
 0x6f6   : > { %v5961_v57 = vpop.f32.mrb[192].mxu1  ;;  %v6287_v50 = vmax.bf16 %v12410_v39, %v6223_v2 }
 0x6f7   : > { %v5963_v48 = vpop.f32.mrb[193].mxu1 }
 0x6f8   : > { %v5965_v6 = vpop.f32.mrb[194].mxu1  ;;  %6695 = vmatprep.mubr.bf16.mxu0 %v6287_v50 }
 0x6f9   : > { %v6152_v9 = vpack.c.bf16 %v5965_v6, %v5961_v57  ;;  %v5967_v55 = vpop.f32.mrb[195].mxu1  ;;  %6696 = vmatmul.mubr.bf16.gmra.mrb[60].mxu0 %v6286_v7 }
 0x6fa   : > { %v6153_v38 = vpack.c.bf16 %v5967_v55, %v5963_v48 }
 0x6fb   : > { %v6224_v35 = vadd.bf16 %v11677_v17, %v6152_v9 }
 0x6fc   : > { %v6225_v58 = vadd.bf16 %v11682_v23, %v6153_v38 }
 0x6fd   : > { %v6288_v0 = vmax.bf16 %v12410_v39, %v6224_v35 }
 0x6fe   : > { %v5971_v1 = vpop.f32.mrb[196].mxu1  ;;  %v6289_v43 = vmax.bf16 %v12410_v39, %v6225_v58 }
 0x6ff   : > { %v5973_v36 = vpop.f32.mrb[197].mxu1 }
 0x700   : > { %v5975_v20 = vpop.f32.mrb[198].mxu1  ;;  %6705 = vmatprep.mubr.bf16.mxu0 %v6289_v43 }
 0x701   : > { %v6154_v31 = vpack.c.bf16 %v5975_v20, %v5971_v1  ;;  %v5977_v63 = vpop.f32.mrb[199].mxu1  ;;  %6706 = vmatmul.mubr.bf16.gmra.mrb[64].mxu0 %v6288_v0 }
 0x702   : > { %v6155_v24 = vpack.c.bf16 %v5977_v63, %v5973_v36 }
 0x703   : > { %v6226_v52 = vadd.bf16 %v11677_v17, %v6154_v31 }
 0x704   : > { %v6227_v45 = vadd.bf16 %v11682_v23, %v6155_v24 }
 0x705   : > { %v6290_v61 = vmax.bf16 %v12410_v39, %v6226_v52 }
 0x706   : > { %v5981_v5 = vpop.f32.mrb[200].mxu1  ;;  %v6291_v41 = vmax.bf16 %v12410_v39, %v6227_v45 }
 0x707   : > { %v5983_v12 = vpop.f32.mrb[201].mxu1 }
 0x708   : > { %v5985_v10 = vpop.f32.mrb[202].mxu1  ;;  %6715 = vmatprep.mubr.bf16.mxu0 %v6291_v41 }
 0x709   : > { %v6156_v32 = vpack.c.bf16 %v5985_v10, %v5981_v5  ;;  %v5987_v11 = vpop.f32.mrb[203].mxu1  ;;  %6716 = vmatmul.mubr.bf16.gmra.mrb[68].mxu0 %v6290_v61 }
 0x70a   : > { %v6157_v3 = vpack.c.bf16 %v5987_v11, %v5983_v12 }
 0x70b   : > { %v6228_v4 = vadd.bf16 %v11677_v17, %v6156_v32 }
 0x70c   : > { %v6229_v51 = vadd.bf16 %v11682_v23, %v6157_v3 }
 0x70d   : > { %v6292_v15 = vmax.bf16 %v12410_v39, %v6228_v4 }
 0x70e   : > { %v5991_v59 = vpop.f32.mrb[204].mxu1  ;;  %v6293_v28 = vmax.bf16 %v12410_v39, %v6229_v51 }
 0x70f   : > { %v5993_v21 = vpop.f32.mrb[205].mxu1 }
 0x710   : > { %v5995_v56 = vpop.f32.mrb[206].mxu1  ;;  %6725 = vmatprep.mubr.bf16.mxu0 %v6293_v28 }
 0x711   : > { %v6158_v49 = vpack.c.bf16 %v5995_v56, %v5991_v59  ;;  %v5997_v30 = vpop.f32.mrb[207].mxu1  ;;  %6726 = vmatmul.mubr.bf16.gmra.mrb[72].mxu0 %v6292_v15 }
 0x712   : > { %v6159_v46 = vpack.c.bf16 %v5997_v30, %v5993_v21 }
 0x713   : > { %v6230_v18 = vadd.bf16 %v11677_v17, %v6158_v49 }
 0x714   : > { %v6231_v8 = vadd.bf16 %v11682_v23, %v6159_v46 }
 0x715   : > { %v6294_v37 = vmax.bf16 %v12410_v39, %v6230_v18 }
 0x716   : > { %v6001_v40 = vpop.f32.mrb[208].mxu1  ;;  %v6295_v19 = vmax.bf16 %v12410_v39, %v6231_v8 }
 0x717   : > { %v6003_v26 = vpop.f32.mrb[209].mxu1 }
 0x718   : > { %v6005_v47 = vpop.f32.mrb[210].mxu1  ;;  %6735 = vmatprep.mubr.bf16.mxu0 %v6295_v19 }
 0x719   : > { %v6160_v42 = vpack.c.bf16 %v6005_v47, %v6001_v40  ;;  %v6007_v62 = vpop.f32.mrb[211].mxu1  ;;  %6736 = vmatmul.mubr.bf16.gmra.mrb[76].mxu0 %v6294_v37 }
 0x71a   : > { %v6161_v27 = vpack.c.bf16 %v6007_v62, %v6003_v26 }
 0x71b   : > { %v6232_v25 = vadd.bf16 %v11677_v17, %v6160_v42 }
 0x71c   : > { %v6233_v54 = vadd.bf16 %v11682_v23, %v6161_v27 }
 0x71d   : > { %v6296_v34 = vmax.bf16 %v12410_v39, %v6232_v25 }
 0x71e   : > { %v6011_v22 = vpop.f32.mrb[212].mxu1  ;;  %v6297_v53 = vmax.bf16 %v12410_v39, %v6233_v54 }
 0x71f   : > { %v6013_v60 = vpop.f32.mrb[213].mxu1 }
 0x720   : > { %v6015_v13 = vpop.f32.mrb[214].mxu1  ;;  %6745 = vmatprep.mubr.bf16.mxu0 %v6297_v53 }
 0x721   : > { %v6162_v29 = vpack.c.bf16 %v6015_v13, %v6011_v22  ;;  %v6017_v33 = vpop.f32.mrb[215].mxu1  ;;  %6746 = vmatmul.mubr.bf16.gmra.mrb[80].mxu0 %v6296_v34 }
 0x722   : > { %v6163_v2 = vpack.c.bf16 %v6017_v33, %v6013_v60 }
 0x723   : > { %v6234_v57 = vadd.bf16 %v11677_v17, %v6162_v29 }
 0x724   : > { %v6235_v50 = vadd.bf16 %v11682_v23, %v6163_v2 }
 0x725   : > { %v6298_v6 = vmax.bf16 %v12410_v39, %v6234_v57 }
 0x726   : > { %v6021_v7 = vpop.f32.mrb[216].mxu1  ;;  %v6299_v48 = vmax.bf16 %v12410_v39, %v6235_v50 }
 0x727   : > { %v6023_v9 = vpop.f32.mrb[217].mxu1 }
 0x728   : > { %v6025_v55 = vpop.f32.mrb[218].mxu1  ;;  %6755 = vmatprep.mubr.bf16.mxu0 %v6299_v48 }
 0x729   : > { %v6164_v38 = vpack.c.bf16 %v6025_v55, %v6021_v7  ;;  %v6027_v35 = vpop.f32.mrb[219].mxu1  ;;  %6756 = vmatmul.mubr.bf16.gmra.mrb[84].mxu0 %v6298_v6  ;;  %v11850_v55 = vrot.slane %v10752_v14, %v11665_v16 }
 0x72a   : > { %v6165_v58 = vpack.c.bf16 %v6027_v35, %v6023_v9 }
 0x72b   : > { %v6236_v1 = vadd.bf16 %v11677_v17, %v6164_v38 }
 0x72c   : > { %v6237_v43 = vadd.bf16 %v11682_v23, %v6165_v58  ;;  %v11854_v58 = vrot.slane %v10754_v44, %v11665_v16 }
 0x72d   : > { %v6300_v20 = vmax.bf16 %v12410_v39, %v6236_v1 }
 0x72e   : > { %v6031_v0 = vpop.f32.mrb[220].mxu1  ;;  %v6301_v36 = vmax.bf16 %v12410_v39, %v6237_v43 }
 0x72f   : > { %v6033_v31 = vpop.f32.mrb[221].mxu1 }
 0x730   : > { %v6035_v63 = vpop.f32.mrb[222].mxu1  ;;  %6765 = vmatprep.mubr.bf16.mxu0 %v6301_v36 }
 0x731   : > { %v6166_v24 = vpack.c.bf16 %v6035_v63, %v6031_v0  ;;  %v6037_v52 = vpop.f32.mrb[223].mxu1  ;;  %6766 = vmatmul.mubr.bf16.gmra.mrb[88].mxu0 %v6300_v20 }
 0x732   : > { %v6167_v45 = vpack.c.bf16 %v6037_v52, %v6033_v31 }
 0x733   : > { %v6238_v5 = vadd.bf16 %v11677_v17, %v6166_v24 }
 0x734   : > { %v6239_v41 = vadd.bf16 %v11682_v23, %v6167_v45 }
 0x735   : > { %v6302_v10 = vmax.bf16 %v12410_v39, %v6238_v5 }
 0x736   : > { %v6041_v61 = vpop.f32.mrb[224].mxu1  ;;  %v6303_v12 = vmax.bf16 %v12410_v39, %v6239_v41 }
 0x737   : > { %v6043_v32 = vpop.f32.mrb[225].mxu1 }
 0x738   : > { %v6045_v11 = vpop.f32.mrb[226].mxu1  ;;  %6775 = vmatprep.mubr.bf16.mxu0 %v6303_v12 }
 0x739   : > { %v6168_v3 = vpack.c.bf16 %v6045_v11, %v6041_v61  ;;  %v6047_v4 = vpop.f32.mrb[227].mxu1  ;;  %6776 = vmatmul.mubr.bf16.gmra.mrb[92].mxu0 %v6302_v10 }
 0x73a   : > { %v6169_v51 = vpack.c.bf16 %v6047_v4, %v6043_v32 }
 0x73b   : > { %v6240_v59 = vadd.bf16 %v11677_v17, %v6168_v3 }
 0x73c   : > { %v6241_v28 = vadd.bf16 %v11682_v23, %v6169_v51 }
 0x73d   : > { %v6304_v56 = vmax.bf16 %v12410_v39, %v6240_v59 }
 0x73e   : > { %v6051_v15 = vpop.f32.mrb[228].mxu1  ;;  %v6305_v21 = vmax.bf16 %v12410_v39, %v6241_v28 }
 0x73f   : > { %v6053_v49 = vpop.f32.mrb[229].mxu1 }
 0x740   : > { %v6055_v30 = vpop.f32.mrb[230].mxu1  ;;  %6785 = vmatprep.mubr.bf16.mxu0 %v6305_v21 }
 0x741   : > { %v6170_v46 = vpack.c.bf16 %v6055_v30, %v6051_v15  ;;  %v6057_v18 = vpop.f32.mrb[231].mxu1  ;;  %6786 = vmatmul.mubr.bf16.gmra.mrb[96].mxu0 %v6304_v56 }
 0x742   : > { %v6171_v8 = vpack.c.bf16 %v6057_v18, %v6053_v49 }
 0x743   : > { %v6242_v40 = vadd.bf16 %v11677_v17, %v6170_v46 }
 0x744   : > { %v6243_v19 = vadd.bf16 %v11682_v23, %v6171_v8 }
 0x745   : > { %v6306_v47 = vmax.bf16 %v12410_v39, %v6242_v40 }
 0x746   : > { %v6061_v37 = vpop.f32.mrb[232].mxu1  ;;  %v6307_v26 = vmax.bf16 %v12410_v39, %v6243_v19 }
 0x747   : > { %v6063_v42 = vpop.f32.mrb[233].mxu1 }
 0x748   : > { %v6065_v62 = vpop.f32.mrb[234].mxu1  ;;  %6795 = vmatprep.mubr.bf16.mxu0 %v6307_v26 }
 0x749   : > { %v6172_v27 = vpack.c.bf16 %v6065_v62, %v6061_v37  ;;  %v6067_v25 = vpop.f32.mrb[235].mxu1  ;;  %6796 = vmatmul.mubr.bf16.gmra.mrb[100].mxu0 %v6306_v47 }
 0x74a   : > { %v6173_v54 = vpack.c.bf16 %v6067_v25, %v6063_v42 }
 0x74b   : > { %v6244_v22 = vadd.bf16 %v11677_v17, %v6172_v27 }
 0x74c   : > { %v6245_v53 = vadd.bf16 %v11682_v23, %v6173_v54 }
 0x74d   : > { %v6308_v13 = vmax.bf16 %v12410_v39, %v6244_v22 }
 0x74e   : > { %v6071_v34 = vpop.f32.mrb[236].mxu1  ;;  %v6309_v60 = vmax.bf16 %v12410_v39, %v6245_v53 }
 0x74f   : > { %v6073_v29 = vpop.f32.mrb[237].mxu1 }
 0x750   : > { %v6075_v33 = vpop.f32.mrb[238].mxu1  ;;  %6805 = vmatprep.mubr.bf16.mxu0 %v6309_v60 }
 0x751   : > { %v6174_v2 = vpack.c.bf16 %v6075_v33, %v6071_v34  ;;  %v6077_v57 = vpop.f32.mrb[239].mxu1  ;;  %6806 = vmatmul.mubr.bf16.gmra.mrb[104].mxu0 %v6308_v13 }
 0x752   : > { %v6175_v50 = vpack.c.bf16 %v6077_v57, %v6073_v29 }
 0x753   : > { %v6246_v7 = vadd.bf16 %v11677_v17, %v6174_v2 }
 0x754   : > { %v6247_v48 = vadd.bf16 %v11682_v23, %v6175_v50  ;;  %v6547_v6 = vpop.f32.mrb[0].mxu0 }
 0x755   : > { %v6549_v9 = vpop.f32.mrb[1].mxu0  ;;  %v6310_v43 = vmax.bf16 %v12410_v39, %v6246_v7 }
 0x756   : > { %v6081_v38 = vpop.f32.mrb[240].mxu1  ;;  %v6551_v35 = vpop.f32.mrb[2].mxu0  ;;  %v6311_v1 = vmax.bf16 %v12410_v39, %v6247_v48 }
 0x757   : > { %v6866_v0 = vpack.c.bf16 %v6551_v35, %v6547_v6  ;;  %v6083_v36 = vpop.f32.mrb[241].mxu1  ;;  %v6553_v20 = vpop.f32.mrb[3].mxu0 }
 0x758   : > { %v6867_v31 = vpack.c.bf16 %v6553_v20, %v6549_v9  ;;  %v6085_v63 = vpop.f32.mrb[242].mxu1  ;;  %6815 = vmatprep.mubr.bf16.mxu0 %v6311_v1 }
 0x759   : > { %v6938_v14 = vadd.bf16 %v11850_v55, %v6866_v0  ;;  %v6176_v24 = vpack.c.bf16 %v6085_v63, %v6081_v38  ;;  %v6087_v52 = vpop.f32.mrb[243].mxu1  ;;  %6816 = vmatmul.mubr.bf16.gmra.mrb[108].mxu0 %v6310_v43 }
 0x75a   : > { %v6939_v44 = vadd.bf16 %v11854_v58, %v6867_v31  ;;  %v6177_v16 = vpack.c.bf16 %v6087_v52, %v6083_v36 }
 0x75b   : > { %v7002_v45 = vmax.bf16 %v12410_v39, %v6938_v14  ;;  %v6248_v5 = vadd.bf16 %v11677_v17, %v6176_v24 }
 0x75c   : > { %v6249_v41 = vadd.bf16 %v11682_v23, %v6177_v16  ;;  %v6557_v61 = vpop.f32.mrb[4].mxu0  ;;  %v7003_v12 = vmax.bf16 %v12410_v39, %v6939_v44 }
 0x75d   : > { %v6559_v10 = vpop.f32.mrb[5].mxu0  ;;  %v6312_v59 = vmax.bf16 %v12410_v39, %v6248_v5 }
 0x75e   : > { %v6091_v32 = vpop.f32.mrb[244].mxu1  ;;  %v6561_v11 = vpop.f32.mrb[6].mxu0  ;;  %7226 = vmatprep.mubr.bf16.mxu1 %v7003_v12  ;;  %v8812_v3 = vcombine.low %v7002_v45, %v7003_v12  ;;  %v8813_v4 = vcombine.high %v7002_v45, %v7003_v12  ;;  %v6313_v51 = vmax.bf16 %v12410_v39, %v6249_v41 }
 0x75f   : > { %v6868_v28 = vpack.c.bf16 %v6561_v11, %v6557_v61  ;;  %v6093_v15 = vpop.f32.mrb[245].mxu1  ;;  %v6563_v21 = vpop.f32.mrb[7].mxu0  ;;  %7227 = vmatmul.mubr.bf16.vlgmr.msra.gmra.mrb[0].mxu1 %v7002_v45 }
 0x760   : > { %8259 = vst [vmem:[%s11869_s19] sm:$0xff] %v8812_v3  ;;  %8260 = vst [vmem:[%s11869_s19 + $0x8] sm:$0xff] %v8813_v4  ;;  %v6869_v56 = vpack.c.bf16 %v6563_v21, %v6559_v10  ;;  %v6095_v49 = vpop.f32.mrb[246].mxu1  ;;  %6825 = vmatprep.mubr.bf16.mxu0 %v6313_v51 }
 0x761   : > { %v6940_v30 = vadd.bf16 %v11850_v55, %v6868_v28  ;;  %v6178_v46 = vpack.c.bf16 %v6095_v49, %v6091_v32  ;;  %v6097_v18 = vpop.f32.mrb[247].mxu1  ;;  %6826 = vmatmul.mubr.bf16.gmra.mrb[112].mxu0 %v6312_v59 }
 0x762   : > { %v6941_v8 = vadd.bf16 %v11854_v58, %v6869_v56  ;;  %v6179_v40 = vpack.c.bf16 %v6097_v18, %v6093_v15 }
 0x763   : > { %v7004_v19 = vmax.bf16 %v12410_v39, %v6940_v30  ;;  %v6250_v37 = vadd.bf16 %v11677_v17, %v6178_v46 }
 0x764   : > { %v6251_v26 = vadd.bf16 %v11682_v23, %v6179_v40  ;;  %v6567_v47 = vpop.f32.mrb[8].mxu0  ;;  %v7005_v42 = vmax.bf16 %v12410_v39, %v6941_v8 }
 0x765   : > { %v6569_v62 = vpop.f32.mrb[9].mxu0  ;;  %v6314_v34 = vmax.bf16 %v12410_v39, %v6250_v37 }
 0x766   : > { %v6101_v27 = vpop.f32.mrb[248].mxu1  ;;  %v6571_v25 = vpop.f32.mrb[10].mxu0  ;;  %7234 = vmatprep.mubr.bf16.mxu1 %v7005_v42  ;;  %v8814_v54 = vcombine.low %v7004_v19, %v7005_v42  ;;  %v8815_v22 = vcombine.high %v7004_v19, %v7005_v42  ;;  %v6315_v53 = vmax.bf16 %v12410_v39, %v6251_v26 }
 0x767   : > { %v6870_v60 = vpack.c.bf16 %v6571_v25, %v6567_v47  ;;  %v6103_v13 = vpop.f32.mrb[249].mxu1  ;;  %v6573_v29 = vpop.f32.mrb[11].mxu0  ;;  %7235 = vmatmul.mubr.bf16.gmra.mrb[4].mxu1 %v7004_v19 }
 0x768   : > { %8261 = vst [vmem:[%s11869_s19 + $0x10] sm:$0xff] %v8814_v54  ;;  %8262 = vst [vmem:[%s11869_s19 + $0x18] sm:$0xff] %v8815_v22  ;;  %v6871_v33 = vpack.c.bf16 %v6573_v29, %v6569_v62  ;;  %v6105_v2 = vpop.f32.mrb[250].mxu1  ;;  %6835 = vmatprep.mubr.bf16.mxu0 %v6315_v53 }
 0x769   : > { %v6942_v57 = vadd.bf16 %v11850_v55, %v6870_v60  ;;  %v6180_v50 = vpack.c.bf16 %v6105_v2, %v6101_v27  ;;  %v6107_v7 = vpop.f32.mrb[251].mxu1  ;;  %6836 = vmatmul.mubr.bf16.gmra.mrb[116].mxu0 %v6314_v34 }
 0x76a   : > { %v6943_v48 = vadd.bf16 %v11854_v58, %v6871_v33  ;;  %v6181_v6 = vpack.c.bf16 %v6107_v7, %v6103_v13 }
 0x76b   : > { %v7006_v9 = vmax.bf16 %v12410_v39, %v6942_v57  ;;  %v6252_v38 = vadd.bf16 %v11677_v17, %v6180_v50 }
 0x76c   : > { %v6253_v35 = vadd.bf16 %v11682_v23, %v6181_v6  ;;  %v6577_v1 = vpop.f32.mrb[12].mxu0  ;;  %v7007_v43 = vmax.bf16 %v12410_v39, %v6943_v48 }
 0x76d   : > { %v6579_v0 = vpop.f32.mrb[13].mxu0  ;;  %v6316_v24 = vmax.bf16 %v12410_v39, %v6252_v38 }
 0x76e   : > { %v6111_v36 = vpop.f32.mrb[252].mxu1  ;;  %v6581_v20 = vpop.f32.mrb[14].mxu0  ;;  %7242 = vmatprep.mubr.bf16.mxu1 %v7007_v43  ;;  %v8816_v31 = vcombine.low %v7006_v9, %v7007_v43  ;;  %v8817_v63 = vcombine.high %v7006_v9, %v7007_v43  ;;  %v6317_v14 = vmax.bf16 %v12410_v39, %v6253_v35 }
 0x76f   : > { %v6872_v52 = vpack.c.bf16 %v6581_v20, %v6577_v1  ;;  %v6113_v44 = vpop.f32.mrb[253].mxu1  ;;  %v6583_v16 = vpop.f32.mrb[15].mxu0  ;;  %7243 = vmatmul.mubr.bf16.gmra.mrb[8].mxu1 %v7006_v9 }
 0x770   : > { %8263 = vst [vmem:[%s11869_s19 + $0x20] sm:$0xff] %v8816_v31  ;;  %8264 = vst [vmem:[%s11869_s19 + $0x28] sm:$0xff] %v8817_v63  ;;  %v6873_v45 = vpack.c.bf16 %v6583_v16, %v6579_v0  ;;  %v6115_v5 = vpop.f32.mrb[254].mxu1  ;;  %6845 = vmatprep.mubr.bf16.mxu0 %v6317_v14 }
 0x771   : > { %v6944_v41 = vadd.bf16 %v11850_v55, %v6872_v52  ;;  %v6182_v61 = vpack.c.bf16 %v6115_v5, %v6111_v36  ;;  %v6117_v12 = vpop.f32.mrb[255].mxu1  ;;  %6846 = vmatmul.mubr.bf16.gmra.mrb[120].mxu0 %v6316_v24 }
 0x772   : > { %v6945_v10 = vadd.bf16 %v11854_v58, %v6873_v45  ;;  %v6183_v32 = vpack.c.bf16 %v6117_v12, %v6113_v44 }
 0x773   : > { %v7008_v11 = vmax.bf16 %v12410_v39, %v6944_v41  ;;  %v6254_v3 = vadd.bf16 %v11677_v17, %v6182_v61 }
 0x774   : > { %v6255_v4 = vadd.bf16 %v11682_v23, %v6183_v32  ;;  %v6587_v51 = vpop.f32.mrb[16].mxu0  ;;  %v7009_v59 = vmax.bf16 %v12410_v39, %v6945_v10 }
 0x775   : > { %v6589_v28 = vpop.f32.mrb[17].mxu0  ;;  %v6318_v30 = vmax.bf16 %v12410_v39, %v6254_v3 }
 0x776   : > { %v6591_v15 = vpop.f32.mrb[18].mxu0  ;;  %7250 = vmatprep.mubr.bf16.mxu1 %v7009_v59  ;;  %v8818_v21 = vcombine.low %v7008_v11, %v7009_v59  ;;  %v8819_v56 = vcombine.high %v7008_v11, %v7009_v59  ;;  %v6319_v49 = vmax.bf16 %v12410_v39, %v6255_v4 }
 0x777   : > { %v6874_v46 = vpack.c.bf16 %v6591_v15, %v6587_v51  ;;  %v6593_v18 = vpop.f32.mrb[19].mxu0  ;;  %7251 = vmatmul.mubr.bf16.gmra.mrb[12].mxu1 %v7008_v11 }
 0x778   : > { %8265 = vst [vmem:[%s11869_s19 + $0x30] sm:$0xff] %v8818_v21  ;;  %8266 = vst [vmem:[%s11869_s19 + $0x38] sm:$0xff] %v8819_v56  ;;  %v6875_v17 = vpack.c.bf16 %v6593_v18, %v6589_v28  ;;  %6855 = vmatprep.mubr.bf16.mxu0 %v6319_v49 }
 0x779   : > { %v6946_v23 = vadd.bf16 %v11850_v55, %v6874_v46  ;;  %6856 = vmatmul.mubr.bf16.gmra.mrb[124].mxu0 %v6318_v30 }
 0x77a   : > { %v6947_v8 = vadd.bf16 %v11854_v58, %v6875_v17 }
 0x77b   : > { %v7010_v40 = vmax.bf16 %v12410_v39, %v6946_v23 }
 0x77c   : > { %v6597_v19 = vpop.f32.mrb[20].mxu0  ;;  %v7011_v37 = vmax.bf16 %v12410_v39, %v6947_v8 }
 0x77d   : > { %v6599_v26 = vpop.f32.mrb[21].mxu0 }
 0x77e   : > { %v6601_v47 = vpop.f32.mrb[22].mxu0  ;;  %7258 = vmatprep.mubr.bf16.mxu1 %v7011_v37  ;;  %v8820_v42 = vcombine.low %v7010_v40, %v7011_v37  ;;  %v8821_v62 = vcombine.high %v7010_v40, %v7011_v37 }
 0x77f   : > { %v6876_v27 = vpack.c.bf16 %v6601_v47, %v6597_v19  ;;  %v6603_v25 = vpop.f32.mrb[23].mxu0  ;;  %7259 = vmatmul.mubr.bf16.gmra.mrb[16].mxu1 %v7010_v40 }
 0x780   : > { %8267 = vst [vmem:[%s11869_s19 + $0x40] sm:$0xff] %v8820_v42  ;;  %8268 = vst [vmem:[%s11869_s19 + $0x48] sm:$0xff] %v8821_v62  ;;  %v6877_v54 = vpack.c.bf16 %v6603_v25, %v6599_v26 }
 0x781   : > { %v6948_v22 = vadd.bf16 %v11850_v55, %v6876_v27 }
 0x782   : > { %v6949_v53 = vadd.bf16 %v11854_v58, %v6877_v54 }
 0x783   : > { %v7012_v34 = vmax.bf16 %v12410_v39, %v6948_v22 }
 0x784   : > { %v6607_v60 = vpop.f32.mrb[24].mxu0  ;;  %v7013_v13 = vmax.bf16 %v12410_v39, %v6949_v53 }
 0x785   : > { %v6609_v29 = vpop.f32.mrb[25].mxu0 }
 0x786   : > { %v6611_v33 = vpop.f32.mrb[26].mxu0  ;;  %7266 = vmatprep.mubr.bf16.mxu1 %v7013_v13  ;;  %v8822_v2 = vcombine.low %v7012_v34, %v7013_v13  ;;  %v8823_v57 = vcombine.high %v7012_v34, %v7013_v13 }
 0x787   : > { %v6878_v50 = vpack.c.bf16 %v6611_v33, %v6607_v60  ;;  %v6613_v7 = vpop.f32.mrb[27].mxu0  ;;  %7267 = vmatmul.mubr.bf16.gmra.mrb[20].mxu1 %v7012_v34 }
 0x788   : > { %8269 = vst [vmem:[%s11869_s19 + $0x50] sm:$0xff] %v8822_v2  ;;  %8270 = vst [vmem:[%s11869_s19 + $0x58] sm:$0xff] %v8823_v57  ;;  %v6879_v48 = vpack.c.bf16 %v6613_v7, %v6609_v29 }
 0x789   : > { %v6950_v6 = vadd.bf16 %v11850_v55, %v6878_v50 }
 0x78a   : > { %v6951_v9 = vadd.bf16 %v11854_v58, %v6879_v48 }
 0x78b   : > { %v7014_v38 = vmax.bf16 %v12410_v39, %v6950_v6 }
 0x78c   : > { %v6617_v35 = vpop.f32.mrb[28].mxu0  ;;  %v7015_v1 = vmax.bf16 %v12410_v39, %v6951_v9 }
 0x78d   : > { %v6619_v43 = vpop.f32.mrb[29].mxu0 }
 0x78e   : > { %v6621_v0 = vpop.f32.mrb[30].mxu0  ;;  %7274 = vmatprep.mubr.bf16.mxu1 %v7015_v1  ;;  %v8824_v36 = vcombine.low %v7014_v38, %v7015_v1  ;;  %v8825_v20 = vcombine.high %v7014_v38, %v7015_v1 }
 0x78f   : > { %v6880_v31 = vpack.c.bf16 %v6621_v0, %v6617_v35  ;;  %v6623_v63 = vpop.f32.mrb[31].mxu0  ;;  %7275 = vmatmul.mubr.bf16.gmra.mrb[24].mxu1 %v7014_v38 }
 0x790   : > { %8271 = vst [vmem:[%s11869_s19 + $0x60] sm:$0xff] %v8824_v36  ;;  %8272 = vst [vmem:[%s11869_s19 + $0x68] sm:$0xff] %v8825_v20  ;;  %v6881_v14 = vpack.c.bf16 %v6623_v63, %v6619_v43 }
 0x791   : > { %v6952_v24 = vadd.bf16 %v11850_v55, %v6880_v31 }
 0x792   : > { %v6953_v52 = vadd.bf16 %v11854_v58, %v6881_v14 }
 0x793   : > { %v7016_v44 = vmax.bf16 %v12410_v39, %v6952_v24 }
 0x794   : > { %v6627_v16 = vpop.f32.mrb[32].mxu0  ;;  %v7017_v45 = vmax.bf16 %v12410_v39, %v6953_v52 }
 0x795   : > { %v6629_v5 = vpop.f32.mrb[33].mxu0 }
 0x796   : > { %v6631_v41 = vpop.f32.mrb[34].mxu0  ;;  %7282 = vmatprep.mubr.bf16.mxu1 %v7017_v45  ;;  %v8826_v61 = vcombine.low %v7016_v44, %v7017_v45  ;;  %v8827_v12 = vcombine.high %v7016_v44, %v7017_v45 }
 0x797   : > { %v6882_v10 = vpack.c.bf16 %v6631_v41, %v6627_v16  ;;  %v6633_v32 = vpop.f32.mrb[35].mxu0  ;;  %7283 = vmatmul.mubr.bf16.gmra.mrb[28].mxu1 %v7016_v44 }
 0x798   : > { %8273 = vst [vmem:[%s11869_s19 + $0x70] sm:$0xff] %v8826_v61  ;;  %8274 = vst [vmem:[%s11869_s19 + $0x78] sm:$0xff] %v8827_v12  ;;  %v6883_v11 = vpack.c.bf16 %v6633_v32, %v6629_v5 }
 0x799   : > { %v6954_v3 = vadd.bf16 %v11850_v55, %v6882_v10 }
 0x79a   : > { %v6955_v4 = vadd.bf16 %v11854_v58, %v6883_v11 }
 0x79b   : > { %v7018_v51 = vmax.bf16 %v12410_v39, %v6954_v3 }
 0x79c   : > { %v6637_v59 = vpop.f32.mrb[36].mxu0  ;;  %v7019_v28 = vmax.bf16 %v12410_v39, %v6955_v4 }
 0x79d   : > { %v6639_v15 = vpop.f32.mrb[37].mxu0 }
 0x79e   : > { %v6641_v21 = vpop.f32.mrb[38].mxu0  ;;  %7290 = vmatprep.mubr.bf16.mxu1 %v7019_v28  ;;  %v8828_v56 = vcombine.low %v7018_v51, %v7019_v28  ;;  %v8829_v49 = vcombine.high %v7018_v51, %v7019_v28 }
 0x79f   : > { %v6884_v30 = vpack.c.bf16 %v6641_v21, %v6637_v59  ;;  %v6643_v46 = vpop.f32.mrb[39].mxu0  ;;  %7291 = vmatmul.mubr.bf16.gmra.mrb[32].mxu1 %v7018_v51 }
 0x7a0   : > { %8275 = vst [vmem:[%s11869_s19 + $0x80] sm:$0xff] %v8828_v56  ;;  %8276 = vst [vmem:[%s11869_s19 + $0x88] sm:$0xff] %v8829_v49  ;;  %v6885_v18 = vpack.c.bf16 %v6643_v46, %v6639_v15 }
 0x7a1   : > { %v6956_v17 = vadd.bf16 %v11850_v55, %v6884_v30 }
 0x7a2   : > { %v6957_v23 = vadd.bf16 %v11854_v58, %v6885_v18 }
 0x7a3   : > { %v7020_v8 = vmax.bf16 %v12410_v39, %v6956_v17 }
 0x7a4   : > { %v6647_v40 = vpop.f32.mrb[40].mxu0  ;;  %v7021_v19 = vmax.bf16 %v12410_v39, %v6957_v23 }
 0x7a5   : > { %v6649_v37 = vpop.f32.mrb[41].mxu0 }
 0x7a6   : > { %v6651_v26 = vpop.f32.mrb[42].mxu0  ;;  %7298 = vmatprep.mubr.bf16.mxu1 %v7021_v19  ;;  %v8830_v47 = vcombine.low %v7020_v8, %v7021_v19  ;;  %v8831_v42 = vcombine.high %v7020_v8, %v7021_v19 }
 0x7a7   : > { %v6886_v62 = vpack.c.bf16 %v6651_v26, %v6647_v40  ;;  %v6653_v27 = vpop.f32.mrb[43].mxu0  ;;  %7299 = vmatmul.mubr.bf16.gmra.mrb[36].mxu1 %v7020_v8 }
 0x7a8   : > { %8277 = vst [vmem:[%s11869_s19 + $0x90] sm:$0xff] %v8830_v47  ;;  %8278 = vst [vmem:[%s11869_s19 + $0x98] sm:$0xff] %v8831_v42  ;;  %v6887_v25 = vpack.c.bf16 %v6653_v27, %v6649_v37 }
 0x7a9   : > { %v6958_v54 = vadd.bf16 %v11850_v55, %v6886_v62 }
 0x7aa   : > { %v6959_v22 = vadd.bf16 %v11854_v58, %v6887_v25 }
 0x7ab   : > { %v7022_v53 = vmax.bf16 %v12410_v39, %v6958_v54 }
 0x7ac   : > { %v6657_v34 = vpop.f32.mrb[44].mxu0  ;;  %v7023_v60 = vmax.bf16 %v12410_v39, %v6959_v22 }
 0x7ad   : > { %v6659_v13 = vpop.f32.mrb[45].mxu0 }
 0x7ae   : > { %v6661_v29 = vpop.f32.mrb[46].mxu0  ;;  %7306 = vmatprep.mubr.bf16.mxu1 %v7023_v60  ;;  %v8832_v33 = vcombine.low %v7022_v53, %v7023_v60  ;;  %v8833_v2 = vcombine.high %v7022_v53, %v7023_v60 }
 0x7af   : > { %v6888_v57 = vpack.c.bf16 %v6661_v29, %v6657_v34  ;;  %v6663_v50 = vpop.f32.mrb[47].mxu0  ;;  %7307 = vmatmul.mubr.bf16.gmra.mrb[40].mxu1 %v7022_v53 }
 0x7b0   : > { %8279 = vst [vmem:[%s11869_s19 + $0xa0] sm:$0xff] %v8832_v33  ;;  %8280 = vst [vmem:[%s11869_s19 + $0xa8] sm:$0xff] %v8833_v2  ;;  %v6889_v7 = vpack.c.bf16 %v6663_v50, %v6659_v13 }
 0x7b1   : > { %v6960_v48 = vadd.bf16 %v11850_v55, %v6888_v57 }
 0x7b2   : > { %v6961_v6 = vadd.bf16 %v11854_v58, %v6889_v7 }
 0x7b3   : > { %v7024_v9 = vmax.bf16 %v12410_v39, %v6960_v48 }
 0x7b4   : > { %v6667_v38 = vpop.f32.mrb[48].mxu0  ;;  %v7025_v35 = vmax.bf16 %v12410_v39, %v6961_v6 }
 0x7b5   : > { %v6669_v1 = vpop.f32.mrb[49].mxu0 }
 0x7b6   : > { %v6671_v43 = vpop.f32.mrb[50].mxu0  ;;  %7314 = vmatprep.mubr.bf16.mxu1 %v7025_v35  ;;  %v8834_v0 = vcombine.low %v7024_v9, %v7025_v35  ;;  %v8835_v36 = vcombine.high %v7024_v9, %v7025_v35 }
 0x7b7   : > { %v6890_v20 = vpack.c.bf16 %v6671_v43, %v6667_v38  ;;  %v6673_v31 = vpop.f32.mrb[51].mxu0  ;;  %7315 = vmatmul.mubr.bf16.gmra.mrb[44].mxu1 %v7024_v9 }
 0x7b8   : > { %8281 = vst [vmem:[%s11869_s19 + $0xb0] sm:$0xff] %v8834_v0  ;;  %8282 = vst [vmem:[%s11869_s19 + $0xb8] sm:$0xff] %v8835_v36  ;;  %v6891_v63 = vpack.c.bf16 %v6673_v31, %v6669_v1 }
 0x7b9   : > { %v6962_v14 = vadd.bf16 %v11850_v55, %v6890_v20 }
 0x7ba   : > { %v6963_v24 = vadd.bf16 %v11854_v58, %v6891_v63 }
 0x7bb   : > { %v7026_v52 = vmax.bf16 %v12410_v39, %v6962_v14 }
 0x7bc   : > { %v6677_v44 = vpop.f32.mrb[52].mxu0  ;;  %v7027_v16 = vmax.bf16 %v12410_v39, %v6963_v24 }
 0x7bd   : > { %v6679_v45 = vpop.f32.mrb[53].mxu0 }
 0x7be   : > { %v6681_v5 = vpop.f32.mrb[54].mxu0  ;;  %7322 = vmatprep.mubr.bf16.mxu1 %v7027_v16  ;;  %v8836_v41 = vcombine.low %v7026_v52, %v7027_v16  ;;  %v8837_v61 = vcombine.high %v7026_v52, %v7027_v16 }
 0x7bf   : > { %v6892_v12 = vpack.c.bf16 %v6681_v5, %v6677_v44  ;;  %v6683_v10 = vpop.f32.mrb[55].mxu0  ;;  %7323 = vmatmul.mubr.bf16.gmra.mrb[48].mxu1 %v7026_v52 }
 0x7c0   : > { %8283 = vst [vmem:[%s11869_s19 + $0xc0] sm:$0xff] %v8836_v41  ;;  %8284 = vst [vmem:[%s11869_s19 + $0xc8] sm:$0xff] %v8837_v61  ;;  %v6893_v32 = vpack.c.bf16 %v6683_v10, %v6679_v45 }
 0x7c1   : > { %v6964_v11 = vadd.bf16 %v11850_v55, %v6892_v12 }
 0x7c2   : > { %v6965_v3 = vadd.bf16 %v11854_v58, %v6893_v32 }
 0x7c3   : > { %v7028_v4 = vmax.bf16 %v12410_v39, %v6964_v11 }
 0x7c4   : > { %v6687_v51 = vpop.f32.mrb[56].mxu0  ;;  %v7029_v59 = vmax.bf16 %v12410_v39, %v6965_v3 }
 0x7c5   : > { %v6689_v28 = vpop.f32.mrb[57].mxu0 }
 0x7c6   : > { %v6691_v15 = vpop.f32.mrb[58].mxu0  ;;  %7330 = vmatprep.mubr.bf16.mxu1 %v7029_v59  ;;  %v8838_v21 = vcombine.low %v7028_v4, %v7029_v59  ;;  %v8839_v56 = vcombine.high %v7028_v4, %v7029_v59 }
 0x7c7   : > { %v6894_v49 = vpack.c.bf16 %v6691_v15, %v6687_v51  ;;  %v6693_v30 = vpop.f32.mrb[59].mxu0  ;;  %7331 = vmatmul.mubr.bf16.gmra.mrb[52].mxu1 %v7028_v4 }
 0x7c8   : > { %8285 = vst [vmem:[%s11869_s19 + $0xd0] sm:$0xff] %v8838_v21  ;;  %8286 = vst [vmem:[%s11869_s19 + $0xd8] sm:$0xff] %v8839_v56  ;;  %v6895_v46 = vpack.c.bf16 %v6693_v30, %v6689_v28 }
 0x7c9   : > { %v6966_v18 = vadd.bf16 %v11850_v55, %v6894_v49 }
 0x7ca   : > { %v6967_v17 = vadd.bf16 %v11854_v58, %v6895_v46 }
 0x7cb   : > { %v7030_v23 = vmax.bf16 %v12410_v39, %v6966_v18 }
 0x7cc   : > { %v6697_v8 = vpop.f32.mrb[60].mxu0  ;;  %v7031_v40 = vmax.bf16 %v12410_v39, %v6967_v17 }
 0x7cd   : > { %v6699_v19 = vpop.f32.mrb[61].mxu0 }
 0x7ce   : > { %v6701_v37 = vpop.f32.mrb[62].mxu0  ;;  %7338 = vmatprep.mubr.bf16.mxu1 %v7031_v40  ;;  %v8840_v26 = vcombine.low %v7030_v23, %v7031_v40  ;;  %v8841_v47 = vcombine.high %v7030_v23, %v7031_v40 }
 0x7cf   : > { %v6896_v42 = vpack.c.bf16 %v6701_v37, %v6697_v8  ;;  %v6703_v62 = vpop.f32.mrb[63].mxu0  ;;  %7339 = vmatmul.mubr.bf16.gmra.mrb[56].mxu1 %v7030_v23 }
 0x7d0   : > { %8287 = vst [vmem:[%s11869_s19 + $0xe0] sm:$0xff] %v8840_v26  ;;  %8288 = vst [vmem:[%s11869_s19 + $0xe8] sm:$0xff] %v8841_v47  ;;  %v6897_v27 = vpack.c.bf16 %v6703_v62, %v6699_v19 }
 0x7d1   : > { %v6968_v25 = vadd.bf16 %v11850_v55, %v6896_v42 }
 0x7d2   : > { %v6969_v54 = vadd.bf16 %v11854_v58, %v6897_v27 }
 0x7d3   : > { %v7032_v22 = vmax.bf16 %v12410_v39, %v6968_v25 }
 0x7d4   : > { %v6707_v53 = vpop.f32.mrb[64].mxu0  ;;  %v7033_v34 = vmax.bf16 %v12410_v39, %v6969_v54 }
 0x7d5   : > { %v6709_v60 = vpop.f32.mrb[65].mxu0 }
 0x7d6   : > { %v6711_v13 = vpop.f32.mrb[66].mxu0  ;;  %7346 = vmatprep.mubr.bf16.mxu1 %v7033_v34  ;;  %v8842_v29 = vcombine.low %v7032_v22, %v7033_v34  ;;  %v8843_v33 = vcombine.high %v7032_v22, %v7033_v34 }
 0x7d7   : > { %v6898_v2 = vpack.c.bf16 %v6711_v13, %v6707_v53  ;;  %v6713_v57 = vpop.f32.mrb[67].mxu0  ;;  %7347 = vmatmul.mubr.bf16.gmra.mrb[60].mxu1 %v7032_v22 }
 0x7d8   : > { %8289 = vst [vmem:[%s11869_s19 + $0xf0] sm:$0xff] %v8842_v29  ;;  %8290 = vst [vmem:[%s11869_s19 + $0xf8] sm:$0xff] %v8843_v33  ;;  %v6899_v50 = vpack.c.bf16 %v6713_v57, %v6709_v60 }
 0x7d9   : > { %v6970_v7 = vadd.bf16 %v11850_v55, %v6898_v2 }
 0x7da   : > { %v6971_v48 = vadd.bf16 %v11854_v58, %v6899_v50 }
 0x7db   : > { %v7034_v6 = vmax.bf16 %v12410_v39, %v6970_v7 }
 0x7dc   : > { %v6717_v9 = vpop.f32.mrb[68].mxu0  ;;  %v7035_v38 = vmax.bf16 %v12410_v39, %v6971_v48 }
 0x7dd   : > { %v6719_v35 = vpop.f32.mrb[69].mxu0 }
 0x7de   : > { %v6721_v1 = vpop.f32.mrb[70].mxu0  ;;  %7354 = vmatprep.mubr.bf16.mxu1 %v7035_v38  ;;  %v8844_v43 = vcombine.low %v7034_v6, %v7035_v38  ;;  %v8845_v0 = vcombine.high %v7034_v6, %v7035_v38 }
 0x7df   : > { %v6900_v36 = vpack.c.bf16 %v6721_v1, %v6717_v9  ;;  %v6723_v20 = vpop.f32.mrb[71].mxu0  ;;  %7355 = vmatmul.mubr.bf16.gmra.mrb[64].mxu1 %v7034_v6 }
 0x7e0   : > { %8291 = vst [vmem:[%s11869_s19 + $0x100] sm:$0xff] %v8844_v43  ;;  %8292 = vst [vmem:[%s11869_s19 + $0x108] sm:$0xff] %v8845_v0  ;;  %v6901_v31 = vpack.c.bf16 %v6723_v20, %v6719_v35 }
 0x7e1   : > { %v6972_v63 = vadd.bf16 %v11850_v55, %v6900_v36 }
 0x7e2   : > { %v6973_v14 = vadd.bf16 %v11854_v58, %v6901_v31 }
 0x7e3   : > { %v7036_v24 = vmax.bf16 %v12410_v39, %v6972_v63 }
 0x7e4   : > { %v6727_v52 = vpop.f32.mrb[72].mxu0  ;;  %v7037_v44 = vmax.bf16 %v12410_v39, %v6973_v14 }
 0x7e5   : > { %v6729_v16 = vpop.f32.mrb[73].mxu0 }
 0x7e6   : > { %v6731_v45 = vpop.f32.mrb[74].mxu0  ;;  %7362 = vmatprep.mubr.bf16.mxu1 %v7037_v44  ;;  %v8846_v5 = vcombine.low %v7036_v24, %v7037_v44  ;;  %v8847_v41 = vcombine.high %v7036_v24, %v7037_v44 }
 0x7e7   : > { %v6902_v61 = vpack.c.bf16 %v6731_v45, %v6727_v52  ;;  %v6733_v12 = vpop.f32.mrb[75].mxu0  ;;  %7363 = vmatmul.mubr.bf16.gmra.mrb[68].mxu1 %v7036_v24 }
 0x7e8   : > { %8293 = vst [vmem:[%s11869_s19 + $0x110] sm:$0xff] %v8846_v5  ;;  %8294 = vst [vmem:[%s11869_s19 + $0x118] sm:$0xff] %v8847_v41  ;;  %v6903_v10 = vpack.c.bf16 %v6733_v12, %v6729_v16 }
 0x7e9   : > { %v6974_v32 = vadd.bf16 %v11850_v55, %v6902_v61 }
 0x7ea   : > { %v6975_v11 = vadd.bf16 %v11854_v58, %v6903_v10 }
 0x7eb   : > { %v7038_v3 = vmax.bf16 %v12410_v39, %v6974_v32 }
 0x7ec   : > { %v6737_v4 = vpop.f32.mrb[76].mxu0  ;;  %v7039_v51 = vmax.bf16 %v12410_v39, %v6975_v11 }
 0x7ed   : > { %v6739_v59 = vpop.f32.mrb[77].mxu0 }
 0x7ee   : > { %v6741_v28 = vpop.f32.mrb[78].mxu0  ;;  %7370 = vmatprep.mubr.bf16.mxu1 %v7039_v51  ;;  %v8848_v15 = vcombine.low %v7038_v3, %v7039_v51  ;;  %v8849_v21 = vcombine.high %v7038_v3, %v7039_v51 }
 0x7ef   : > { %v6904_v56 = vpack.c.bf16 %v6741_v28, %v6737_v4  ;;  %v6743_v49 = vpop.f32.mrb[79].mxu0  ;;  %7371 = vmatmul.mubr.bf16.gmra.mrb[72].mxu1 %v7038_v3 }
 0x7f0   : > { %8295 = vst [vmem:[%s11869_s19 + $0x120] sm:$0xff] %v8848_v15  ;;  %8296 = vst [vmem:[%s11869_s19 + $0x128] sm:$0xff] %v8849_v21  ;;  %v6905_v30 = vpack.c.bf16 %v6743_v49, %v6739_v59 }
 0x7f1   : > { %v6976_v46 = vadd.bf16 %v11850_v55, %v6904_v56 }
 0x7f2   : > { %v6977_v18 = vadd.bf16 %v11854_v58, %v6905_v30 }
 0x7f3   : > { %v7040_v17 = vmax.bf16 %v12410_v39, %v6976_v46 }
 0x7f4   : > { %v6747_v23 = vpop.f32.mrb[80].mxu0  ;;  %v7041_v8 = vmax.bf16 %v12410_v39, %v6977_v18 }
 0x7f5   : > { %v6749_v40 = vpop.f32.mrb[81].mxu0 }
 0x7f6   : > { %v6751_v19 = vpop.f32.mrb[82].mxu0  ;;  %7378 = vmatprep.mubr.bf16.mxu1 %v7041_v8  ;;  %v8850_v37 = vcombine.low %v7040_v17, %v7041_v8  ;;  %v8851_v26 = vcombine.high %v7040_v17, %v7041_v8 }
 0x7f7   : > { %v6906_v47 = vpack.c.bf16 %v6751_v19, %v6747_v23  ;;  %v6753_v42 = vpop.f32.mrb[83].mxu0  ;;  %7379 = vmatmul.mubr.bf16.gmra.mrb[76].mxu1 %v7040_v17 }
 0x7f8   : > { %8297 = vst [vmem:[%s11869_s19 + $0x130] sm:$0xff] %v8850_v37  ;;  %8298 = vst [vmem:[%s11869_s19 + $0x138] sm:$0xff] %v8851_v26  ;;  %v6907_v62 = vpack.c.bf16 %v6753_v42, %v6749_v40 }
 0x7f9   : > { %v6978_v27 = vadd.bf16 %v11850_v55, %v6906_v47 }
 0x7fa   : > { %v6979_v25 = vadd.bf16 %v11854_v58, %v6907_v62 }
 0x7fb   : > { %v7042_v54 = vmax.bf16 %v12410_v39, %v6978_v27 }
 0x7fc   : > { %v6757_v22 = vpop.f32.mrb[84].mxu0  ;;  %v7043_v53 = vmax.bf16 %v12410_v39, %v6979_v25 }
 0x7fd   : > { %v6759_v34 = vpop.f32.mrb[85].mxu0 }
 0x7fe   : > { %v6761_v60 = vpop.f32.mrb[86].mxu0  ;;  %7386 = vmatprep.mubr.bf16.mxu1 %v7043_v53  ;;  %v8852_v13 = vcombine.low %v7042_v54, %v7043_v53  ;;  %v8853_v29 = vcombine.high %v7042_v54, %v7043_v53 }
 0x7ff   : > { %v6908_v33 = vpack.c.bf16 %v6761_v60, %v6757_v22  ;;  %v6763_v2 = vpop.f32.mrb[87].mxu0  ;;  %7387 = vmatmul.mubr.bf16.gmra.mrb[80].mxu1 %v7042_v54 }
 0x800   : > { %8299 = vst [vmem:[%s11869_s19 + $0x140] sm:$0xff] %v8852_v13  ;;  %8300 = vst [vmem:[%s11869_s19 + $0x148] sm:$0xff] %v8853_v29  ;;  %v6909_v57 = vpack.c.bf16 %v6763_v2, %v6759_v34 }
 0x801   : > { %v6980_v50 = vadd.bf16 %v11850_v55, %v6908_v33 }
 0x802   : > { %v6981_v7 = vadd.bf16 %v11854_v58, %v6909_v57 }
 0x803   : > { %v7044_v48 = vmax.bf16 %v12410_v39, %v6980_v50 }
 0x804   : > { %v6767_v6 = vpop.f32.mrb[88].mxu0  ;;  %v7045_v9 = vmax.bf16 %v12410_v39, %v6981_v7 }
 0x805   : > { %v6769_v38 = vpop.f32.mrb[89].mxu0 }
 0x806   : > { %v6771_v35 = vpop.f32.mrb[90].mxu0  ;;  %7394 = vmatprep.mubr.bf16.mxu1 %v7045_v9  ;;  %v8854_v1 = vcombine.low %v7044_v48, %v7045_v9  ;;  %v8855_v43 = vcombine.high %v7044_v48, %v7045_v9 }
 0x807   : > { %v6910_v0 = vpack.c.bf16 %v6771_v35, %v6767_v6  ;;  %v6773_v36 = vpop.f32.mrb[91].mxu0  ;;  %7395 = vmatmul.mubr.bf16.gmra.mrb[84].mxu1 %v7044_v48 }
 0x808   : > { %8301 = vst [vmem:[%s11869_s19 + $0x150] sm:$0xff] %v8854_v1  ;;  %8302 = vst [vmem:[%s11869_s19 + $0x158] sm:$0xff] %v8855_v43  ;;  %v6911_v20 = vpack.c.bf16 %v6773_v36, %v6769_v38 }
 0x809   : > { %v6982_v31 = vadd.bf16 %v11850_v55, %v6910_v0 }
 0x80a   : > { %v6983_v63 = vadd.bf16 %v11854_v58, %v6911_v20  ;;  %v12041_v20 = vld [vmem:[#allocation2] ss:$0 sm:$0xff] }
 0x80b   : > { %v7046_v14 = vmax.bf16 %v12410_v39, %v6982_v31 }
 0x80c   : > { %v6777_v24 = vpop.f32.mrb[92].mxu0  ;;  %v7047_v52 = vmax.bf16 %v12410_v39, %v6983_v63 }
 0x80d   : > { %v6779_v44 = vpop.f32.mrb[93].mxu0 }
 0x80e   : > { %v6781_v16 = vpop.f32.mrb[94].mxu0  ;;  %7402 = vmatprep.mubr.bf16.mxu1 %v7047_v52  ;;  %v8856_v45 = vcombine.low %v7046_v14, %v7047_v52  ;;  %v8857_v5 = vcombine.high %v7046_v14, %v7047_v52 }
 0x80f   : > { %v6912_v41 = vpack.c.bf16 %v6781_v16, %v6777_v24  ;;  %v6783_v61 = vpop.f32.mrb[95].mxu0  ;;  %7403 = vmatmul.mubr.bf16.gmra.mrb[88].mxu1 %v7046_v14 }
 0x810   : > { %8303 = vst [vmem:[%s11869_s19 + $0x160] sm:$0xff] %v8856_v45  ;;  %8304 = vst [vmem:[%s11869_s19 + $0x168] sm:$0xff] %v8857_v5  ;;  %v6913_v12 = vpack.c.bf16 %v6783_v61, %v6779_v44 }
 0x811   : > { %v6984_v10 = vadd.bf16 %v11850_v55, %v6912_v41 }
 0x812   : > { %v6985_v32 = vadd.bf16 %v11854_v58, %v6913_v12 }
 0x813   : > { %v7048_v11 = vmax.bf16 %v12410_v39, %v6984_v10 }
 0x814   : > { %v6787_v3 = vpop.f32.mrb[96].mxu0  ;;  %v7049_v4 = vmax.bf16 %v12410_v39, %v6985_v32 }
 0x815   : > { %v6789_v51 = vpop.f32.mrb[97].mxu0 }
 0x816   : > { %v6791_v59 = vpop.f32.mrb[98].mxu0  ;;  %7410 = vmatprep.mubr.bf16.mxu1 %v7049_v4  ;;  %v8858_v28 = vcombine.low %v7048_v11, %v7049_v4  ;;  %v8859_v15 = vcombine.high %v7048_v11, %v7049_v4 }
 0x817   : > { %v6914_v21 = vpack.c.bf16 %v6791_v59, %v6787_v3  ;;  %v6793_v56 = vpop.f32.mrb[99].mxu0  ;;  %7411 = vmatmul.mubr.bf16.gmra.mrb[92].mxu1 %v7048_v11 }
 0x818   : > { %8305 = vst [vmem:[%s11869_s19 + $0x170] sm:$0xff] %v8858_v28  ;;  %8306 = vst [vmem:[%s11869_s19 + $0x178] sm:$0xff] %v8859_v15  ;;  %v6915_v49 = vpack.c.bf16 %v6793_v56, %v6789_v51 }
 0x819   : > { %v6986_v30 = vadd.bf16 %v11850_v55, %v6914_v21 }
 0x81a   : > { %v6987_v46 = vadd.bf16 %v11854_v58, %v6915_v49 }
 0x81b   : > { %v7050_v18 = vmax.bf16 %v12410_v39, %v6986_v30 }
 0x81c   : > { %v6797_v17 = vpop.f32.mrb[100].mxu0  ;;  %v7051_v23 = vmax.bf16 %v12410_v39, %v6987_v46 }
 0x81d   : > { %v6799_v8 = vpop.f32.mrb[101].mxu0 }
 0x81e   : > { %v6801_v40 = vpop.f32.mrb[102].mxu0  ;;  %7418 = vmatprep.mubr.bf16.mxu1 %v7051_v23  ;;  %v8860_v19 = vcombine.low %v7050_v18, %v7051_v23  ;;  %v8861_v37 = vcombine.high %v7050_v18, %v7051_v23 }
 0x81f   : > { %v6916_v26 = vpack.c.bf16 %v6801_v40, %v6797_v17  ;;  %v6803_v47 = vpop.f32.mrb[103].mxu0  ;;  %7419 = vmatmul.mubr.bf16.gmra.mrb[96].mxu1 %v7050_v18 }
 0x820   : > { %8307 = vst [vmem:[%s11869_s19 + $0x180] sm:$0xff] %v8860_v19  ;;  %8308 = vst [vmem:[%s11869_s19 + $0x188] sm:$0xff] %v8861_v37  ;;  %v6917_v42 = vpack.c.bf16 %v6803_v47, %v6799_v8 }
 0x821   : > { %v6988_v62 = vadd.bf16 %v11850_v55, %v6916_v26 }
 0x822   : > { %v6989_v27 = vadd.bf16 %v11854_v58, %v6917_v42 }
 0x823   : > { %v7052_v25 = vmax.bf16 %v12410_v39, %v6988_v62 }
 0x824   : > { %v6807_v54 = vpop.f32.mrb[104].mxu0  ;;  %v7053_v22 = vmax.bf16 %v12410_v39, %v6989_v27 }
 0x825   : > { %v6809_v53 = vpop.f32.mrb[105].mxu0 }
 0x826   : > { %v6811_v34 = vpop.f32.mrb[106].mxu0  ;;  %7426 = vmatprep.mubr.bf16.mxu1 %v7053_v22  ;;  %v8862_v60 = vcombine.low %v7052_v25, %v7053_v22  ;;  %v8863_v13 = vcombine.high %v7052_v25, %v7053_v22 }
 0x827   : > { %v6918_v29 = vpack.c.bf16 %v6811_v34, %v6807_v54  ;;  %v6813_v33 = vpop.f32.mrb[107].mxu0  ;;  %7427 = vmatmul.mubr.bf16.gmra.mrb[100].mxu1 %v7052_v25 }
 0x828   : > { %8309 = vst [vmem:[%s11869_s19 + $0x190] sm:$0xff] %v8862_v60  ;;  %8310 = vst [vmem:[%s11869_s19 + $0x198] sm:$0xff] %v8863_v13  ;;  %v6919_v2 = vpack.c.bf16 %v6813_v33, %v6809_v53 }
 0x829   : > { %v6990_v57 = vadd.bf16 %v11850_v55, %v6918_v29 }
 0x82a   : > { %v6991_v50 = vadd.bf16 %v11854_v58, %v6919_v2 }
 0x82b   : > { %v7054_v7 = vmax.bf16 %v12410_v39, %v6990_v57 }
 0x82c   : > { %v6817_v48 = vpop.f32.mrb[108].mxu0  ;;  %v7055_v6 = vmax.bf16 %v12410_v39, %v6991_v50 }
 0x82d   : > { %v6819_v9 = vpop.f32.mrb[109].mxu0 }
 0x82e   : > { %v6821_v38 = vpop.f32.mrb[110].mxu0  ;;  %7434 = vmatprep.mubr.bf16.mxu1 %v7055_v6  ;;  %v8864_v35 = vcombine.low %v7054_v7, %v7055_v6  ;;  %v8865_v1 = vcombine.high %v7054_v7, %v7055_v6 }
 0x82f   : > { %v6920_v43 = vpack.c.bf16 %v6821_v38, %v6817_v48  ;;  %v6823_v0 = vpop.f32.mrb[111].mxu0  ;;  %7435 = vmatmul.mubr.bf16.gmra.mrb[104].mxu1 %v7054_v7 }
 0x830   : > { %8311 = vst [vmem:[%s11869_s19 + $0x1a0] sm:$0xff] %v8864_v35  ;;  %8312 = vst [vmem:[%s11869_s19 + $0x1a8] sm:$0xff] %v8865_v1  ;;  %v6921_v36 = vpack.c.bf16 %v6823_v0, %v6819_v9 }
 0x831   : > { %v6992_v31 = vadd.bf16 %v11850_v55, %v6920_v43 }
 0x832   : > { %v6993_v63 = vadd.bf16 %v11854_v58, %v6921_v36  ;;  %v7228_v14 = vpop.f32.mrb[0].mxu1 }
 0x833   : > { %v7056_v24 = vmax.bf16 %v12410_v39, %v6992_v31  ;;  %v7490_v52 = vadd.f32 %v12041_v20, %v7228_v14  ;;  %v7230_v44 = vpop.f32.mrb[1].mxu1 }
 0x834   : > { %v6827_v16 = vpop.f32.mrb[112].mxu0  ;;  %v7231_v45 = vpop.f32.mrb[2].mxu1  ;;  %v7057_v5 = vmax.bf16 %v12410_v39, %v6993_v63 }
 0x835   : > { %v7554_v41 = vmax.f32 %v7490_v52, 0.0  ;;  %v7491_v61 = vadd.f32 %v12041_v20, %v7231_v45  ;;  %v6829_v12 = vpop.f32.mrb[113].mxu0  ;;  %v7233_v10 = vpop.f32.mrb[3].mxu1 }
 0x836   : > { %v6831_v32 = vpop.f32.mrb[114].mxu0  ;;  %7442 = vmatprep.mubr.bf16.mxu1 %v7057_v5  ;;  %v8866_v11 = vcombine.low %v7056_v24, %v7057_v5  ;;  %v8867_v3 = vcombine.high %v7056_v24, %v7057_v5 }
 0x837   : > { %v7618_v4 = vsub.f32 0.0, %v7554_v41  ;;  %v7555_v51 = vmax.f32 %v7491_v61, 0.0  ;;  %v6922_v59 = vpack.c.bf16 %v6831_v32, %v6827_v16  ;;  %v6833_v28 = vpop.f32.mrb[115].mxu0  ;;  %7443 = vmatmul.mubr.bf16.gmra.mrb[108].mxu1 %v7056_v24 }
 0x838   : > { %8313 = vst [vmem:[%s11869_s19 + $0x1b0] sm:$0xff] %v8866_v11  ;;  %8314 = vst [vmem:[%s11869_s19 + $0x1b8] sm:$0xff] %v8867_v3  ;;  %v6923_v15 = vpack.c.bf16 %v6833_v28, %v6829_v12 }
 0x839   : > { %v7682_v21 = vmul.f32 1.442695, %v7618_v4  ;;  %v7619_v56 = vsub.f32 0.0, %v7555_v51  ;;  %v6994_v49 = vadd.bf16 %v11850_v55, %v6922_v59 }
 0x83a   : > { %v6995_v30 = vadd.bf16 %v11854_v58, %v6923_v15  ;;  %v7236_v46 = vpop.f32.mrb[4].mxu1 }
 0x83b   : > { %9349 = vpow2.f32 %v7682_v21  ;;  %v7684_v18 = vmul.f32 1.442695, %v7619_v56  ;;  %v7058_v17 = vmax.bf16 %v12410_v39, %v6994_v49  ;;  %v7492_v23 = vadd.f32 %v12041_v20, %v7236_v46  ;;  %v7238_v8 = vpop.f32.mrb[5].mxu1 }
 0x83c   : > { %v6837_v40 = vpop.f32.mrb[116].mxu0  ;;  %v7239_v19 = vpop.f32.mrb[6].mxu1  ;;  %v7059_v37 = vmax.bf16 %v12410_v39, %v6995_v30 }
 0x83d   : > { %9351 = vpow2.f32 %v7684_v18  ;;  %v7556_v26 = vmax.f32 %v7492_v23, 0.0  ;;  %v7493_v47 = vadd.f32 %v12041_v20, %v7239_v19  ;;  %v6839_v42 = vpop.f32.mrb[117].mxu0  ;;  %v7241_v62 = vpop.f32.mrb[7].mxu1 }
 0x83e   : > { %v6841_v27 = vpop.f32.mrb[118].mxu0  ;;  %7450 = vmatprep.mubr.bf16.mxu1 %v7059_v37  ;;  %v8868_v25 = vcombine.low %v7058_v17, %v7059_v37  ;;  %v8869_v54 = vcombine.high %v7058_v17, %v7059_v37 }
 0x83f   : > { %v7620_v22 = vsub.f32 0.0, %v7556_v26  ;;  %v7557_v53 = vmax.f32 %v7493_v47, 0.0  ;;  %v6924_v34 = vpack.c.bf16 %v6841_v27, %v6837_v40  ;;  %v6843_v60 = vpop.f32.mrb[119].mxu0  ;;  %7451 = vmatmul.mubr.bf16.gmra.mrb[112].mxu1 %v7058_v17 }
 0x840   : > { %8315 = vst [vmem:[%s11869_s19 + $0x1c0] sm:$0xff] %v8868_v25  ;;  %8316 = vst [vmem:[%s11869_s19 + $0x1c8] sm:$0xff] %v8869_v54  ;;  %v6925_v13 = vpack.c.bf16 %v6843_v60, %v6839_v42 }
 0x841   : > { %v7686_v29 = vmul.f32 1.442695, %v7620_v22  ;;  %v7621_v33 = vsub.f32 0.0, %v7557_v53  ;;  %v6996_v2 = vadd.bf16 %v11850_v55, %v6924_v34 }
 0x842   : > { %v6997_v57 = vadd.bf16 %v11854_v58, %v6925_v13  ;;  %v7244_v50 = vpop.f32.mrb[8].mxu1 }
 0x843   : > { %9353 = vpow2.f32 %v7686_v29  ;;  %v7688_v7 = vmul.f32 1.442695, %v7621_v33  ;;  %v7060_v48 = vmax.bf16 %v12410_v39, %v6996_v2  ;;  %v7494_v6 = vadd.f32 %v12041_v20, %v7244_v50  ;;  %v7246_v9 = vpop.f32.mrb[9].mxu1 }
 0x844   : > { %v6847_v38 = vpop.f32.mrb[120].mxu0  ;;  %v7247_v35 = vpop.f32.mrb[10].mxu1  ;;  %v7061_v1 = vmax.bf16 %v12410_v39, %v6997_v57 }
 0x845   : > { %v9350_v43 = vpop.eup %9349  ;;  %9355 = vpow2.f32 %v7688_v7  ;;  %v7558_v0 = vmax.f32 %v7494_v6, 0.0  ;;  %v7495_v36 = vadd.f32 %v12041_v20, %v7247_v35  ;;  %v6849_v31 = vpop.f32.mrb[121].mxu0 }
 0x846   : > { %v7249_v63 = vpop.f32.mrb[11].mxu1  ;;  %v7810_v14 = vsub.f32 1.0, %v9350_v43  ;;  %v6851_v24 = vpop.f32.mrb[122].mxu0  ;;  %7458 = vmatprep.mubr.bf16.mxu1 %v7061_v1  ;;  %v8870_v52 = vcombine.low %v7060_v48, %v7061_v1  ;;  %v8871_v44 = vcombine.high %v7060_v48, %v7061_v1 }
 0x847   : > { %v9352_v16 = vpop.eup %9351  ;;  %v7622_v45 = vsub.f32 0.0, %v7558_v0  ;;  %v7559_v5 = vmax.f32 %v7495_v36, 0.0  ;;  %v6926_v41 = vpack.c.bf16 %v6851_v24, %v6847_v38  ;;  %v6853_v61 = vpop.f32.mrb[123].mxu0  ;;  %7459 = vmatmul.mubr.bf16.gmra.mrb[116].mxu1 %v7060_v48 }
 0x848   : > { %7875 = vst.msk [vmem:[%s12068_s23] sm:$0xff] %vm7874_vm1, %v7810_v14  ;;  %v7811_v12 = vsub.f32 1.0, %v9352_v16  ;;  %8317 = vst [vmem:[%s11869_s19 + $0x1d0] sm:$0xff] %v8870_v52  ;;  %v6927_v10 = vpack.c.bf16 %v6853_v61, %v6849_v31 }
 0x849   : > { %8318 = vst [vmem:[%s11869_s19 + $0x1d8] sm:$0xff] %v8871_v44  ;;  %v7690_v32 = vmul.f32 1.442695, %v7622_v45  ;;  %v7623_v11 = vsub.f32 0.0, %v7559_v5  ;;  %v6998_v3 = vadd.bf16 %v11850_v55, %v6926_v41 }
 0x84a   : > { %7876 = vst.msk [vmem:[%s12068_s23 + $0x8] sm:$0xff] %vm7874_vm1, %v7811_v12  ;;  %v6999_v4 = vadd.bf16 %v11854_v58, %v6927_v10  ;;  %v7252_v51 = vpop.f32.mrb[12].mxu1 }
 0x84b   : > { %9357 = vpow2.f32 %v7690_v32  ;;  %v7692_v59 = vmul.f32 1.442695, %v7623_v11  ;;  %v7062_v28 = vmax.bf16 %v12410_v39, %v6998_v3  ;;  %v7496_v15 = vadd.f32 %v12041_v20, %v7252_v51  ;;  %v7254_v21 = vpop.f32.mrb[13].mxu1 }
 0x84c   : > { %v6857_v56 = vpop.f32.mrb[124].mxu0  ;;  %v7255_v49 = vpop.f32.mrb[14].mxu1  ;;  %v7063_v30 = vmax.bf16 %v12410_v39, %v6999_v4 }
 0x84d   : > { %v9354_v46 = vpop.eup %9353  ;;  %9359 = vpow2.f32 %v7692_v59  ;;  %v7560_v18 = vmax.f32 %v7496_v15, 0.0  ;;  %v7497_v17 = vadd.f32 %v12041_v20, %v7255_v49  ;;  %v6859_v23 = vpop.f32.mrb[125].mxu0 }
 0x84e   : > { %v7257_v8 = vpop.f32.mrb[15].mxu1  ;;  %v7812_v40 = vsub.f32 1.0, %v9354_v46  ;;  %v6861_v19 = vpop.f32.mrb[126].mxu0  ;;  %7466 = vmatprep.mubr.bf16.mxu1 %v7063_v30  ;;  %v8872_v37 = vcombine.low %v7062_v28, %v7063_v30  ;;  %v8873_v26 = vcombine.high %v7062_v28, %v7063_v30 }
 0x84f   : > { %v9356_v47 = vpop.eup %9355  ;;  %v7624_v42 = vsub.f32 0.0, %v7560_v18  ;;  %v7561_v62 = vmax.f32 %v7497_v17, 0.0  ;;  %v6928_v27 = vpack.c.bf16 %v6861_v19, %v6857_v56  ;;  %v6863_v25 = vpop.f32.mrb[127].mxu0  ;;  %7467 = vmatmul.mubr.bf16.gmra.mrb[120].mxu1 %v7062_v28 }
 0x850   : > { %7877 = vst.msk [vmem:[%s12068_s23 + $0x10] sm:$0xff] %vm7874_vm1, %v7812_v40  ;;  %v7813_v54 = vsub.f32 1.0, %v9356_v47  ;;  %8319 = vst [vmem:[%s11869_s19 + $0x1e0] sm:$0xff] %v8872_v37  ;;  %v6929_v22 = vpack.c.bf16 %v6863_v25, %v6859_v23 }
 0x851   : > { %8320 = vst [vmem:[%s11869_s19 + $0x1e8] sm:$0xff] %v8873_v26  ;;  %v7694_v53 = vmul.f32 1.442695, %v7624_v42  ;;  %v7625_v34 = vsub.f32 0.0, %v7561_v62  ;;  %v7000_v60 = vadd.bf16 %v11850_v55, %v6928_v27 }
 0x852   : > { %7878 = vst.msk [vmem:[%s12068_s23 + $0x18] sm:$0xff] %vm7874_vm1, %v7813_v54  ;;  %v7001_v13 = vadd.bf16 %v11854_v58, %v6929_v22  ;;  %v7260_v29 = vpop.f32.mrb[16].mxu1 }
 0x853   : > { %9361 = vpow2.f32 %v7694_v53  ;;  %v7696_v33 = vmul.f32 1.442695, %v7625_v34  ;;  %v7064_v2 = vmax.bf16 %v12410_v39, %v7000_v60  ;;  %v7498_v57 = vadd.f32 %v12041_v20, %v7260_v29  ;;  %v7262_v50 = vpop.f32.mrb[17].mxu1 }
 0x854   : > { %v7263_v7 = vpop.f32.mrb[18].mxu1  ;;  %v7065_v48 = vmax.bf16 %v12410_v39, %v7001_v13 }
 0x855   : > { %v9358_v6 = vpop.eup %9357  ;;  %9363 = vpow2.f32 %v7696_v33  ;;  %v7562_v55 = vmax.f32 %v7498_v57, 0.0  ;;  %v7499_v9 = vadd.f32 %v12041_v20, %v7263_v7  ;;  %v7265_v58 = vpop.f32.mrb[19].mxu1 }
 0x856   : > { %v7814_v38 = vsub.f32 1.0, %v9358_v6  ;;  %7474 = vmatprep.mubr.bf16.mxu1 %v7065_v48  ;;  %v8874_v35 = vcombine.low %v7064_v2, %v7065_v48  ;;  %v8875_v1 = vcombine.high %v7064_v2, %v7065_v48 }
 0x857   : > { %v9360_v43 = vpop.eup %9359  ;;  %v7626_v0 = vsub.f32 0.0, %v7562_v55  ;;  %v7563_v36 = vmax.f32 %v7499_v9, 0.0  ;;  %7475 = vmatmul.mubr.bf16.gmra.mrb[124].mxu1 %v7064_v2 }
 0x858   : > { %7879 = vst.msk [vmem:[%s12068_s23 + $0x20] sm:$0xff] %vm7874_vm1, %v7814_v38  ;;  %v7815_v39 = vsub.f32 1.0, %v9360_v43  ;;  %8321 = vst [vmem:[%s11869_s19 + $0x1f0] sm:$0xff] %v8874_v35 }
 0x859   : > { %8322 = vst [vmem:[%s11869_s19 + $0x1f8] sm:$0xff] %v8875_v1  ;;  %v7698_v31 = vmul.f32 1.442695, %v7626_v0  ;;  %v7627_v63 = vsub.f32 0.0, %v7563_v36 }
 0x85a   : > { %7880 = vst.msk [vmem:[%s12068_s23 + $0x28] sm:$0xff] %vm7874_vm1, %v7815_v39  ;;  %v7268_v14 = vpop.f32.mrb[20].mxu1 }
 0x85b   : > { %9365 = vpow2.f32 %v7698_v31  ;;  %v7700_v24 = vmul.f32 1.442695, %v7627_v63  ;;  %v7500_v52 = vadd.f32 %v12041_v20, %v7268_v14  ;;  %v7270_v44 = vpop.f32.mrb[21].mxu1 }
 0x85c   : > { %v7271_v16 = vpop.f32.mrb[22].mxu1 }
 0x85d   : > { %v9362_v45 = vpop.eup %9361  ;;  %9367 = vpow2.f32 %v7700_v24  ;;  %v7564_v5 = vmax.f32 %v7500_v52, 0.0  ;;  %v7501_v41 = vadd.f32 %v12041_v20, %v7271_v16  ;;  %v7273_v61 = vpop.f32.mrb[23].mxu1 }
 0x85e   : > { %v7816_v12 = vsub.f32 1.0, %v9362_v45 }
 0x85f   : > { %v9364_v10 = vpop.eup %9363  ;;  %v7628_v32 = vsub.f32 0.0, %v7564_v5  ;;  %v7565_v11 = vmax.f32 %v7501_v41, 0.0 }
 0x860   : > { %7881 = vst.msk [vmem:[%s12068_s23 + $0x30] sm:$0xff] %vm7874_vm1, %v7816_v12  ;;  %v7817_v3 = vsub.f32 1.0, %v9364_v10 }
 0x861   : > { %v7702_v4 = vmul.f32 1.442695, %v7628_v32  ;;  %v7629_v51 = vsub.f32 0.0, %v7565_v11 }
 0x862   : > { %7882 = vst.msk [vmem:[%s12068_s23 + $0x38] sm:$0xff] %vm7874_vm1, %v7817_v3  ;;  %v7276_v59 = vpop.f32.mrb[24].mxu1 }
 0x863   : > { %9369 = vpow2.f32 %v7702_v4  ;;  %v7704_v28 = vmul.f32 1.442695, %v7629_v51  ;;  %v7502_v15 = vadd.f32 %v12041_v20, %v7276_v59  ;;  %v7278_v21 = vpop.f32.mrb[25].mxu1 }
 0x864   : > { %v7279_v56 = vpop.f32.mrb[26].mxu1 }
 0x865   : > { %v9366_v49 = vpop.eup %9365  ;;  %9371 = vpow2.f32 %v7704_v28  ;;  %v7566_v30 = vmax.f32 %v7502_v15, 0.0  ;;  %v7503_v46 = vadd.f32 %v12041_v20, %v7279_v56  ;;  %v7281_v18 = vpop.f32.mrb[27].mxu1 }
 0x866   : > { %v7818_v17 = vsub.f32 1.0, %v9366_v49 }
 0x867   : > { %v9368_v23 = vpop.eup %9367  ;;  %v7630_v8 = vsub.f32 0.0, %v7566_v30  ;;  %v7567_v40 = vmax.f32 %v7503_v46, 0.0 }
 0x868   : > { %7883 = vst.msk [vmem:[%s12068_s23 + $0x40] sm:$0xff] %vm7874_vm1, %v7818_v17  ;;  %v7819_v19 = vsub.f32 1.0, %v9368_v23 }
 0x869   : > { %v7706_v37 = vmul.f32 1.442695, %v7630_v8  ;;  %v7631_v26 = vsub.f32 0.0, %v7567_v40 }
 0x86a   : > { %7884 = vst.msk [vmem:[%s12068_s23 + $0x48] sm:$0xff] %vm7874_vm1, %v7819_v19  ;;  %v7284_v47 = vpop.f32.mrb[28].mxu1 }
 0x86b   : > { %9373 = vpow2.f32 %v7706_v37  ;;  %v7708_v42 = vmul.f32 1.442695, %v7631_v26  ;;  %v7504_v62 = vadd.f32 %v12041_v20, %v7284_v47  ;;  %v7286_v27 = vpop.f32.mrb[29].mxu1 }
 0x86c   : > { %v7287_v25 = vpop.f32.mrb[30].mxu1 }
 0x86d   : > { %v9370_v54 = vpop.eup %9369  ;;  %9375 = vpow2.f32 %v7708_v42  ;;  %v7568_v22 = vmax.f32 %v7504_v62, 0.0  ;;  %v7505_v53 = vadd.f32 %v12041_v20, %v7287_v25  ;;  %v7289_v34 = vpop.f32.mrb[31].mxu1 }
 0x86e   : > { %v7820_v60 = vsub.f32 1.0, %v9370_v54 }
 0x86f   : > { %v9372_v13 = vpop.eup %9371  ;;  %v7632_v29 = vsub.f32 0.0, %v7568_v22  ;;  %v7569_v33 = vmax.f32 %v7505_v53, 0.0 }
 0x870   : > { %7885 = vst.msk [vmem:[%s12068_s23 + $0x50] sm:$0xff] %vm7874_vm1, %v7820_v60  ;;  %v7821_v2 = vsub.f32 1.0, %v9372_v13 }
 0x871   : > { %v7710_v57 = vmul.f32 1.442695, %v7632_v29  ;;  %v7633_v50 = vsub.f32 0.0, %v7569_v33 }
 0x872   : > { %7886 = vst.msk [vmem:[%s12068_s23 + $0x58] sm:$0xff] %vm7874_vm1, %v7821_v2  ;;  %v7292_v7 = vpop.f32.mrb[32].mxu1 }
 0x873   : > { %9377 = vpow2.f32 %v7710_v57  ;;  %v7712_v48 = vmul.f32 1.442695, %v7633_v50  ;;  %v7506_v6 = vadd.f32 %v12041_v20, %v7292_v7  ;;  %v7294_v55 = vpop.f32.mrb[33].mxu1 }
 0x874   : > { %v7295_v9 = vpop.f32.mrb[34].mxu1 }
 0x875   : > { %v9374_v58 = vpop.eup %9373  ;;  %9379 = vpow2.f32 %v7712_v48  ;;  %v7570_v38 = vmax.f32 %v7506_v6, 0.0  ;;  %v7507_v35 = vadd.f32 %v12041_v20, %v7295_v9  ;;  %v7297_v1 = vpop.f32.mrb[35].mxu1 }
 0x876   : > { %v7822_v43 = vsub.f32 1.0, %v9374_v58 }
 0x877   : > { %v9376_v0 = vpop.eup %9375  ;;  %v7634_v36 = vsub.f32 0.0, %v7570_v38  ;;  %v7571_v39 = vmax.f32 %v7507_v35, 0.0 }
 0x878   : > { %7887 = vst.msk [vmem:[%s12068_s23 + $0x60] sm:$0xff] %vm7874_vm1, %v7822_v43  ;;  %v7823_v31 = vsub.f32 1.0, %v9376_v0 }
 0x879   : > { %v7714_v63 = vmul.f32 1.442695, %v7634_v36  ;;  %v7635_v14 = vsub.f32 0.0, %v7571_v39 }
 0x87a   : > { %7888 = vst.msk [vmem:[%s12068_s23 + $0x68] sm:$0xff] %vm7874_vm1, %v7823_v31  ;;  %v7300_v24 = vpop.f32.mrb[36].mxu1 }
 0x87b   : > { %9381 = vpow2.f32 %v7714_v63  ;;  %v7716_v52 = vmul.f32 1.442695, %v7635_v14  ;;  %v7508_v44 = vadd.f32 %v12041_v20, %v7300_v24  ;;  %v7302_v16 = vpop.f32.mrb[37].mxu1 }
 0x87c   : > { %v7303_v45 = vpop.f32.mrb[38].mxu1 }
 0x87d   : > { %v9378_v5 = vpop.eup %9377  ;;  %9383 = vpow2.f32 %v7716_v52  ;;  %v7572_v41 = vmax.f32 %v7508_v44, 0.0  ;;  %v7509_v61 = vadd.f32 %v12041_v20, %v7303_v45  ;;  %v7305_v12 = vpop.f32.mrb[39].mxu1 }
 0x87e   : > { %v7824_v10 = vsub.f32 1.0, %v9378_v5 }
 0x87f   : > { %v9380_v32 = vpop.eup %9379  ;;  %v7636_v11 = vsub.f32 0.0, %v7572_v41  ;;  %v7573_v3 = vmax.f32 %v7509_v61, 0.0 }
 0x880   : > { %7889 = vst.msk [vmem:[%s12068_s23 + $0x70] sm:$0xff] %vm7874_vm1, %v7824_v10  ;;  %v7825_v4 = vsub.f32 1.0, %v9380_v32 }
 0x881   : > { %v7718_v51 = vmul.f32 1.442695, %v7636_v11  ;;  %v7637_v59 = vsub.f32 0.0, %v7573_v3 }
 0x882   : > { %7890 = vst.msk [vmem:[%s12068_s23 + $0x78] sm:$0xff] %vm7874_vm1, %v7825_v4  ;;  %v7308_v28 = vpop.f32.mrb[40].mxu1 }
 0x883   : > { %9385 = vpow2.f32 %v7718_v51  ;;  %v7720_v15 = vmul.f32 1.442695, %v7637_v59  ;;  %v7510_v21 = vadd.f32 %v12041_v20, %v7308_v28  ;;  %v7310_v56 = vpop.f32.mrb[41].mxu1 }
 0x884   : > { %v7311_v49 = vpop.f32.mrb[42].mxu1 }
 0x885   : > { %v9382_v30 = vpop.eup %9381  ;;  %9387 = vpow2.f32 %v7720_v15  ;;  %v7574_v46 = vmax.f32 %v7510_v21, 0.0  ;;  %v7511_v18 = vadd.f32 %v12041_v20, %v7311_v49  ;;  %v7313_v17 = vpop.f32.mrb[43].mxu1 }
 0x886   : > { %v7826_v23 = vsub.f32 1.0, %v9382_v30 }
 0x887   : > { %v9384_v8 = vpop.eup %9383  ;;  %v7638_v40 = vsub.f32 0.0, %v7574_v46  ;;  %v7575_v19 = vmax.f32 %v7511_v18, 0.0 }
 0x888   : > { %7891 = vst.msk [vmem:[%s12068_s23 + $0x80] sm:$0xff] %vm7874_vm1, %v7826_v23  ;;  %v7827_v37 = vsub.f32 1.0, %v9384_v8 }
 0x889   : > { %v7722_v26 = vmul.f32 1.442695, %v7638_v40  ;;  %v7639_v47 = vsub.f32 0.0, %v7575_v19 }
 0x88a   : > { %7892 = vst.msk [vmem:[%s12068_s23 + $0x88] sm:$0xff] %vm7874_vm1, %v7827_v37  ;;  %v7316_v42 = vpop.f32.mrb[44].mxu1 }
 0x88b   : > { %9389 = vpow2.f32 %v7722_v26  ;;  %v7724_v62 = vmul.f32 1.442695, %v7639_v47  ;;  %v7512_v27 = vadd.f32 %v12041_v20, %v7316_v42  ;;  %v7318_v25 = vpop.f32.mrb[45].mxu1 }
 0x88c   : > { %v7319_v54 = vpop.f32.mrb[46].mxu1 }
 0x88d   : > { %v9386_v22 = vpop.eup %9385  ;;  %9391 = vpow2.f32 %v7724_v62  ;;  %v7576_v53 = vmax.f32 %v7512_v27, 0.0  ;;  %v7513_v34 = vadd.f32 %v12041_v20, %v7319_v54  ;;  %v7321_v60 = vpop.f32.mrb[47].mxu1 }
 0x88e   : > { %v7828_v13 = vsub.f32 1.0, %v9386_v22 }
 0x88f   : > { %v9388_v29 = vpop.eup %9387  ;;  %v7640_v33 = vsub.f32 0.0, %v7576_v53  ;;  %v7577_v2 = vmax.f32 %v7513_v34, 0.0 }
 0x890   : > { %7893 = vst.msk [vmem:[%s12068_s23 + $0x90] sm:$0xff] %vm7874_vm1, %v7828_v13  ;;  %v7829_v57 = vsub.f32 1.0, %v9388_v29 }
 0x891   : > { %v7726_v50 = vmul.f32 1.442695, %v7640_v33  ;;  %v7641_v7 = vsub.f32 0.0, %v7577_v2 }
 0x892   : > { %7894 = vst.msk [vmem:[%s12068_s23 + $0x98] sm:$0xff] %vm7874_vm1, %v7829_v57  ;;  %v7324_v48 = vpop.f32.mrb[48].mxu1 }
 0x893   : > { %9393 = vpow2.f32 %v7726_v50  ;;  %v7728_v6 = vmul.f32 1.442695, %v7641_v7  ;;  %v7514_v55 = vadd.f32 %v12041_v20, %v7324_v48  ;;  %v7326_v9 = vpop.f32.mrb[49].mxu1 }
 0x894   : > { %v7327_v58 = vpop.f32.mrb[50].mxu1 }
 0x895   : > { %v9390_v38 = vpop.eup %9389  ;;  %9395 = vpow2.f32 %v7728_v6  ;;  %v7578_v35 = vmax.f32 %v7514_v55, 0.0  ;;  %v7515_v1 = vadd.f32 %v12041_v20, %v7327_v58  ;;  %v7329_v43 = vpop.f32.mrb[51].mxu1 }
 0x896   : > { %v7830_v0 = vsub.f32 1.0, %v9390_v38 }
 0x897   : > { %v9392_v36 = vpop.eup %9391  ;;  %v7642_v39 = vsub.f32 0.0, %v7578_v35  ;;  %v7579_v31 = vmax.f32 %v7515_v1, 0.0 }
 0x898   : > { %7895 = vst.msk [vmem:[%s12068_s23 + $0xa0] sm:$0xff] %vm7874_vm1, %v7830_v0  ;;  %v7831_v63 = vsub.f32 1.0, %v9392_v36 }
 0x899   : > { %v7730_v14 = vmul.f32 1.442695, %v7642_v39  ;;  %v7643_v24 = vsub.f32 0.0, %v7579_v31 }
 0x89a   : > { %7896 = vst.msk [vmem:[%s12068_s23 + $0xa8] sm:$0xff] %vm7874_vm1, %v7831_v63  ;;  %v7332_v52 = vpop.f32.mrb[52].mxu1 }
 0x89b   : > { %9397 = vpow2.f32 %v7730_v14  ;;  %v7732_v44 = vmul.f32 1.442695, %v7643_v24  ;;  %v7516_v16 = vadd.f32 %v12041_v20, %v7332_v52  ;;  %v7334_v45 = vpop.f32.mrb[53].mxu1 }
 0x89c   : > { %v7335_v5 = vpop.f32.mrb[54].mxu1 }
 0x89d   : > { %v9394_v41 = vpop.eup %9393  ;;  %9399 = vpow2.f32 %v7732_v44  ;;  %v7580_v61 = vmax.f32 %v7516_v16, 0.0  ;;  %v7517_v12 = vadd.f32 %v12041_v20, %v7335_v5  ;;  %v7337_v10 = vpop.f32.mrb[55].mxu1 }
 0x89e   : > { %v7832_v32 = vsub.f32 1.0, %v9394_v41 }
 0x89f   : > { %v9396_v11 = vpop.eup %9395  ;;  %v7644_v3 = vsub.f32 0.0, %v7580_v61  ;;  %v7581_v4 = vmax.f32 %v7517_v12, 0.0 }
 0x8a0   : > { %7897 = vst.msk [vmem:[%s12068_s23 + $0xb0] sm:$0xff] %vm7874_vm1, %v7832_v32  ;;  %v7833_v51 = vsub.f32 1.0, %v9396_v11 }
 0x8a1   : > { %v7734_v59 = vmul.f32 1.442695, %v7644_v3  ;;  %v7645_v28 = vsub.f32 0.0, %v7581_v4 }
 0x8a2   : > { %7898 = vst.msk [vmem:[%s12068_s23 + $0xb8] sm:$0xff] %vm7874_vm1, %v7833_v51  ;;  %v7340_v15 = vpop.f32.mrb[56].mxu1 }
 0x8a3   : > { %9401 = vpow2.f32 %v7734_v59  ;;  %v7736_v21 = vmul.f32 1.442695, %v7645_v28  ;;  %v7518_v56 = vadd.f32 %v12041_v20, %v7340_v15  ;;  %v7342_v49 = vpop.f32.mrb[57].mxu1 }
 0x8a4   : > { %v7343_v30 = vpop.f32.mrb[58].mxu1 }
 0x8a5   : > { %v9398_v46 = vpop.eup %9397  ;;  %9403 = vpow2.f32 %v7736_v21  ;;  %v7582_v18 = vmax.f32 %v7518_v56, 0.0  ;;  %v7519_v17 = vadd.f32 %v12041_v20, %v7343_v30  ;;  %v7345_v23 = vpop.f32.mrb[59].mxu1 }
 0x8a6   : > { %v7834_v8 = vsub.f32 1.0, %v9398_v46 }
 0x8a7   : > { %v9400_v40 = vpop.eup %9399  ;;  %v7646_v19 = vsub.f32 0.0, %v7582_v18  ;;  %v7583_v37 = vmax.f32 %v7519_v17, 0.0 }
 0x8a8   : > { %7899 = vst.msk [vmem:[%s12068_s23 + $0xc0] sm:$0xff] %vm7874_vm1, %v7834_v8  ;;  %v7835_v26 = vsub.f32 1.0, %v9400_v40 }
 0x8a9   : > { %v7738_v47 = vmul.f32 1.442695, %v7646_v19  ;;  %v7647_v42 = vsub.f32 0.0, %v7583_v37 }
 0x8aa   : > { %7900 = vst.msk [vmem:[%s12068_s23 + $0xc8] sm:$0xff] %vm7874_vm1, %v7835_v26  ;;  %v7348_v62 = vpop.f32.mrb[60].mxu1 }
 0x8ab   : > { %9405 = vpow2.f32 %v7738_v47  ;;  %v7740_v27 = vmul.f32 1.442695, %v7647_v42  ;;  %v7520_v25 = vadd.f32 %v12041_v20, %v7348_v62  ;;  %v7350_v54 = vpop.f32.mrb[61].mxu1 }
 0x8ac   : > { %v7351_v22 = vpop.f32.mrb[62].mxu1 }
 0x8ad   : > { %v9402_v53 = vpop.eup %9401  ;;  %9407 = vpow2.f32 %v7740_v27  ;;  %v7584_v34 = vmax.f32 %v7520_v25, 0.0  ;;  %v7521_v60 = vadd.f32 %v12041_v20, %v7351_v22  ;;  %v7353_v13 = vpop.f32.mrb[63].mxu1 }
 0x8ae   : > { %v7836_v29 = vsub.f32 1.0, %v9402_v53 }
 0x8af   : > { %v9404_v33 = vpop.eup %9403  ;;  %v7648_v2 = vsub.f32 0.0, %v7584_v34  ;;  %v7585_v57 = vmax.f32 %v7521_v60, 0.0 }
 0x8b0   : > { %7901 = vst.msk [vmem:[%s12068_s23 + $0xd0] sm:$0xff] %vm7874_vm1, %v7836_v29  ;;  %v7837_v50 = vsub.f32 1.0, %v9404_v33 }
 0x8b1   : > { %v7742_v7 = vmul.f32 1.442695, %v7648_v2  ;;  %v7649_v48 = vsub.f32 0.0, %v7585_v57 }
 0x8b2   : > { %7902 = vst.msk [vmem:[%s12068_s23 + $0xd8] sm:$0xff] %vm7874_vm1, %v7837_v50  ;;  %v7356_v6 = vpop.f32.mrb[64].mxu1 }
 0x8b3   : > { %9409 = vpow2.f32 %v7742_v7  ;;  %v7744_v55 = vmul.f32 1.442695, %v7649_v48  ;;  %v7522_v9 = vadd.f32 %v12041_v20, %v7356_v6  ;;  %v7358_v58 = vpop.f32.mrb[65].mxu1 }
 0x8b4   : > { %v7359_v38 = vpop.f32.mrb[66].mxu1 }
 0x8b5   : > { %v9406_v35 = vpop.eup %9405  ;;  %9411 = vpow2.f32 %v7744_v55  ;;  %v7586_v1 = vmax.f32 %v7522_v9, 0.0  ;;  %v7523_v43 = vadd.f32 %v12041_v20, %v7359_v38  ;;  %v7361_v0 = vpop.f32.mrb[67].mxu1 }
 0x8b6   : > { %v7838_v36 = vsub.f32 1.0, %v9406_v35 }
 0x8b7   : > { %v9408_v39 = vpop.eup %9407  ;;  %v7650_v31 = vsub.f32 0.0, %v7586_v1  ;;  %v7587_v63 = vmax.f32 %v7523_v43, 0.0 }
 0x8b8   : > { %7903 = vst.msk [vmem:[%s12068_s23 + $0xe0] sm:$0xff] %vm7874_vm1, %v7838_v36  ;;  %v7839_v14 = vsub.f32 1.0, %v9408_v39 }
 0x8b9   : > { %v7746_v24 = vmul.f32 1.442695, %v7650_v31  ;;  %v7651_v52 = vsub.f32 0.0, %v7587_v63 }
 0x8ba   : > { %7904 = vst.msk [vmem:[%s12068_s23 + $0xe8] sm:$0xff] %vm7874_vm1, %v7839_v14  ;;  %v7364_v44 = vpop.f32.mrb[68].mxu1 }
 0x8bb   : > { %9413 = vpow2.f32 %v7746_v24  ;;  %v7748_v16 = vmul.f32 1.442695, %v7651_v52  ;;  %v7524_v45 = vadd.f32 %v12041_v20, %v7364_v44  ;;  %v7366_v5 = vpop.f32.mrb[69].mxu1 }
 0x8bc   : > { %v7367_v41 = vpop.f32.mrb[70].mxu1 }
 0x8bd   : > { %v9410_v61 = vpop.eup %9409  ;;  %9415 = vpow2.f32 %v7748_v16  ;;  %v7588_v12 = vmax.f32 %v7524_v45, 0.0  ;;  %v7525_v10 = vadd.f32 %v12041_v20, %v7367_v41  ;;  %v7369_v32 = vpop.f32.mrb[71].mxu1 }
 0x8be   : > { %v7840_v11 = vsub.f32 1.0, %v9410_v61 }
 0x8bf   : > { %v9412_v3 = vpop.eup %9411  ;;  %v7652_v4 = vsub.f32 0.0, %v7588_v12  ;;  %v7589_v51 = vmax.f32 %v7525_v10, 0.0 }
 0x8c0   : > { %7905 = vst.msk [vmem:[%s12068_s23 + $0xf0] sm:$0xff] %vm7874_vm1, %v7840_v11  ;;  %v7841_v59 = vsub.f32 1.0, %v9412_v3 }
 0x8c1   : > { %v7750_v28 = vmul.f32 1.442695, %v7652_v4  ;;  %v7653_v15 = vsub.f32 0.0, %v7589_v51 }
 0x8c2   : > { %7906 = vst.msk [vmem:[%s12068_s23 + $0xf8] sm:$0xff] %vm7874_vm1, %v7841_v59  ;;  %v7372_v21 = vpop.f32.mrb[72].mxu1 }
 0x8c3   : > { %9417 = vpow2.f32 %v7750_v28  ;;  %v7752_v56 = vmul.f32 1.442695, %v7653_v15  ;;  %v7526_v49 = vadd.f32 %v12041_v20, %v7372_v21  ;;  %v7374_v30 = vpop.f32.mrb[73].mxu1 }
 0x8c4   : > { %v7375_v46 = vpop.f32.mrb[74].mxu1 }
 0x8c5   : > { %9519 = shalt.err (!%p9516_p7)
}
 0x8c6   : > { %s9520_s17 = scalar_lea.hbm %s12182_s15, 8192  ;;  %s9524_s22 = scalar_lea.hbm %s12332_s7, 16384 }
 0x8c7   : > { %p9521_p8 = scmp.ne.s32.totalorder %s12182_s15, %s9520_s17  ;;  %p9525_p1 = scmp.lt.u32.totalorder %s12182_s15, %s12332_s7 }
 0x8c8   : > { %p9526_p0 = scmp.lt.u32.totalorder %s9524_s22, %s9520_s17  ;;  %p9528_p6 = scmp.lt.u32.totalorder %s9520_s17, %s12182_s15 }
 0x8c9   : > { %p9522_p11 = pnand %p9521_p8, %p12467_p9 }
 0x8ca   : > { %p9527_p5 = por %p9526_p0, %p9525_p1 }
 0x8cb   : > { %p9523_p13 = pneg %p9522_p11 }
 0x8cc   : > { %p9529_p10 = por %p9528_p6, %p9527_p5 }
 0x8ce   : > { %p9530_p12 = pnand %p9529_p10, %p9523_p13 }
 0x8d0   : > { %9533 = shalt.err (!%p9530_p12)
}
 0x8d1   : > { %s9579_s25 = smov 128   ;;  %s9580_s30 = smov 8   ;;  %v9414_v18 = vpop.eup %9413  ;;  %9419 = vpow2.f32 %v7752_v56  ;;  %v7590_v17 = vmax.f32 %v7526_v49, 0.0  ;;  %v7527_v23 = vadd.f32 %v12041_v20, %v7375_v46  ;;  %v7377_v8 = vpop.f32.mrb[75].mxu1  ;;  %v12238_v30 = vld [vmem:[#allocation2] ss:$0 sm:$0xff] }
 0x8d2   : > { %8888 = dma.vmem_to_hbm [thread:$0]  (%p12467_p9), %s12186_s24, 8192, %s12182_s15, %s12191_s5, %s9579_s25, %s9579_s25, %s9580_s30   ;;  %v7842_v40 = vsub.f32 1.0, %v9414_v18  ;;  %v9416_v19 = vpop.eup %9415  ;;  %v7380_v27 = vpop.f32.mrb[76].mxu1 }
 0x8d3   : > { %v7654_v37 = vsub.f32 0.0, %v7590_v17  ;;  %v7591_v26 = vmax.f32 %v7527_v23, 0.0  ;;  %v7843_v47 = vsub.f32 1.0, %v9416_v19  ;;  %v7528_v54 = vadd.f32 %v12041_v20, %v7380_v27  ;;  %v7382_v22 = vpop.f32.mrb[77].mxu1  ;;  %v9418_v34 = vpop.eup %9417 }
 0x8d4   : > { %7907 = vst.msk [vmem:[%s12068_s23 + $0x100] sm:$0xff] %vm7874_vm1, %v7842_v40  ;;  %v7383_v53 = vpop.f32.mrb[78].mxu1  ;;  %v7844_v33 = vsub.f32 1.0, %v9418_v34 }
 0x8d5   : > { %v7754_v42 = vmul.f32 1.442695, %v7654_v37  ;;  %v7655_v62 = vsub.f32 0.0, %v7591_v26  ;;  %7908 = vst.msk [vmem:[%s12068_s23 + $0x108] sm:$0xff] %vm7874_vm1, %v7843_v47  ;;  %v7592_v60 = vmax.f32 %v7528_v54, 0.0  ;;  %v7529_v13 = vadd.f32 %v12041_v20, %v7383_v53  ;;  %v7385_v29 = vpop.f32.mrb[79].mxu1 }
 0x8d6   : > { %7909 = vst.msk [vmem:[%s12068_s23 + $0x110] sm:$0xff] %vm7874_vm1, %v7844_v33  ;;  %v7388_v55 = vpop.f32.mrb[80].mxu1 }
 0x8d7   : > { %9421 = vpow2.f32 %v7754_v42  ;;  %v7756_v25 = vmul.f32 1.442695, %v7655_v62  ;;  %v7656_v57 = vsub.f32 0.0, %v7592_v60  ;;  %v7593_v50 = vmax.f32 %v7529_v13, 0.0  ;;  %v7390_v38 = vpop.f32.mrb[81].mxu1 }
 0x8d8   : > { %v7530_v58 = vadd.f32 %v12041_v20, %v7388_v55  ;;  %v7391_v35 = vpop.f32.mrb[82].mxu1 }
 0x8d9   : > { %9423 = vpow2.f32 %v7756_v25  ;;  %v7758_v48 = vmul.f32 1.442695, %v7656_v57  ;;  %v7657_v6 = vsub.f32 0.0, %v7593_v50  ;;  %v7531_v0 = vadd.f32 %v12041_v20, %v7391_v35  ;;  %v7393_v36 = vpop.f32.mrb[83].mxu1 }
 0x8da   : > { %v7594_v43 = vmax.f32 %v7530_v58, 0.0  ;;  %v7396_v16 = vpop.f32.mrb[84].mxu1 }
 0x8db   : > { %v9420_v2 = vpop.eup %9419  ;;  %9425 = vpow2.f32 %v7758_v48  ;;  %v7760_v9 = vmul.f32 1.442695, %v7657_v6  ;;  %v7595_v14 = vmax.f32 %v7531_v0, 0.0  ;;  %v7532_v5 = vadd.f32 %v12041_v20, %v7396_v16  ;;  %v7398_v41 = vpop.f32.mrb[85].mxu1 }
 0x8dc   : > { %v7845_v7 = vsub.f32 1.0, %v9420_v2  ;;  %v7658_v63 = vsub.f32 0.0, %v7594_v43  ;;  %v7399_v61 = vpop.f32.mrb[86].mxu1 }
 0x8dd   : > { %9427 = vpow2.f32 %v7760_v9  ;;  %v7659_v44 = vsub.f32 0.0, %v7595_v14  ;;  %v7596_v10 = vmax.f32 %v7532_v5, 0.0  ;;  %v7533_v32 = vadd.f32 %v12041_v20, %v7399_v61  ;;  %v7401_v11 = vpop.f32.mrb[87].mxu1 }
 0x8de   : > { %7910 = vst.msk [vmem:[%s12068_s23 + $0x118] sm:$0xff] %vm7874_vm1, %v7845_v7  ;;  %v7762_v52 = vmul.f32 1.442695, %v7658_v63 }
 0x8df   : > { %v7764_v45 = vmul.f32 1.442695, %v7659_v44  ;;  %v7660_v51 = vsub.f32 0.0, %v7596_v10  ;;  %v7597_v59 = vmax.f32 %v7533_v32, 0.0 }
 0x8e0   : > { %9429 = vpow2.f32 %v7762_v52 }
 0x8e1   : > { %v9422_v1 = vpop.eup %9421  ;;  %9431 = vpow2.f32 %v7764_v45  ;;  %v7766_v15 = vmul.f32 1.442695, %v7660_v51  ;;  %v7661_v21 = vsub.f32 0.0, %v7597_v59 }
 0x8e2   : > { %v7846_v39 = vsub.f32 1.0, %v9422_v1  ;;  %v7404_v56 = vpop.f32.mrb[88].mxu1 }
 0x8e3   : > { %v9424_v31 = vpop.eup %9423  ;;  %9433 = vpow2.f32 %v7766_v15  ;;  %v7768_v49 = vmul.f32 1.442695, %v7661_v21  ;;  %v7534_v20 = vadd.f32 %v12238_v30, %v7404_v56  ;;  %v7406_v46 = vpop.f32.mrb[89].mxu1 }
 0x8e4   : > { %7911 = vst.msk [vmem:[%s12068_s23 + $0x120] sm:$0xff] %vm7874_vm1, %v7846_v39  ;;  %v7847_v24 = vsub.f32 1.0, %v9424_v31  ;;  %v7407_v18 = vpop.f32.mrb[90].mxu1 }
 0x8e5   : > { %v9426_v12 = vpop.eup %9425  ;;  %9435 = vpow2.f32 %v7768_v49  ;;  %v7598_v23 = vmax.f32 %v7534_v20, 0.0  ;;  %v7535_v8 = vadd.f32 %v12238_v30, %v7407_v18  ;;  %v7409_v40 = vpop.f32.mrb[91].mxu1 }
 0x8e6   : > { %7912 = vst.msk [vmem:[%s12068_s23 + $0x128] sm:$0xff] %vm7874_vm1, %v7847_v24  ;;  %v7848_v3 = vsub.f32 1.0, %v9426_v12 }
 0x8e7   : > { %v9428_v4 = vpop.eup %9427  ;;  %v7662_v26 = vsub.f32 0.0, %v7598_v23  ;;  %v7599_v47 = vmax.f32 %v7535_v8, 0.0 }
 0x8e8   : > { %7913 = vst.msk [vmem:[%s12068_s23 + $0x130] sm:$0xff] %vm7874_vm1, %v7848_v3  ;;  %v7849_v28 = vsub.f32 1.0, %v9428_v4 }
 0x8e9   : > { %v7770_v62 = vmul.f32 1.442695, %v7662_v26  ;;  %v7663_v27 = vsub.f32 0.0, %v7599_v47 }
 0x8ea   : > { %7914 = vst.msk [vmem:[%s12068_s23 + $0x138] sm:$0xff] %vm7874_vm1, %v7849_v28  ;;  %v9430_v17 = vpop.eup %9429  ;;  %v7412_v25 = vpop.f32.mrb[92].mxu1 }
 0x8eb   : > { %v7850_v19 = vsub.f32 1.0, %v9430_v17  ;;  %v9432_v37 = vpop.eup %9431  ;;  %9437 = vpow2.f32 %v7770_v62  ;;  %v7772_v54 = vmul.f32 1.442695, %v7663_v27  ;;  %v7536_v22 = vadd.f32 %v12238_v30, %v7412_v25  ;;  %v7414_v53 = vpop.f32.mrb[93].mxu1 }
 0x8ec   : > { %v7851_v42 = vsub.f32 1.0, %v9432_v37  ;;  %v7415_v34 = vpop.f32.mrb[94].mxu1 }
 0x8ed   : > { %7915 = vst.msk [vmem:[%s12068_s23 + $0x140] sm:$0xff] %vm7874_vm1, %v7850_v19  ;;  %v9434_v60 = vpop.eup %9433  ;;  %9439 = vpow2.f32 %v7772_v54  ;;  %v7600_v13 = vmax.f32 %v7536_v22, 0.0  ;;  %v7537_v29 = vadd.f32 %v12238_v30, %v7415_v34  ;;  %v7417_v33 = vpop.f32.mrb[95].mxu1 }
 0x8ee   : > { %7916 = vst.msk [vmem:[%s12068_s23 + $0x148] sm:$0xff] %vm7874_vm1, %v7851_v42  ;;  %v7852_v2 = vsub.f32 1.0, %v9434_v60 }
 0x8ef   : > { %v9436_v57 = vpop.eup %9435  ;;  %v7664_v50 = vsub.f32 0.0, %v7600_v13  ;;  %v7601_v7 = vmax.f32 %v7537_v29, 0.0 }
 0x8f0   : > { %7917 = vst.msk [vmem:[%s12068_s23 + $0x150] sm:$0xff] %vm7874_vm1, %v7852_v2  ;;  %v7853_v48 = vsub.f32 1.0, %v9436_v57 }
 0x8f1   : > { %v7774_v6 = vmul.f32 1.442695, %v7664_v50  ;;  %v7665_v55 = vsub.f32 0.0, %v7601_v7 }
 0x8f2   : > { %7918 = vst.msk [vmem:[%s12068_s23 + $0x158] sm:$0xff] %vm7874_vm1, %v7853_v48  ;;  %v7420_v9 = vpop.f32.mrb[96].mxu1 }
 0x8f3   : > { %9441 = vpow2.f32 %v7774_v6  ;;  %v7776_v58 = vmul.f32 1.442695, %v7665_v55  ;;  %v7538_v38 = vadd.f32 %v12238_v30, %v7420_v9  ;;  %v7422_v35 = vpop.f32.mrb[97].mxu1 }
 0x8f4   : > { %v7423_v1 = vpop.f32.mrb[98].mxu1 }
 0x8f5   : > { %v9438_v43 = vpop.eup %9437  ;;  %9443 = vpow2.f32 %v7776_v58  ;;  %v7602_v0 = vmax.f32 %v7538_v38, 0.0  ;;  %v7539_v36 = vadd.f32 %v12238_v30, %v7423_v1  ;;  %v7425_v39 = vpop.f32.mrb[99].mxu1 }
 0x8f6   : > { %v7854_v31 = vsub.f32 1.0, %v9438_v43 }
 0x8f7   : > { %v9440_v63 = vpop.eup %9439  ;;  %v7666_v14 = vsub.f32 0.0, %v7602_v0  ;;  %v7603_v24 = vmax.f32 %v7539_v36, 0.0 }
 0x8f8   : > { %7919 = vst.msk [vmem:[%s12068_s23 + $0x160] sm:$0xff] %vm7874_vm1, %v7854_v31  ;;  %v7855_v52 = vsub.f32 1.0, %v9440_v63 }
 0x8f9   : > { %v7778_v44 = vmul.f32 1.442695, %v7666_v14  ;;  %v7667_v16 = vsub.f32 0.0, %v7603_v24 }
 0x8fa   : > { %7920 = vst.msk [vmem:[%s12068_s23 + $0x168] sm:$0xff] %vm7874_vm1, %v7855_v52  ;;  %v7428_v45 = vpop.f32.mrb[100].mxu1 }
 0x8fb   : > { %9445 = vpow2.f32 %v7778_v44  ;;  %v7780_v5 = vmul.f32 1.442695, %v7667_v16  ;;  %v7540_v41 = vadd.f32 %v12238_v30, %v7428_v45  ;;  %v7430_v61 = vpop.f32.mrb[101].mxu1 }
 0x8fc   : > { %v7431_v12 = vpop.f32.mrb[102].mxu1 }
 0x8fd   : > { %v9442_v10 = vpop.eup %9441  ;;  %9447 = vpow2.f32 %v7780_v5  ;;  %v7604_v32 = vmax.f32 %v7540_v41, 0.0  ;;  %v7541_v11 = vadd.f32 %v12238_v30, %v7431_v12  ;;  %v7433_v3 = vpop.f32.mrb[103].mxu1 }
 0x8fe   : > { %v7856_v4 = vsub.f32 1.0, %v9442_v10 }
 0x8ff   : > { %v9444_v51 = vpop.eup %9443  ;;  %v7668_v59 = vsub.f32 0.0, %v7604_v32  ;;  %v7605_v28 = vmax.f32 %v7541_v11, 0.0 }
 0x900   : > { %7921 = vst.msk [vmem:[%s12068_s23 + $0x170] sm:$0xff] %vm7874_vm1, %v7856_v4  ;;  %v7857_v15 = vsub.f32 1.0, %v9444_v51 }
 0x901   : > { %v7782_v21 = vmul.f32 1.442695, %v7668_v59  ;;  %v7669_v56 = vsub.f32 0.0, %v7605_v28 }
 0x902   : > { %7922 = vst.msk [vmem:[%s12068_s23 + $0x178] sm:$0xff] %vm7874_vm1, %v7857_v15  ;;  %v7436_v49 = vpop.f32.mrb[104].mxu1 }
 0x903   : > { %9449 = vpow2.f32 %v7782_v21  ;;  %v7784_v20 = vmul.f32 1.442695, %v7669_v56  ;;  %v7542_v46 = vadd.f32 %v12238_v30, %v7436_v49  ;;  %v7438_v18 = vpop.f32.mrb[105].mxu1 }
 0x904   : > { %v7439_v17 = vpop.f32.mrb[106].mxu1 }
 0x905   : > { %v9446_v23 = vpop.eup %9445  ;;  %9451 = vpow2.f32 %v7784_v20  ;;  %v7606_v8 = vmax.f32 %v7542_v46, 0.0  ;;  %v7543_v40 = vadd.f32 %v12238_v30, %v7439_v17  ;;  %v7441_v19 = vpop.f32.mrb[107].mxu1 }
 0x906   : > { %v7858_v37 = vsub.f32 1.0, %v9446_v23 }
 0x907   : > { %v9448_v26 = vpop.eup %9447  ;;  %v7670_v47 = vsub.f32 0.0, %v7606_v8  ;;  %v7607_v42 = vmax.f32 %v7543_v40, 0.0 }
 0x908   : > { %7923 = vst.msk [vmem:[%s12068_s23 + $0x180] sm:$0xff] %vm7874_vm1, %v7858_v37  ;;  %v7859_v62 = vsub.f32 1.0, %v9448_v26 }
 0x909   : > { %v7786_v27 = vmul.f32 1.442695, %v7670_v47  ;;  %v7671_v25 = vsub.f32 0.0, %v7607_v42 }
 0x90a   : > { %7924 = vst.msk [vmem:[%s12068_s23 + $0x188] sm:$0xff] %vm7874_vm1, %v7859_v62  ;;  %v7444_v54 = vpop.f32.mrb[108].mxu1 }
 0x90b   : > { %9453 = vpow2.f32 %v7786_v27  ;;  %v7788_v22 = vmul.f32 1.442695, %v7671_v25  ;;  %v7544_v53 = vadd.f32 %v12238_v30, %v7444_v54  ;;  %v7446_v34 = vpop.f32.mrb[109].mxu1 }
 0x90c   : > { %v7447_v60 = vpop.f32.mrb[110].mxu1 }
 0x90d   : > { %v9450_v13 = vpop.eup %9449  ;;  %9455 = vpow2.f32 %v7788_v22  ;;  %v7608_v29 = vmax.f32 %v7544_v53, 0.0  ;;  %v7545_v33 = vadd.f32 %v12238_v30, %v7447_v60  ;;  %v7449_v2 = vpop.f32.mrb[111].mxu1 }
 0x90e   : > { %v7860_v57 = vsub.f32 1.0, %v9450_v13 }
 0x90f   : > { %v9452_v50 = vpop.eup %9451  ;;  %v7672_v7 = vsub.f32 0.0, %v7608_v29  ;;  %v7609_v48 = vmax.f32 %v7545_v33, 0.0 }
 0x910   : > { %7925 = vst.msk [vmem:[%s12068_s23 + $0x190] sm:$0xff] %vm7874_vm1, %v7860_v57  ;;  %v7861_v6 = vsub.f32 1.0, %v9452_v50 }
 0x911   : > { %v7790_v55 = vmul.f32 1.442695, %v7672_v7  ;;  %v7673_v9 = vsub.f32 0.0, %v7609_v48 }
 0x912   : > { %7926 = vst.msk [vmem:[%s12068_s23 + $0x198] sm:$0xff] %vm7874_vm1, %v7861_v6  ;;  %v7452_v58 = vpop.f32.mrb[112].mxu1 }
 0x913   : > { %9457 = vpow2.f32 %v7790_v55  ;;  %v7792_v38 = vmul.f32 1.442695, %v7673_v9  ;;  %v7546_v35 = vadd.f32 %v12238_v30, %v7452_v58  ;;  %v7454_v1 = vpop.f32.mrb[113].mxu1 }
 0x914   : > { %v7455_v43 = vpop.f32.mrb[114].mxu1 }
 0x915   : > { %v9454_v0 = vpop.eup %9453  ;;  %9459 = vpow2.f32 %v7792_v38  ;;  %v7610_v36 = vmax.f32 %v7546_v35, 0.0  ;;  %v7547_v39 = vadd.f32 %v12238_v30, %v7455_v43  ;;  %v7457_v31 = vpop.f32.mrb[115].mxu1 }
 0x916   : > { %v7862_v63 = vsub.f32 1.0, %v9454_v0 }
 0x917   : > { %v9456_v14 = vpop.eup %9455  ;;  %v7674_v24 = vsub.f32 0.0, %v7610_v36  ;;  %v7611_v52 = vmax.f32 %v7547_v39, 0.0 }
 0x918   : > { %7927 = vst.msk [vmem:[%s12068_s23 + $0x1a0] sm:$0xff] %vm7874_vm1, %v7862_v63  ;;  %v7863_v44 = vsub.f32 1.0, %v9456_v14 }
 0x919   : > { %v7794_v16 = vmul.f32 1.442695, %v7674_v24  ;;  %v7675_v45 = vsub.f32 0.0, %v7611_v52 }
 0x91a   : > { %7928 = vst.msk [vmem:[%s12068_s23 + $0x1a8] sm:$0xff] %vm7874_vm1, %v7863_v44  ;;  %v7460_v5 = vpop.f32.mrb[116].mxu1 }
 0x91b   : > { %9461 = vpow2.f32 %v7794_v16  ;;  %v7796_v41 = vmul.f32 1.442695, %v7675_v45  ;;  %v7548_v61 = vadd.f32 %v12238_v30, %v7460_v5  ;;  %v7462_v12 = vpop.f32.mrb[117].mxu1 }
 0x91c   : > { %v7463_v10 = vpop.f32.mrb[118].mxu1 }
 0x91d   : > { %v9458_v32 = vpop.eup %9457  ;;  %9463 = vpow2.f32 %v7796_v41  ;;  %v7612_v11 = vmax.f32 %v7548_v61, 0.0  ;;  %v7549_v3 = vadd.f32 %v12238_v30, %v7463_v10  ;;  %v7465_v4 = vpop.f32.mrb[119].mxu1 }
 0x91e   : > { %v7864_v51 = vsub.f32 1.0, %v9458_v32 }
 0x91f   : > { %v9460_v59 = vpop.eup %9459  ;;  %v7676_v28 = vsub.f32 0.0, %v7612_v11  ;;  %v7613_v15 = vmax.f32 %v7549_v3, 0.0 }
 0x920   : > { %7929 = vst.msk [vmem:[%s12068_s23 + $0x1b0] sm:$0xff] %vm7874_vm1, %v7864_v51  ;;  %v7865_v21 = vsub.f32 1.0, %v9460_v59 }
 0x921   : > { %v7798_v56 = vmul.f32 1.442695, %v7676_v28  ;;  %v7677_v49 = vsub.f32 0.0, %v7613_v15 }
 0x922   : > { %7930 = vst.msk [vmem:[%s12068_s23 + $0x1b8] sm:$0xff] %vm7874_vm1, %v7865_v21  ;;  %v7468_v20 = vpop.f32.mrb[120].mxu1 }
 0x923   : > { %9465 = vpow2.f32 %v7798_v56  ;;  %v7800_v46 = vmul.f32 1.442695, %v7677_v49  ;;  %v7550_v18 = vadd.f32 %v12238_v30, %v7468_v20  ;;  %v7470_v17 = vpop.f32.mrb[121].mxu1 }
 0x924   : > { %v7471_v23 = vpop.f32.mrb[122].mxu1 }
 0x925   : > { %v9462_v8 = vpop.eup %9461  ;;  %9467 = vpow2.f32 %v7800_v46  ;;  %v7614_v40 = vmax.f32 %v7550_v18, 0.0  ;;  %v7551_v19 = vadd.f32 %v12238_v30, %v7471_v23  ;;  %v7473_v37 = vpop.f32.mrb[123].mxu1 }
 0x926   : > { %v7866_v26 = vsub.f32 1.0, %v9462_v8 }
 0x927   : > { %v9464_v47 = vpop.eup %9463  ;;  %v7678_v42 = vsub.f32 0.0, %v7614_v40  ;;  %v7615_v62 = vmax.f32 %v7551_v19, 0.0 }
 0x928   : > { %7931 = vst.msk [vmem:[%s12068_s23 + $0x1c0] sm:$0xff] %vm7874_vm1, %v7866_v26  ;;  %v7867_v27 = vsub.f32 1.0, %v9464_v47 }
 0x929   : > { %v7802_v25 = vmul.f32 1.442695, %v7678_v42  ;;  %v7679_v54 = vsub.f32 0.0, %v7615_v62 }
 0x92a   : > { %7932 = vst.msk [vmem:[%s12068_s23 + $0x1c8] sm:$0xff] %vm7874_vm1, %v7867_v27  ;;  %v7476_v22 = vpop.f32.mrb[124].mxu1 }
 0x92b   : > { %9469 = vpow2.f32 %v7802_v25  ;;  %v7804_v53 = vmul.f32 1.442695, %v7679_v54  ;;  %v7552_v34 = vadd.f32 %v12238_v30, %v7476_v22  ;;  %v7478_v60 = vpop.f32.mrb[125].mxu1 }
 0x92c   : > { %v7479_v13 = vpop.f32.mrb[126].mxu1 }
 0x92d   : > { %v9466_v29 = vpop.eup %9465  ;;  %9471 = vpow2.f32 %v7804_v53  ;;  %v7616_v33 = vmax.f32 %v7552_v34, 0.0  ;;  %v7553_v2 = vadd.f32 %v12238_v30, %v7479_v13  ;;  %v7481_v57 = vpop.f32.mrb[127].mxu1 }
 0x92e   : > { %v7868_v50 = vsub.f32 1.0, %v9466_v29 }
 0x92f   : > { %v9468_v7 = vpop.eup %9467  ;;  %v7680_v48 = vsub.f32 0.0, %v7616_v33  ;;  %v7617_v6 = vmax.f32 %v7553_v2, 0.0 }
 0x930   : > { %7933 = vst.msk [vmem:[%s12068_s23 + $0x1d0] sm:$0xff] %vm7874_vm1, %v7868_v50  ;;  %v7869_v55 = vsub.f32 1.0, %v9468_v7 }
 0x931   : > { %v7806_v9 = vmul.f32 1.442695, %v7680_v48  ;;  %v7681_v58 = vsub.f32 0.0, %v7617_v6 }
 0x932   : > { %7934 = vst.msk [vmem:[%s12068_s23 + $0x1d8] sm:$0xff] %vm7874_vm1, %v7869_v55 }
 0x933   : > { %9473 = vpow2.f32 %v7806_v9  ;;  %v7808_v38 = vmul.f32 1.442695, %v7681_v58 }
 0x935   : > { %v9470_v35 = vpop.eup %9469  ;;  %9475 = vpow2.f32 %v7808_v38 }
 0x936   : > { %v7870_v30 = vsub.f32 1.0, %v9470_v35 }
 0x937   : > { %v9472_v1 = vpop.eup %9471 }
 0x938   : > { %7935 = vst.msk [vmem:[%s12068_s23 + $0x1e0] sm:$0xff] %vm7874_vm1, %v7870_v30  ;;  %v7871_v43 = vsub.f32 1.0, %v9472_v1 }
 0x93a   : > { %7936 = vst.msk [vmem:[%s12068_s23 + $0x1e8] sm:$0xff] %vm7874_vm1, %v7871_v43 }
 0x93d   : > { %v9474_v0 = vpop.eup %9473 }
 0x93e   : > { %v7872_v36 = vsub.f32 1.0, %v9474_v0 }
 0x93f   : > { %v9476_v39 = vpop.eup %9475 }
 0x940   : > { %7937 = vst.msk [vmem:[%s12068_s23 + $0x1f0] sm:$0xff] %vm7874_vm1, %v7872_v36  ;;  %v7873_v31 = vsub.f32 1.0, %v9476_v39 }
 0x942   : > { %7938 = vst.msk [vmem:[%s12068_s23 + $0x1f8] sm:$0xff] %vm7874_vm1, %v7873_v31 }
 0x943 PF: > { %p8900_p9 = scmp.ge.s32.totalorder %s9572_s29, 2  ;;  %s8370_s12 = sand.u32 1, %s9560_s26  }
 0x944   : > { %p12468_p2 = scmp.ne.s32.totalorder %s12371_s13, 0  ;;  %s8371_s24 = scalar_lea.sflag [#allocation5], %s8370_s12 }
 0x946   : > { %p8895_p3 = pnand %p8900_p9, %p12468_p2 }
 0x948   : > { %9555 = dma.done.wait (!%p8895_p3), %s8371_s24, 8192  }
 0x949   : > { %9557 = vsyncadd (!%p8895_p3), %s8371_s24, 4294959104  ;;  %p21_p4 = scmp.ge.s32.totalorder %s9649_s8, 4   ;;  %s12469_s26 = smov %s9564_s27 }
 0x94a   : > { %s12470_s27 = smov %s9568_s28  ;;  %s12471_s28 = smov %s9660_s11 }
 0x94b   : > { %s12472_s29 = smov %s9649_s8  ;;  %23 = sbr.rel (!%p21_p4) target bundleno = 7 (0x7), region = 102 }
 0x952   :  { %8376 = vsyncpa [#allocation4], 1 }
 0x953   :  { %8378 = vsyncpa [#allocation4 + $0x1], 1 }
 0x954   :  { %8379 = vsyncpa [#allocation5], 1 }
 0x955   :  { %8381 = vsyncpa [#allocation5 + $0x1], 1 }

</bundles_post_ra>
